<compile_context>
chip_gen: v6e
topology: v6e:2x2x1
jax: 0.10.0
libtpu: 0.0.40
codegen_flags: <defaults>
</compile_context>

<pallas_src>
import jax
import jax.numpy as jnp
from jax.experimental import pallas as pl
from jax.experimental.pallas import tpu as pltpu

# ---- small, forward-consistent hyperparameters -----------------------------
VOCAB = 512      # vocab_size (module default 30522, shrunk for the demo)
D = 128          # hidden_size / d_model (module default)
NHEAD = 4        # nhead (module default)
DHEAD = D // NHEAD
LAYERS = 2       # num_encoder_layers == num_decoder_layers
FFN = 256        # dim_feedforward (PyTorch default 2048, shrunk for demo)
SEQ = 8
BATCH = 2
LN_EPS = 1e-5
SCALE = 1.0 / (DHEAD ** 0.5)
MM_DTYPE = jnp.bfloat16   # matmul operand dtype (f32 accumulation)

# Fixed flat ordering of all weight/bias operands passed to the fused kernel.
PARAM_ORDER = (
    # encoder layers (stacked along leading LAYERS axis)
    "enc_wqkv", "enc_bqkv", "enc_wo", "enc_bo",
    "enc_ln1_g", "enc_ln1_b",
    "enc_w1", "enc_b1", "enc_w2", "enc_b2",
    "enc_ln2_g", "enc_ln2_b",
    # decoder layers (stacked along leading LAYERS axis)
    "dec_sa_wqkv", "dec_sa_bqkv", "dec_sa_wo", "dec_sa_bo",
    "dec_ln1_g", "dec_ln1_b",
    "dec_ca_wq", "dec_ca_bq", "dec_ca_wkv", "dec_ca_bkv",
    "dec_ca_wo", "dec_ca_bo",
    "dec_ln2_g", "dec_ln2_b",
    "dec_w1", "dec_b1", "dec_w2", "dec_b2",
    "dec_ln3_g", "dec_ln3_b",
    # final norms + output head
    "enc_norm_g", "enc_norm_b", "dec_norm_g", "dec_norm_b",
    "fc_w", "fc_b",
)


# ======================= in-kernel helper math (values) =====================
def _linear(x, w, b, relu=False):
    """y = x @ w + b with bf16 operands, f32 accumulation."""
    y = jnp.dot(x.astype(MM_DTYPE), w.astype(MM_DTYPE),
                preferred_element_type=jnp.float32) + b
    if relu:
        y = jnp.maximum(y, 0.0)
    return y


def _ln(x, g, b):
    """LayerNorm over the last dim, f32 statistics."""
    mu = jnp.mean(x, axis=-1, keepdims=True)
    var = jnp.mean(jnp.square(x - mu), axis=-1, keepdims=True)
    return (x - mu) * jax.lax.rsqrt(var + LN_EPS) * g + b


def _attn_core(q, k, v):
    """softmax(q k^T / sqrt(dh)) v per (batch, head).

    q/k/v: (B*S, D) f32, batch-major rows. Static row/lane slices (no
    transposes of the activation) keep everything lane-resident in VMEM.
    """
    rows = []
    for b in range(BATCH):
        r = b * SEQ
        heads = []
        for h in range(NHEAD):
            c = h * DHEAD
            qh = q[r:r + SEQ, c:c + DHEAD].astype(MM_DTYPE)
            kh = k[r:r + SEQ, c:c + DHEAD].astype(MM_DTYPE)
            vh = v[r:r + SEQ, c:c + DHEAD].astype(MM_DTYPE)
            # q @ k^T without materializing a transpose.
            s = jax.lax.dot_general(
                qh, kh, (((1,), (1,)), ((), ())),
                preferred_element_type=jnp.float32) * SCALE          # (S, S)
            s = s - jnp.max(s, axis=-1, keepdims=True)
            e = jnp.exp(s)
            inv = pl.reciprocal(jnp.sum(e, axis=-1, keepdims=True), approx=True)
            p = (e * inv).astype(MM_DTYPE)
            heads.append(jnp.dot(p, vh, preferred_element_type=jnp.float32))
        rows.append(jnp.concatenate(heads, axis=-1))                  # (S, D)
    return jnp.concatenate(rows, axis=0)                              # (B*S, D)


def _encoder_layer(x, p, l):
    qkv = _linear(x, p["enc_wqkv"][l], p["enc_bqkv"][l])              # (BS, 3D)
    ctx = _attn_core(qkv[:, :D], qkv[:, D:2 * D], qkv[:, 2 * D:])
    attn = _linear(ctx, p["enc_wo"][l], p["enc_bo"][l])
    x = _ln(x + attn, p["enc_ln1_g"][l], p["enc_ln1_b"][l])
    h = _linear(x, p["enc_w1"][l], p["enc_b1"][l], relu=True)
    h = _linear(h, p["enc_w2"][l], p["enc_b2"][l])
    return _ln(x + h, p["enc_ln2_g"][l], p["enc_ln2_b"][l])


def _decoder_layer(x, mem, p, l):
    # self-attention (fused QKV)
    qkv = _linear(x, p["dec_sa_wqkv"][l], p["dec_sa_bqkv"][l])
    ctx = _attn_core(qkv[:, :D], qkv[:, D:2 * D], qkv[:, 2 * D:])
    sa = _linear(ctx, p["dec_sa_wo"][l], p["dec_sa_bo"][l])
    x = _ln(x + sa, p["dec_ln1_g"][l], p["dec_ln1_b"][l])
    # cross-attention (fused KV over encoder memory)
    q = _linear(x, p["dec_ca_wq"][l], p["dec_ca_bq"][l])
    kv = _linear(mem, p["dec_ca_wkv"][l], p["dec_ca_bkv"][l])
    ctx = _attn_core(q, kv[:, :D], kv[:, D:])
    ca = _linear(ctx, p["dec_ca_wo"][l], p["dec_ca_bo"][l])
    x = _ln(x + ca, p["dec_ln2_g"][l], p["dec_ln2_b"][l])
    # feed-forward
    h = _linear(x, p["dec_w1"][l], p["dec_b1"][l], relu=True)
    h = _linear(h, p["dec_w2"][l], p["dec_b2"][l])
    return _ln(x + h, p["dec_ln3_g"][l], p["dec_ln3_b"][l])


# =========================== the fused Pallas kernel ========================
def _fused_transformer_kernel(x_ref, *refs):
    if len(refs) != len(PARAM_ORDER) + 1:
        raise ValueError("kernel operand count mismatch")
    out_ref = refs[-1]
    p = dict(zip(PARAM_ORDER, refs[:-1]))

    x = x_ref[...]                                           # (B*S, D) f32

    # encoder stack + final encoder LayerNorm
    mem = x
    for l in range(LAYERS):
        mem = _encoder_layer(mem, p, l)
    mem = _ln(mem, p["enc_norm_g"][...], p["enc_norm_b"][...])

    # decoder stack (tgt = same embeddings, no masks) + final decoder LN
    y = x
    for l in range(LAYERS):
        y = _decoder_layer(y, mem, p, l)
    y = _ln(y, p["dec_norm_g"][...], p["dec_norm_b"][...])

    # last token of each batch block, lane-dense (B, D)
    last = jnp.concatenate(
        [y[(b + 1) * SEQ - 1:(b + 1) * SEQ, :] for b in range(BATCH)], axis=0)

    # final fc + softmax (output lane-dense: VOCAB multiple of 128)
    logits = jnp.dot(last.astype(MM_DTYPE), p["fc_w"][...],
                     preferred_element_type=jnp.float32) + p["fc_b"][...]
    m = jnp.max(logits, axis=-1, keepdims=True)
    e = jnp.exp(logits - m)
    inv = 1.0 / jnp.sum(e, axis=-1, keepdims=True)           # exact: 1 div + bcast mul
    out_ref[...] = (e * inv).astype(out_ref.dtype)


def toy_transformer_forward(params, input_ids):
    """input_ids: (B, S) int32 -> (B, VOCAB) f32 probabilities."""
    B, S = input_ids.shape
    # Embedding gather stays in XLA (tiny here; at full vocab keep it out of
    # the kernel anyway). Batch-major flat layout (B*S, D).
    emb = jnp.take(params["embedding"], input_ids, axis=0)   # (B, S, D) f32
    x = emb.reshape(B * S, D).astype(jnp.float32)

    flat = [params[k] for k in PARAM_ORDER]
    n_in = 1 + len(flat)
    vmem_spec = pl.BlockSpec(memory_space=pltpu.MemorySpace.VMEM)
    return pl.pallas_call(
        _fused_transformer_kernel,
        out_shape=jax.ShapeDtypeStruct((B, VOCAB), jnp.float32),
        in_specs=[vmem_spec] * n_in,
        out_specs=vmem_spec,
    )(x, *flat)


# =========================== pure-JAX reference ============================
def _reference_forward(params, input_ids):
    B, S = input_ids.shape
    p = params
    x = jnp.take(p["embedding"], input_ids, axis=0).reshape(B * S, D)
    x = x.astype(jnp.float32)

    def lin(x, w, b, relu=False):
        y = jnp.dot(x.astype(MM_DTYPE), w.astype(MM_DTYPE),
                    preferred_element_type=jnp.float32) + b
        return jnp.maximum(y, 0.0) if relu else y

    def ln(x, g, b):
        mu = jnp.mean(x, -1, keepdims=True)
        var = jnp.mean((x - mu) ** 2, -1, keepdims=True)
        return (x - mu) * jax.lax.rsqrt(var + LN_EPS) * g + b

    def attn(q, k, v):
        qh = q.reshape(B, S, NHEAD, DHEAD)
        kh = k.reshape(B, S, NHEAD, DHEAD)
        vh = v.reshape(B, S, NHEAD, DHEAD)
        s = jnp.einsum("bqhd,bkhd->bhqk", qh, kh) * SCALE
        pr = jax.nn.softmax(s, axis=-1)
        o = jnp.einsum("bhqk,bkhd->bqhd", pr, vh)
        return o.reshape(B * S, D)

    mem = x
    for l in range(LAYERS):
        qkv = lin(mem, p["enc_wqkv"][l], p["enc_bqkv"][l])
        a = attn(qkv[:, :D], qkv[:, D:2 * D], qkv[:, 2 * D:])
        mem = ln(mem + lin(a, p["enc_wo"][l], p["enc_bo"][l]),
                 p["enc_ln1_g"][l], p["enc_ln1_b"][l])
        h = lin(lin(mem, p["enc_w1"][l], p["enc_b1"][l], True),
                p["enc_w2"][l], p["enc_b2"][l])
        mem = ln(mem + h, p["enc_ln2_g"][l], p["enc_ln2_b"][l])
    mem = ln(mem, p["enc_norm_g"], p["enc_norm_b"])

    y = x
    for l in range(LAYERS):
        qkv = lin(y, p["dec_sa_wqkv"][l], p["dec_sa_bqkv"][l])
        a = attn(qkv[:, :D], qkv[:, D:2 * D], qkv[:, 2 * D:])
        y = ln(y + lin(a, p["dec_sa_wo"][l], p["dec_sa_bo"][l]),
               p["dec_ln1_g"][l], p["dec_ln1_b"][l])
        q = lin(y, p["dec_ca_wq"][l], p["dec_ca_bq"][l])
        kv = lin(mem, p["dec_ca_wkv"][l], p["dec_ca_bkv"][l])
        a = attn(q, kv[:, :D], kv[:, D:])
        y = ln(y + lin(a, p["dec_ca_wo"][l], p["dec_ca_bo"][l]),
               p["dec_ln2_g"][l], p["dec_ln2_b"][l])
        h = lin(lin(y, p["dec_w1"][l], p["dec_b1"][l], True),
                p["dec_w2"][l], p["dec_b2"][l])
        y = ln(y + h, p["dec_ln3_g"][l], p["dec_ln3_b"][l])
    y = ln(y, p["dec_norm_g"], p["dec_norm_b"])

    last = y.reshape(B, S, D)[:, -1, :]
    logits = jnp.dot(last.astype(MM_DTYPE), p["fc_w"].astype(MM_DTYPE),
                     preferred_element_type=jnp.float32) + p["fc_b"]
    return jax.nn.softmax(logits, axis=-1)


# =========================== deterministic init =============================
def init_params(key):
    keys = iter(jax.random.split(key, 128))

    def w(shape, scale=0.02, dtype=MM_DTYPE):
        return (scale * jax.random.normal(next(keys), shape,
                                          jnp.float32)).astype(dtype)

    def bias(shape):
        return w(shape, scale=0.02, dtype=jnp.float32)

    def zeros(shape):
        return jnp.zeros(shape, jnp.float32)

    def ones(shape):
        return jnp.ones(shape, jnp.float32)

    L = LAYERS
    params = dict(
        embedding=w((VOCAB, D), scale=1.0, dtype=jnp.float32),
        # encoder (stacked over layers)
        enc_wqkv=w((L, D, 3 * D)), enc_bqkv=bias((L, 1, 3 * D)),
        enc_wo=w((L, D, D)), enc_bo=bias((L, 1, D)),
        enc_ln1_g=ones((L, 1, D)), enc_ln1_b=zeros((L, 1, D)),
        enc_w1=w((L, D, FFN)), enc_b1=bias((L, 1, FFN)),
        enc_w2=w((L, FFN, D)), enc_b2=bias((L, 1, D)),
        enc_ln2_g=ones((L, 1, D)), enc_ln2_b=zeros((L, 1, D)),
        # decoder (stacked over layers)
        dec_sa_wqkv=w((L, D, 3 * D)), dec_sa_bqkv=bias((L, 1, 3 * D)),
        dec_sa_wo=w((L, D, D)), dec_sa_bo=bias((L, 1, D)),
        dec_ln1_g=ones((L, 1, D)), dec_ln1_b=zeros((L, 1, D)),
        dec_ca_wq=w((L, D, D)), dec_ca_bq=bias((L, 1, D)),
        dec_ca_wkv=w((L, D, 2 * D)), dec_ca_bkv=bias((L, 1, 2 * D)),
        dec_ca_wo=w((L, D, D)), dec_ca_bo=bias((L, 1, D)),
        dec_ln2_g=ones((L, 1, D)), dec_ln2_b=zeros((L, 1, D)),
        dec_w1=w((L, D, FFN)), dec_b1=bias((L, 1, FFN)),
        dec_w2=w((L, FFN, D)), dec_b2=bias((L, 1, D)),
        dec_ln3_g=ones((L, 1, D)), dec_ln3_b=zeros((L, 1, D)),
        # final norms + head
        enc_norm_g=ones((1, D)), enc_norm_b=zeros((1, D)),
        dec_norm_g=ones((1, D)), dec_norm_b=zeros((1, D)),
        fc_w=w((D, VOCAB)), fc_b=bias((1, VOCAB)),
    )
    assert all(k in params for k in PARAM_ORDER)
    return params


# ================================ main =======================================
if __name__ == "__main__":
    root = jax.random.PRNGKey(0)
    pkey, ikey = jax.random.split(root)
    params = init_params(pkey)
    input_ids = jax.random.randint(ikey, (BATCH, SEQ), 0, VOCAB,
                                   dtype=jnp.int32)

    fwd = jax.jit(toy_transformer_forward)
    probs = jax.block_until_ready(fwd(params, input_ids))

    assert probs.shape == (BATCH, VOCAB), probs.shape
    assert probs.dtype == jnp.float32
    row_sums = jnp.sum(probs, axis=-1)
    assert bool(jnp.all(jnp.abs(row_sums - 1.0) < 1e-3)), row_sums

    # sanity check against a pure-JAX reference of the same math
    ref = _reference_forward(params, input_ids)
    assert bool(jnp.allclose(probs, ref, atol=2e-3, rtol=5e-2)), \
        float(jnp.max(jnp.abs(probs - ref)))

    print("KERNEL_OK")
</pallas_src>

<mosaic_0001>
module attributes {stable_mosaic.version = 11 : i64} {
  func.func @_fused_transformer_kernel(%arg0: memref<16x128xf32, #tpu.memory_space<vmem>>, %arg1: memref<2x128x384xbf16, #tpu.memory_space<vmem>>, %arg2: memref<2x1x384xf32, #tpu.memory_space<vmem>>, %arg3: memref<2x128x128xbf16, #tpu.memory_space<vmem>>, %arg4: memref<2x1x128xf32, #tpu.memory_space<vmem>>, %arg5: memref<2x1x128xf32, #tpu.memory_space<vmem>>, %arg6: memref<2x1x128xf32, #tpu.memory_space<vmem>>, %arg7: memref<2x128x256xbf16, #tpu.memory_space<vmem>>, %arg8: memref<2x1x256xf32, #tpu.memory_space<vmem>>, %arg9: memref<2x256x128xbf16, #tpu.memory_space<vmem>>, %arg10: memref<2x1x128xf32, #tpu.memory_space<vmem>>, %arg11: memref<2x1x128xf32, #tpu.memory_space<vmem>>, %arg12: memref<2x1x128xf32, #tpu.memory_space<vmem>>, %arg13: memref<2x128x384xbf16, #tpu.memory_space<vmem>>, %arg14: memref<2x1x384xf32, #tpu.memory_space<vmem>>, %arg15: memref<2x128x128xbf16, #tpu.memory_space<vmem>>, %arg16: memref<2x1x128xf32, #tpu.memory_space<vmem>>, %arg17: memref<2x1x128xf32, #tpu.memory_space<vmem>>, %arg18: memref<2x1x128xf32, #tpu.memory_space<vmem>>, %arg19: memref<2x128x128xbf16, #tpu.memory_space<vmem>>, %arg20: memref<2x1x128xf32, #tpu.memory_space<vmem>>, %arg21: memref<2x128x256xbf16, #tpu.memory_space<vmem>>, %arg22: memref<2x1x256xf32, #tpu.memory_space<vmem>>, %arg23: memref<2x128x128xbf16, #tpu.memory_space<vmem>>, %arg24: memref<2x1x128xf32, #tpu.memory_space<vmem>>, %arg25: memref<2x1x128xf32, #tpu.memory_space<vmem>>, %arg26: memref<2x1x128xf32, #tpu.memory_space<vmem>>, %arg27: memref<2x128x256xbf16, #tpu.memory_space<vmem>>, %arg28: memref<2x1x256xf32, #tpu.memory_space<vmem>>, %arg29: memref<2x256x128xbf16, #tpu.memory_space<vmem>>, %arg30: memref<2x1x128xf32, #tpu.memory_space<vmem>>, %arg31: memref<2x1x128xf32, #tpu.memory_space<vmem>>, %arg32: memref<2x1x128xf32, #tpu.memory_space<vmem>>, %arg33: memref<1x128xf32, #tpu.memory_space<vmem>>, %arg34: memref<1x128xf32, #tpu.memory_space<vmem>>, %arg35: memref<1x128xf32, #tpu.memory_space<vmem>>, %arg36: memref<1x128xf32, #tpu.memory_space<vmem>>, %arg37: memref<128x512xbf16, #tpu.memory_space<vmem>>, %arg38: memref<1x512xf32, #tpu.memory_space<vmem>>, %arg39: memref<2x512xf32, #tpu.memory_space<vmem>>) attributes {dimension_semantics = [], scalar_prefetch = 0 : i64, scratch_operands = 0 : i64, tpu.core_type = #tpu.core_type<tc>} {
    %c0 = arith.constant 0 : index
    %c0_0 = arith.constant 0 : index
    %0 = vector.load %arg0[%c0, %c0_0] : memref<16x128xf32, #tpu.memory_space<vmem>>, vector<16x128xf32>
    %c0_1 = arith.constant 0 : index
    %c0_2 = arith.constant 0 : index
    %c0_3 = arith.constant 0 : index
    %1 = vector.load %arg1[%c0_1, %c0_2, %c0_3] : memref<2x128x384xbf16, #tpu.memory_space<vmem>>, vector<1x128x384xbf16>
    %2 = vector.shape_cast %1 : vector<1x128x384xbf16> to vector<128x384xbf16>
    %c0_4 = arith.constant 0 : index
    %c0_5 = arith.constant 0 : index
    %c0_6 = arith.constant 0 : index
    %3 = vector.load %arg2[%c0_4, %c0_5, %c0_6] : memref<2x1x384xf32, #tpu.memory_space<vmem>>, vector<1x1x384xf32>
    %4 = vector.shape_cast %3 : vector<1x1x384xf32> to vector<1x384xf32>
    %5 = arith.truncf %0 : vector<16x128xf32> to vector<16x128xbf16>
    %cst = arith.constant dense<0.000000e+00> : vector<16x384xf32>
    %6 = tpu.matmul %5, %2, %cst {dimension_numbers = #tpu.dot_dimension_numbers<[1], [0], [0], [1], [0, 0, 1, 1], [], []>} : vector<16x128xbf16>, vector<128x384xbf16>, vector<16x384xf32> -> vector<16x384xf32>
    %7 = vector.broadcast %4 : vector<1x384xf32> to vector<16x384xf32>
    %8 = arith.addf %6, %7 : vector<16x384xf32>
    %9 = vector.extract_strided_slice %8 {offsets = [0, 0], sizes = [16, 128], strides = [1, 1]} : vector<16x384xf32> to vector<16x128xf32>
    %10 = vector.extract_strided_slice %8 {offsets = [0, 128], sizes = [16, 128], strides = [1, 1]} : vector<16x384xf32> to vector<16x128xf32>
    %11 = vector.extract_strided_slice %8 {offsets = [0, 256], sizes = [16, 128], strides = [1, 1]} : vector<16x384xf32> to vector<16x128xf32>
    %12 = vector.extract_strided_slice %9 {offsets = [0, 0], sizes = [8, 32], strides = [1, 1]} : vector<16x128xf32> to vector<8x32xf32>
    %13 = arith.truncf %12 : vector<8x32xf32> to vector<8x32xbf16>
    %14 = vector.extract_strided_slice %10 {offsets = [0, 0], sizes = [8, 32], strides = [1, 1]} : vector<16x128xf32> to vector<8x32xf32>
    %15 = arith.truncf %14 : vector<8x32xf32> to vector<8x32xbf16>
    %16 = vector.extract_strided_slice %11 {offsets = [0, 0], sizes = [8, 32], strides = [1, 1]} : vector<16x128xf32> to vector<8x32xf32>
    %17 = arith.truncf %16 : vector<8x32xf32> to vector<8x32xbf16>
    %cst_7 = arith.constant dense<0.000000e+00> : vector<8x8xf32>
    %18 = tpu.matmul %13, %15, %cst_7 {dimension_numbers = #tpu.dot_dimension_numbers<[1], [1], [0], [0], [0, 0, 1, 0], [], []>} : vector<8x32xbf16>, vector<8x32xbf16>, vector<8x8xf32> -> vector<8x8xf32>
    %cst_8 = arith.constant 0.176776692 : f32
    %19 = vector.broadcast %cst_8 : f32 to vector<8x8xf32>
    %20 = arith.mulf %18, %19 : vector<8x8xf32>
    %cst_9 = arith.constant dense<0xFF800000> : vector<8xf32>
    %21 = vector.multi_reduction <maximumf>, %20, %cst_9 [1] : vector<8x8xf32> to vector<8xf32>
    %22 = vector.shape_cast %21 : vector<8xf32> to vector<8x1xf32>
    %23 = vector.broadcast %22 : vector<8x1xf32> to vector<8x8xf32>
    %24 = arith.subf %20, %23 : vector<8x8xf32>
    %25 = math.exp %24 : vector<8x8xf32>
    %cst_10 = arith.constant dense<0.000000e+00> : vector<8xf32>
    %26 = vector.multi_reduction <add>, %25, %cst_10 [1] : vector<8x8xf32> to vector<8xf32>
    %27 = vector.shape_cast %26 : vector<8xf32> to vector<8x1xf32>
    %28 = tpu.reciprocal %27 {approx = true} : vector<8x1xf32> -> vector<8x1xf32>
    %29 = vector.broadcast %28 : vector<8x1xf32> to vector<8x8xf32>
    %30 = arith.mulf %25, %29 : vector<8x8xf32>
    %31 = arith.truncf %30 : vector<8x8xf32> to vector<8x8xbf16>
    %cst_11 = arith.constant dense<0.000000e+00> : vector<8x32xf32>
    %32 = tpu.matmul %31, %17, %cst_11 {dimension_numbers = #tpu.dot_dimension_numbers<[1], [0], [0], [1], [0, 0, 1, 1], [], []>} : vector<8x8xbf16>, vector<8x32xbf16>, vector<8x32xf32> -> vector<8x32xf32>
    %33 = vector.extract_strided_slice %9 {offsets = [0, 32], sizes = [8, 32], strides = [1, 1]} : vector<16x128xf32> to vector<8x32xf32>
    %34 = arith.truncf %33 : vector<8x32xf32> to vector<8x32xbf16>
    %35 = vector.extract_strided_slice %10 {offsets = [0, 32], sizes = [8, 32], strides = [1, 1]} : vector<16x128xf32> to vector<8x32xf32>
    %36 = arith.truncf %35 : vector<8x32xf32> to vector<8x32xbf16>
    %37 = vector.extract_strided_slice %11 {offsets = [0, 32], sizes = [8, 32], strides = [1, 1]} : vector<16x128xf32> to vector<8x32xf32>
    %38 = arith.truncf %37 : vector<8x32xf32> to vector<8x32xbf16>
    %cst_12 = arith.constant dense<0.000000e+00> : vector<8x8xf32>
    %39 = tpu.matmul %34, %36, %cst_12 {dimension_numbers = #tpu.dot_dimension_numbers<[1], [1], [0], [0], [0, 0, 1, 0], [], []>} : vector<8x32xbf16>, vector<8x32xbf16>, vector<8x8xf32> -> vector<8x8xf32>
    %cst_13 = arith.constant 0.176776692 : f32
    %40 = vector.broadcast %cst_13 : f32 to vector<8x8xf32>
    %41 = arith.mulf %39, %40 : vector<8x8xf32>
    %cst_14 = arith.constant dense<0xFF800000> : vector<8xf32>
    %42 = vector.multi_reduction <maximumf>, %41, %cst_14 [1] : vector<8x8xf32> to vector<8xf32>
    %43 = vector.shape_cast %42 : vector<8xf32> to vector<8x1xf32>
    %44 = vector.broadcast %43 : vector<8x1xf32> to vector<8x8xf32>
    %45 = arith.subf %41, %44 : vector<8x8xf32>
    %46 = math.exp %45 : vector<8x8xf32>
    %cst_15 = arith.constant dense<0.000000e+00> : vector<8xf32>
    %47 = vector.multi_reduction <add>, %46, %cst_15 [1] : vector<8x8xf32> to vector<8xf32>
    %48 = vector.shape_cast %47 : vector<8xf32> to vector<8x1xf32>
    %49 = tpu.reciprocal %48 {approx = true} : vector<8x1xf32> -> vector<8x1xf32>
    %50 = vector.broadcast %49 : vector<8x1xf32> to vector<8x8xf32>
    %51 = arith.mulf %46, %50 : vector<8x8xf32>
    %52 = arith.truncf %51 : vector<8x8xf32> to vector<8x8xbf16>
    %cst_16 = arith.constant dense<0.000000e+00> : vector<8x32xf32>
    %53 = tpu.matmul %52, %38, %cst_16 {dimension_numbers = #tpu.dot_dimension_numbers<[1], [0], [0], [1], [0, 0, 1, 1], [], []>} : vector<8x8xbf16>, vector<8x32xbf16>, vector<8x32xf32> -> vector<8x32xf32>
    %54 = vector.extract_strided_slice %9 {offsets = [0, 64], sizes = [8, 32], strides = [1, 1]} : vector<16x128xf32> to vector<8x32xf32>
    %55 = arith.truncf %54 : vector<8x32xf32> to vector<8x32xbf16>
    %56 = vector.extract_strided_slice %10 {offsets = [0, 64], sizes = [8, 32], strides = [1, 1]} : vector<16x128xf32> to vector<8x32xf32>
    %57 = arith.truncf %56 : vector<8x32xf32> to vector<8x32xbf16>
    %58 = vector.extract_strided_slice %11 {offsets = [0, 64], sizes = [8, 32], strides = [1, 1]} : vector<16x128xf32> to vector<8x32xf32>
    %59 = arith.truncf %58 : vector<8x32xf32> to vector<8x32xbf16>
    %cst_17 = arith.constant dense<0.000000e+00> : vector<8x8xf32>
    %60 = tpu.matmul %55, %57, %cst_17 {dimension_numbers = #tpu.dot_dimension_numbers<[1], [1], [0], [0], [0, 0, 1, 0], [], []>} : vector<8x32xbf16>, vector<8x32xbf16>, vector<8x8xf32> -> vector<8x8xf32>
    %cst_18 = arith.constant 0.176776692 : f32
    %61 = vector.broadcast %cst_18 : f32 to vector<8x8xf32>
    %62 = arith.mulf %60, %61 : vector<8x8xf32>
    %cst_19 = arith.constant dense<0xFF800000> : vector<8xf32>
    %63 = vector.multi_reduction <maximumf>, %62, %cst_19 [1] : vector<8x8xf32> to vector<8xf32>
    %64 = vector.shape_cast %63 : vector<8xf32> to vector<8x1xf32>
    %65 = vector.broadcast %64 : vector<8x1xf32> to vector<8x8xf32>
    %66 = arith.subf %62, %65 : vector<8x8xf32>
    %67 = math.exp %66 : vector<8x8xf32>
    %cst_20 = arith.constant dense<0.000000e+00> : vector<8xf32>
    %68 = vector.multi_reduction <add>, %67, %cst_20 [1] : vector<8x8xf32> to vector<8xf32>
    %69 = vector.shape_cast %68 : vector<8xf32> to vector<8x1xf32>
    %70 = tpu.reciprocal %69 {approx = true} : vector<8x1xf32> -> vector<8x1xf32>
    %71 = vector.broadcast %70 : vector<8x1xf32> to vector<8x8xf32>
    %72 = arith.mulf %67, %71 : vector<8x8xf32>
    %73 = arith.truncf %72 : vector<8x8xf32> to vector<8x8xbf16>
    %cst_21 = arith.constant dense<0.000000e+00> : vector<8x32xf32>
    %74 = tpu.matmul %73, %59, %cst_21 {dimension_numbers = #tpu.dot_dimension_numbers<[1], [0], [0], [1], [0, 0, 1, 1], [], []>} : vector<8x8xbf16>, vector<8x32xbf16>, vector<8x32xf32> -> vector<8x32xf32>
    %75 = vector.extract_strided_slice %9 {offsets = [0, 96], sizes = [8, 32], strides = [1, 1]} : vector<16x128xf32> to vector<8x32xf32>
    %76 = arith.truncf %75 : vector<8x32xf32> to vector<8x32xbf16>
    %77 = vector.extract_strided_slice %10 {offsets = [0, 96], sizes = [8, 32], strides = [1, 1]} : vector<16x128xf32> to vector<8x32xf32>
    %78 = arith.truncf %77 : vector<8x32xf32> to vector<8x32xbf16>
    %79 = vector.extract_strided_slice %11 {offsets = [0, 96], sizes = [8, 32], strides = [1, 1]} : vector<16x128xf32> to vector<8x32xf32>
    %80 = arith.truncf %79 : vector<8x32xf32> to vector<8x32xbf16>
    %cst_22 = arith.constant dense<0.000000e+00> : vector<8x8xf32>
    %81 = tpu.matmul %76, %78, %cst_22 {dimension_numbers = #tpu.dot_dimension_numbers<[1], [1], [0], [0], [0, 0, 1, 0], [], []>} : vector<8x32xbf16>, vector<8x32xbf16>, vector<8x8xf32> -> vector<8x8xf32>
    %cst_23 = arith.constant 0.176776692 : f32
    %82 = vector.broadcast %cst_23 : f32 to vector<8x8xf32>
    %83 = arith.mulf %81, %82 : vector<8x8xf32>
    %cst_24 = arith.constant dense<0xFF800000> : vector<8xf32>
    %84 = vector.multi_reduction <maximumf>, %83, %cst_24 [1] : vector<8x8xf32> to vector<8xf32>
    %85 = vector.shape_cast %84 : vector<8xf32> to vector<8x1xf32>
    %86 = vector.broadcast %85 : vector<8x1xf32> to vector<8x8xf32>
    %87 = arith.subf %83, %86 : vector<8x8xf32>
    %88 = math.exp %87 : vector<8x8xf32>
    %cst_25 = arith.constant dense<0.000000e+00> : vector<8xf32>
    %89 = vector.multi_reduction <add>, %88, %cst_25 [1] : vector<8x8xf32> to vector<8xf32>
    %90 = vector.shape_cast %89 : vector<8xf32> to vector<8x1xf32>
    %91 = tpu.reciprocal %90 {approx = true} : vector<8x1xf32> -> vector<8x1xf32>
    %92 = vector.broadcast %91 : vector<8x1xf32> to vector<8x8xf32>
    %93 = arith.mulf %88, %92 : vector<8x8xf32>
    %94 = arith.truncf %93 : vector<8x8xf32> to vector<8x8xbf16>
    %cst_26 = arith.constant dense<0.000000e+00> : vector<8x32xf32>
    %95 = tpu.matmul %94, %80, %cst_26 {dimension_numbers = #tpu.dot_dimension_numbers<[1], [0], [0], [1], [0, 0, 1, 1], [], []>} : vector<8x8xbf16>, vector<8x32xbf16>, vector<8x32xf32> -> vector<8x32xf32>
    %96 = tpu.concatenate %32, %53, %74, %95 in 1 : vector<8x32xf32>, vector<8x32xf32>, vector<8x32xf32>, vector<8x32xf32> -> vector<8x128xf32>
    %97 = vector.extract_strided_slice %9 {offsets = [8, 0], sizes = [8, 32], strides = [1, 1]} : vector<16x128xf32> to vector<8x32xf32>
    %98 = arith.truncf %97 : vector<8x32xf32> to vector<8x32xbf16>
    %99 = vector.extract_strided_slice %10 {offsets = [8, 0], sizes = [8, 32], strides = [1, 1]} : vector<16x128xf32> to vector<8x32xf32>
    %100 = arith.truncf %99 : vector<8x32xf32> to vector<8x32xbf16>
    %101 = vector.extract_strided_slice %11 {offsets = [8, 0], sizes = [8, 32], strides = [1, 1]} : vector<16x128xf32> to vector<8x32xf32>
    %102 = arith.truncf %101 : vector<8x32xf32> to vector<8x32xbf16>
    %cst_27 = arith.constant dense<0.000000e+00> : vector<8x8xf32>
    %103 = tpu.matmul %98, %100, %cst_27 {dimension_numbers = #tpu.dot_dimension_numbers<[1], [1], [0], [0], [0, 0, 1, 0], [], []>} : vector<8x32xbf16>, vector<8x32xbf16>, vector<8x8xf32> -> vector<8x8xf32>
    %cst_28 = arith.constant 0.176776692 : f32
    %104 = vector.broadcast %cst_28 : f32 to vector<8x8xf32>
    %105 = arith.mulf %103, %104 : vector<8x8xf32>
    %cst_29 = arith.constant dense<0xFF800000> : vector<8xf32>
    %106 = vector.multi_reduction <maximumf>, %105, %cst_29 [1] : vector<8x8xf32> to vector<8xf32>
    %107 = vector.shape_cast %106 : vector<8xf32> to vector<8x1xf32>
    %108 = vector.broadcast %107 : vector<8x1xf32> to vector<8x8xf32>
    %109 = arith.subf %105, %108 : vector<8x8xf32>
    %110 = math.exp %109 : vector<8x8xf32>
    %cst_30 = arith.constant dense<0.000000e+00> : vector<8xf32>
    %111 = vector.multi_reduction <add>, %110, %cst_30 [1] : vector<8x8xf32> to vector<8xf32>
    %112 = vector.shape_cast %111 : vector<8xf32> to vector<8x1xf32>
    %113 = tpu.reciprocal %112 {approx = true} : vector<8x1xf32> -> vector<8x1xf32>
    %114 = vector.broadcast %113 : vector<8x1xf32> to vector<8x8xf32>
    %115 = arith.mulf %110, %114 : vector<8x8xf32>
    %116 = arith.truncf %115 : vector<8x8xf32> to vector<8x8xbf16>
    %cst_31 = arith.constant dense<0.000000e+00> : vector<8x32xf32>
    %117 = tpu.matmul %116, %102, %cst_31 {dimension_numbers = #tpu.dot_dimension_numbers<[1], [0], [0], [1], [0, 0, 1, 1], [], []>} : vector<8x8xbf16>, vector<8x32xbf16>, vector<8x32xf32> -> vector<8x32xf32>
    %118 = vector.extract_strided_slice %9 {offsets = [8, 32], sizes = [8, 32], strides = [1, 1]} : vector<16x128xf32> to vector<8x32xf32>
    %119 = arith.truncf %118 : vector<8x32xf32> to vector<8x32xbf16>
    %120 = vector.extract_strided_slice %10 {offsets = [8, 32], sizes = [8, 32], strides = [1, 1]} : vector<16x128xf32> to vector<8x32xf32>
    %121 = arith.truncf %120 : vector<8x32xf32> to vector<8x32xbf16>
    %122 = vector.extract_strided_slice %11 {offsets = [8, 32], sizes = [8, 32], strides = [1, 1]} : vector<16x128xf32> to vector<8x32xf32>
    %123 = arith.truncf %122 : vector<8x32xf32> to vector<8x32xbf16>
    %cst_32 = arith.constant dense<0.000000e+00> : vector<8x8xf32>
    %124 = tpu.matmul %119, %121, %cst_32 {dimension_numbers = #tpu.dot_dimension_numbers<[1], [1], [0], [0], [0, 0, 1, 0], [], []>} : vector<8x32xbf16>, vector<8x32xbf16>, vector<8x8xf32> -> vector<8x8xf32>
    %cst_33 = arith.constant 0.176776692 : f32
    %125 = vector.broadcast %cst_33 : f32 to vector<8x8xf32>
    %126 = arith.mulf %124, %125 : vector<8x8xf32>
    %cst_34 = arith.constant dense<0xFF800000> : vector<8xf32>
    %127 = vector.multi_reduction <maximumf>, %126, %cst_34 [1] : vector<8x8xf32> to vector<8xf32>
    %128 = vector.shape_cast %127 : vector<8xf32> to vector<8x1xf32>
    %129 = vector.broadcast %128 : vector<8x1xf32> to vector<8x8xf32>
    %130 = arith.subf %126, %129 : vector<8x8xf32>
    %131 = math.exp %130 : vector<8x8xf32>
    %cst_35 = arith.constant dense<0.000000e+00> : vector<8xf32>
    %132 = vector.multi_reduction <add>, %131, %cst_35 [1] : vector<8x8xf32> to vector<8xf32>
    %133 = vector.shape_cast %132 : vector<8xf32> to vector<8x1xf32>
    %134 = tpu.reciprocal %133 {approx = true} : vector<8x1xf32> -> vector<8x1xf32>
    %135 = vector.broadcast %134 : vector<8x1xf32> to vector<8x8xf32>
    %136 = arith.mulf %131, %135 : vector<8x8xf32>
    %137 = arith.truncf %136 : vector<8x8xf32> to vector<8x8xbf16>
    %cst_36 = arith.constant dense<0.000000e+00> : vector<8x32xf32>
    %138 = tpu.matmul %137, %123, %cst_36 {dimension_numbers = #tpu.dot_dimension_numbers<[1], [0], [0], [1], [0, 0, 1, 1], [], []>} : vector<8x8xbf16>, vector<8x32xbf16>, vector<8x32xf32> -> vector<8x32xf32>
    %139 = vector.extract_strided_slice %9 {offsets = [8, 64], sizes = [8, 32], strides = [1, 1]} : vector<16x128xf32> to vector<8x32xf32>
    %140 = arith.truncf %139 : vector<8x32xf32> to vector<8x32xbf16>
    %141 = vector.extract_strided_slice %10 {offsets = [8, 64], sizes = [8, 32], strides = [1, 1]} : vector<16x128xf32> to vector<8x32xf32>
    %142 = arith.truncf %141 : vector<8x32xf32> to vector<8x32xbf16>
    %143 = vector.extract_strided_slice %11 {offsets = [8, 64], sizes = [8, 32], strides = [1, 1]} : vector<16x128xf32> to vector<8x32xf32>
    %144 = arith.truncf %143 : vector<8x32xf32> to vector<8x32xbf16>
    %cst_37 = arith.constant dense<0.000000e+00> : vector<8x8xf32>
    %145 = tpu.matmul %140, %142, %cst_37 {dimension_numbers = #tpu.dot_dimension_numbers<[1], [1], [0], [0], [0, 0, 1, 0], [], []>} : vector<8x32xbf16>, vector<8x32xbf16>, vector<8x8xf32> -> vector<8x8xf32>
    %cst_38 = arith.constant 0.176776692 : f32
    %146 = vector.broadcast %cst_38 : f32 to vector<8x8xf32>
    %147 = arith.mulf %145, %146 : vector<8x8xf32>
    %cst_39 = arith.constant dense<0xFF800000> : vector<8xf32>
    %148 = vector.multi_reduction <maximumf>, %147, %cst_39 [1] : vector<8x8xf32> to vector<8xf32>
    %149 = vector.shape_cast %148 : vector<8xf32> to vector<8x1xf32>
    %150 = vector.broadcast %149 : vector<8x1xf32> to vector<8x8xf32>
    %151 = arith.subf %147, %150 : vector<8x8xf32>
    %152 = math.exp %151 : vector<8x8xf32>
    %cst_40 = arith.constant dense<0.000000e+00> : vector<8xf32>
    %153 = vector.multi_reduction <add>, %152, %cst_40 [1] : vector<8x8xf32> to vector<8xf32>
    %154 = vector.shape_cast %153 : vector<8xf32> to vector<8x1xf32>
    %155 = tpu.reciprocal %154 {approx = true} : vector<8x1xf32> -> vector<8x1xf32>
    %156 = vector.broadcast %155 : vector<8x1xf32> to vector<8x8xf32>
    %157 = arith.mulf %152, %156 : vector<8x8xf32>
    %158 = arith.truncf %157 : vector<8x8xf32> to vector<8x8xbf16>
    %cst_41 = arith.constant dense<0.000000e+00> : vector<8x32xf32>
    %159 = tpu.matmul %158, %144, %cst_41 {dimension_numbers = #tpu.dot_dimension_numbers<[1], [0], [0], [1], [0, 0, 1, 1], [], []>} : vector<8x8xbf16>, vector<8x32xbf16>, vector<8x32xf32> -> vector<8x32xf32>
    %160 = vector.extract_strided_slice %9 {offsets = [8, 96], sizes = [8, 32], strides = [1, 1]} : vector<16x128xf32> to vector<8x32xf32>
    %161 = arith.truncf %160 : vector<8x32xf32> to vector<8x32xbf16>
    %162 = vector.extract_strided_slice %10 {offsets = [8, 96], sizes = [8, 32], strides = [1, 1]} : vector<16x128xf32> to vector<8x32xf32>
    %163 = arith.truncf %162 : vector<8x32xf32> to vector<8x32xbf16>
    %164 = vector.extract_strided_slice %11 {offsets = [8, 96], sizes = [8, 32], strides = [1, 1]} : vector<16x128xf32> to vector<8x32xf32>
    %165 = arith.truncf %164 : vector<8x32xf32> to vector<8x32xbf16>
    %cst_42 = arith.constant dense<0.000000e+00> : vector<8x8xf32>
    %166 = tpu.matmul %161, %163, %cst_42 {dimension_numbers = #tpu.dot_dimension_numbers<[1], [1], [0], [0], [0, 0, 1, 0], [], []>} : vector<8x32xbf16>, vector<8x32xbf16>, vector<8x8xf32> -> vector<8x8xf32>
    %cst_43 = arith.constant 0.176776692 : f32
    %167 = vector.broadcast %cst_43 : f32 to vector<8x8xf32>
    %168 = arith.mulf %166, %167 : vector<8x8xf32>
    %cst_44 = arith.constant dense<0xFF800000> : vector<8xf32>
    %169 = vector.multi_reduction <maximumf>, %168, %cst_44 [1] : vector<8x8xf32> to vector<8xf32>
    %170 = vector.shape_cast %169 : vector<8xf32> to vector<8x1xf32>
    %171 = vector.broadcast %170 : vector<8x1xf32> to vector<8x8xf32>
    %172 = arith.subf %168, %171 : vector<8x8xf32>
    %173 = math.exp %172 : vector<8x8xf32>
    %cst_45 = arith.constant dense<0.000000e+00> : vector<8xf32>
    %174 = vector.multi_reduction <add>, %173, %cst_45 [1] : vector<8x8xf32> to vector<8xf32>
    %175 = vector.shape_cast %174 : vector<8xf32> to vector<8x1xf32>
    %176 = tpu.reciprocal %175 {approx = true} : vector<8x1xf32> -> vector<8x1xf32>
    %177 = vector.broadcast %176 : vector<8x1xf32> to vector<8x8xf32>
    %178 = arith.mulf %173, %177 : vector<8x8xf32>
    %179 = arith.truncf %178 : vector<8x8xf32> to vector<8x8xbf16>
    %cst_46 = arith.constant dense<0.000000e+00> : vector<8x32xf32>
    %180 = tpu.matmul %179, %165, %cst_46 {dimension_numbers = #tpu.dot_dimension_numbers<[1], [0], [0], [1], [0, 0, 1, 1], [], []>} : vector<8x8xbf16>, vector<8x32xbf16>, vector<8x32xf32> -> vector<8x32xf32>
    %181 = tpu.concatenate %117, %138, %159, %180 in 1 : vector<8x32xf32>, vector<8x32xf32>, vector<8x32xf32>, vector<8x32xf32> -> vector<8x128xf32>
    %182 = tpu.concatenate %96, %181 in 0 : vector<8x128xf32>, vector<8x128xf32> -> vector<16x128xf32>
    %c0_47 = arith.constant 0 : index
    %c0_48 = arith.constant 0 : index
    %c0_49 = arith.constant 0 : index
    %183 = vector.load %arg3[%c0_47, %c0_48, %c0_49] : memref<2x128x128xbf16, #tpu.memory_space<vmem>>, vector<1x128x128xbf16>
    %184 = vector.shape_cast %183 : vector<1x128x128xbf16> to vector<128x128xbf16>
    %c0_50 = arith.constant 0 : index
    %c0_51 = arith.constant 0 : index
    %c0_52 = arith.constant 0 : index
    %185 = vector.load %arg4[%c0_50, %c0_51, %c0_52] : memref<2x1x128xf32, #tpu.memory_space<vmem>>, vector<1x1x128xf32>
    %186 = vector.shape_cast %185 : vector<1x1x128xf32> to vector<1x128xf32>
    %187 = arith.truncf %182 : vector<16x128xf32> to vector<16x128xbf16>
    %cst_53 = arith.constant dense<0.000000e+00> : vector<16x128xf32>
    %188 = tpu.matmul %187, %184, %cst_53 {dimension_numbers = #tpu.dot_dimension_numbers<[1], [0], [0], [1], [0, 0, 1, 1], [], []>} : vector<16x128xbf16>, vector<128x128xbf16>, vector<16x128xf32> -> vector<16x128xf32>
    %189 = vector.broadcast %186 : vector<1x128xf32> to vector<16x128xf32>
    %190 = arith.addf %188, %189 : vector<16x128xf32>
    %191 = arith.addf %0, %190 : vector<16x128xf32>
    %c0_54 = arith.constant 0 : index
    %c0_55 = arith.constant 0 : index
    %c0_56 = arith.constant 0 : index
    %192 = vector.load %arg5[%c0_54, %c0_55, %c0_56] : memref<2x1x128xf32, #tpu.memory_space<vmem>>, vector<1x1x128xf32>
    %193 = vector.shape_cast %192 : vector<1x1x128xf32> to vector<1x128xf32>
    %c0_57 = arith.constant 0 : index
    %c0_58 = arith.constant 0 : index
    %c0_59 = arith.constant 0 : index
    %194 = vector.load %arg6[%c0_57, %c0_58, %c0_59] : memref<2x1x128xf32, #tpu.memory_space<vmem>>, vector<1x1x128xf32>
    %195 = vector.shape_cast %194 : vector<1x1x128xf32> to vector<1x128xf32>
    %cst_60 = arith.constant dense<0.000000e+00> : vector<16xf32>
    %196 = vector.multi_reduction <add>, %191, %cst_60 [1] : vector<16x128xf32> to vector<16xf32>
    %197 = vector.shape_cast %196 : vector<16xf32> to vector<16x1xf32>
    %cst_61 = arith.constant 1.280000e+02 : f32
    %198 = vector.broadcast %cst_61 : f32 to vector<16x1xf32>
    %199 = arith.divf %197, %198 : vector<16x1xf32>
    %200 = vector.broadcast %199 : vector<16x1xf32> to vector<16x128xf32>
    %201 = arith.subf %191, %200 : vector<16x128xf32>
    %202 = arith.mulf %201, %201 : vector<16x128xf32>
    %cst_62 = arith.constant dense<0.000000e+00> : vector<16xf32>
    %203 = vector.multi_reduction <add>, %202, %cst_62 [1] : vector<16x128xf32> to vector<16xf32>
    %204 = vector.shape_cast %203 : vector<16xf32> to vector<16x1xf32>
    %cst_63 = arith.constant 1.280000e+02 : f32
    %205 = vector.broadcast %cst_63 : f32 to vector<16x1xf32>
    %206 = arith.divf %204, %205 : vector<16x1xf32>
    %207 = vector.broadcast %199 : vector<16x1xf32> to vector<16x128xf32>
    %208 = arith.subf %191, %207 : vector<16x128xf32>
    %cst_64 = arith.constant 9.99999974E-6 : f32
    %209 = vector.broadcast %cst_64 : f32 to vector<16x1xf32>
    %210 = arith.addf %206, %209 : vector<16x1xf32>
    %211 = math.rsqrt %210 : vector<16x1xf32>
    %212 = vector.broadcast %211 : vector<16x1xf32> to vector<16x128xf32>
    %213 = arith.mulf %208, %212 : vector<16x128xf32>
    %214 = vector.broadcast %193 : vector<1x128xf32> to vector<16x128xf32>
    %215 = arith.mulf %213, %214 : vector<16x128xf32>
    %216 = vector.broadcast %195 : vector<1x128xf32> to vector<16x128xf32>
    %217 = arith.addf %215, %216 : vector<16x128xf32>
    %c0_65 = arith.constant 0 : index
    %c0_66 = arith.constant 0 : index
    %c0_67 = arith.constant 0 : index
    %218 = vector.load %arg7[%c0_65, %c0_66, %c0_67] : memref<2x128x256xbf16, #tpu.memory_space<vmem>>, vector<1x128x256xbf16>
    %219 = vector.shape_cast %218 : vector<1x128x256xbf16> to vector<128x256xbf16>
    %c0_68 = arith.constant 0 : index
    %c0_69 = arith.constant 0 : index
    %c0_70 = arith.constant 0 : index
    %220 = vector.load %arg8[%c0_68, %c0_69, %c0_70] : memref<2x1x256xf32, #tpu.memory_space<vmem>>, vector<1x1x256xf32>
    %221 = vector.shape_cast %220 : vector<1x1x256xf32> to vector<1x256xf32>
    %222 = arith.truncf %217 : vector<16x128xf32> to vector<16x128xbf16>
    %cst_71 = arith.constant dense<0.000000e+00> : vector<16x256xf32>
    %223 = tpu.matmul %222, %219, %cst_71 {dimension_numbers = #tpu.dot_dimension_numbers<[1], [0], [0], [1], [0, 0, 1, 1], [], []>} : vector<16x128xbf16>, vector<128x256xbf16>, vector<16x256xf32> -> vector<16x256xf32>
    %224 = vector.broadcast %221 : vector<1x256xf32> to vector<16x256xf32>
    %225 = arith.addf %223, %224 : vector<16x256xf32>
    %cst_72 = arith.constant 0.000000e+00 : f32
    %226 = vector.broadcast %cst_72 : f32 to vector<16x256xf32>
    %227 = arith.maximumf %225, %226 : vector<16x256xf32>
    %c0_73 = arith.constant 0 : index
    %c0_74 = arith.constant 0 : index
    %c0_75 = arith.constant 0 : index
    %228 = vector.load %arg9[%c0_73, %c0_74, %c0_75] : memref<2x256x128xbf16, #tpu.memory_space<vmem>>, vector<1x256x128xbf16>
    %229 = vector.shape_cast %228 : vector<1x256x128xbf16> to vector<256x128xbf16>
    %c0_76 = arith.constant 0 : index
    %c0_77 = arith.constant 0 : index
    %c0_78 = arith.constant 0 : index
    %230 = vector.load %arg10[%c0_76, %c0_77, %c0_78] : memref<2x1x128xf32, #tpu.memory_space<vmem>>, vector<1x1x128xf32>
    %231 = vector.shape_cast %230 : vector<1x1x128xf32> to vector<1x128xf32>
    %232 = arith.truncf %227 : vector<16x256xf32> to vector<16x256xbf16>
    %cst_79 = arith.constant dense<0.000000e+00> : vector<16x128xf32>
    %233 = tpu.matmul %232, %229, %cst_79 {dimension_numbers = #tpu.dot_dimension_numbers<[1], [0], [0], [1], [0, 0, 1, 1], [], []>} : vector<16x256xbf16>, vector<256x128xbf16>, vector<16x128xf32> -> vector<16x128xf32>
    %234 = vector.broadcast %231 : vector<1x128xf32> to vector<16x128xf32>
    %235 = arith.addf %233, %234 : vector<16x128xf32>
    %236 = arith.addf %217, %235 : vector<16x128xf32>
    %c0_80 = arith.constant 0 : index
    %c0_81 = arith.constant 0 : index
    %c0_82 = arith.constant 0 : index
    %237 = vector.load %arg11[%c0_80, %c0_81, %c0_82] : memref<2x1x128xf32, #tpu.memory_space<vmem>>, vector<1x1x128xf32>
    %238 = vector.shape_cast %237 : vector<1x1x128xf32> to vector<1x128xf32>
    %c0_83 = arith.constant 0 : index
    %c0_84 = arith.constant 0 : index
    %c0_85 = arith.constant 0 : index
    %239 = vector.load %arg12[%c0_83, %c0_84, %c0_85] : memref<2x1x128xf32, #tpu.memory_space<vmem>>, vector<1x1x128xf32>
    %240 = vector.shape_cast %239 : vector<1x1x128xf32> to vector<1x128xf32>
    %cst_86 = arith.constant dense<0.000000e+00> : vector<16xf32>
    %241 = vector.multi_reduction <add>, %236, %cst_86 [1] : vector<16x128xf32> to vector<16xf32>
    %242 = vector.shape_cast %241 : vector<16xf32> to vector<16x1xf32>
    %cst_87 = arith.constant 1.280000e+02 : f32
    %243 = vector.broadcast %cst_87 : f32 to vector<16x1xf32>
    %244 = arith.divf %242, %243 : vector<16x1xf32>
    %245 = vector.broadcast %244 : vector<16x1xf32> to vector<16x128xf32>
    %246 = arith.subf %236, %245 : vector<16x128xf32>
    %247 = arith.mulf %246, %246 : vector<16x128xf32>
    %cst_88 = arith.constant dense<0.000000e+00> : vector<16xf32>
    %248 = vector.multi_reduction <add>, %247, %cst_88 [1] : vector<16x128xf32> to vector<16xf32>
    %249 = vector.shape_cast %248 : vector<16xf32> to vector<16x1xf32>
    %cst_89 = arith.constant 1.280000e+02 : f32
    %250 = vector.broadcast %cst_89 : f32 to vector<16x1xf32>
    %251 = arith.divf %249, %250 : vector<16x1xf32>
    %252 = vector.broadcast %244 : vector<16x1xf32> to vector<16x128xf32>
    %253 = arith.subf %236, %252 : vector<16x128xf32>
    %cst_90 = arith.constant 9.99999974E-6 : f32
    %254 = vector.broadcast %cst_90 : f32 to vector<16x1xf32>
    %255 = arith.addf %251, %254 : vector<16x1xf32>
    %256 = math.rsqrt %255 : vector<16x1xf32>
    %257 = vector.broadcast %256 : vector<16x1xf32> to vector<16x128xf32>
    %258 = arith.mulf %253, %257 : vector<16x128xf32>
    %259 = vector.broadcast %238 : vector<1x128xf32> to vector<16x128xf32>
    %260 = arith.mulf %258, %259 : vector<16x128xf32>
    %261 = vector.broadcast %240 : vector<1x128xf32> to vector<16x128xf32>
    %262 = arith.addf %260, %261 : vector<16x128xf32>
    %c1 = arith.constant 1 : index
    %c0_91 = arith.constant 0 : index
    %c0_92 = arith.constant 0 : index
    %263 = vector.load %arg1[%c1, %c0_91, %c0_92] : memref<2x128x384xbf16, #tpu.memory_space<vmem>>, vector<1x128x384xbf16>
    %264 = vector.shape_cast %263 : vector<1x128x384xbf16> to vector<128x384xbf16>
    %c1_93 = arith.constant 1 : index
    %c0_94 = arith.constant 0 : index
    %c0_95 = arith.constant 0 : index
    %265 = vector.load %arg2[%c1_93, %c0_94, %c0_95] : memref<2x1x384xf32, #tpu.memory_space<vmem>>, vector<1x1x384xf32>
    %266 = vector.shape_cast %265 : vector<1x1x384xf32> to vector<1x384xf32>
    %267 = arith.truncf %262 : vector<16x128xf32> to vector<16x128xbf16>
    %cst_96 = arith.constant dense<0.000000e+00> : vector<16x384xf32>
    %268 = tpu.matmul %267, %264, %cst_96 {dimension_numbers = #tpu.dot_dimension_numbers<[1], [0], [0], [1], [0, 0, 1, 1], [], []>} : vector<16x128xbf16>, vector<128x384xbf16>, vector<16x384xf32> -> vector<16x384xf32>
    %269 = vector.broadcast %266 : vector<1x384xf32> to vector<16x384xf32>
    %270 = arith.addf %268, %269 : vector<16x384xf32>
    %271 = vector.extract_strided_slice %270 {offsets = [0, 0], sizes = [16, 128], strides = [1, 1]} : vector<16x384xf32> to vector<16x128xf32>
    %272 = vector.extract_strided_slice %270 {offsets = [0, 128], sizes = [16, 128], strides = [1, 1]} : vector<16x384xf32> to vector<16x128xf32>
    %273 = vector.extract_strided_slice %270 {offsets = [0, 256], sizes = [16, 128], strides = [1, 1]} : vector<16x384xf32> to vector<16x128xf32>
    %274 = vector.extract_strided_slice %271 {offsets = [0, 0], sizes = [8, 32], strides = [1, 1]} : vector<16x128xf32> to vector<8x32xf32>
    %275 = arith.truncf %274 : vector<8x32xf32> to vector<8x32xbf16>
    %276 = vector.extract_strided_slice %272 {offsets = [0, 0], sizes = [8, 32], strides = [1, 1]} : vector<16x128xf32> to vector<8x32xf32>
    %277 = arith.truncf %276 : vector<8x32xf32> to vector<8x32xbf16>
    %278 = vector.extract_strided_slice %273 {offsets = [0, 0], sizes = [8, 32], strides = [1, 1]} : vector<16x128xf32> to vector<8x32xf32>
    %279 = arith.truncf %278 : vector<8x32xf32> to vector<8x32xbf16>
    %cst_97 = arith.constant dense<0.000000e+00> : vector<8x8xf32>
    %280 = tpu.matmul %275, %277, %cst_97 {dimension_numbers = #tpu.dot_dimension_numbers<[1], [1], [0], [0], [0, 0, 1, 0], [], []>} : vector<8x32xbf16>, vector<8x32xbf16>, vector<8x8xf32> -> vector<8x8xf32>
    %cst_98 = arith.constant 0.176776692 : f32
    %281 = vector.broadcast %cst_98 : f32 to vector<8x8xf32>
    %282 = arith.mulf %280, %281 : vector<8x8xf32>
    %cst_99 = arith.constant dense<0xFF800000> : vector<8xf32>
    %283 = vector.multi_reduction <maximumf>, %282, %cst_99 [1] : vector<8x8xf32> to vector<8xf32>
    %284 = vector.shape_cast %283 : vector<8xf32> to vector<8x1xf32>
    %285 = vector.broadcast %284 : vector<8x1xf32> to vector<8x8xf32>
    %286 = arith.subf %282, %285 : vector<8x8xf32>
    %287 = math.exp %286 : vector<8x8xf32>
    %cst_100 = arith.constant dense<0.000000e+00> : vector<8xf32>
    %288 = vector.multi_reduction <add>, %287, %cst_100 [1] : vector<8x8xf32> to vector<8xf32>
    %289 = vector.shape_cast %288 : vector<8xf32> to vector<8x1xf32>
    %290 = tpu.reciprocal %289 {approx = true} : vector<8x1xf32> -> vector<8x1xf32>
    %291 = vector.broadcast %290 : vector<8x1xf32> to vector<8x8xf32>
    %292 = arith.mulf %287, %291 : vector<8x8xf32>
    %293 = arith.truncf %292 : vector<8x8xf32> to vector<8x8xbf16>
    %cst_101 = arith.constant dense<0.000000e+00> : vector<8x32xf32>
    %294 = tpu.matmul %293, %279, %cst_101 {dimension_numbers = #tpu.dot_dimension_numbers<[1], [0], [0], [1], [0, 0, 1, 1], [], []>} : vector<8x8xbf16>, vector<8x32xbf16>, vector<8x32xf32> -> vector<8x32xf32>
    %295 = vector.extract_strided_slice %271 {offsets = [0, 32], sizes = [8, 32], strides = [1, 1]} : vector<16x128xf32> to vector<8x32xf32>
    %296 = arith.truncf %295 : vector<8x32xf32> to vector<8x32xbf16>
    %297 = vector.extract_strided_slice %272 {offsets = [0, 32], sizes = [8, 32], strides = [1, 1]} : vector<16x128xf32> to vector<8x32xf32>
    %298 = arith.truncf %297 : vector<8x32xf32> to vector<8x32xbf16>
    %299 = vector.extract_strided_slice %273 {offsets = [0, 32], sizes = [8, 32], strides = [1, 1]} : vector<16x128xf32> to vector<8x32xf32>
    %300 = arith.truncf %299 : vector<8x32xf32> to vector<8x32xbf16>
    %cst_102 = arith.constant dense<0.000000e+00> : vector<8x8xf32>
    %301 = tpu.matmul %296, %298, %cst_102 {dimension_numbers = #tpu.dot_dimension_numbers<[1], [1], [0], [0], [0, 0, 1, 0], [], []>} : vector<8x32xbf16>, vector<8x32xbf16>, vector<8x8xf32> -> vector<8x8xf32>
    %cst_103 = arith.constant 0.176776692 : f32
    %302 = vector.broadcast %cst_103 : f32 to vector<8x8xf32>
    %303 = arith.mulf %301, %302 : vector<8x8xf32>
    %cst_104 = arith.constant dense<0xFF800000> : vector<8xf32>
    %304 = vector.multi_reduction <maximumf>, %303, %cst_104 [1] : vector<8x8xf32> to vector<8xf32>
    %305 = vector.shape_cast %304 : vector<8xf32> to vector<8x1xf32>
    %306 = vector.broadcast %305 : vector<8x1xf32> to vector<8x8xf32>
    %307 = arith.subf %303, %306 : vector<8x8xf32>
    %308 = math.exp %307 : vector<8x8xf32>
    %cst_105 = arith.constant dense<0.000000e+00> : vector<8xf32>
    %309 = vector.multi_reduction <add>, %308, %cst_105 [1] : vector<8x8xf32> to vector<8xf32>
    %310 = vector.shape_cast %309 : vector<8xf32> to vector<8x1xf32>
    %311 = tpu.reciprocal %310 {approx = true} : vector<8x1xf32> -> vector<8x1xf32>
    %312 = vector.broadcast %311 : vector<8x1xf32> to vector<8x8xf32>
    %313 = arith.mulf %308, %312 : vector<8x8xf32>
    %314 = arith.truncf %313 : vector<8x8xf32> to vector<8x8xbf16>
    %cst_106 = arith.constant dense<0.000000e+00> : vector<8x32xf32>
    %315 = tpu.matmul %314, %300, %cst_106 {dimension_numbers = #tpu.dot_dimension_numbers<[1], [0], [0], [1], [0, 0, 1, 1], [], []>} : vector<8x8xbf16>, vector<8x32xbf16>, vector<8x32xf32> -> vector<8x32xf32>
    %316 = vector.extract_strided_slice %271 {offsets = [0, 64], sizes = [8, 32], strides = [1, 1]} : vector<16x128xf32> to vector<8x32xf32>
    %317 = arith.truncf %316 : vector<8x32xf32> to vector<8x32xbf16>
    %318 = vector.extract_strided_slice %272 {offsets = [0, 64], sizes = [8, 32], strides = [1, 1]} : vector<16x128xf32> to vector<8x32xf32>
    %319 = arith.truncf %318 : vector<8x32xf32> to vector<8x32xbf16>
    %320 = vector.extract_strided_slice %273 {offsets = [0, 64], sizes = [8, 32], strides = [1, 1]} : vector<16x128xf32> to vector<8x32xf32>
    %321 = arith.truncf %320 : vector<8x32xf32> to vector<8x32xbf16>
    %cst_107 = arith.constant dense<0.000000e+00> : vector<8x8xf32>
    %322 = tpu.matmul %317, %319, %cst_107 {dimension_numbers = #tpu.dot_dimension_numbers<[1], [1], [0], [0], [0, 0, 1, 0], [], []>} : vector<8x32xbf16>, vector<8x32xbf16>, vector<8x8xf32> -> vector<8x8xf32>
    %cst_108 = arith.constant 0.176776692 : f32
    %323 = vector.broadcast %cst_108 : f32 to vector<8x8xf32>
    %324 = arith.mulf %322, %323 : vector<8x8xf32>
    %cst_109 = arith.constant dense<0xFF800000> : vector<8xf32>
    %325 = vector.multi_reduction <maximumf>, %324, %cst_109 [1] : vector<8x8xf32> to vector<8xf32>
    %326 = vector.shape_cast %325 : vector<8xf32> to vector<8x1xf32>
    %327 = vector.broadcast %326 : vector<8x1xf32> to vector<8x8xf32>
    %328 = arith.subf %324, %327 : vector<8x8xf32>
    %329 = math.exp %328 : vector<8x8xf32>
    %cst_110 = arith.constant dense<0.000000e+00> : vector<8xf32>
    %330 = vector.multi_reduction <add>, %329, %cst_110 [1] : vector<8x8xf32> to vector<8xf32>
    %331 = vector.shape_cast %330 : vector<8xf32> to vector<8x1xf32>
    %332 = tpu.reciprocal %331 {approx = true} : vector<8x1xf32> -> vector<8x1xf32>
    %333 = vector.broadcast %332 : vector<8x1xf32> to vector<8x8xf32>
    %334 = arith.mulf %329, %333 : vector<8x8xf32>
    %335 = arith.truncf %334 : vector<8x8xf32> to vector<8x8xbf16>
    %cst_111 = arith.constant dense<0.000000e+00> : vector<8x32xf32>
    %336 = tpu.matmul %335, %321, %cst_111 {dimension_numbers = #tpu.dot_dimension_numbers<[1], [0], [0], [1], [0, 0, 1, 1], [], []>} : vector<8x8xbf16>, vector<8x32xbf16>, vector<8x32xf32> -> vector<8x32xf32>
    %337 = vector.extract_strided_slice %271 {offsets = [0, 96], sizes = [8, 32], strides = [1, 1]} : vector<16x128xf32> to vector<8x32xf32>
    %338 = arith.truncf %337 : vector<8x32xf32> to vector<8x32xbf16>
    %339 = vector.extract_strided_slice %272 {offsets = [0, 96], sizes = [8, 32], strides = [1, 1]} : vector<16x128xf32> to vector<8x32xf32>
    %340 = arith.truncf %339 : vector<8x32xf32> to vector<8x32xbf16>
    %341 = vector.extract_strided_slice %273 {offsets = [0, 96], sizes = [8, 32], strides = [1, 1]} : vector<16x128xf32> to vector<8x32xf32>
    %342 = arith.truncf %341 : vector<8x32xf32> to vector<8x32xbf16>
    %cst_112 = arith.constant dense<0.000000e+00> : vector<8x8xf32>
    %343 = tpu.matmul %338, %340, %cst_112 {dimension_numbers = #tpu.dot_dimension_numbers<[1], [1], [0], [0], [0, 0, 1, 0], [], []>} : vector<8x32xbf16>, vector<8x32xbf16>, vector<8x8xf32> -> vector<8x8xf32>
    %cst_113 = arith.constant 0.176776692 : f32
    %344 = vector.broadcast %cst_113 : f32 to vector<8x8xf32>
    %345 = arith.mulf %343, %344 : vector<8x8xf32>
    %cst_114 = arith.constant dense<0xFF800000> : vector<8xf32>
    %346 = vector.multi_reduction <maximumf>, %345, %cst_114 [1] : vector<8x8xf32> to vector<8xf32>
    %347 = vector.shape_cast %346 : vector<8xf32> to vector<8x1xf32>
    %348 = vector.broadcast %347 : vector<8x1xf32> to vector<8x8xf32>
    %349 = arith.subf %345, %348 : vector<8x8xf32>
    %350 = math.exp %349 : vector<8x8xf32>
    %cst_115 = arith.constant dense<0.000000e+00> : vector<8xf32>
    %351 = vector.multi_reduction <add>, %350, %cst_115 [1] : vector<8x8xf32> to vector<8xf32>
    %352 = vector.shape_cast %351 : vector<8xf32> to vector<8x1xf32>
    %353 = tpu.reciprocal %352 {approx = true} : vector<8x1xf32> -> vector<8x1xf32>
    %354 = vector.broadcast %353 : vector<8x1xf32> to vector<8x8xf32>
    %355 = arith.mulf %350, %354 : vector<8x8xf32>
    %356 = arith.truncf %355 : vector<8x8xf32> to vector<8x8xbf16>
    %cst_116 = arith.constant dense<0.000000e+00> : vector<8x32xf32>
    %357 = tpu.matmul %356, %342, %cst_116 {dimension_numbers = #tpu.dot_dimension_numbers<[1], [0], [0], [1], [0, 0, 1, 1], [], []>} : vector<8x8xbf16>, vector<8x32xbf16>, vector<8x32xf32> -> vector<8x32xf32>
    %358 = tpu.concatenate %294, %315, %336, %357 in 1 : vector<8x32xf32>, vector<8x32xf32>, vector<8x32xf32>, vector<8x32xf32> -> vector<8x128xf32>
    %359 = vector.extract_strided_slice %271 {offsets = [8, 0], sizes = [8, 32], strides = [1, 1]} : vector<16x128xf32> to vector<8x32xf32>
    %360 = arith.truncf %359 : vector<8x32xf32> to vector<8x32xbf16>
    %361 = vector.extract_strided_slice %272 {offsets = [8, 0], sizes = [8, 32], strides = [1, 1]} : vector<16x128xf32> to vector<8x32xf32>
    %362 = arith.truncf %361 : vector<8x32xf32> to vector<8x32xbf16>
    %363 = vector.extract_strided_slice %273 {offsets = [8, 0], sizes = [8, 32], strides = [1, 1]} : vector<16x128xf32> to vector<8x32xf32>
    %364 = arith.truncf %363 : vector<8x32xf32> to vector<8x32xbf16>
    %cst_117 = arith.constant dense<0.000000e+00> : vector<8x8xf32>
    %365 = tpu.matmul %360, %362, %cst_117 {dimension_numbers = #tpu.dot_dimension_numbers<[1], [1], [0], [0], [0, 0, 1, 0], [], []>} : vector<8x32xbf16>, vector<8x32xbf16>, vector<8x8xf32> -> vector<8x8xf32>
    %cst_118 = arith.constant 0.176776692 : f32
    %366 = vector.broadcast %cst_118 : f32 to vector<8x8xf32>
    %367 = arith.mulf %365, %366 : vector<8x8xf32>
    %cst_119 = arith.constant dense<0xFF800000> : vector<8xf32>
    %368 = vector.multi_reduction <maximumf>, %367, %cst_119 [1] : vector<8x8xf32> to vector<8xf32>
    %369 = vector.shape_cast %368 : vector<8xf32> to vector<8x1xf32>
    %370 = vector.broadcast %369 : vector<8x1xf32> to vector<8x8xf32>
    %371 = arith.subf %367, %370 : vector<8x8xf32>
    %372 = math.exp %371 : vector<8x8xf32>
    %cst_120 = arith.constant dense<0.000000e+00> : vector<8xf32>
    %373 = vector.multi_reduction <add>, %372, %cst_120 [1] : vector<8x8xf32> to vector<8xf32>
    %374 = vector.shape_cast %373 : vector<8xf32> to vector<8x1xf32>
    %375 = tpu.reciprocal %374 {approx = true} : vector<8x1xf32> -> vector<8x1xf32>
    %376 = vector.broadcast %375 : vector<8x1xf32> to vector<8x8xf32>
    %377 = arith.mulf %372, %376 : vector<8x8xf32>
    %378 = arith.truncf %377 : vector<8x8xf32> to vector<8x8xbf16>
    %cst_121 = arith.constant dense<0.000000e+00> : vector<8x32xf32>
    %379 = tpu.matmul %378, %364, %cst_121 {dimension_numbers = #tpu.dot_dimension_numbers<[1], [0], [0], [1], [0, 0, 1, 1], [], []>} : vector<8x8xbf16>, vector<8x32xbf16>, vector<8x32xf32> -> vector<8x32xf32>
    %380 = vector.extract_strided_slice %271 {offsets = [8, 32], sizes = [8, 32], strides = [1, 1]} : vector<16x128xf32> to vector<8x32xf32>
    %381 = arith.truncf %380 : vector<8x32xf32> to vector<8x32xbf16>
    %382 = vector.extract_strided_slice %272 {offsets = [8, 32], sizes = [8, 32], strides = [1, 1]} : vector<16x128xf32> to vector<8x32xf32>
    %383 = arith.truncf %382 : vector<8x32xf32> to vector<8x32xbf16>
    %384 = vector.extract_strided_slice %273 {offsets = [8, 32], sizes = [8, 32], strides = [1, 1]} : vector<16x128xf32> to vector<8x32xf32>
    %385 = arith.truncf %384 : vector<8x32xf32> to vector<8x32xbf16>
    %cst_122 = arith.constant dense<0.000000e+00> : vector<8x8xf32>
    %386 = tpu.matmul %381, %383, %cst_122 {dimension_numbers = #tpu.dot_dimension_numbers<[1], [1], [0], [0], [0, 0, 1, 0], [], []>} : vector<8x32xbf16>, vector<8x32xbf16>, vector<8x8xf32> -> vector<8x8xf32>
    %cst_123 = arith.constant 0.176776692 : f32
    %387 = vector.broadcast %cst_123 : f32 to vector<8x8xf32>
    %388 = arith.mulf %386, %387 : vector<8x8xf32>
    %cst_124 = arith.constant dense<0xFF800000> : vector<8xf32>
    %389 = vector.multi_reduction <maximumf>, %388, %cst_124 [1] : vector<8x8xf32> to vector<8xf32>
    %390 = vector.shape_cast %389 : vector<8xf32> to vector<8x1xf32>
    %391 = vector.broadcast %390 : vector<8x1xf32> to vector<8x8xf32>
    %392 = arith.subf %388, %391 : vector<8x8xf32>
    %393 = math.exp %392 : vector<8x8xf32>
    %cst_125 = arith.constant dense<0.000000e+00> : vector<8xf32>
    %394 = vector.multi_reduction <add>, %393, %cst_125 [1] : vector<8x8xf32> to vector<8xf32>
    %395 = vector.shape_cast %394 : vector<8xf32> to vector<8x1xf32>
    %396 = tpu.reciprocal %395 {approx = true} : vector<8x1xf32> -> vector<8x1xf32>
    %397 = vector.broadcast %396 : vector<8x1xf32> to vector<8x8xf32>
    %398 = arith.mulf %393, %397 : vector<8x8xf32>
    %399 = arith.truncf %398 : vector<8x8xf32> to vector<8x8xbf16>
    %cst_126 = arith.constant dense<0.000000e+00> : vector<8x32xf32>
    %400 = tpu.matmul %399, %385, %cst_126 {dimension_numbers = #tpu.dot_dimension_numbers<[1], [0], [0], [1], [0, 0, 1, 1], [], []>} : vector<8x8xbf16>, vector<8x32xbf16>, vector<8x32xf32> -> vector<8x32xf32>
    %401 = vector.extract_strided_slice %271 {offsets = [8, 64], sizes = [8, 32], strides = [1, 1]} : vector<16x128xf32> to vector<8x32xf32>
    %402 = arith.truncf %401 : vector<8x32xf32> to vector<8x32xbf16>
    %403 = vector.extract_strided_slice %272 {offsets = [8, 64], sizes = [8, 32], strides = [1, 1]} : vector<16x128xf32> to vector<8x32xf32>
    %404 = arith.truncf %403 : vector<8x32xf32> to vector<8x32xbf16>
    %405 = vector.extract_strided_slice %273 {offsets = [8, 64], sizes = [8, 32], strides = [1, 1]} : vector<16x128xf32> to vector<8x32xf32>
    %406 = arith.truncf %405 : vector<8x32xf32> to vector<8x32xbf16>
    %cst_127 = arith.constant dense<0.000000e+00> : vector<8x8xf32>
    %407 = tpu.matmul %402, %404, %cst_127 {dimension_numbers = #tpu.dot_dimension_numbers<[1], [1], [0], [0], [0, 0, 1, 0], [], []>} : vector<8x32xbf16>, vector<8x32xbf16>, vector<8x8xf32> -> vector<8x8xf32>
    %cst_128 = arith.constant 0.176776692 : f32
    %408 = vector.broadcast %cst_128 : f32 to vector<8x8xf32>
    %409 = arith.mulf %407, %408 : vector<8x8xf32>
    %cst_129 = arith.constant dense<0xFF800000> : vector<8xf32>
    %410 = vector.multi_reduction <maximumf>, %409, %cst_129 [1] : vector<8x8xf32> to vector<8xf32>
    %411 = vector.shape_cast %410 : vector<8xf32> to vector<8x1xf32>
    %412 = vector.broadcast %411 : vector<8x1xf32> to vector<8x8xf32>
    %413 = arith.subf %409, %412 : vector<8x8xf32>
    %414 = math.exp %413 : vector<8x8xf32>
    %cst_130 = arith.constant dense<0.000000e+00> : vector<8xf32>
    %415 = vector.multi_reduction <add>, %414, %cst_130 [1] : vector<8x8xf32> to vector<8xf32>
    %416 = vector.shape_cast %415 : vector<8xf32> to vector<8x1xf32>
    %417 = tpu.reciprocal %416 {approx = true} : vector<8x1xf32> -> vector<8x1xf32>
    %418 = vector.broadcast %417 : vector<8x1xf32> to vector<8x8xf32>
    %419 = arith.mulf %414, %418 : vector<8x8xf32>
    %420 = arith.truncf %419 : vector<8x8xf32> to vector<8x8xbf16>
    %cst_131 = arith.constant dense<0.000000e+00> : vector<8x32xf32>
    %421 = tpu.matmul %420, %406, %cst_131 {dimension_numbers = #tpu.dot_dimension_numbers<[1], [0], [0], [1], [0, 0, 1, 1], [], []>} : vector<8x8xbf16>, vector<8x32xbf16>, vector<8x32xf32> -> vector<8x32xf32>
    %422 = vector.extract_strided_slice %271 {offsets = [8, 96], sizes = [8, 32], strides = [1, 1]} : vector<16x128xf32> to vector<8x32xf32>
    %423 = arith.truncf %422 : vector<8x32xf32> to vector<8x32xbf16>
    %424 = vector.extract_strided_slice %272 {offsets = [8, 96], sizes = [8, 32], strides = [1, 1]} : vector<16x128xf32> to vector<8x32xf32>
    %425 = arith.truncf %424 : vector<8x32xf32> to vector<8x32xbf16>
    %426 = vector.extract_strided_slice %273 {offsets = [8, 96], sizes = [8, 32], strides = [1, 1]} : vector<16x128xf32> to vector<8x32xf32>
    %427 = arith.truncf %426 : vector<8x32xf32> to vector<8x32xbf16>
    %cst_132 = arith.constant dense<0.000000e+00> : vector<8x8xf32>
    %428 = tpu.matmul %423, %425, %cst_132 {dimension_numbers = #tpu.dot_dimension_numbers<[1], [1], [0], [0], [0, 0, 1, 0], [], []>} : vector<8x32xbf16>, vector<8x32xbf16>, vector<8x8xf32> -> vector<8x8xf32>
    %cst_133 = arith.constant 0.176776692 : f32
    %429 = vector.broadcast %cst_133 : f32 to vector<8x8xf32>
    %430 = arith.mulf %428, %429 : vector<8x8xf32>
    %cst_134 = arith.constant dense<0xFF800000> : vector<8xf32>
    %431 = vector.multi_reduction <maximumf>, %430, %cst_134 [1] : vector<8x8xf32> to vector<8xf32>
    %432 = vector.shape_cast %431 : vector<8xf32> to vector<8x1xf32>
    %433 = vector.broadcast %432 : vector<8x1xf32> to vector<8x8xf32>
    %434 = arith.subf %430, %433 : vector<8x8xf32>
    %435 = math.exp %434 : vector<8x8xf32>
    %cst_135 = arith.constant dense<0.000000e+00> : vector<8xf32>
    %436 = vector.multi_reduction <add>, %435, %cst_135 [1] : vector<8x8xf32> to vector<8xf32>
    %437 = vector.shape_cast %436 : vector<8xf32> to vector<8x1xf32>
    %438 = tpu.reciprocal %437 {approx = true} : vector<8x1xf32> -> vector<8x1xf32>
    %439 = vector.broadcast %438 : vector<8x1xf32> to vector<8x8xf32>
    %440 = arith.mulf %435, %439 : vector<8x8xf32>
    %441 = arith.truncf %440 : vector<8x8xf32> to vector<8x8xbf16>
    %cst_136 = arith.constant dense<0.000000e+00> : vector<8x32xf32>
    %442 = tpu.matmul %441, %427, %cst_136 {dimension_numbers = #tpu.dot_dimension_numbers<[1], [0], [0], [1], [0, 0, 1, 1], [], []>} : vector<8x8xbf16>, vector<8x32xbf16>, vector<8x32xf32> -> vector<8x32xf32>
    %443 = tpu.concatenate %379, %400, %421, %442 in 1 : vector<8x32xf32>, vector<8x32xf32>, vector<8x32xf32>, vector<8x32xf32> -> vector<8x128xf32>
    %444 = tpu.concatenate %358, %443 in 0 : vector<8x128xf32>, vector<8x128xf32> -> vector<16x128xf32>
    %c1_137 = arith.constant 1 : index
    %c0_138 = arith.constant 0 : index
    %c0_139 = arith.constant 0 : index
    %445 = vector.load %arg3[%c1_137, %c0_138, %c0_139] : memref<2x128x128xbf16, #tpu.memory_space<vmem>>, vector<1x128x128xbf16>
    %446 = vector.shape_cast %445 : vector<1x128x128xbf16> to vector<128x128xbf16>
    %c1_140 = arith.constant 1 : index
    %c0_141 = arith.constant 0 : index
    %c0_142 = arith.constant 0 : index
    %447 = vector.load %arg4[%c1_140, %c0_141, %c0_142] : memref<2x1x128xf32, #tpu.memory_space<vmem>>, vector<1x1x128xf32>
    %448 = vector.shape_cast %447 : vector<1x1x128xf32> to vector<1x128xf32>
    %449 = arith.truncf %444 : vector<16x128xf32> to vector<16x128xbf16>
    %cst_143 = arith.constant dense<0.000000e+00> : vector<16x128xf32>
    %450 = tpu.matmul %449, %446, %cst_143 {dimension_numbers = #tpu.dot_dimension_numbers<[1], [0], [0], [1], [0, 0, 1, 1], [], []>} : vector<16x128xbf16>, vector<128x128xbf16>, vector<16x128xf32> -> vector<16x128xf32>
    %451 = vector.broadcast %448 : vector<1x128xf32> to vector<16x128xf32>
    %452 = arith.addf %450, %451 : vector<16x128xf32>
    %453 = arith.addf %262, %452 : vector<16x128xf32>
    %c1_144 = arith.constant 1 : index
    %c0_145 = arith.constant 0 : index
    %c0_146 = arith.constant 0 : index
    %454 = vector.load %arg5[%c1_144, %c0_145, %c0_146] : memref<2x1x128xf32, #tpu.memory_space<vmem>>, vector<1x1x128xf32>
    %455 = vector.shape_cast %454 : vector<1x1x128xf32> to vector<1x128xf32>
    %c1_147 = arith.constant 1 : index
    %c0_148 = arith.constant 0 : index
    %c0_149 = arith.constant 0 : index
    %456 = vector.load %arg6[%c1_147, %c0_148, %c0_149] : memref<2x1x128xf32, #tpu.memory_space<vmem>>, vector<1x1x128xf32>
    %457 = vector.shape_cast %456 : vector<1x1x128xf32> to vector<1x128xf32>
    %cst_150 = arith.constant dense<0.000000e+00> : vector<16xf32>
    %458 = vector.multi_reduction <add>, %453, %cst_150 [1] : vector<16x128xf32> to vector<16xf32>
    %459 = vector.shape_cast %458 : vector<16xf32> to vector<16x1xf32>
    %cst_151 = arith.constant 1.280000e+02 : f32
    %460 = vector.broadcast %cst_151 : f32 to vector<16x1xf32>
    %461 = arith.divf %459, %460 : vector<16x1xf32>
    %462 = vector.broadcast %461 : vector<16x1xf32> to vector<16x128xf32>
    %463 = arith.subf %453, %462 : vector<16x128xf32>
    %464 = arith.mulf %463, %463 : vector<16x128xf32>
    %cst_152 = arith.constant dense<0.000000e+00> : vector<16xf32>
    %465 = vector.multi_reduction <add>, %464, %cst_152 [1] : vector<16x128xf32> to vector<16xf32>
    %466 = vector.shape_cast %465 : vector<16xf32> to vector<16x1xf32>
    %cst_153 = arith.constant 1.280000e+02 : f32
    %467 = vector.broadcast %cst_153 : f32 to vector<16x1xf32>
    %468 = arith.divf %466, %467 : vector<16x1xf32>
    %469 = vector.broadcast %461 : vector<16x1xf32> to vector<16x128xf32>
    %470 = arith.subf %453, %469 : vector<16x128xf32>
    %cst_154 = arith.constant 9.99999974E-6 : f32
    %471 = vector.broadcast %cst_154 : f32 to vector<16x1xf32>
    %472 = arith.addf %468, %471 : vector<16x1xf32>
    %473 = math.rsqrt %472 : vector<16x1xf32>
    %474 = vector.broadcast %473 : vector<16x1xf32> to vector<16x128xf32>
    %475 = arith.mulf %470, %474 : vector<16x128xf32>
    %476 = vector.broadcast %455 : vector<1x128xf32> to vector<16x128xf32>
    %477 = arith.mulf %475, %476 : vector<16x128xf32>
    %478 = vector.broadcast %457 : vector<1x128xf32> to vector<16x128xf32>
    %479 = arith.addf %477, %478 : vector<16x128xf32>
    %c1_155 = arith.constant 1 : index
    %c0_156 = arith.constant 0 : index
    %c0_157 = arith.constant 0 : index
    %480 = vector.load %arg7[%c1_155, %c0_156, %c0_157] : memref<2x128x256xbf16, #tpu.memory_space<vmem>>, vector<1x128x256xbf16>
    %481 = vector.shape_cast %480 : vector<1x128x256xbf16> to vector<128x256xbf16>
    %c1_158 = arith.constant 1 : index
    %c0_159 = arith.constant 0 : index
    %c0_160 = arith.constant 0 : index
    %482 = vector.load %arg8[%c1_158, %c0_159, %c0_160] : memref<2x1x256xf32, #tpu.memory_space<vmem>>, vector<1x1x256xf32>
    %483 = vector.shape_cast %482 : vector<1x1x256xf32> to vector<1x256xf32>
    %484 = arith.truncf %479 : vector<16x128xf32> to vector<16x128xbf16>
    %cst_161 = arith.constant dense<0.000000e+00> : vector<16x256xf32>
    %485 = tpu.matmul %484, %481, %cst_161 {dimension_numbers = #tpu.dot_dimension_numbers<[1], [0], [0], [1], [0, 0, 1, 1], [], []>} : vector<16x128xbf16>, vector<128x256xbf16>, vector<16x256xf32> -> vector<16x256xf32>
    %486 = vector.broadcast %483 : vector<1x256xf32> to vector<16x256xf32>
    %487 = arith.addf %485, %486 : vector<16x256xf32>
    %cst_162 = arith.constant 0.000000e+00 : f32
    %488 = vector.broadcast %cst_162 : f32 to vector<16x256xf32>
    %489 = arith.maximumf %487, %488 : vector<16x256xf32>
    %c1_163 = arith.constant 1 : index
    %c0_164 = arith.constant 0 : index
    %c0_165 = arith.constant 0 : index
    %490 = vector.load %arg9[%c1_163, %c0_164, %c0_165] : memref<2x256x128xbf16, #tpu.memory_space<vmem>>, vector<1x256x128xbf16>
    %491 = vector.shape_cast %490 : vector<1x256x128xbf16> to vector<256x128xbf16>
    %c1_166 = arith.constant 1 : index
    %c0_167 = arith.constant 0 : index
    %c0_168 = arith.constant 0 : index
    %492 = vector.load %arg10[%c1_166, %c0_167, %c0_168] : memref<2x1x128xf32, #tpu.memory_space<vmem>>, vector<1x1x128xf32>
    %493 = vector.shape_cast %492 : vector<1x1x128xf32> to vector<1x128xf32>
    %494 = arith.truncf %489 : vector<16x256xf32> to vector<16x256xbf16>
    %cst_169 = arith.constant dense<0.000000e+00> : vector<16x128xf32>
    %495 = tpu.matmul %494, %491, %cst_169 {dimension_numbers = #tpu.dot_dimension_numbers<[1], [0], [0], [1], [0, 0, 1, 1], [], []>} : vector<16x256xbf16>, vector<256x128xbf16>, vector<16x128xf32> -> vector<16x128xf32>
    %496 = vector.broadcast %493 : vector<1x128xf32> to vector<16x128xf32>
    %497 = arith.addf %495, %496 : vector<16x128xf32>
    %498 = arith.addf %479, %497 : vector<16x128xf32>
    %c1_170 = arith.constant 1 : index
    %c0_171 = arith.constant 0 : index
    %c0_172 = arith.constant 0 : index
    %499 = vector.load %arg11[%c1_170, %c0_171, %c0_172] : memref<2x1x128xf32, #tpu.memory_space<vmem>>, vector<1x1x128xf32>
    %500 = vector.shape_cast %499 : vector<1x1x128xf32> to vector<1x128xf32>
    %c1_173 = arith.constant 1 : index
    %c0_174 = arith.constant 0 : index
    %c0_175 = arith.constant 0 : index
    %501 = vector.load %arg12[%c1_173, %c0_174, %c0_175] : memref<2x1x128xf32, #tpu.memory_space<vmem>>, vector<1x1x128xf32>
    %502 = vector.shape_cast %501 : vector<1x1x128xf32> to vector<1x128xf32>
    %cst_176 = arith.constant dense<0.000000e+00> : vector<16xf32>
    %503 = vector.multi_reduction <add>, %498, %cst_176 [1] : vector<16x128xf32> to vector<16xf32>
    %504 = vector.shape_cast %503 : vector<16xf32> to vector<16x1xf32>
    %cst_177 = arith.constant 1.280000e+02 : f32
    %505 = vector.broadcast %cst_177 : f32 to vector<16x1xf32>
    %506 = arith.divf %504, %505 : vector<16x1xf32>
    %507 = vector.broadcast %506 : vector<16x1xf32> to vector<16x128xf32>
    %508 = arith.subf %498, %507 : vector<16x128xf32>
    %509 = arith.mulf %508, %508 : vector<16x128xf32>
    %cst_178 = arith.constant dense<0.000000e+00> : vector<16xf32>
    %510 = vector.multi_reduction <add>, %509, %cst_178 [1] : vector<16x128xf32> to vector<16xf32>
    %511 = vector.shape_cast %510 : vector<16xf32> to vector<16x1xf32>
    %cst_179 = arith.constant 1.280000e+02 : f32
    %512 = vector.broadcast %cst_179 : f32 to vector<16x1xf32>
    %513 = arith.divf %511, %512 : vector<16x1xf32>
    %514 = vector.broadcast %506 : vector<16x1xf32> to vector<16x128xf32>
    %515 = arith.subf %498, %514 : vector<16x128xf32>
    %cst_180 = arith.constant 9.99999974E-6 : f32
    %516 = vector.broadcast %cst_180 : f32 to vector<16x1xf32>
    %517 = arith.addf %513, %516 : vector<16x1xf32>
    %518 = math.rsqrt %517 : vector<16x1xf32>
    %519 = vector.broadcast %518 : vector<16x1xf32> to vector<16x128xf32>
    %520 = arith.mulf %515, %519 : vector<16x128xf32>
    %521 = vector.broadcast %500 : vector<1x128xf32> to vector<16x128xf32>
    %522 = arith.mulf %520, %521 : vector<16x128xf32>
    %523 = vector.broadcast %502 : vector<1x128xf32> to vector<16x128xf32>
    %524 = arith.addf %522, %523 : vector<16x128xf32>
    %c0_181 = arith.constant 0 : index
    %c0_182 = arith.constant 0 : index
    %525 = vector.load %arg33[%c0_181, %c0_182] : memref<1x128xf32, #tpu.memory_space<vmem>>, vector<1x128xf32>
    %c0_183 = arith.constant 0 : index
    %c0_184 = arith.constant 0 : index
    %526 = vector.load %arg34[%c0_183, %c0_184] : memref<1x128xf32, #tpu.memory_space<vmem>>, vector<1x128xf32>
    %cst_185 = arith.constant dense<0.000000e+00> : vector<16xf32>
    %527 = vector.multi_reduction <add>, %524, %cst_185 [1] : vector<16x128xf32> to vector<16xf32>
    %528 = vector.shape_cast %527 : vector<16xf32> to vector<16x1xf32>
    %cst_186 = arith.constant 1.280000e+02 : f32
    %529 = vector.broadcast %cst_186 : f32 to vector<16x1xf32>
    %530 = arith.divf %528, %529 : vector<16x1xf32>
    %531 = vector.broadcast %530 : vector<16x1xf32> to vector<16x128xf32>
    %532 = arith.subf %524, %531 : vector<16x128xf32>
    %533 = arith.mulf %532, %532 : vector<16x128xf32>
    %cst_187 = arith.constant dense<0.000000e+00> : vector<16xf32>
    %534 = vector.multi_reduction <add>, %533, %cst_187 [1] : vector<16x128xf32> to vector<16xf32>
    %535 = vector.shape_cast %534 : vector<16xf32> to vector<16x1xf32>
    %cst_188 = arith.constant 1.280000e+02 : f32
    %536 = vector.broadcast %cst_188 : f32 to vector<16x1xf32>
    %537 = arith.divf %535, %536 : vector<16x1xf32>
    %538 = vector.broadcast %530 : vector<16x1xf32> to vector<16x128xf32>
    %539 = arith.subf %524, %538 : vector<16x128xf32>
    %cst_189 = arith.constant 9.99999974E-6 : f32
    %540 = vector.broadcast %cst_189 : f32 to vector<16x1xf32>
    %541 = arith.addf %537, %540 : vector<16x1xf32>
    %542 = math.rsqrt %541 : vector<16x1xf32>
    %543 = vector.broadcast %542 : vector<16x1xf32> to vector<16x128xf32>
    %544 = arith.mulf %539, %543 : vector<16x128xf32>
    %545 = vector.broadcast %525 : vector<1x128xf32> to vector<16x128xf32>
    %546 = arith.mulf %544, %545 : vector<16x128xf32>
    %547 = vector.broadcast %526 : vector<1x128xf32> to vector<16x128xf32>
    %548 = arith.addf %546, %547 : vector<16x128xf32>
    %c0_190 = arith.constant 0 : index
    %c0_191 = arith.constant 0 : index
    %c0_192 = arith.constant 0 : index
    %549 = vector.load %arg13[%c0_190, %c0_191, %c0_192] : memref<2x128x384xbf16, #tpu.memory_space<vmem>>, vector<1x128x384xbf16>
    %550 = vector.shape_cast %549 : vector<1x128x384xbf16> to vector<128x384xbf16>
    %c0_193 = arith.constant 0 : index
    %c0_194 = arith.constant 0 : index
    %c0_195 = arith.constant 0 : index
    %551 = vector.load %arg14[%c0_193, %c0_194, %c0_195] : memref<2x1x384xf32, #tpu.memory_space<vmem>>, vector<1x1x384xf32>
    %552 = vector.shape_cast %551 : vector<1x1x384xf32> to vector<1x384xf32>
    %553 = arith.truncf %0 : vector<16x128xf32> to vector<16x128xbf16>
    %cst_196 = arith.constant dense<0.000000e+00> : vector<16x384xf32>
    %554 = tpu.matmul %553, %550, %cst_196 {dimension_numbers = #tpu.dot_dimension_numbers<[1], [0], [0], [1], [0, 0, 1, 1], [], []>} : vector<16x128xbf16>, vector<128x384xbf16>, vector<16x384xf32> -> vector<16x384xf32>
    %555 = vector.broadcast %552 : vector<1x384xf32> to vector<16x384xf32>
    %556 = arith.addf %554, %555 : vector<16x384xf32>
    %557 = vector.extract_strided_slice %556 {offsets = [0, 0], sizes = [16, 128], strides = [1, 1]} : vector<16x384xf32> to vector<16x128xf32>
    %558 = vector.extract_strided_slice %556 {offsets = [0, 128], sizes = [16, 128], strides = [1, 1]} : vector<16x384xf32> to vector<16x128xf32>
    %559 = vector.extract_strided_slice %556 {offsets = [0, 256], sizes = [16, 128], strides = [1, 1]} : vector<16x384xf32> to vector<16x128xf32>
    %560 = vector.extract_strided_slice %557 {offsets = [0, 0], sizes = [8, 32], strides = [1, 1]} : vector<16x128xf32> to vector<8x32xf32>
    %561 = arith.truncf %560 : vector<8x32xf32> to vector<8x32xbf16>
    %562 = vector.extract_strided_slice %558 {offsets = [0, 0], sizes = [8, 32], strides = [1, 1]} : vector<16x128xf32> to vector<8x32xf32>
    %563 = arith.truncf %562 : vector<8x32xf32> to vector<8x32xbf16>
    %564 = vector.extract_strided_slice %559 {offsets = [0, 0], sizes = [8, 32], strides = [1, 1]} : vector<16x128xf32> to vector<8x32xf32>
    %565 = arith.truncf %564 : vector<8x32xf32> to vector<8x32xbf16>
    %cst_197 = arith.constant dense<0.000000e+00> : vector<8x8xf32>
    %566 = tpu.matmul %561, %563, %cst_197 {dimension_numbers = #tpu.dot_dimension_numbers<[1], [1], [0], [0], [0, 0, 1, 0], [], []>} : vector<8x32xbf16>, vector<8x32xbf16>, vector<8x8xf32> -> vector<8x8xf32>
    %cst_198 = arith.constant 0.176776692 : f32
    %567 = vector.broadcast %cst_198 : f32 to vector<8x8xf32>
    %568 = arith.mulf %566, %567 : vector<8x8xf32>
    %cst_199 = arith.constant dense<0xFF800000> : vector<8xf32>
    %569 = vector.multi_reduction <maximumf>, %568, %cst_199 [1] : vector<8x8xf32> to vector<8xf32>
    %570 = vector.shape_cast %569 : vector<8xf32> to vector<8x1xf32>
    %571 = vector.broadcast %570 : vector<8x1xf32> to vector<8x8xf32>
    %572 = arith.subf %568, %571 : vector<8x8xf32>
    %573 = math.exp %572 : vector<8x8xf32>
    %cst_200 = arith.constant dense<0.000000e+00> : vector<8xf32>
    %574 = vector.multi_reduction <add>, %573, %cst_200 [1] : vector<8x8xf32> to vector<8xf32>
    %575 = vector.shape_cast %574 : vector<8xf32> to vector<8x1xf32>
    %576 = tpu.reciprocal %575 {approx = true} : vector<8x1xf32> -> vector<8x1xf32>
    %577 = vector.broadcast %576 : vector<8x1xf32> to vector<8x8xf32>
    %578 = arith.mulf %573, %577 : vector<8x8xf32>
    %579 = arith.truncf %578 : vector<8x8xf32> to vector<8x8xbf16>
    %cst_201 = arith.constant dense<0.000000e+00> : vector<8x32xf32>
    %580 = tpu.matmul %579, %565, %cst_201 {dimension_numbers = #tpu.dot_dimension_numbers<[1], [0], [0], [1], [0, 0, 1, 1], [], []>} : vector<8x8xbf16>, vector<8x32xbf16>, vector<8x32xf32> -> vector<8x32xf32>
    %581 = vector.extract_strided_slice %557 {offsets = [0, 32], sizes = [8, 32], strides = [1, 1]} : vector<16x128xf32> to vector<8x32xf32>
    %582 = arith.truncf %581 : vector<8x32xf32> to vector<8x32xbf16>
    %583 = vector.extract_strided_slice %558 {offsets = [0, 32], sizes = [8, 32], strides = [1, 1]} : vector<16x128xf32> to vector<8x32xf32>
    %584 = arith.truncf %583 : vector<8x32xf32> to vector<8x32xbf16>
    %585 = vector.extract_strided_slice %559 {offsets = [0, 32], sizes = [8, 32], strides = [1, 1]} : vector<16x128xf32> to vector<8x32xf32>
    %586 = arith.truncf %585 : vector<8x32xf32> to vector<8x32xbf16>
    %cst_202 = arith.constant dense<0.000000e+00> : vector<8x8xf32>
    %587 = tpu.matmul %582, %584, %cst_202 {dimension_numbers = #tpu.dot_dimension_numbers<[1], [1], [0], [0], [0, 0, 1, 0], [], []>} : vector<8x32xbf16>, vector<8x32xbf16>, vector<8x8xf32> -> vector<8x8xf32>
    %cst_203 = arith.constant 0.176776692 : f32
    %588 = vector.broadcast %cst_203 : f32 to vector<8x8xf32>
    %589 = arith.mulf %587, %588 : vector<8x8xf32>
    %cst_204 = arith.constant dense<0xFF800000> : vector<8xf32>
    %590 = vector.multi_reduction <maximumf>, %589, %cst_204 [1] : vector<8x8xf32> to vector<8xf32>
    %591 = vector.shape_cast %590 : vector<8xf32> to vector<8x1xf32>
    %592 = vector.broadcast %591 : vector<8x1xf32> to vector<8x8xf32>
    %593 = arith.subf %589, %592 : vector<8x8xf32>
    %594 = math.exp %593 : vector<8x8xf32>
    %cst_205 = arith.constant dense<0.000000e+00> : vector<8xf32>
    %595 = vector.multi_reduction <add>, %594, %cst_205 [1] : vector<8x8xf32> to vector<8xf32>
    %596 = vector.shape_cast %595 : vector<8xf32> to vector<8x1xf32>
    %597 = tpu.reciprocal %596 {approx = true} : vector<8x1xf32> -> vector<8x1xf32>
    %598 = vector.broadcast %597 : vector<8x1xf32> to vector<8x8xf32>
    %599 = arith.mulf %594, %598 : vector<8x8xf32>
    %600 = arith.truncf %599 : vector<8x8xf32> to vector<8x8xbf16>
    %cst_206 = arith.constant dense<0.000000e+00> : vector<8x32xf32>
    %601 = tpu.matmul %600, %586, %cst_206 {dimension_numbers = #tpu.dot_dimension_numbers<[1], [0], [0], [1], [0, 0, 1, 1], [], []>} : vector<8x8xbf16>, vector<8x32xbf16>, vector<8x32xf32> -> vector<8x32xf32>
    %602 = vector.extract_strided_slice %557 {offsets = [0, 64], sizes = [8, 32], strides = [1, 1]} : vector<16x128xf32> to vector<8x32xf32>
    %603 = arith.truncf %602 : vector<8x32xf32> to vector<8x32xbf16>
    %604 = vector.extract_strided_slice %558 {offsets = [0, 64], sizes = [8, 32], strides = [1, 1]} : vector<16x128xf32> to vector<8x32xf32>
    %605 = arith.truncf %604 : vector<8x32xf32> to vector<8x32xbf16>
    %606 = vector.extract_strided_slice %559 {offsets = [0, 64], sizes = [8, 32], strides = [1, 1]} : vector<16x128xf32> to vector<8x32xf32>
    %607 = arith.truncf %606 : vector<8x32xf32> to vector<8x32xbf16>
    %cst_207 = arith.constant dense<0.000000e+00> : vector<8x8xf32>
    %608 = tpu.matmul %603, %605, %cst_207 {dimension_numbers = #tpu.dot_dimension_numbers<[1], [1], [0], [0], [0, 0, 1, 0], [], []>} : vector<8x32xbf16>, vector<8x32xbf16>, vector<8x8xf32> -> vector<8x8xf32>
    %cst_208 = arith.constant 0.176776692 : f32
    %609 = vector.broadcast %cst_208 : f32 to vector<8x8xf32>
    %610 = arith.mulf %608, %609 : vector<8x8xf32>
    %cst_209 = arith.constant dense<0xFF800000> : vector<8xf32>
    %611 = vector.multi_reduction <maximumf>, %610, %cst_209 [1] : vector<8x8xf32> to vector<8xf32>
    %612 = vector.shape_cast %611 : vector<8xf32> to vector<8x1xf32>
    %613 = vector.broadcast %612 : vector<8x1xf32> to vector<8x8xf32>
    %614 = arith.subf %610, %613 : vector<8x8xf32>
    %615 = math.exp %614 : vector<8x8xf32>
    %cst_210 = arith.constant dense<0.000000e+00> : vector<8xf32>
    %616 = vector.multi_reduction <add>, %615, %cst_210 [1] : vector<8x8xf32> to vector<8xf32>
    %617 = vector.shape_cast %616 : vector<8xf32> to vector<8x1xf32>
    %618 = tpu.reciprocal %617 {approx = true} : vector<8x1xf32> -> vector<8x1xf32>
    %619 = vector.broadcast %618 : vector<8x1xf32> to vector<8x8xf32>
    %620 = arith.mulf %615, %619 : vector<8x8xf32>
    %621 = arith.truncf %620 : vector<8x8xf32> to vector<8x8xbf16>
    %cst_211 = arith.constant dense<0.000000e+00> : vector<8x32xf32>
    %622 = tpu.matmul %621, %607, %cst_211 {dimension_numbers = #tpu.dot_dimension_numbers<[1], [0], [0], [1], [0, 0, 1, 1], [], []>} : vector<8x8xbf16>, vector<8x32xbf16>, vector<8x32xf32> -> vector<8x32xf32>
    %623 = vector.extract_strided_slice %557 {offsets = [0, 96], sizes = [8, 32], strides = [1, 1]} : vector<16x128xf32> to vector<8x32xf32>
    %624 = arith.truncf %623 : vector<8x32xf32> to vector<8x32xbf16>
    %625 = vector.extract_strided_slice %558 {offsets = [0, 96], sizes = [8, 32], strides = [1, 1]} : vector<16x128xf32> to vector<8x32xf32>
    %626 = arith.truncf %625 : vector<8x32xf32> to vector<8x32xbf16>
    %627 = vector.extract_strided_slice %559 {offsets = [0, 96], sizes = [8, 32], strides = [1, 1]} : vector<16x128xf32> to vector<8x32xf32>
    %628 = arith.truncf %627 : vector<8x32xf32> to vector<8x32xbf16>
    %cst_212 = arith.constant dense<0.000000e+00> : vector<8x8xf32>
    %629 = tpu.matmul %624, %626, %cst_212 {dimension_numbers = #tpu.dot_dimension_numbers<[1], [1], [0], [0], [0, 0, 1, 0], [], []>} : vector<8x32xbf16>, vector<8x32xbf16>, vector<8x8xf32> -> vector<8x8xf32>
    %cst_213 = arith.constant 0.176776692 : f32
    %630 = vector.broadcast %cst_213 : f32 to vector<8x8xf32>
    %631 = arith.mulf %629, %630 : vector<8x8xf32>
    %cst_214 = arith.constant dense<0xFF800000> : vector<8xf32>
    %632 = vector.multi_reduction <maximumf>, %631, %cst_214 [1] : vector<8x8xf32> to vector<8xf32>
    %633 = vector.shape_cast %632 : vector<8xf32> to vector<8x1xf32>
    %634 = vector.broadcast %633 : vector<8x1xf32> to vector<8x8xf32>
    %635 = arith.subf %631, %634 : vector<8x8xf32>
    %636 = math.exp %635 : vector<8x8xf32>
    %cst_215 = arith.constant dense<0.000000e+00> : vector<8xf32>
    %637 = vector.multi_reduction <add>, %636, %cst_215 [1] : vector<8x8xf32> to vector<8xf32>
    %638 = vector.shape_cast %637 : vector<8xf32> to vector<8x1xf32>
    %639 = tpu.reciprocal %638 {approx = true} : vector<8x1xf32> -> vector<8x1xf32>
    %640 = vector.broadcast %639 : vector<8x1xf32> to vector<8x8xf32>
    %641 = arith.mulf %636, %640 : vector<8x8xf32>
    %642 = arith.truncf %641 : vector<8x8xf32> to vector<8x8xbf16>
    %cst_216 = arith.constant dense<0.000000e+00> : vector<8x32xf32>
    %643 = tpu.matmul %642, %628, %cst_216 {dimension_numbers = #tpu.dot_dimension_numbers<[1], [0], [0], [1], [0, 0, 1, 1], [], []>} : vector<8x8xbf16>, vector<8x32xbf16>, vector<8x32xf32> -> vector<8x32xf32>
    %644 = tpu.concatenate %580, %601, %622, %643 in 1 : vector<8x32xf32>, vector<8x32xf32>, vector<8x32xf32>, vector<8x32xf32> -> vector<8x128xf32>
    %645 = vector.extract_strided_slice %557 {offsets = [8, 0], sizes = [8, 32], strides = [1, 1]} : vector<16x128xf32> to vector<8x32xf32>
    %646 = arith.truncf %645 : vector<8x32xf32> to vector<8x32xbf16>
    %647 = vector.extract_strided_slice %558 {offsets = [8, 0], sizes = [8, 32], strides = [1, 1]} : vector<16x128xf32> to vector<8x32xf32>
    %648 = arith.truncf %647 : vector<8x32xf32> to vector<8x32xbf16>
    %649 = vector.extract_strided_slice %559 {offsets = [8, 0], sizes = [8, 32], strides = [1, 1]} : vector<16x128xf32> to vector<8x32xf32>
    %650 = arith.truncf %649 : vector<8x32xf32> to vector<8x32xbf16>
    %cst_217 = arith.constant dense<0.000000e+00> : vector<8x8xf32>
    %651 = tpu.matmul %646, %648, %cst_217 {dimension_numbers = #tpu.dot_dimension_numbers<[1], [1], [0], [0], [0, 0, 1, 0], [], []>} : vector<8x32xbf16>, vector<8x32xbf16>, vector<8x8xf32> -> vector<8x8xf32>
    %cst_218 = arith.constant 0.176776692 : f32
    %652 = vector.broadcast %cst_218 : f32 to vector<8x8xf32>
    %653 = arith.mulf %651, %652 : vector<8x8xf32>
    %cst_219 = arith.constant dense<0xFF800000> : vector<8xf32>
    %654 = vector.multi_reduction <maximumf>, %653, %cst_219 [1] : vector<8x8xf32> to vector<8xf32>
    %655 = vector.shape_cast %654 : vector<8xf32> to vector<8x1xf32>
    %656 = vector.broadcast %655 : vector<8x1xf32> to vector<8x8xf32>
    %657 = arith.subf %653, %656 : vector<8x8xf32>
    %658 = math.exp %657 : vector<8x8xf32>
    %cst_220 = arith.constant dense<0.000000e+00> : vector<8xf32>
    %659 = vector.multi_reduction <add>, %658, %cst_220 [1] : vector<8x8xf32> to vector<8xf32>
    %660 = vector.shape_cast %659 : vector<8xf32> to vector<8x1xf32>
    %661 = tpu.reciprocal %660 {approx = true} : vector<8x1xf32> -> vector<8x1xf32>
    %662 = vector.broadcast %661 : vector<8x1xf32> to vector<8x8xf32>
    %663 = arith.mulf %658, %662 : vector<8x8xf32>
    %664 = arith.truncf %663 : vector<8x8xf32> to vector<8x8xbf16>
    %cst_221 = arith.constant dense<0.000000e+00> : vector<8x32xf32>
    %665 = tpu.matmul %664, %650, %cst_221 {dimension_numbers = #tpu.dot_dimension_numbers<[1], [0], [0], [1], [0, 0, 1, 1], [], []>} : vector<8x8xbf16>, vector<8x32xbf16>, vector<8x32xf32> -> vector<8x32xf32>
    %666 = vector.extract_strided_slice %557 {offsets = [8, 32], sizes = [8, 32], strides = [1, 1]} : vector<16x128xf32> to vector<8x32xf32>
    %667 = arith.truncf %666 : vector<8x32xf32> to vector<8x32xbf16>
    %668 = vector.extract_strided_slice %558 {offsets = [8, 32], sizes = [8, 32], strides = [1, 1]} : vector<16x128xf32> to vector<8x32xf32>
    %669 = arith.truncf %668 : vector<8x32xf32> to vector<8x32xbf16>
    %670 = vector.extract_strided_slice %559 {offsets = [8, 32], sizes = [8, 32], strides = [1, 1]} : vector<16x128xf32> to vector<8x32xf32>
    %671 = arith.truncf %670 : vector<8x32xf32> to vector<8x32xbf16>
    %cst_222 = arith.constant dense<0.000000e+00> : vector<8x8xf32>
    %672 = tpu.matmul %667, %669, %cst_222 {dimension_numbers = #tpu.dot_dimension_numbers<[1], [1], [0], [0], [0, 0, 1, 0], [], []>} : vector<8x32xbf16>, vector<8x32xbf16>, vector<8x8xf32> -> vector<8x8xf32>
    %cst_223 = arith.constant 0.176776692 : f32
    %673 = vector.broadcast %cst_223 : f32 to vector<8x8xf32>
    %674 = arith.mulf %672, %673 : vector<8x8xf32>
    %cst_224 = arith.constant dense<0xFF800000> : vector<8xf32>
    %675 = vector.multi_reduction <maximumf>, %674, %cst_224 [1] : vector<8x8xf32> to vector<8xf32>
    %676 = vector.shape_cast %675 : vector<8xf32> to vector<8x1xf32>
    %677 = vector.broadcast %676 : vector<8x1xf32> to vector<8x8xf32>
    %678 = arith.subf %674, %677 : vector<8x8xf32>
    %679 = math.exp %678 : vector<8x8xf32>
    %cst_225 = arith.constant dense<0.000000e+00> : vector<8xf32>
    %680 = vector.multi_reduction <add>, %679, %cst_225 [1] : vector<8x8xf32> to vector<8xf32>
    %681 = vector.shape_cast %680 : vector<8xf32> to vector<8x1xf32>
    %682 = tpu.reciprocal %681 {approx = true} : vector<8x1xf32> -> vector<8x1xf32>
    %683 = vector.broadcast %682 : vector<8x1xf32> to vector<8x8xf32>
    %684 = arith.mulf %679, %683 : vector<8x8xf32>
    %685 = arith.truncf %684 : vector<8x8xf32> to vector<8x8xbf16>
    %cst_226 = arith.constant dense<0.000000e+00> : vector<8x32xf32>
    %686 = tpu.matmul %685, %671, %cst_226 {dimension_numbers = #tpu.dot_dimension_numbers<[1], [0], [0], [1], [0, 0, 1, 1], [], []>} : vector<8x8xbf16>, vector<8x32xbf16>, vector<8x32xf32> -> vector<8x32xf32>
    %687 = vector.extract_strided_slice %557 {offsets = [8, 64], sizes = [8, 32], strides = [1, 1]} : vector<16x128xf32> to vector<8x32xf32>
    %688 = arith.truncf %687 : vector<8x32xf32> to vector<8x32xbf16>
    %689 = vector.extract_strided_slice %558 {offsets = [8, 64], sizes = [8, 32], strides = [1, 1]} : vector<16x128xf32> to vector<8x32xf32>
    %690 = arith.truncf %689 : vector<8x32xf32> to vector<8x32xbf16>
    %691 = vector.extract_strided_slice %559 {offsets = [8, 64], sizes = [8, 32], strides = [1, 1]} : vector<16x128xf32> to vector<8x32xf32>
    %692 = arith.truncf %691 : vector<8x32xf32> to vector<8x32xbf16>
    %cst_227 = arith.constant dense<0.000000e+00> : vector<8x8xf32>
    %693 = tpu.matmul %688, %690, %cst_227 {dimension_numbers = #tpu.dot_dimension_numbers<[1], [1], [0], [0], [0, 0, 1, 0], [], []>} : vector<8x32xbf16>, vector<8x32xbf16>, vector<8x8xf32> -> vector<8x8xf32>
    %cst_228 = arith.constant 0.176776692 : f32
    %694 = vector.broadcast %cst_228 : f32 to vector<8x8xf32>
    %695 = arith.mulf %693, %694 : vector<8x8xf32>
    %cst_229 = arith.constant dense<0xFF800000> : vector<8xf32>
    %696 = vector.multi_reduction <maximumf>, %695, %cst_229 [1] : vector<8x8xf32> to vector<8xf32>
    %697 = vector.shape_cast %696 : vector<8xf32> to vector<8x1xf32>
    %698 = vector.broadcast %697 : vector<8x1xf32> to vector<8x8xf32>
    %699 = arith.subf %695, %698 : vector<8x8xf32>
    %700 = math.exp %699 : vector<8x8xf32>
    %cst_230 = arith.constant dense<0.000000e+00> : vector<8xf32>
    %701 = vector.multi_reduction <add>, %700, %cst_230 [1] : vector<8x8xf32> to vector<8xf32>
    %702 = vector.shape_cast %701 : vector<8xf32> to vector<8x1xf32>
    %703 = tpu.reciprocal %702 {approx = true} : vector<8x1xf32> -> vector<8x1xf32>
    %704 = vector.broadcast %703 : vector<8x1xf32> to vector<8x8xf32>
    %705 = arith.mulf %700, %704 : vector<8x8xf32>
    %706 = arith.truncf %705 : vector<8x8xf32> to vector<8x8xbf16>
    %cst_231 = arith.constant dense<0.000000e+00> : vector<8x32xf32>
    %707 = tpu.matmul %706, %692, %cst_231 {dimension_numbers = #tpu.dot_dimension_numbers<[1], [0], [0], [1], [0, 0, 1, 1], [], []>} : vector<8x8xbf16>, vector<8x32xbf16>, vector<8x32xf32> -> vector<8x32xf32>
    %708 = vector.extract_strided_slice %557 {offsets = [8, 96], sizes = [8, 32], strides = [1, 1]} : vector<16x128xf32> to vector<8x32xf32>
    %709 = arith.truncf %708 : vector<8x32xf32> to vector<8x32xbf16>
    %710 = vector.extract_strided_slice %558 {offsets = [8, 96], sizes = [8, 32], strides = [1, 1]} : vector<16x128xf32> to vector<8x32xf32>
    %711 = arith.truncf %710 : vector<8x32xf32> to vector<8x32xbf16>
    %712 = vector.extract_strided_slice %559 {offsets = [8, 96], sizes = [8, 32], strides = [1, 1]} : vector<16x128xf32> to vector<8x32xf32>
    %713 = arith.truncf %712 : vector<8x32xf32> to vector<8x32xbf16>
    %cst_232 = arith.constant dense<0.000000e+00> : vector<8x8xf32>
    %714 = tpu.matmul %709, %711, %cst_232 {dimension_numbers = #tpu.dot_dimension_numbers<[1], [1], [0], [0], [0, 0, 1, 0], [], []>} : vector<8x32xbf16>, vector<8x32xbf16>, vector<8x8xf32> -> vector<8x8xf32>
    %cst_233 = arith.constant 0.176776692 : f32
    %715 = vector.broadcast %cst_233 : f32 to vector<8x8xf32>
    %716 = arith.mulf %714, %715 : vector<8x8xf32>
    %cst_234 = arith.constant dense<0xFF800000> : vector<8xf32>
    %717 = vector.multi_reduction <maximumf>, %716, %cst_234 [1] : vector<8x8xf32> to vector<8xf32>
    %718 = vector.shape_cast %717 : vector<8xf32> to vector<8x1xf32>
    %719 = vector.broadcast %718 : vector<8x1xf32> to vector<8x8xf32>
    %720 = arith.subf %716, %719 : vector<8x8xf32>
    %721 = math.exp %720 : vector<8x8xf32>
    %cst_235 = arith.constant dense<0.000000e+00> : vector<8xf32>
    %722 = vector.multi_reduction <add>, %721, %cst_235 [1] : vector<8x8xf32> to vector<8xf32>
    %723 = vector.shape_cast %722 : vector<8xf32> to vector<8x1xf32>
    %724 = tpu.reciprocal %723 {approx = true} : vector<8x1xf32> -> vector<8x1xf32>
    %725 = vector.broadcast %724 : vector<8x1xf32> to vector<8x8xf32>
    %726 = arith.mulf %721, %725 : vector<8x8xf32>
    %727 = arith.truncf %726 : vector<8x8xf32> to vector<8x8xbf16>
    %cst_236 = arith.constant dense<0.000000e+00> : vector<8x32xf32>
    %728 = tpu.matmul %727, %713, %cst_236 {dimension_numbers = #tpu.dot_dimension_numbers<[1], [0], [0], [1], [0, 0, 1, 1], [], []>} : vector<8x8xbf16>, vector<8x32xbf16>, vector<8x32xf32> -> vector<8x32xf32>
    %729 = tpu.concatenate %665, %686, %707, %728 in 1 : vector<8x32xf32>, vector<8x32xf32>, vector<8x32xf32>, vector<8x32xf32> -> vector<8x128xf32>
    %730 = tpu.concatenate %644, %729 in 0 : vector<8x128xf32>, vector<8x128xf32> -> vector<16x128xf32>
    %c0_237 = arith.constant 0 : index
    %c0_238 = arith.constant 0 : index
    %c0_239 = arith.constant 0 : index
    %731 = vector.load %arg15[%c0_237, %c0_238, %c0_239] : memref<2x128x128xbf16, #tpu.memory_space<vmem>>, vector<1x128x128xbf16>
    %732 = vector.shape_cast %731 : vector<1x128x128xbf16> to vector<128x128xbf16>
    %c0_240 = arith.constant 0 : index
    %c0_241 = arith.constant 0 : index
    %c0_242 = arith.constant 0 : index
    %733 = vector.load %arg16[%c0_240, %c0_241, %c0_242] : memref<2x1x128xf32, #tpu.memory_space<vmem>>, vector<1x1x128xf32>
    %734 = vector.shape_cast %733 : vector<1x1x128xf32> to vector<1x128xf32>
    %735 = arith.truncf %730 : vector<16x128xf32> to vector<16x128xbf16>
    %cst_243 = arith.constant dense<0.000000e+00> : vector<16x128xf32>
    %736 = tpu.matmul %735, %732, %cst_243 {dimension_numbers = #tpu.dot_dimension_numbers<[1], [0], [0], [1], [0, 0, 1, 1], [], []>} : vector<16x128xbf16>, vector<128x128xbf16>, vector<16x128xf32> -> vector<16x128xf32>
    %737 = vector.broadcast %734 : vector<1x128xf32> to vector<16x128xf32>
    %738 = arith.addf %736, %737 : vector<16x128xf32>
    %739 = arith.addf %0, %738 : vector<16x128xf32>
    %c0_244 = arith.constant 0 : index
    %c0_245 = arith.constant 0 : index
    %c0_246 = arith.constant 0 : index
    %740 = vector.load %arg17[%c0_244, %c0_245, %c0_246] : memref<2x1x128xf32, #tpu.memory_space<vmem>>, vector<1x1x128xf32>
    %741 = vector.shape_cast %740 : vector<1x1x128xf32> to vector<1x128xf32>
    %c0_247 = arith.constant 0 : index
    %c0_248 = arith.constant 0 : index
    %c0_249 = arith.constant 0 : index
    %742 = vector.load %arg18[%c0_247, %c0_248, %c0_249] : memref<2x1x128xf32, #tpu.memory_space<vmem>>, vector<1x1x128xf32>
    %743 = vector.shape_cast %742 : vector<1x1x128xf32> to vector<1x128xf32>
    %cst_250 = arith.constant dense<0.000000e+00> : vector<16xf32>
    %744 = vector.multi_reduction <add>, %739, %cst_250 [1] : vector<16x128xf32> to vector<16xf32>
    %745 = vector.shape_cast %744 : vector<16xf32> to vector<16x1xf32>
    %cst_251 = arith.constant 1.280000e+02 : f32
    %746 = vector.broadcast %cst_251 : f32 to vector<16x1xf32>
    %747 = arith.divf %745, %746 : vector<16x1xf32>
    %748 = vector.broadcast %747 : vector<16x1xf32> to vector<16x128xf32>
    %749 = arith.subf %739, %748 : vector<16x128xf32>
    %750 = arith.mulf %749, %749 : vector<16x128xf32>
    %cst_252 = arith.constant dense<0.000000e+00> : vector<16xf32>
    %751 = vector.multi_reduction <add>, %750, %cst_252 [1] : vector<16x128xf32> to vector<16xf32>
    %752 = vector.shape_cast %751 : vector<16xf32> to vector<16x1xf32>
    %cst_253 = arith.constant 1.280000e+02 : f32
    %753 = vector.broadcast %cst_253 : f32 to vector<16x1xf32>
    %754 = arith.divf %752, %753 : vector<16x1xf32>
    %755 = vector.broadcast %747 : vector<16x1xf32> to vector<16x128xf32>
    %756 = arith.subf %739, %755 : vector<16x128xf32>
    %cst_254 = arith.constant 9.99999974E-6 : f32
    %757 = vector.broadcast %cst_254 : f32 to vector<16x1xf32>
    %758 = arith.addf %754, %757 : vector<16x1xf32>
    %759 = math.rsqrt %758 : vector<16x1xf32>
    %760 = vector.broadcast %759 : vector<16x1xf32> to vector<16x128xf32>
    %761 = arith.mulf %756, %760 : vector<16x128xf32>
    %762 = vector.broadcast %741 : vector<1x128xf32> to vector<16x128xf32>
    %763 = arith.mulf %761, %762 : vector<16x128xf32>
    %764 = vector.broadcast %743 : vector<1x128xf32> to vector<16x128xf32>
    %765 = arith.addf %763, %764 : vector<16x128xf32>
    %c0_255 = arith.constant 0 : index
    %c0_256 = arith.constant 0 : index
    %c0_257 = arith.constant 0 : index
    %766 = vector.load %arg19[%c0_255, %c0_256, %c0_257] : memref<2x128x128xbf16, #tpu.memory_space<vmem>>, vector<1x128x128xbf16>
    %767 = vector.shape_cast %766 : vector<1x128x128xbf16> to vector<128x128xbf16>
    %c0_258 = arith.constant 0 : index
    %c0_259 = arith.constant 0 : index
    %c0_260 = arith.constant 0 : index
    %768 = vector.load %arg20[%c0_258, %c0_259, %c0_260] : memref<2x1x128xf32, #tpu.memory_space<vmem>>, vector<1x1x128xf32>
    %769 = vector.shape_cast %768 : vector<1x1x128xf32> to vector<1x128xf32>
    %770 = arith.truncf %765 : vector<16x128xf32> to vector<16x128xbf16>
    %cst_261 = arith.constant dense<0.000000e+00> : vector<16x128xf32>
    %771 = tpu.matmul %770, %767, %cst_261 {dimension_numbers = #tpu.dot_dimension_numbers<[1], [0], [0], [1], [0, 0, 1, 1], [], []>} : vector<16x128xbf16>, vector<128x128xbf16>, vector<16x128xf32> -> vector<16x128xf32>
    %772 = vector.broadcast %769 : vector<1x128xf32> to vector<16x128xf32>
    %773 = arith.addf %771, %772 : vector<16x128xf32>
    %c0_262 = arith.constant 0 : index
    %c0_263 = arith.constant 0 : index
    %c0_264 = arith.constant 0 : index
    %774 = vector.load %arg21[%c0_262, %c0_263, %c0_264] : memref<2x128x256xbf16, #tpu.memory_space<vmem>>, vector<1x128x256xbf16>
    %775 = vector.shape_cast %774 : vector<1x128x256xbf16> to vector<128x256xbf16>
    %c0_265 = arith.constant 0 : index
    %c0_266 = arith.constant 0 : index
    %c0_267 = arith.constant 0 : index
    %776 = vector.load %arg22[%c0_265, %c0_266, %c0_267] : memref<2x1x256xf32, #tpu.memory_space<vmem>>, vector<1x1x256xf32>
    %777 = vector.shape_cast %776 : vector<1x1x256xf32> to vector<1x256xf32>
    %778 = arith.truncf %548 : vector<16x128xf32> to vector<16x128xbf16>
    %cst_268 = arith.constant dense<0.000000e+00> : vector<16x256xf32>
    %779 = tpu.matmul %778, %775, %cst_268 {dimension_numbers = #tpu.dot_dimension_numbers<[1], [0], [0], [1], [0, 0, 1, 1], [], []>} : vector<16x128xbf16>, vector<128x256xbf16>, vector<16x256xf32> -> vector<16x256xf32>
    %780 = vector.broadcast %777 : vector<1x256xf32> to vector<16x256xf32>
    %781 = arith.addf %779, %780 : vector<16x256xf32>
    %782 = vector.extract_strided_slice %781 {offsets = [0, 0], sizes = [16, 128], strides = [1, 1]} : vector<16x256xf32> to vector<16x128xf32>
    %783 = vector.extract_strided_slice %781 {offsets = [0, 128], sizes = [16, 128], strides = [1, 1]} : vector<16x256xf32> to vector<16x128xf32>
    %784 = vector.extract_strided_slice %773 {offsets = [0, 0], sizes = [8, 32], strides = [1, 1]} : vector<16x128xf32> to vector<8x32xf32>
    %785 = arith.truncf %784 : vector<8x32xf32> to vector<8x32xbf16>
    %786 = vector.extract_strided_slice %782 {offsets = [0, 0], sizes = [8, 32], strides = [1, 1]} : vector<16x128xf32> to vector<8x32xf32>
    %787 = arith.truncf %786 : vector<8x32xf32> to vector<8x32xbf16>
    %788 = vector.extract_strided_slice %783 {offsets = [0, 0], sizes = [8, 32], strides = [1, 1]} : vector<16x128xf32> to vector<8x32xf32>
    %789 = arith.truncf %788 : vector<8x32xf32> to vector<8x32xbf16>
    %cst_269 = arith.constant dense<0.000000e+00> : vector<8x8xf32>
    %790 = tpu.matmul %785, %787, %cst_269 {dimension_numbers = #tpu.dot_dimension_numbers<[1], [1], [0], [0], [0, 0, 1, 0], [], []>} : vector<8x32xbf16>, vector<8x32xbf16>, vector<8x8xf32> -> vector<8x8xf32>
    %cst_270 = arith.constant 0.176776692 : f32
    %791 = vector.broadcast %cst_270 : f32 to vector<8x8xf32>
    %792 = arith.mulf %790, %791 : vector<8x8xf32>
    %cst_271 = arith.constant dense<0xFF800000> : vector<8xf32>
    %793 = vector.multi_reduction <maximumf>, %792, %cst_271 [1] : vector<8x8xf32> to vector<8xf32>
    %794 = vector.shape_cast %793 : vector<8xf32> to vector<8x1xf32>
    %795 = vector.broadcast %794 : vector<8x1xf32> to vector<8x8xf32>
    %796 = arith.subf %792, %795 : vector<8x8xf32>
    %797 = math.exp %796 : vector<8x8xf32>
    %cst_272 = arith.constant dense<0.000000e+00> : vector<8xf32>
    %798 = vector.multi_reduction <add>, %797, %cst_272 [1] : vector<8x8xf32> to vector<8xf32>
    %799 = vector.shape_cast %798 : vector<8xf32> to vector<8x1xf32>
    %800 = tpu.reciprocal %799 {approx = true} : vector<8x1xf32> -> vector<8x1xf32>
    %801 = vector.broadcast %800 : vector<8x1xf32> to vector<8x8xf32>
    %802 = arith.mulf %797, %801 : vector<8x8xf32>
    %803 = arith.truncf %802 : vector<8x8xf32> to vector<8x8xbf16>
    %cst_273 = arith.constant dense<0.000000e+00> : vector<8x32xf32>
    %804 = tpu.matmul %803, %789, %cst_273 {dimension_numbers = #tpu.dot_dimension_numbers<[1], [0], [0], [1], [0, 0, 1, 1], [], []>} : vector<8x8xbf16>, vector<8x32xbf16>, vector<8x32xf32> -> vector<8x32xf32>
    %805 = vector.extract_strided_slice %773 {offsets = [0, 32], sizes = [8, 32], strides = [1, 1]} : vector<16x128xf32> to vector<8x32xf32>
    %806 = arith.truncf %805 : vector<8x32xf32> to vector<8x32xbf16>
    %807 = vector.extract_strided_slice %782 {offsets = [0, 32], sizes = [8, 32], strides = [1, 1]} : vector<16x128xf32> to vector<8x32xf32>
    %808 = arith.truncf %807 : vector<8x32xf32> to vector<8x32xbf16>
    %809 = vector.extract_strided_slice %783 {offsets = [0, 32], sizes = [8, 32], strides = [1, 1]} : vector<16x128xf32> to vector<8x32xf32>
    %810 = arith.truncf %809 : vector<8x32xf32> to vector<8x32xbf16>
    %cst_274 = arith.constant dense<0.000000e+00> : vector<8x8xf32>
    %811 = tpu.matmul %806, %808, %cst_274 {dimension_numbers = #tpu.dot_dimension_numbers<[1], [1], [0], [0], [0, 0, 1, 0], [], []>} : vector<8x32xbf16>, vector<8x32xbf16>, vector<8x8xf32> -> vector<8x8xf32>
    %cst_275 = arith.constant 0.176776692 : f32
    %812 = vector.broadcast %cst_275 : f32 to vector<8x8xf32>
    %813 = arith.mulf %811, %812 : vector<8x8xf32>
    %cst_276 = arith.constant dense<0xFF800000> : vector<8xf32>
    %814 = vector.multi_reduction <maximumf>, %813, %cst_276 [1] : vector<8x8xf32> to vector<8xf32>
    %815 = vector.shape_cast %814 : vector<8xf32> to vector<8x1xf32>
    %816 = vector.broadcast %815 : vector<8x1xf32> to vector<8x8xf32>
    %817 = arith.subf %813, %816 : vector<8x8xf32>
    %818 = math.exp %817 : vector<8x8xf32>
    %cst_277 = arith.constant dense<0.000000e+00> : vector<8xf32>
    %819 = vector.multi_reduction <add>, %818, %cst_277 [1] : vector<8x8xf32> to vector<8xf32>
    %820 = vector.shape_cast %819 : vector<8xf32> to vector<8x1xf32>
    %821 = tpu.reciprocal %820 {approx = true} : vector<8x1xf32> -> vector<8x1xf32>
    %822 = vector.broadcast %821 : vector<8x1xf32> to vector<8x8xf32>
    %823 = arith.mulf %818, %822 : vector<8x8xf32>
    %824 = arith.truncf %823 : vector<8x8xf32> to vector<8x8xbf16>
    %cst_278 = arith.constant dense<0.000000e+00> : vector<8x32xf32>
    %825 = tpu.matmul %824, %810, %cst_278 {dimension_numbers = #tpu.dot_dimension_numbers<[1], [0], [0], [1], [0, 0, 1, 1], [], []>} : vector<8x8xbf16>, vector<8x32xbf16>, vector<8x32xf32> -> vector<8x32xf32>
    %826 = vector.extract_strided_slice %773 {offsets = [0, 64], sizes = [8, 32], strides = [1, 1]} : vector<16x128xf32> to vector<8x32xf32>
    %827 = arith.truncf %826 : vector<8x32xf32> to vector<8x32xbf16>
    %828 = vector.extract_strided_slice %782 {offsets = [0, 64], sizes = [8, 32], strides = [1, 1]} : vector<16x128xf32> to vector<8x32xf32>
    %829 = arith.truncf %828 : vector<8x32xf32> to vector<8x32xbf16>
    %830 = vector.extract_strided_slice %783 {offsets = [0, 64], sizes = [8, 32], strides = [1, 1]} : vector<16x128xf32> to vector<8x32xf32>
    %831 = arith.truncf %830 : vector<8x32xf32> to vector<8x32xbf16>
    %cst_279 = arith.constant dense<0.000000e+00> : vector<8x8xf32>
    %832 = tpu.matmul %827, %829, %cst_279 {dimension_numbers = #tpu.dot_dimension_numbers<[1], [1], [0], [0], [0, 0, 1, 0], [], []>} : vector<8x32xbf16>, vector<8x32xbf16>, vector<8x8xf32> -> vector<8x8xf32>
    %cst_280 = arith.constant 0.176776692 : f32
    %833 = vector.broadcast %cst_280 : f32 to vector<8x8xf32>
    %834 = arith.mulf %832, %833 : vector<8x8xf32>
    %cst_281 = arith.constant dense<0xFF800000> : vector<8xf32>
    %835 = vector.multi_reduction <maximumf>, %834, %cst_281 [1] : vector<8x8xf32> to vector<8xf32>
    %836 = vector.shape_cast %835 : vector<8xf32> to vector<8x1xf32>
    %837 = vector.broadcast %836 : vector<8x1xf32> to vector<8x8xf32>
    %838 = arith.subf %834, %837 : vector<8x8xf32>
    %839 = math.exp %838 : vector<8x8xf32>
    %cst_282 = arith.constant dense<0.000000e+00> : vector<8xf32>
    %840 = vector.multi_reduction <add>, %839, %cst_282 [1] : vector<8x8xf32> to vector<8xf32>
    %841 = vector.shape_cast %840 : vector<8xf32> to vector<8x1xf32>
    %842 = tpu.reciprocal %841 {approx = true} : vector<8x1xf32> -> vector<8x1xf32>
    %843 = vector.broadcast %842 : vector<8x1xf32> to vector<8x8xf32>
    %844 = arith.mulf %839, %843 : vector<8x8xf32>
    %845 = arith.truncf %844 : vector<8x8xf32> to vector<8x8xbf16>
    %cst_283 = arith.constant dense<0.000000e+00> : vector<8x32xf32>
    %846 = tpu.matmul %845, %831, %cst_283 {dimension_numbers = #tpu.dot_dimension_numbers<[1], [0], [0], [1], [0, 0, 1, 1], [], []>} : vector<8x8xbf16>, vector<8x32xbf16>, vector<8x32xf32> -> vector<8x32xf32>
    %847 = vector.extract_strided_slice %773 {offsets = [0, 96], sizes = [8, 32], strides = [1, 1]} : vector<16x128xf32> to vector<8x32xf32>
    %848 = arith.truncf %847 : vector<8x32xf32> to vector<8x32xbf16>
    %849 = vector.extract_strided_slice %782 {offsets = [0, 96], sizes = [8, 32], strides = [1, 1]} : vector<16x128xf32> to vector<8x32xf32>
    %850 = arith.truncf %849 : vector<8x32xf32> to vector<8x32xbf16>
    %851 = vector.extract_strided_slice %783 {offsets = [0, 96], sizes = [8, 32], strides = [1, 1]} : vector<16x128xf32> to vector<8x32xf32>
    %852 = arith.truncf %851 : vector<8x32xf32> to vector<8x32xbf16>
    %cst_284 = arith.constant dense<0.000000e+00> : vector<8x8xf32>
    %853 = tpu.matmul %848, %850, %cst_284 {dimension_numbers = #tpu.dot_dimension_numbers<[1], [1], [0], [0], [0, 0, 1, 0], [], []>} : vector<8x32xbf16>, vector<8x32xbf16>, vector<8x8xf32> -> vector<8x8xf32>
    %cst_285 = arith.constant 0.176776692 : f32
    %854 = vector.broadcast %cst_285 : f32 to vector<8x8xf32>
    %855 = arith.mulf %853, %854 : vector<8x8xf32>
    %cst_286 = arith.constant dense<0xFF800000> : vector<8xf32>
    %856 = vector.multi_reduction <maximumf>, %855, %cst_286 [1] : vector<8x8xf32> to vector<8xf32>
    %857 = vector.shape_cast %856 : vector<8xf32> to vector<8x1xf32>
    %858 = vector.broadcast %857 : vector<8x1xf32> to vector<8x8xf32>
    %859 = arith.subf %855, %858 : vector<8x8xf32>
    %860 = math.exp %859 : vector<8x8xf32>
    %cst_287 = arith.constant dense<0.000000e+00> : vector<8xf32>
    %861 = vector.multi_reduction <add>, %860, %cst_287 [1] : vector<8x8xf32> to vector<8xf32>
    %862 = vector.shape_cast %861 : vector<8xf32> to vector<8x1xf32>
    %863 = tpu.reciprocal %862 {approx = true} : vector<8x1xf32> -> vector<8x1xf32>
    %864 = vector.broadcast %863 : vector<8x1xf32> to vector<8x8xf32>
    %865 = arith.mulf %860, %864 : vector<8x8xf32>
    %866 = arith.truncf %865 : vector<8x8xf32> to vector<8x8xbf16>
    %cst_288 = arith.constant dense<0.000000e+00> : vector<8x32xf32>
    %867 = tpu.matmul %866, %852, %cst_288 {dimension_numbers = #tpu.dot_dimension_numbers<[1], [0], [0], [1], [0, 0, 1, 1], [], []>} : vector<8x8xbf16>, vector<8x32xbf16>, vector<8x32xf32> -> vector<8x32xf32>
    %868 = tpu.concatenate %804, %825, %846, %867 in 1 : vector<8x32xf32>, vector<8x32xf32>, vector<8x32xf32>, vector<8x32xf32> -> vector<8x128xf32>
    %869 = vector.extract_strided_slice %773 {offsets = [8, 0], sizes = [8, 32], strides = [1, 1]} : vector<16x128xf32> to vector<8x32xf32>
    %870 = arith.truncf %869 : vector<8x32xf32> to vector<8x32xbf16>
    %871 = vector.extract_strided_slice %782 {offsets = [8, 0], sizes = [8, 32], strides = [1, 1]} : vector<16x128xf32> to vector<8x32xf32>
    %872 = arith.truncf %871 : vector<8x32xf32> to vector<8x32xbf16>
    %873 = vector.extract_strided_slice %783 {offsets = [8, 0], sizes = [8, 32], strides = [1, 1]} : vector<16x128xf32> to vector<8x32xf32>
    %874 = arith.truncf %873 : vector<8x32xf32> to vector<8x32xbf16>
    %cst_289 = arith.constant dense<0.000000e+00> : vector<8x8xf32>
    %875 = tpu.matmul %870, %872, %cst_289 {dimension_numbers = #tpu.dot_dimension_numbers<[1], [1], [0], [0], [0, 0, 1, 0], [], []>} : vector<8x32xbf16>, vector<8x32xbf16>, vector<8x8xf32> -> vector<8x8xf32>
    %cst_290 = arith.constant 0.176776692 : f32
    %876 = vector.broadcast %cst_290 : f32 to vector<8x8xf32>
    %877 = arith.mulf %875, %876 : vector<8x8xf32>
    %cst_291 = arith.constant dense<0xFF800000> : vector<8xf32>
    %878 = vector.multi_reduction <maximumf>, %877, %cst_291 [1] : vector<8x8xf32> to vector<8xf32>
    %879 = vector.shape_cast %878 : vector<8xf32> to vector<8x1xf32>
    %880 = vector.broadcast %879 : vector<8x1xf32> to vector<8x8xf32>
    %881 = arith.subf %877, %880 : vector<8x8xf32>
    %882 = math.exp %881 : vector<8x8xf32>
    %cst_292 = arith.constant dense<0.000000e+00> : vector<8xf32>
    %883 = vector.multi_reduction <add>, %882, %cst_292 [1] : vector<8x8xf32> to vector<8xf32>
    %884 = vector.shape_cast %883 : vector<8xf32> to vector<8x1xf32>
    %885 = tpu.reciprocal %884 {approx = true} : vector<8x1xf32> -> vector<8x1xf32>
    %886 = vector.broadcast %885 : vector<8x1xf32> to vector<8x8xf32>
    %887 = arith.mulf %882, %886 : vector<8x8xf32>
    %888 = arith.truncf %887 : vector<8x8xf32> to vector<8x8xbf16>
    %cst_293 = arith.constant dense<0.000000e+00> : vector<8x32xf32>
    %889 = tpu.matmul %888, %874, %cst_293 {dimension_numbers = #tpu.dot_dimension_numbers<[1], [0], [0], [1], [0, 0, 1, 1], [], []>} : vector<8x8xbf16>, vector<8x32xbf16>, vector<8x32xf32> -> vector<8x32xf32>
    %890 = vector.extract_strided_slice %773 {offsets = [8, 32], sizes = [8, 32], strides = [1, 1]} : vector<16x128xf32> to vector<8x32xf32>
    %891 = arith.truncf %890 : vector<8x32xf32> to vector<8x32xbf16>
    %892 = vector.extract_strided_slice %782 {offsets = [8, 32], sizes = [8, 32], strides = [1, 1]} : vector<16x128xf32> to vector<8x32xf32>
    %893 = arith.truncf %892 : vector<8x32xf32> to vector<8x32xbf16>
    %894 = vector.extract_strided_slice %783 {offsets = [8, 32], sizes = [8, 32], strides = [1, 1]} : vector<16x128xf32> to vector<8x32xf32>
    %895 = arith.truncf %894 : vector<8x32xf32> to vector<8x32xbf16>
    %cst_294 = arith.constant dense<0.000000e+00> : vector<8x8xf32>
    %896 = tpu.matmul %891, %893, %cst_294 {dimension_numbers = #tpu.dot_dimension_numbers<[1], [1], [0], [0], [0, 0, 1, 0], [], []>} : vector<8x32xbf16>, vector<8x32xbf16>, vector<8x8xf32> -> vector<8x8xf32>
    %cst_295 = arith.constant 0.176776692 : f32
    %897 = vector.broadcast %cst_295 : f32 to vector<8x8xf32>
    %898 = arith.mulf %896, %897 : vector<8x8xf32>
    %cst_296 = arith.constant dense<0xFF800000> : vector<8xf32>
    %899 = vector.multi_reduction <maximumf>, %898, %cst_296 [1] : vector<8x8xf32> to vector<8xf32>
    %900 = vector.shape_cast %899 : vector<8xf32> to vector<8x1xf32>
    %901 = vector.broadcast %900 : vector<8x1xf32> to vector<8x8xf32>
    %902 = arith.subf %898, %901 : vector<8x8xf32>
    %903 = math.exp %902 : vector<8x8xf32>
    %cst_297 = arith.constant dense<0.000000e+00> : vector<8xf32>
    %904 = vector.multi_reduction <add>, %903, %cst_297 [1] : vector<8x8xf32> to vector<8xf32>
    %905 = vector.shape_cast %904 : vector<8xf32> to vector<8x1xf32>
    %906 = tpu.reciprocal %905 {approx = true} : vector<8x1xf32> -> vector<8x1xf32>
    %907 = vector.broadcast %906 : vector<8x1xf32> to vector<8x8xf32>
    %908 = arith.mulf %903, %907 : vector<8x8xf32>
    %909 = arith.truncf %908 : vector<8x8xf32> to vector<8x8xbf16>
    %cst_298 = arith.constant dense<0.000000e+00> : vector<8x32xf32>
    %910 = tpu.matmul %909, %895, %cst_298 {dimension_numbers = #tpu.dot_dimension_numbers<[1], [0], [0], [1], [0, 0, 1, 1], [], []>} : vector<8x8xbf16>, vector<8x32xbf16>, vector<8x32xf32> -> vector<8x32xf32>
    %911 = vector.extract_strided_slice %773 {offsets = [8, 64], sizes = [8, 32], strides = [1, 1]} : vector<16x128xf32> to vector<8x32xf32>
    %912 = arith.truncf %911 : vector<8x32xf32> to vector<8x32xbf16>
    %913 = vector.extract_strided_slice %782 {offsets = [8, 64], sizes = [8, 32], strides = [1, 1]} : vector<16x128xf32> to vector<8x32xf32>
    %914 = arith.truncf %913 : vector<8x32xf32> to vector<8x32xbf16>
    %915 = vector.extract_strided_slice %783 {offsets = [8, 64], sizes = [8, 32], strides = [1, 1]} : vector<16x128xf32> to vector<8x32xf32>
    %916 = arith.truncf %915 : vector<8x32xf32> to vector<8x32xbf16>
    %cst_299 = arith.constant dense<0.000000e+00> : vector<8x8xf32>
    %917 = tpu.matmul %912, %914, %cst_299 {dimension_numbers = #tpu.dot_dimension_numbers<[1], [1], [0], [0], [0, 0, 1, 0], [], []>} : vector<8x32xbf16>, vector<8x32xbf16>, vector<8x8xf32> -> vector<8x8xf32>
    %cst_300 = arith.constant 0.176776692 : f32
    %918 = vector.broadcast %cst_300 : f32 to vector<8x8xf32>
    %919 = arith.mulf %917, %918 : vector<8x8xf32>
    %cst_301 = arith.constant dense<0xFF800000> : vector<8xf32>
    %920 = vector.multi_reduction <maximumf>, %919, %cst_301 [1] : vector<8x8xf32> to vector<8xf32>
    %921 = vector.shape_cast %920 : vector<8xf32> to vector<8x1xf32>
    %922 = vector.broadcast %921 : vector<8x1xf32> to vector<8x8xf32>
    %923 = arith.subf %919, %922 : vector<8x8xf32>
    %924 = math.exp %923 : vector<8x8xf32>
    %cst_302 = arith.constant dense<0.000000e+00> : vector<8xf32>
    %925 = vector.multi_reduction <add>, %924, %cst_302 [1] : vector<8x8xf32> to vector<8xf32>
    %926 = vector.shape_cast %925 : vector<8xf32> to vector<8x1xf32>
    %927 = tpu.reciprocal %926 {approx = true} : vector<8x1xf32> -> vector<8x1xf32>
    %928 = vector.broadcast %927 : vector<8x1xf32> to vector<8x8xf32>
    %929 = arith.mulf %924, %928 : vector<8x8xf32>
    %930 = arith.truncf %929 : vector<8x8xf32> to vector<8x8xbf16>
    %cst_303 = arith.constant dense<0.000000e+00> : vector<8x32xf32>
    %931 = tpu.matmul %930, %916, %cst_303 {dimension_numbers = #tpu.dot_dimension_numbers<[1], [0], [0], [1], [0, 0, 1, 1], [], []>} : vector<8x8xbf16>, vector<8x32xbf16>, vector<8x32xf32> -> vector<8x32xf32>
    %932 = vector.extract_strided_slice %773 {offsets = [8, 96], sizes = [8, 32], strides = [1, 1]} : vector<16x128xf32> to vector<8x32xf32>
    %933 = arith.truncf %932 : vector<8x32xf32> to vector<8x32xbf16>
    %934 = vector.extract_strided_slice %782 {offsets = [8, 96], sizes = [8, 32], strides = [1, 1]} : vector<16x128xf32> to vector<8x32xf32>
    %935 = arith.truncf %934 : vector<8x32xf32> to vector<8x32xbf16>
    %936 = vector.extract_strided_slice %783 {offsets = [8, 96], sizes = [8, 32], strides = [1, 1]} : vector<16x128xf32> to vector<8x32xf32>
    %937 = arith.truncf %936 : vector<8x32xf32> to vector<8x32xbf16>
    %cst_304 = arith.constant dense<0.000000e+00> : vector<8x8xf32>
    %938 = tpu.matmul %933, %935, %cst_304 {dimension_numbers = #tpu.dot_dimension_numbers<[1], [1], [0], [0], [0, 0, 1, 0], [], []>} : vector<8x32xbf16>, vector<8x32xbf16>, vector<8x8xf32> -> vector<8x8xf32>
    %cst_305 = arith.constant 0.176776692 : f32
    %939 = vector.broadcast %cst_305 : f32 to vector<8x8xf32>
    %940 = arith.mulf %938, %939 : vector<8x8xf32>
    %cst_306 = arith.constant dense<0xFF800000> : vector<8xf32>
    %941 = vector.multi_reduction <maximumf>, %940, %cst_306 [1] : vector<8x8xf32> to vector<8xf32>
    %942 = vector.shape_cast %941 : vector<8xf32> to vector<8x1xf32>
    %943 = vector.broadcast %942 : vector<8x1xf32> to vector<8x8xf32>
    %944 = arith.subf %940, %943 : vector<8x8xf32>
    %945 = math.exp %944 : vector<8x8xf32>
    %cst_307 = arith.constant dense<0.000000e+00> : vector<8xf32>
    %946 = vector.multi_reduction <add>, %945, %cst_307 [1] : vector<8x8xf32> to vector<8xf32>
    %947 = vector.shape_cast %946 : vector<8xf32> to vector<8x1xf32>
    %948 = tpu.reciprocal %947 {approx = true} : vector<8x1xf32> -> vector<8x1xf32>
    %949 = vector.broadcast %948 : vector<8x1xf32> to vector<8x8xf32>
    %950 = arith.mulf %945, %949 : vector<8x8xf32>
    %951 = arith.truncf %950 : vector<8x8xf32> to vector<8x8xbf16>
    %cst_308 = arith.constant dense<0.000000e+00> : vector<8x32xf32>
    %952 = tpu.matmul %951, %937, %cst_308 {dimension_numbers = #tpu.dot_dimension_numbers<[1], [0], [0], [1], [0, 0, 1, 1], [], []>} : vector<8x8xbf16>, vector<8x32xbf16>, vector<8x32xf32> -> vector<8x32xf32>
    %953 = tpu.concatenate %889, %910, %931, %952 in 1 : vector<8x32xf32>, vector<8x32xf32>, vector<8x32xf32>, vector<8x32xf32> -> vector<8x128xf32>
    %954 = tpu.concatenate %868, %953 in 0 : vector<8x128xf32>, vector<8x128xf32> -> vector<16x128xf32>
    %c0_309 = arith.constant 0 : index
    %c0_310 = arith.constant 0 : index
    %c0_311 = arith.constant 0 : index
    %955 = vector.load %arg23[%c0_309, %c0_310, %c0_311] : memref<2x128x128xbf16, #tpu.memory_space<vmem>>, vector<1x128x128xbf16>
    %956 = vector.shape_cast %955 : vector<1x128x128xbf16> to vector<128x128xbf16>
    %c0_312 = arith.constant 0 : index
    %c0_313 = arith.constant 0 : index
    %c0_314 = arith.constant 0 : index
    %957 = vector.load %arg24[%c0_312, %c0_313, %c0_314] : memref<2x1x128xf32, #tpu.memory_space<vmem>>, vector<1x1x128xf32>
    %958 = vector.shape_cast %957 : vector<1x1x128xf32> to vector<1x128xf32>
    %959 = arith.truncf %954 : vector<16x128xf32> to vector<16x128xbf16>
    %cst_315 = arith.constant dense<0.000000e+00> : vector<16x128xf32>
    %960 = tpu.matmul %959, %956, %cst_315 {dimension_numbers = #tpu.dot_dimension_numbers<[1], [0], [0], [1], [0, 0, 1, 1], [], []>} : vector<16x128xbf16>, vector<128x128xbf16>, vector<16x128xf32> -> vector<16x128xf32>
    %961 = vector.broadcast %958 : vector<1x128xf32> to vector<16x128xf32>
    %962 = arith.addf %960, %961 : vector<16x128xf32>
    %963 = arith.addf %765, %962 : vector<16x128xf32>
    %c0_316 = arith.constant 0 : index
    %c0_317 = arith.constant 0 : index
    %c0_318 = arith.constant 0 : index
    %964 = vector.load %arg25[%c0_316, %c0_317, %c0_318] : memref<2x1x128xf32, #tpu.memory_space<vmem>>, vector<1x1x128xf32>
    %965 = vector.shape_cast %964 : vector<1x1x128xf32> to vector<1x128xf32>
    %c0_319 = arith.constant 0 : index
    %c0_320 = arith.constant 0 : index
    %c0_321 = arith.constant 0 : index
    %966 = vector.load %arg26[%c0_319, %c0_320, %c0_321] : memref<2x1x128xf32, #tpu.memory_space<vmem>>, vector<1x1x128xf32>
    %967 = vector.shape_cast %966 : vector<1x1x128xf32> to vector<1x128xf32>
    %cst_322 = arith.constant dense<0.000000e+00> : vector<16xf32>
    %968 = vector.multi_reduction <add>, %963, %cst_322 [1] : vector<16x128xf32> to vector<16xf32>
    %969 = vector.shape_cast %968 : vector<16xf32> to vector<16x1xf32>
    %cst_323 = arith.constant 1.280000e+02 : f32
    %970 = vector.broadcast %cst_323 : f32 to vector<16x1xf32>
    %971 = arith.divf %969, %970 : vector<16x1xf32>
    %972 = vector.broadcast %971 : vector<16x1xf32> to vector<16x128xf32>
    %973 = arith.subf %963, %972 : vector<16x128xf32>
    %974 = arith.mulf %973, %973 : vector<16x128xf32>
    %cst_324 = arith.constant dense<0.000000e+00> : vector<16xf32>
    %975 = vector.multi_reduction <add>, %974, %cst_324 [1] : vector<16x128xf32> to vector<16xf32>
    %976 = vector.shape_cast %975 : vector<16xf32> to vector<16x1xf32>
    %cst_325 = arith.constant 1.280000e+02 : f32
    %977 = vector.broadcast %cst_325 : f32 to vector<16x1xf32>
    %978 = arith.divf %976, %977 : vector<16x1xf32>
    %979 = vector.broadcast %971 : vector<16x1xf32> to vector<16x128xf32>
    %980 = arith.subf %963, %979 : vector<16x128xf32>
    %cst_326 = arith.constant 9.99999974E-6 : f32
    %981 = vector.broadcast %cst_326 : f32 to vector<16x1xf32>
    %982 = arith.addf %978, %981 : vector<16x1xf32>
    %983 = math.rsqrt %982 : vector<16x1xf32>
    %984 = vector.broadcast %983 : vector<16x1xf32> to vector<16x128xf32>
    %985 = arith.mulf %980, %984 : vector<16x128xf32>
    %986 = vector.broadcast %965 : vector<1x128xf32> to vector<16x128xf32>
    %987 = arith.mulf %985, %986 : vector<16x128xf32>
    %988 = vector.broadcast %967 : vector<1x128xf32> to vector<16x128xf32>
    %989 = arith.addf %987, %988 : vector<16x128xf32>
    %c0_327 = arith.constant 0 : index
    %c0_328 = arith.constant 0 : index
    %c0_329 = arith.constant 0 : index
    %990 = vector.load %arg27[%c0_327, %c0_328, %c0_329] : memref<2x128x256xbf16, #tpu.memory_space<vmem>>, vector<1x128x256xbf16>
    %991 = vector.shape_cast %990 : vector<1x128x256xbf16> to vector<128x256xbf16>
    %c0_330 = arith.constant 0 : index
    %c0_331 = arith.constant 0 : index
    %c0_332 = arith.constant 0 : index
    %992 = vector.load %arg28[%c0_330, %c0_331, %c0_332] : memref<2x1x256xf32, #tpu.memory_space<vmem>>, vector<1x1x256xf32>
    %993 = vector.shape_cast %992 : vector<1x1x256xf32> to vector<1x256xf32>
    %994 = arith.truncf %989 : vector<16x128xf32> to vector<16x128xbf16>
    %cst_333 = arith.constant dense<0.000000e+00> : vector<16x256xf32>
    %995 = tpu.matmul %994, %991, %cst_333 {dimension_numbers = #tpu.dot_dimension_numbers<[1], [0], [0], [1], [0, 0, 1, 1], [], []>} : vector<16x128xbf16>, vector<128x256xbf16>, vector<16x256xf32> -> vector<16x256xf32>
    %996 = vector.broadcast %993 : vector<1x256xf32> to vector<16x256xf32>
    %997 = arith.addf %995, %996 : vector<16x256xf32>
    %cst_334 = arith.constant 0.000000e+00 : f32
    %998 = vector.broadcast %cst_334 : f32 to vector<16x256xf32>
    %999 = arith.maximumf %997, %998 : vector<16x256xf32>
    %c0_335 = arith.constant 0 : index
    %c0_336 = arith.constant 0 : index
    %c0_337 = arith.constant 0 : index
    %1000 = vector.load %arg29[%c0_335, %c0_336, %c0_337] : memref<2x256x128xbf16, #tpu.memory_space<vmem>>, vector<1x256x128xbf16>
    %1001 = vector.shape_cast %1000 : vector<1x256x128xbf16> to vector<256x128xbf16>
    %c0_338 = arith.constant 0 : index
    %c0_339 = arith.constant 0 : index
    %c0_340 = arith.constant 0 : index
    %1002 = vector.load %arg30[%c0_338, %c0_339, %c0_340] : memref<2x1x128xf32, #tpu.memory_space<vmem>>, vector<1x1x128xf32>
    %1003 = vector.shape_cast %1002 : vector<1x1x128xf32> to vector<1x128xf32>
    %1004 = arith.truncf %999 : vector<16x256xf32> to vector<16x256xbf16>
    %cst_341 = arith.constant dense<0.000000e+00> : vector<16x128xf32>
    %1005 = tpu.matmul %1004, %1001, %cst_341 {dimension_numbers = #tpu.dot_dimension_numbers<[1], [0], [0], [1], [0, 0, 1, 1], [], []>} : vector<16x256xbf16>, vector<256x128xbf16>, vector<16x128xf32> -> vector<16x128xf32>
    %1006 = vector.broadcast %1003 : vector<1x128xf32> to vector<16x128xf32>
    %1007 = arith.addf %1005, %1006 : vector<16x128xf32>
    %1008 = arith.addf %989, %1007 : vector<16x128xf32>
    %c0_342 = arith.constant 0 : index
    %c0_343 = arith.constant 0 : index
    %c0_344 = arith.constant 0 : index
    %1009 = vector.load %arg31[%c0_342, %c0_343, %c0_344] : memref<2x1x128xf32, #tpu.memory_space<vmem>>, vector<1x1x128xf32>
    %1010 = vector.shape_cast %1009 : vector<1x1x128xf32> to vector<1x128xf32>
    %c0_345 = arith.constant 0 : index
    %c0_346 = arith.constant 0 : index
    %c0_347 = arith.constant 0 : index
    %1011 = vector.load %arg32[%c0_345, %c0_346, %c0_347] : memref<2x1x128xf32, #tpu.memory_space<vmem>>, vector<1x1x128xf32>
    %1012 = vector.shape_cast %1011 : vector<1x1x128xf32> to vector<1x128xf32>
    %cst_348 = arith.constant dense<0.000000e+00> : vector<16xf32>
    %1013 = vector.multi_reduction <add>, %1008, %cst_348 [1] : vector<16x128xf32> to vector<16xf32>
    %1014 = vector.shape_cast %1013 : vector<16xf32> to vector<16x1xf32>
    %cst_349 = arith.constant 1.280000e+02 : f32
    %1015 = vector.broadcast %cst_349 : f32 to vector<16x1xf32>
    %1016 = arith.divf %1014, %1015 : vector<16x1xf32>
    %1017 = vector.broadcast %1016 : vector<16x1xf32> to vector<16x128xf32>
    %1018 = arith.subf %1008, %1017 : vector<16x128xf32>
    %1019 = arith.mulf %1018, %1018 : vector<16x128xf32>
    %cst_350 = arith.constant dense<0.000000e+00> : vector<16xf32>
    %1020 = vector.multi_reduction <add>, %1019, %cst_350 [1] : vector<16x128xf32> to vector<16xf32>
    %1021 = vector.shape_cast %1020 : vector<16xf32> to vector<16x1xf32>
    %cst_351 = arith.constant 1.280000e+02 : f32
    %1022 = vector.broadcast %cst_351 : f32 to vector<16x1xf32>
    %1023 = arith.divf %1021, %1022 : vector<16x1xf32>
    %1024 = vector.broadcast %1016 : vector<16x1xf32> to vector<16x128xf32>
    %1025 = arith.subf %1008, %1024 : vector<16x128xf32>
    %cst_352 = arith.constant 9.99999974E-6 : f32
    %1026 = vector.broadcast %cst_352 : f32 to vector<16x1xf32>
    %1027 = arith.addf %1023, %1026 : vector<16x1xf32>
    %1028 = math.rsqrt %1027 : vector<16x1xf32>
    %1029 = vector.broadcast %1028 : vector<16x1xf32> to vector<16x128xf32>
    %1030 = arith.mulf %1025, %1029 : vector<16x128xf32>
    %1031 = vector.broadcast %1010 : vector<1x128xf32> to vector<16x128xf32>
    %1032 = arith.mulf %1030, %1031 : vector<16x128xf32>
    %1033 = vector.broadcast %1012 : vector<1x128xf32> to vector<16x128xf32>
    %1034 = arith.addf %1032, %1033 : vector<16x128xf32>
    %c1_353 = arith.constant 1 : index
    %c0_354 = arith.constant 0 : index
    %c0_355 = arith.constant 0 : index
    %1035 = vector.load %arg13[%c1_353, %c0_354, %c0_355] : memref<2x128x384xbf16, #tpu.memory_space<vmem>>, vector<1x128x384xbf16>
    %1036 = vector.shape_cast %1035 : vector<1x128x384xbf16> to vector<128x384xbf16>
    %c1_356 = arith.constant 1 : index
    %c0_357 = arith.constant 0 : index
    %c0_358 = arith.constant 0 : index
    %1037 = vector.load %arg14[%c1_356, %c0_357, %c0_358] : memref<2x1x384xf32, #tpu.memory_space<vmem>>, vector<1x1x384xf32>
    %1038 = vector.shape_cast %1037 : vector<1x1x384xf32> to vector<1x384xf32>
    %1039 = arith.truncf %1034 : vector<16x128xf32> to vector<16x128xbf16>
    %cst_359 = arith.constant dense<0.000000e+00> : vector<16x384xf32>
    %1040 = tpu.matmul %1039, %1036, %cst_359 {dimension_numbers = #tpu.dot_dimension_numbers<[1], [0], [0], [1], [0, 0, 1, 1], [], []>} : vector<16x128xbf16>, vector<128x384xbf16>, vector<16x384xf32> -> vector<16x384xf32>
    %1041 = vector.broadcast %1038 : vector<1x384xf32> to vector<16x384xf32>
    %1042 = arith.addf %1040, %1041 : vector<16x384xf32>
    %1043 = vector.extract_strided_slice %1042 {offsets = [0, 0], sizes = [16, 128], strides = [1, 1]} : vector<16x384xf32> to vector<16x128xf32>
    %1044 = vector.extract_strided_slice %1042 {offsets = [0, 128], sizes = [16, 128], strides = [1, 1]} : vector<16x384xf32> to vector<16x128xf32>
    %1045 = vector.extract_strided_slice %1042 {offsets = [0, 256], sizes = [16, 128], strides = [1, 1]} : vector<16x384xf32> to vector<16x128xf32>
    %1046 = vector.extract_strided_slice %1043 {offsets = [0, 0], sizes = [8, 32], strides = [1, 1]} : vector<16x128xf32> to vector<8x32xf32>
    %1047 = arith.truncf %1046 : vector<8x32xf32> to vector<8x32xbf16>
    %1048 = vector.extract_strided_slice %1044 {offsets = [0, 0], sizes = [8, 32], strides = [1, 1]} : vector<16x128xf32> to vector<8x32xf32>
    %1049 = arith.truncf %1048 : vector<8x32xf32> to vector<8x32xbf16>
    %1050 = vector.extract_strided_slice %1045 {offsets = [0, 0], sizes = [8, 32], strides = [1, 1]} : vector<16x128xf32> to vector<8x32xf32>
    %1051 = arith.truncf %1050 : vector<8x32xf32> to vector<8x32xbf16>
    %cst_360 = arith.constant dense<0.000000e+00> : vector<8x8xf32>
    %1052 = tpu.matmul %1047, %1049, %cst_360 {dimension_numbers = #tpu.dot_dimension_numbers<[1], [1], [0], [0], [0, 0, 1, 0], [], []>} : vector<8x32xbf16>, vector<8x32xbf16>, vector<8x8xf32> -> vector<8x8xf32>
    %cst_361 = arith.constant 0.176776692 : f32
    %1053 = vector.broadcast %cst_361 : f32 to vector<8x8xf32>
    %1054 = arith.mulf %1052, %1053 : vector<8x8xf32>
    %cst_362 = arith.constant dense<0xFF800000> : vector<8xf32>
    %1055 = vector.multi_reduction <maximumf>, %1054, %cst_362 [1] : vector<8x8xf32> to vector<8xf32>
    %1056 = vector.shape_cast %1055 : vector<8xf32> to vector<8x1xf32>
    %1057 = vector.broadcast %1056 : vector<8x1xf32> to vector<8x8xf32>
    %1058 = arith.subf %1054, %1057 : vector<8x8xf32>
    %1059 = math.exp %1058 : vector<8x8xf32>
    %cst_363 = arith.constant dense<0.000000e+00> : vector<8xf32>
    %1060 = vector.multi_reduction <add>, %1059, %cst_363 [1] : vector<8x8xf32> to vector<8xf32>
    %1061 = vector.shape_cast %1060 : vector<8xf32> to vector<8x1xf32>
    %1062 = tpu.reciprocal %1061 {approx = true} : vector<8x1xf32> -> vector<8x1xf32>
    %1063 = vector.broadcast %1062 : vector<8x1xf32> to vector<8x8xf32>
    %1064 = arith.mulf %1059, %1063 : vector<8x8xf32>
    %1065 = arith.truncf %1064 : vector<8x8xf32> to vector<8x8xbf16>
    %cst_364 = arith.constant dense<0.000000e+00> : vector<8x32xf32>
    %1066 = tpu.matmul %1065, %1051, %cst_364 {dimension_numbers = #tpu.dot_dimension_numbers<[1], [0], [0], [1], [0, 0, 1, 1], [], []>} : vector<8x8xbf16>, vector<8x32xbf16>, vector<8x32xf32> -> vector<8x32xf32>
    %1067 = vector.extract_strided_slice %1043 {offsets = [0, 32], sizes = [8, 32], strides = [1, 1]} : vector<16x128xf32> to vector<8x32xf32>
    %1068 = arith.truncf %1067 : vector<8x32xf32> to vector<8x32xbf16>
    %1069 = vector.extract_strided_slice %1044 {offsets = [0, 32], sizes = [8, 32], strides = [1, 1]} : vector<16x128xf32> to vector<8x32xf32>
    %1070 = arith.truncf %1069 : vector<8x32xf32> to vector<8x32xbf16>
    %1071 = vector.extract_strided_slice %1045 {offsets = [0, 32], sizes = [8, 32], strides = [1, 1]} : vector<16x128xf32> to vector<8x32xf32>
    %1072 = arith.truncf %1071 : vector<8x32xf32> to vector<8x32xbf16>
    %cst_365 = arith.constant dense<0.000000e+00> : vector<8x8xf32>
    %1073 = tpu.matmul %1068, %1070, %cst_365 {dimension_numbers = #tpu.dot_dimension_numbers<[1], [1], [0], [0], [0, 0, 1, 0], [], []>} : vector<8x32xbf16>, vector<8x32xbf16>, vector<8x8xf32> -> vector<8x8xf32>
    %cst_366 = arith.constant 0.176776692 : f32
    %1074 = vector.broadcast %cst_366 : f32 to vector<8x8xf32>
    %1075 = arith.mulf %1073, %1074 : vector<8x8xf32>
    %cst_367 = arith.constant dense<0xFF800000> : vector<8xf32>
    %1076 = vector.multi_reduction <maximumf>, %1075, %cst_367 [1] : vector<8x8xf32> to vector<8xf32>
    %1077 = vector.shape_cast %1076 : vector<8xf32> to vector<8x1xf32>
    %1078 = vector.broadcast %1077 : vector<8x1xf32> to vector<8x8xf32>
    %1079 = arith.subf %1075, %1078 : vector<8x8xf32>
    %1080 = math.exp %1079 : vector<8x8xf32>
    %cst_368 = arith.constant dense<0.000000e+00> : vector<8xf32>
    %1081 = vector.multi_reduction <add>, %1080, %cst_368 [1] : vector<8x8xf32> to vector<8xf32>
    %1082 = vector.shape_cast %1081 : vector<8xf32> to vector<8x1xf32>
    %1083 = tpu.reciprocal %1082 {approx = true} : vector<8x1xf32> -> vector<8x1xf32>
    %1084 = vector.broadcast %1083 : vector<8x1xf32> to vector<8x8xf32>
    %1085 = arith.mulf %1080, %1084 : vector<8x8xf32>
    %1086 = arith.truncf %1085 : vector<8x8xf32> to vector<8x8xbf16>
    %cst_369 = arith.constant dense<0.000000e+00> : vector<8x32xf32>
    %1087 = tpu.matmul %1086, %1072, %cst_369 {dimension_numbers = #tpu.dot_dimension_numbers<[1], [0], [0], [1], [0, 0, 1, 1], [], []>} : vector<8x8xbf16>, vector<8x32xbf16>, vector<8x32xf32> -> vector<8x32xf32>
    %1088 = vector.extract_strided_slice %1043 {offsets = [0, 64], sizes = [8, 32], strides = [1, 1]} : vector<16x128xf32> to vector<8x32xf32>
    %1089 = arith.truncf %1088 : vector<8x32xf32> to vector<8x32xbf16>
    %1090 = vector.extract_strided_slice %1044 {offsets = [0, 64], sizes = [8, 32], strides = [1, 1]} : vector<16x128xf32> to vector<8x32xf32>
    %1091 = arith.truncf %1090 : vector<8x32xf32> to vector<8x32xbf16>
    %1092 = vector.extract_strided_slice %1045 {offsets = [0, 64], sizes = [8, 32], strides = [1, 1]} : vector<16x128xf32> to vector<8x32xf32>
    %1093 = arith.truncf %1092 : vector<8x32xf32> to vector<8x32xbf16>
    %cst_370 = arith.constant dense<0.000000e+00> : vector<8x8xf32>
    %1094 = tpu.matmul %1089, %1091, %cst_370 {dimension_numbers = #tpu.dot_dimension_numbers<[1], [1], [0], [0], [0, 0, 1, 0], [], []>} : vector<8x32xbf16>, vector<8x32xbf16>, vector<8x8xf32> -> vector<8x8xf32>
    %cst_371 = arith.constant 0.176776692 : f32
    %1095 = vector.broadcast %cst_371 : f32 to vector<8x8xf32>
    %1096 = arith.mulf %1094, %1095 : vector<8x8xf32>
    %cst_372 = arith.constant dense<0xFF800000> : vector<8xf32>
    %1097 = vector.multi_reduction <maximumf>, %1096, %cst_372 [1] : vector<8x8xf32> to vector<8xf32>
    %1098 = vector.shape_cast %1097 : vector<8xf32> to vector<8x1xf32>
    %1099 = vector.broadcast %1098 : vector<8x1xf32> to vector<8x8xf32>
    %1100 = arith.subf %1096, %1099 : vector<8x8xf32>
    %1101 = math.exp %1100 : vector<8x8xf32>
    %cst_373 = arith.constant dense<0.000000e+00> : vector<8xf32>
    %1102 = vector.multi_reduction <add>, %1101, %cst_373 [1] : vector<8x8xf32> to vector<8xf32>
    %1103 = vector.shape_cast %1102 : vector<8xf32> to vector<8x1xf32>
    %1104 = tpu.reciprocal %1103 {approx = true} : vector<8x1xf32> -> vector<8x1xf32>
    %1105 = vector.broadcast %1104 : vector<8x1xf32> to vector<8x8xf32>
    %1106 = arith.mulf %1101, %1105 : vector<8x8xf32>
    %1107 = arith.truncf %1106 : vector<8x8xf32> to vector<8x8xbf16>
    %cst_374 = arith.constant dense<0.000000e+00> : vector<8x32xf32>
    %1108 = tpu.matmul %1107, %1093, %cst_374 {dimension_numbers = #tpu.dot_dimension_numbers<[1], [0], [0], [1], [0, 0, 1, 1], [], []>} : vector<8x8xbf16>, vector<8x32xbf16>, vector<8x32xf32> -> vector<8x32xf32>
    %1109 = vector.extract_strided_slice %1043 {offsets = [0, 96], sizes = [8, 32], strides = [1, 1]} : vector<16x128xf32> to vector<8x32xf32>
    %1110 = arith.truncf %1109 : vector<8x32xf32> to vector<8x32xbf16>
    %1111 = vector.extract_strided_slice %1044 {offsets = [0, 96], sizes = [8, 32], strides = [1, 1]} : vector<16x128xf32> to vector<8x32xf32>
    %1112 = arith.truncf %1111 : vector<8x32xf32> to vector<8x32xbf16>
    %1113 = vector.extract_strided_slice %1045 {offsets = [0, 96], sizes = [8, 32], strides = [1, 1]} : vector<16x128xf32> to vector<8x32xf32>
    %1114 = arith.truncf %1113 : vector<8x32xf32> to vector<8x32xbf16>
    %cst_375 = arith.constant dense<0.000000e+00> : vector<8x8xf32>
    %1115 = tpu.matmul %1110, %1112, %cst_375 {dimension_numbers = #tpu.dot_dimension_numbers<[1], [1], [0], [0], [0, 0, 1, 0], [], []>} : vector<8x32xbf16>, vector<8x32xbf16>, vector<8x8xf32> -> vector<8x8xf32>
    %cst_376 = arith.constant 0.176776692 : f32
    %1116 = vector.broadcast %cst_376 : f32 to vector<8x8xf32>
    %1117 = arith.mulf %1115, %1116 : vector<8x8xf32>
    %cst_377 = arith.constant dense<0xFF800000> : vector<8xf32>
    %1118 = vector.multi_reduction <maximumf>, %1117, %cst_377 [1] : vector<8x8xf32> to vector<8xf32>
    %1119 = vector.shape_cast %1118 : vector<8xf32> to vector<8x1xf32>
    %1120 = vector.broadcast %1119 : vector<8x1xf32> to vector<8x8xf32>
    %1121 = arith.subf %1117, %1120 : vector<8x8xf32>
    %1122 = math.exp %1121 : vector<8x8xf32>
    %cst_378 = arith.constant dense<0.000000e+00> : vector<8xf32>
    %1123 = vector.multi_reduction <add>, %1122, %cst_378 [1] : vector<8x8xf32> to vector<8xf32>
    %1124 = vector.shape_cast %1123 : vector<8xf32> to vector<8x1xf32>
    %1125 = tpu.reciprocal %1124 {approx = true} : vector<8x1xf32> -> vector<8x1xf32>
    %1126 = vector.broadcast %1125 : vector<8x1xf32> to vector<8x8xf32>
    %1127 = arith.mulf %1122, %1126 : vector<8x8xf32>
    %1128 = arith.truncf %1127 : vector<8x8xf32> to vector<8x8xbf16>
    %cst_379 = arith.constant dense<0.000000e+00> : vector<8x32xf32>
    %1129 = tpu.matmul %1128, %1114, %cst_379 {dimension_numbers = #tpu.dot_dimension_numbers<[1], [0], [0], [1], [0, 0, 1, 1], [], []>} : vector<8x8xbf16>, vector<8x32xbf16>, vector<8x32xf32> -> vector<8x32xf32>
    %1130 = tpu.concatenate %1066, %1087, %1108, %1129 in 1 : vector<8x32xf32>, vector<8x32xf32>, vector<8x32xf32>, vector<8x32xf32> -> vector<8x128xf32>
    %1131 = vector.extract_strided_slice %1043 {offsets = [8, 0], sizes = [8, 32], strides = [1, 1]} : vector<16x128xf32> to vector<8x32xf32>
    %1132 = arith.truncf %1131 : vector<8x32xf32> to vector<8x32xbf16>
    %1133 = vector.extract_strided_slice %1044 {offsets = [8, 0], sizes = [8, 32], strides = [1, 1]} : vector<16x128xf32> to vector<8x32xf32>
    %1134 = arith.truncf %1133 : vector<8x32xf32> to vector<8x32xbf16>
    %1135 = vector.extract_strided_slice %1045 {offsets = [8, 0], sizes = [8, 32], strides = [1, 1]} : vector<16x128xf32> to vector<8x32xf32>
    %1136 = arith.truncf %1135 : vector<8x32xf32> to vector<8x32xbf16>
    %cst_380 = arith.constant dense<0.000000e+00> : vector<8x8xf32>
    %1137 = tpu.matmul %1132, %1134, %cst_380 {dimension_numbers = #tpu.dot_dimension_numbers<[1], [1], [0], [0], [0, 0, 1, 0], [], []>} : vector<8x32xbf16>, vector<8x32xbf16>, vector<8x8xf32> -> vector<8x8xf32>
    %cst_381 = arith.constant 0.176776692 : f32
    %1138 = vector.broadcast %cst_381 : f32 to vector<8x8xf32>
    %1139 = arith.mulf %1137, %1138 : vector<8x8xf32>
    %cst_382 = arith.constant dense<0xFF800000> : vector<8xf32>
    %1140 = vector.multi_reduction <maximumf>, %1139, %cst_382 [1] : vector<8x8xf32> to vector<8xf32>
    %1141 = vector.shape_cast %1140 : vector<8xf32> to vector<8x1xf32>
    %1142 = vector.broadcast %1141 : vector<8x1xf32> to vector<8x8xf32>
    %1143 = arith.subf %1139, %1142 : vector<8x8xf32>
    %1144 = math.exp %1143 : vector<8x8xf32>
    %cst_383 = arith.constant dense<0.000000e+00> : vector<8xf32>
    %1145 = vector.multi_reduction <add>, %1144, %cst_383 [1] : vector<8x8xf32> to vector<8xf32>
    %1146 = vector.shape_cast %1145 : vector<8xf32> to vector<8x1xf32>
    %1147 = tpu.reciprocal %1146 {approx = true} : vector<8x1xf32> -> vector<8x1xf32>
    %1148 = vector.broadcast %1147 : vector<8x1xf32> to vector<8x8xf32>
    %1149 = arith.mulf %1144, %1148 : vector<8x8xf32>
    %1150 = arith.truncf %1149 : vector<8x8xf32> to vector<8x8xbf16>
    %cst_384 = arith.constant dense<0.000000e+00> : vector<8x32xf32>
    %1151 = tpu.matmul %1150, %1136, %cst_384 {dimension_numbers = #tpu.dot_dimension_numbers<[1], [0], [0], [1], [0, 0, 1, 1], [], []>} : vector<8x8xbf16>, vector<8x32xbf16>, vector<8x32xf32> -> vector<8x32xf32>
    %1152 = vector.extract_strided_slice %1043 {offsets = [8, 32], sizes = [8, 32], strides = [1, 1]} : vector<16x128xf32> to vector<8x32xf32>
    %1153 = arith.truncf %1152 : vector<8x32xf32> to vector<8x32xbf16>
    %1154 = vector.extract_strided_slice %1044 {offsets = [8, 32], sizes = [8, 32], strides = [1, 1]} : vector<16x128xf32> to vector<8x32xf32>
    %1155 = arith.truncf %1154 : vector<8x32xf32> to vector<8x32xbf16>
    %1156 = vector.extract_strided_slice %1045 {offsets = [8, 32], sizes = [8, 32], strides = [1, 1]} : vector<16x128xf32> to vector<8x32xf32>
    %1157 = arith.truncf %1156 : vector<8x32xf32> to vector<8x32xbf16>
    %cst_385 = arith.constant dense<0.000000e+00> : vector<8x8xf32>
    %1158 = tpu.matmul %1153, %1155, %cst_385 {dimension_numbers = #tpu.dot_dimension_numbers<[1], [1], [0], [0], [0, 0, 1, 0], [], []>} : vector<8x32xbf16>, vector<8x32xbf16>, vector<8x8xf32> -> vector<8x8xf32>
    %cst_386 = arith.constant 0.176776692 : f32
    %1159 = vector.broadcast %cst_386 : f32 to vector<8x8xf32>
    %1160 = arith.mulf %1158, %1159 : vector<8x8xf32>
    %cst_387 = arith.constant dense<0xFF800000> : vector<8xf32>
    %1161 = vector.multi_reduction <maximumf>, %1160, %cst_387 [1] : vector<8x8xf32> to vector<8xf32>
    %1162 = vector.shape_cast %1161 : vector<8xf32> to vector<8x1xf32>
    %1163 = vector.broadcast %1162 : vector<8x1xf32> to vector<8x8xf32>
    %1164 = arith.subf %1160, %1163 : vector<8x8xf32>
    %1165 = math.exp %1164 : vector<8x8xf32>
    %cst_388 = arith.constant dense<0.000000e+00> : vector<8xf32>
    %1166 = vector.multi_reduction <add>, %1165, %cst_388 [1] : vector<8x8xf32> to vector<8xf32>
    %1167 = vector.shape_cast %1166 : vector<8xf32> to vector<8x1xf32>
    %1168 = tpu.reciprocal %1167 {approx = true} : vector<8x1xf32> -> vector<8x1xf32>
    %1169 = vector.broadcast %1168 : vector<8x1xf32> to vector<8x8xf32>
    %1170 = arith.mulf %1165, %1169 : vector<8x8xf32>
    %1171 = arith.truncf %1170 : vector<8x8xf32> to vector<8x8xbf16>
    %cst_389 = arith.constant dense<0.000000e+00> : vector<8x32xf32>
    %1172 = tpu.matmul %1171, %1157, %cst_389 {dimension_numbers = #tpu.dot_dimension_numbers<[1], [0], [0], [1], [0, 0, 1, 1], [], []>} : vector<8x8xbf16>, vector<8x32xbf16>, vector<8x32xf32> -> vector<8x32xf32>
    %1173 = vector.extract_strided_slice %1043 {offsets = [8, 64], sizes = [8, 32], strides = [1, 1]} : vector<16x128xf32> to vector<8x32xf32>
    %1174 = arith.truncf %1173 : vector<8x32xf32> to vector<8x32xbf16>
    %1175 = vector.extract_strided_slice %1044 {offsets = [8, 64], sizes = [8, 32], strides = [1, 1]} : vector<16x128xf32> to vector<8x32xf32>
    %1176 = arith.truncf %1175 : vector<8x32xf32> to vector<8x32xbf16>
    %1177 = vector.extract_strided_slice %1045 {offsets = [8, 64], sizes = [8, 32], strides = [1, 1]} : vector<16x128xf32> to vector<8x32xf32>
    %1178 = arith.truncf %1177 : vector<8x32xf32> to vector<8x32xbf16>
    %cst_390 = arith.constant dense<0.000000e+00> : vector<8x8xf32>
    %1179 = tpu.matmul %1174, %1176, %cst_390 {dimension_numbers = #tpu.dot_dimension_numbers<[1], [1], [0], [0], [0, 0, 1, 0], [], []>} : vector<8x32xbf16>, vector<8x32xbf16>, vector<8x8xf32> -> vector<8x8xf32>
    %cst_391 = arith.constant 0.176776692 : f32
    %1180 = vector.broadcast %cst_391 : f32 to vector<8x8xf32>
    %1181 = arith.mulf %1179, %1180 : vector<8x8xf32>
    %cst_392 = arith.constant dense<0xFF800000> : vector<8xf32>
    %1182 = vector.multi_reduction <maximumf>, %1181, %cst_392 [1] : vector<8x8xf32> to vector<8xf32>
    %1183 = vector.shape_cast %1182 : vector<8xf32> to vector<8x1xf32>
    %1184 = vector.broadcast %1183 : vector<8x1xf32> to vector<8x8xf32>
    %1185 = arith.subf %1181, %1184 : vector<8x8xf32>
    %1186 = math.exp %1185 : vector<8x8xf32>
    %cst_393 = arith.constant dense<0.000000e+00> : vector<8xf32>
    %1187 = vector.multi_reduction <add>, %1186, %cst_393 [1] : vector<8x8xf32> to vector<8xf32>
    %1188 = vector.shape_cast %1187 : vector<8xf32> to vector<8x1xf32>
    %1189 = tpu.reciprocal %1188 {approx = true} : vector<8x1xf32> -> vector<8x1xf32>
    %1190 = vector.broadcast %1189 : vector<8x1xf32> to vector<8x8xf32>
    %1191 = arith.mulf %1186, %1190 : vector<8x8xf32>
    %1192 = arith.truncf %1191 : vector<8x8xf32> to vector<8x8xbf16>
    %cst_394 = arith.constant dense<0.000000e+00> : vector<8x32xf32>
    %1193 = tpu.matmul %1192, %1178, %cst_394 {dimension_numbers = #tpu.dot_dimension_numbers<[1], [0], [0], [1], [0, 0, 1, 1], [], []>} : vector<8x8xbf16>, vector<8x32xbf16>, vector<8x32xf32> -> vector<8x32xf32>
    %1194 = vector.extract_strided_slice %1043 {offsets = [8, 96], sizes = [8, 32], strides = [1, 1]} : vector<16x128xf32> to vector<8x32xf32>
    %1195 = arith.truncf %1194 : vector<8x32xf32> to vector<8x32xbf16>
    %1196 = vector.extract_strided_slice %1044 {offsets = [8, 96], sizes = [8, 32], strides = [1, 1]} : vector<16x128xf32> to vector<8x32xf32>
    %1197 = arith.truncf %1196 : vector<8x32xf32> to vector<8x32xbf16>
    %1198 = vector.extract_strided_slice %1045 {offsets = [8, 96], sizes = [8, 32], strides = [1, 1]} : vector<16x128xf32> to vector<8x32xf32>
    %1199 = arith.truncf %1198 : vector<8x32xf32> to vector<8x32xbf16>
    %cst_395 = arith.constant dense<0.000000e+00> : vector<8x8xf32>
    %1200 = tpu.matmul %1195, %1197, %cst_395 {dimension_numbers = #tpu.dot_dimension_numbers<[1], [1], [0], [0], [0, 0, 1, 0], [], []>} : vector<8x32xbf16>, vector<8x32xbf16>, vector<8x8xf32> -> vector<8x8xf32>
    %cst_396 = arith.constant 0.176776692 : f32
    %1201 = vector.broadcast %cst_396 : f32 to vector<8x8xf32>
    %1202 = arith.mulf %1200, %1201 : vector<8x8xf32>
    %cst_397 = arith.constant dense<0xFF800000> : vector<8xf32>
    %1203 = vector.multi_reduction <maximumf>, %1202, %cst_397 [1] : vector<8x8xf32> to vector<8xf32>
    %1204 = vector.shape_cast %1203 : vector<8xf32> to vector<8x1xf32>
    %1205 = vector.broadcast %1204 : vector<8x1xf32> to vector<8x8xf32>
    %1206 = arith.subf %1202, %1205 : vector<8x8xf32>
    %1207 = math.exp %1206 : vector<8x8xf32>
    %cst_398 = arith.constant dense<0.000000e+00> : vector<8xf32>
    %1208 = vector.multi_reduction <add>, %1207, %cst_398 [1] : vector<8x8xf32> to vector<8xf32>
    %1209 = vector.shape_cast %1208 : vector<8xf32> to vector<8x1xf32>
    %1210 = tpu.reciprocal %1209 {approx = true} : vector<8x1xf32> -> vector<8x1xf32>
    %1211 = vector.broadcast %1210 : vector<8x1xf32> to vector<8x8xf32>
    %1212 = arith.mulf %1207, %1211 : vector<8x8xf32>
    %1213 = arith.truncf %1212 : vector<8x8xf32> to vector<8x8xbf16>
    %cst_399 = arith.constant dense<0.000000e+00> : vector<8x32xf32>
    %1214 = tpu.matmul %1213, %1199, %cst_399 {dimension_numbers = #tpu.dot_dimension_numbers<[1], [0], [0], [1], [0, 0, 1, 1], [], []>} : vector<8x8xbf16>, vector<8x32xbf16>, vector<8x32xf32> -> vector<8x32xf32>
    %1215 = tpu.concatenate %1151, %1172, %1193, %1214 in 1 : vector<8x32xf32>, vector<8x32xf32>, vector<8x32xf32>, vector<8x32xf32> -> vector<8x128xf32>
    %1216 = tpu.concatenate %1130, %1215 in 0 : vector<8x128xf32>, vector<8x128xf32> -> vector<16x128xf32>
    %c1_400 = arith.constant 1 : index
    %c0_401 = arith.constant 0 : index
    %c0_402 = arith.constant 0 : index
    %1217 = vector.load %arg15[%c1_400, %c0_401, %c0_402] : memref<2x128x128xbf16, #tpu.memory_space<vmem>>, vector<1x128x128xbf16>
    %1218 = vector.shape_cast %1217 : vector<1x128x128xbf16> to vector<128x128xbf16>
    %c1_403 = arith.constant 1 : index
    %c0_404 = arith.constant 0 : index
    %c0_405 = arith.constant 0 : index
    %1219 = vector.load %arg16[%c1_403, %c0_404, %c0_405] : memref<2x1x128xf32, #tpu.memory_space<vmem>>, vector<1x1x128xf32>
    %1220 = vector.shape_cast %1219 : vector<1x1x128xf32> to vector<1x128xf32>
    %1221 = arith.truncf %1216 : vector<16x128xf32> to vector<16x128xbf16>
    %cst_406 = arith.constant dense<0.000000e+00> : vector<16x128xf32>
    %1222 = tpu.matmul %1221, %1218, %cst_406 {dimension_numbers = #tpu.dot_dimension_numbers<[1], [0], [0], [1], [0, 0, 1, 1], [], []>} : vector<16x128xbf16>, vector<128x128xbf16>, vector<16x128xf32> -> vector<16x128xf32>
    %1223 = vector.broadcast %1220 : vector<1x128xf32> to vector<16x128xf32>
    %1224 = arith.addf %1222, %1223 : vector<16x128xf32>
    %1225 = arith.addf %1034, %1224 : vector<16x128xf32>
    %c1_407 = arith.constant 1 : index
    %c0_408 = arith.constant 0 : index
    %c0_409 = arith.constant 0 : index
    %1226 = vector.load %arg17[%c1_407, %c0_408, %c0_409] : memref<2x1x128xf32, #tpu.memory_space<vmem>>, vector<1x1x128xf32>
    %1227 = vector.shape_cast %1226 : vector<1x1x128xf32> to vector<1x128xf32>
    %c1_410 = arith.constant 1 : index
    %c0_411 = arith.constant 0 : index
    %c0_412 = arith.constant 0 : index
    %1228 = vector.load %arg18[%c1_410, %c0_411, %c0_412] : memref<2x1x128xf32, #tpu.memory_space<vmem>>, vector<1x1x128xf32>
    %1229 = vector.shape_cast %1228 : vector<1x1x128xf32> to vector<1x128xf32>
    %cst_413 = arith.constant dense<0.000000e+00> : vector<16xf32>
    %1230 = vector.multi_reduction <add>, %1225, %cst_413 [1] : vector<16x128xf32> to vector<16xf32>
    %1231 = vector.shape_cast %1230 : vector<16xf32> to vector<16x1xf32>
    %cst_414 = arith.constant 1.280000e+02 : f32
    %1232 = vector.broadcast %cst_414 : f32 to vector<16x1xf32>
    %1233 = arith.divf %1231, %1232 : vector<16x1xf32>
    %1234 = vector.broadcast %1233 : vector<16x1xf32> to vector<16x128xf32>
    %1235 = arith.subf %1225, %1234 : vector<16x128xf32>
    %1236 = arith.mulf %1235, %1235 : vector<16x128xf32>
    %cst_415 = arith.constant dense<0.000000e+00> : vector<16xf32>
    %1237 = vector.multi_reduction <add>, %1236, %cst_415 [1] : vector<16x128xf32> to vector<16xf32>
    %1238 = vector.shape_cast %1237 : vector<16xf32> to vector<16x1xf32>
    %cst_416 = arith.constant 1.280000e+02 : f32
    %1239 = vector.broadcast %cst_416 : f32 to vector<16x1xf32>
    %1240 = arith.divf %1238, %1239 : vector<16x1xf32>
    %1241 = vector.broadcast %1233 : vector<16x1xf32> to vector<16x128xf32>
    %1242 = arith.subf %1225, %1241 : vector<16x128xf32>
    %cst_417 = arith.constant 9.99999974E-6 : f32
    %1243 = vector.broadcast %cst_417 : f32 to vector<16x1xf32>
    %1244 = arith.addf %1240, %1243 : vector<16x1xf32>
    %1245 = math.rsqrt %1244 : vector<16x1xf32>
    %1246 = vector.broadcast %1245 : vector<16x1xf32> to vector<16x128xf32>
    %1247 = arith.mulf %1242, %1246 : vector<16x128xf32>
    %1248 = vector.broadcast %1227 : vector<1x128xf32> to vector<16x128xf32>
    %1249 = arith.mulf %1247, %1248 : vector<16x128xf32>
    %1250 = vector.broadcast %1229 : vector<1x128xf32> to vector<16x128xf32>
    %1251 = arith.addf %1249, %1250 : vector<16x128xf32>
    %c1_418 = arith.constant 1 : index
    %c0_419 = arith.constant 0 : index
    %c0_420 = arith.constant 0 : index
    %1252 = vector.load %arg19[%c1_418, %c0_419, %c0_420] : memref<2x128x128xbf16, #tpu.memory_space<vmem>>, vector<1x128x128xbf16>
    %1253 = vector.shape_cast %1252 : vector<1x128x128xbf16> to vector<128x128xbf16>
    %c1_421 = arith.constant 1 : index
    %c0_422 = arith.constant 0 : index
    %c0_423 = arith.constant 0 : index
    %1254 = vector.load %arg20[%c1_421, %c0_422, %c0_423] : memref<2x1x128xf32, #tpu.memory_space<vmem>>, vector<1x1x128xf32>
    %1255 = vector.shape_cast %1254 : vector<1x1x128xf32> to vector<1x128xf32>
    %1256 = arith.truncf %1251 : vector<16x128xf32> to vector<16x128xbf16>
    %cst_424 = arith.constant dense<0.000000e+00> : vector<16x128xf32>
    %1257 = tpu.matmul %1256, %1253, %cst_424 {dimension_numbers = #tpu.dot_dimension_numbers<[1], [0], [0], [1], [0, 0, 1, 1], [], []>} : vector<16x128xbf16>, vector<128x128xbf16>, vector<16x128xf32> -> vector<16x128xf32>
    %1258 = vector.broadcast %1255 : vector<1x128xf32> to vector<16x128xf32>
    %1259 = arith.addf %1257, %1258 : vector<16x128xf32>
    %c1_425 = arith.constant 1 : index
    %c0_426 = arith.constant 0 : index
    %c0_427 = arith.constant 0 : index
    %1260 = vector.load %arg21[%c1_425, %c0_426, %c0_427] : memref<2x128x256xbf16, #tpu.memory_space<vmem>>, vector<1x128x256xbf16>
    %1261 = vector.shape_cast %1260 : vector<1x128x256xbf16> to vector<128x256xbf16>
    %c1_428 = arith.constant 1 : index
    %c0_429 = arith.constant 0 : index
    %c0_430 = arith.constant 0 : index
    %1262 = vector.load %arg22[%c1_428, %c0_429, %c0_430] : memref<2x1x256xf32, #tpu.memory_space<vmem>>, vector<1x1x256xf32>
    %1263 = vector.shape_cast %1262 : vector<1x1x256xf32> to vector<1x256xf32>
    %1264 = arith.truncf %548 : vector<16x128xf32> to vector<16x128xbf16>
    %cst_431 = arith.constant dense<0.000000e+00> : vector<16x256xf32>
    %1265 = tpu.matmul %1264, %1261, %cst_431 {dimension_numbers = #tpu.dot_dimension_numbers<[1], [0], [0], [1], [0, 0, 1, 1], [], []>} : vector<16x128xbf16>, vector<128x256xbf16>, vector<16x256xf32> -> vector<16x256xf32>
    %1266 = vector.broadcast %1263 : vector<1x256xf32> to vector<16x256xf32>
    %1267 = arith.addf %1265, %1266 : vector<16x256xf32>
    %1268 = vector.extract_strided_slice %1267 {offsets = [0, 0], sizes = [16, 128], strides = [1, 1]} : vector<16x256xf32> to vector<16x128xf32>
    %1269 = vector.extract_strided_slice %1267 {offsets = [0, 128], sizes = [16, 128], strides = [1, 1]} : vector<16x256xf32> to vector<16x128xf32>
    %1270 = vector.extract_strided_slice %1259 {offsets = [0, 0], sizes = [8, 32], strides = [1, 1]} : vector<16x128xf32> to vector<8x32xf32>
    %1271 = arith.truncf %1270 : vector<8x32xf32> to vector<8x32xbf16>
    %1272 = vector.extract_strided_slice %1268 {offsets = [0, 0], sizes = [8, 32], strides = [1, 1]} : vector<16x128xf32> to vector<8x32xf32>
    %1273 = arith.truncf %1272 : vector<8x32xf32> to vector<8x32xbf16>
    %1274 = vector.extract_strided_slice %1269 {offsets = [0, 0], sizes = [8, 32], strides = [1, 1]} : vector<16x128xf32> to vector<8x32xf32>
    %1275 = arith.truncf %1274 : vector<8x32xf32> to vector<8x32xbf16>
    %cst_432 = arith.constant dense<0.000000e+00> : vector<8x8xf32>
    %1276 = tpu.matmul %1271, %1273, %cst_432 {dimension_numbers = #tpu.dot_dimension_numbers<[1], [1], [0], [0], [0, 0, 1, 0], [], []>} : vector<8x32xbf16>, vector<8x32xbf16>, vector<8x8xf32> -> vector<8x8xf32>
    %cst_433 = arith.constant 0.176776692 : f32
    %1277 = vector.broadcast %cst_433 : f32 to vector<8x8xf32>
    %1278 = arith.mulf %1276, %1277 : vector<8x8xf32>
    %cst_434 = arith.constant dense<0xFF800000> : vector<8xf32>
    %1279 = vector.multi_reduction <maximumf>, %1278, %cst_434 [1] : vector<8x8xf32> to vector<8xf32>
    %1280 = vector.shape_cast %1279 : vector<8xf32> to vector<8x1xf32>
    %1281 = vector.broadcast %1280 : vector<8x1xf32> to vector<8x8xf32>
    %1282 = arith.subf %1278, %1281 : vector<8x8xf32>
    %1283 = math.exp %1282 : vector<8x8xf32>
    %cst_435 = arith.constant dense<0.000000e+00> : vector<8xf32>
    %1284 = vector.multi_reduction <add>, %1283, %cst_435 [1] : vector<8x8xf32> to vector<8xf32>
    %1285 = vector.shape_cast %1284 : vector<8xf32> to vector<8x1xf32>
    %1286 = tpu.reciprocal %1285 {approx = true} : vector<8x1xf32> -> vector<8x1xf32>
    %1287 = vector.broadcast %1286 : vector<8x1xf32> to vector<8x8xf32>
    %1288 = arith.mulf %1283, %1287 : vector<8x8xf32>
    %1289 = arith.truncf %1288 : vector<8x8xf32> to vector<8x8xbf16>
    %cst_436 = arith.constant dense<0.000000e+00> : vector<8x32xf32>
    %1290 = tpu.matmul %1289, %1275, %cst_436 {dimension_numbers = #tpu.dot_dimension_numbers<[1], [0], [0], [1], [0, 0, 1, 1], [], []>} : vector<8x8xbf16>, vector<8x32xbf16>, vector<8x32xf32> -> vector<8x32xf32>
    %1291 = vector.extract_strided_slice %1259 {offsets = [0, 32], sizes = [8, 32], strides = [1, 1]} : vector<16x128xf32> to vector<8x32xf32>
    %1292 = arith.truncf %1291 : vector<8x32xf32> to vector<8x32xbf16>
    %1293 = vector.extract_strided_slice %1268 {offsets = [0, 32], sizes = [8, 32], strides = [1, 1]} : vector<16x128xf32> to vector<8x32xf32>
    %1294 = arith.truncf %1293 : vector<8x32xf32> to vector<8x32xbf16>
    %1295 = vector.extract_strided_slice %1269 {offsets = [0, 32], sizes = [8, 32], strides = [1, 1]} : vector<16x128xf32> to vector<8x32xf32>
    %1296 = arith.truncf %1295 : vector<8x32xf32> to vector<8x32xbf16>
    %cst_437 = arith.constant dense<0.000000e+00> : vector<8x8xf32>
    %1297 = tpu.matmul %1292, %1294, %cst_437 {dimension_numbers = #tpu.dot_dimension_numbers<[1], [1], [0], [0], [0, 0, 1, 0], [], []>} : vector<8x32xbf16>, vector<8x32xbf16>, vector<8x8xf32> -> vector<8x8xf32>
    %cst_438 = arith.constant 0.176776692 : f32
    %1298 = vector.broadcast %cst_438 : f32 to vector<8x8xf32>
    %1299 = arith.mulf %1297, %1298 : vector<8x8xf32>
    %cst_439 = arith.constant dense<0xFF800000> : vector<8xf32>
    %1300 = vector.multi_reduction <maximumf>, %1299, %cst_439 [1] : vector<8x8xf32> to vector<8xf32>
    %1301 = vector.shape_cast %1300 : vector<8xf32> to vector<8x1xf32>
    %1302 = vector.broadcast %1301 : vector<8x1xf32> to vector<8x8xf32>
    %1303 = arith.subf %1299, %1302 : vector<8x8xf32>
    %1304 = math.exp %1303 : vector<8x8xf32>
    %cst_440 = arith.constant dense<0.000000e+00> : vector<8xf32>
    %1305 = vector.multi_reduction <add>, %1304, %cst_440 [1] : vector<8x8xf32> to vector<8xf32>
    %1306 = vector.shape_cast %1305 : vector<8xf32> to vector<8x1xf32>
    %1307 = tpu.reciprocal %1306 {approx = true} : vector<8x1xf32> -> vector<8x1xf32>
    %1308 = vector.broadcast %1307 : vector<8x1xf32> to vector<8x8xf32>
    %1309 = arith.mulf %1304, %1308 : vector<8x8xf32>
    %1310 = arith.truncf %1309 : vector<8x8xf32> to vector<8x8xbf16>
    %cst_441 = arith.constant dense<0.000000e+00> : vector<8x32xf32>
    %1311 = tpu.matmul %1310, %1296, %cst_441 {dimension_numbers = #tpu.dot_dimension_numbers<[1], [0], [0], [1], [0, 0, 1, 1], [], []>} : vector<8x8xbf16>, vector<8x32xbf16>, vector<8x32xf32> -> vector<8x32xf32>
    %1312 = vector.extract_strided_slice %1259 {offsets = [0, 64], sizes = [8, 32], strides = [1, 1]} : vector<16x128xf32> to vector<8x32xf32>
    %1313 = arith.truncf %1312 : vector<8x32xf32> to vector<8x32xbf16>
    %1314 = vector.extract_strided_slice %1268 {offsets = [0, 64], sizes = [8, 32], strides = [1, 1]} : vector<16x128xf32> to vector<8x32xf32>
    %1315 = arith.truncf %1314 : vector<8x32xf32> to vector<8x32xbf16>
    %1316 = vector.extract_strided_slice %1269 {offsets = [0, 64], sizes = [8, 32], strides = [1, 1]} : vector<16x128xf32> to vector<8x32xf32>
    %1317 = arith.truncf %1316 : vector<8x32xf32> to vector<8x32xbf16>
    %cst_442 = arith.constant dense<0.000000e+00> : vector<8x8xf32>
    %1318 = tpu.matmul %1313, %1315, %cst_442 {dimension_numbers = #tpu.dot_dimension_numbers<[1], [1], [0], [0], [0, 0, 1, 0], [], []>} : vector<8x32xbf16>, vector<8x32xbf16>, vector<8x8xf32> -> vector<8x8xf32>
    %cst_443 = arith.constant 0.176776692 : f32
    %1319 = vector.broadcast %cst_443 : f32 to vector<8x8xf32>
    %1320 = arith.mulf %1318, %1319 : vector<8x8xf32>
    %cst_444 = arith.constant dense<0xFF800000> : vector<8xf32>
    %1321 = vector.multi_reduction <maximumf>, %1320, %cst_444 [1] : vector<8x8xf32> to vector<8xf32>
    %1322 = vector.shape_cast %1321 : vector<8xf32> to vector<8x1xf32>
    %1323 = vector.broadcast %1322 : vector<8x1xf32> to vector<8x8xf32>
    %1324 = arith.subf %1320, %1323 : vector<8x8xf32>
    %1325 = math.exp %1324 : vector<8x8xf32>
    %cst_445 = arith.constant dense<0.000000e+00> : vector<8xf32>
    %1326 = vector.multi_reduction <add>, %1325, %cst_445 [1] : vector<8x8xf32> to vector<8xf32>
    %1327 = vector.shape_cast %1326 : vector<8xf32> to vector<8x1xf32>
    %1328 = tpu.reciprocal %1327 {approx = true} : vector<8x1xf32> -> vector<8x1xf32>
    %1329 = vector.broadcast %1328 : vector<8x1xf32> to vector<8x8xf32>
    %1330 = arith.mulf %1325, %1329 : vector<8x8xf32>
    %1331 = arith.truncf %1330 : vector<8x8xf32> to vector<8x8xbf16>
    %cst_446 = arith.constant dense<0.000000e+00> : vector<8x32xf32>
    %1332 = tpu.matmul %1331, %1317, %cst_446 {dimension_numbers = #tpu.dot_dimension_numbers<[1], [0], [0], [1], [0, 0, 1, 1], [], []>} : vector<8x8xbf16>, vector<8x32xbf16>, vector<8x32xf32> -> vector<8x32xf32>
    %1333 = vector.extract_strided_slice %1259 {offsets = [0, 96], sizes = [8, 32], strides = [1, 1]} : vector<16x128xf32> to vector<8x32xf32>
    %1334 = arith.truncf %1333 : vector<8x32xf32> to vector<8x32xbf16>
    %1335 = vector.extract_strided_slice %1268 {offsets = [0, 96], sizes = [8, 32], strides = [1, 1]} : vector<16x128xf32> to vector<8x32xf32>
    %1336 = arith.truncf %1335 : vector<8x32xf32> to vector<8x32xbf16>
    %1337 = vector.extract_strided_slice %1269 {offsets = [0, 96], sizes = [8, 32], strides = [1, 1]} : vector<16x128xf32> to vector<8x32xf32>
    %1338 = arith.truncf %1337 : vector<8x32xf32> to vector<8x32xbf16>
    %cst_447 = arith.constant dense<0.000000e+00> : vector<8x8xf32>
    %1339 = tpu.matmul %1334, %1336, %cst_447 {dimension_numbers = #tpu.dot_dimension_numbers<[1], [1], [0], [0], [0, 0, 1, 0], [], []>} : vector<8x32xbf16>, vector<8x32xbf16>, vector<8x8xf32> -> vector<8x8xf32>
    %cst_448 = arith.constant 0.176776692 : f32
    %1340 = vector.broadcast %cst_448 : f32 to vector<8x8xf32>
    %1341 = arith.mulf %1339, %1340 : vector<8x8xf32>
    %cst_449 = arith.constant dense<0xFF800000> : vector<8xf32>
    %1342 = vector.multi_reduction <maximumf>, %1341, %cst_449 [1] : vector<8x8xf32> to vector<8xf32>
    %1343 = vector.shape_cast %1342 : vector<8xf32> to vector<8x1xf32>
    %1344 = vector.broadcast %1343 : vector<8x1xf32> to vector<8x8xf32>
    %1345 = arith.subf %1341, %1344 : vector<8x8xf32>
    %1346 = math.exp %1345 : vector<8x8xf32>
    %cst_450 = arith.constant dense<0.000000e+00> : vector<8xf32>
    %1347 = vector.multi_reduction <add>, %1346, %cst_450 [1] : vector<8x8xf32> to vector<8xf32>
    %1348 = vector.shape_cast %1347 : vector<8xf32> to vector<8x1xf32>
    %1349 = tpu.reciprocal %1348 {approx = true} : vector<8x1xf32> -> vector<8x1xf32>
    %1350 = vector.broadcast %1349 : vector<8x1xf32> to vector<8x8xf32>
    %1351 = arith.mulf %1346, %1350 : vector<8x8xf32>
    %1352 = arith.truncf %1351 : vector<8x8xf32> to vector<8x8xbf16>
    %cst_451 = arith.constant dense<0.000000e+00> : vector<8x32xf32>
    %1353 = tpu.matmul %1352, %1338, %cst_451 {dimension_numbers = #tpu.dot_dimension_numbers<[1], [0], [0], [1], [0, 0, 1, 1], [], []>} : vector<8x8xbf16>, vector<8x32xbf16>, vector<8x32xf32> -> vector<8x32xf32>
    %1354 = tpu.concatenate %1290, %1311, %1332, %1353 in 1 : vector<8x32xf32>, vector<8x32xf32>, vector<8x32xf32>, vector<8x32xf32> -> vector<8x128xf32>
    %1355 = vector.extract_strided_slice %1259 {offsets = [8, 0], sizes = [8, 32], strides = [1, 1]} : vector<16x128xf32> to vector<8x32xf32>
    %1356 = arith.truncf %1355 : vector<8x32xf32> to vector<8x32xbf16>
    %1357 = vector.extract_strided_slice %1268 {offsets = [8, 0], sizes = [8, 32], strides = [1, 1]} : vector<16x128xf32> to vector<8x32xf32>
    %1358 = arith.truncf %1357 : vector<8x32xf32> to vector<8x32xbf16>
    %1359 = vector.extract_strided_slice %1269 {offsets = [8, 0], sizes = [8, 32], strides = [1, 1]} : vector<16x128xf32> to vector<8x32xf32>
    %1360 = arith.truncf %1359 : vector<8x32xf32> to vector<8x32xbf16>
    %cst_452 = arith.constant dense<0.000000e+00> : vector<8x8xf32>
    %1361 = tpu.matmul %1356, %1358, %cst_452 {dimension_numbers = #tpu.dot_dimension_numbers<[1], [1], [0], [0], [0, 0, 1, 0], [], []>} : vector<8x32xbf16>, vector<8x32xbf16>, vector<8x8xf32> -> vector<8x8xf32>
    %cst_453 = arith.constant 0.176776692 : f32
    %1362 = vector.broadcast %cst_453 : f32 to vector<8x8xf32>
    %1363 = arith.mulf %1361, %1362 : vector<8x8xf32>
    %cst_454 = arith.constant dense<0xFF800000> : vector<8xf32>
    %1364 = vector.multi_reduction <maximumf>, %1363, %cst_454 [1] : vector<8x8xf32> to vector<8xf32>
    %1365 = vector.shape_cast %1364 : vector<8xf32> to vector<8x1xf32>
    %1366 = vector.broadcast %1365 : vector<8x1xf32> to vector<8x8xf32>
    %1367 = arith.subf %1363, %1366 : vector<8x8xf32>
    %1368 = math.exp %1367 : vector<8x8xf32>
    %cst_455 = arith.constant dense<0.000000e+00> : vector<8xf32>
    %1369 = vector.multi_reduction <add>, %1368, %cst_455 [1] : vector<8x8xf32> to vector<8xf32>
    %1370 = vector.shape_cast %1369 : vector<8xf32> to vector<8x1xf32>
    %1371 = tpu.reciprocal %1370 {approx = true} : vector<8x1xf32> -> vector<8x1xf32>
    %1372 = vector.broadcast %1371 : vector<8x1xf32> to vector<8x8xf32>
    %1373 = arith.mulf %1368, %1372 : vector<8x8xf32>
    %1374 = arith.truncf %1373 : vector<8x8xf32> to vector<8x8xbf16>
    %cst_456 = arith.constant dense<0.000000e+00> : vector<8x32xf32>
    %1375 = tpu.matmul %1374, %1360, %cst_456 {dimension_numbers = #tpu.dot_dimension_numbers<[1], [0], [0], [1], [0, 0, 1, 1], [], []>} : vector<8x8xbf16>, vector<8x32xbf16>, vector<8x32xf32> -> vector<8x32xf32>
    %1376 = vector.extract_strided_slice %1259 {offsets = [8, 32], sizes = [8, 32], strides = [1, 1]} : vector<16x128xf32> to vector<8x32xf32>
    %1377 = arith.truncf %1376 : vector<8x32xf32> to vector<8x32xbf16>
    %1378 = vector.extract_strided_slice %1268 {offsets = [8, 32], sizes = [8, 32], strides = [1, 1]} : vector<16x128xf32> to vector<8x32xf32>
    %1379 = arith.truncf %1378 : vector<8x32xf32> to vector<8x32xbf16>
    %1380 = vector.extract_strided_slice %1269 {offsets = [8, 32], sizes = [8, 32], strides = [1, 1]} : vector<16x128xf32> to vector<8x32xf32>
    %1381 = arith.truncf %1380 : vector<8x32xf32> to vector<8x32xbf16>
    %cst_457 = arith.constant dense<0.000000e+00> : vector<8x8xf32>
    %1382 = tpu.matmul %1377, %1379, %cst_457 {dimension_numbers = #tpu.dot_dimension_numbers<[1], [1], [0], [0], [0, 0, 1, 0], [], []>} : vector<8x32xbf16>, vector<8x32xbf16>, vector<8x8xf32> -> vector<8x8xf32>
    %cst_458 = arith.constant 0.176776692 : f32
    %1383 = vector.broadcast %cst_458 : f32 to vector<8x8xf32>
    %1384 = arith.mulf %1382, %1383 : vector<8x8xf32>
    %cst_459 = arith.constant dense<0xFF800000> : vector<8xf32>
    %1385 = vector.multi_reduction <maximumf>, %1384, %cst_459 [1] : vector<8x8xf32> to vector<8xf32>
    %1386 = vector.shape_cast %1385 : vector<8xf32> to vector<8x1xf32>
    %1387 = vector.broadcast %1386 : vector<8x1xf32> to vector<8x8xf32>
    %1388 = arith.subf %1384, %1387 : vector<8x8xf32>
    %1389 = math.exp %1388 : vector<8x8xf32>
    %cst_460 = arith.constant dense<0.000000e+00> : vector<8xf32>
    %1390 = vector.multi_reduction <add>, %1389, %cst_460 [1] : vector<8x8xf32> to vector<8xf32>
    %1391 = vector.shape_cast %1390 : vector<8xf32> to vector<8x1xf32>
    %1392 = tpu.reciprocal %1391 {approx = true} : vector<8x1xf32> -> vector<8x1xf32>
    %1393 = vector.broadcast %1392 : vector<8x1xf32> to vector<8x8xf32>
    %1394 = arith.mulf %1389, %1393 : vector<8x8xf32>
    %1395 = arith.truncf %1394 : vector<8x8xf32> to vector<8x8xbf16>
    %cst_461 = arith.constant dense<0.000000e+00> : vector<8x32xf32>
    %1396 = tpu.matmul %1395, %1381, %cst_461 {dimension_numbers = #tpu.dot_dimension_numbers<[1], [0], [0], [1], [0, 0, 1, 1], [], []>} : vector<8x8xbf16>, vector<8x32xbf16>, vector<8x32xf32> -> vector<8x32xf32>
    %1397 = vector.extract_strided_slice %1259 {offsets = [8, 64], sizes = [8, 32], strides = [1, 1]} : vector<16x128xf32> to vector<8x32xf32>
    %1398 = arith.truncf %1397 : vector<8x32xf32> to vector<8x32xbf16>
    %1399 = vector.extract_strided_slice %1268 {offsets = [8, 64], sizes = [8, 32], strides = [1, 1]} : vector<16x128xf32> to vector<8x32xf32>
    %1400 = arith.truncf %1399 : vector<8x32xf32> to vector<8x32xbf16>
    %1401 = vector.extract_strided_slice %1269 {offsets = [8, 64], sizes = [8, 32], strides = [1, 1]} : vector<16x128xf32> to vector<8x32xf32>
    %1402 = arith.truncf %1401 : vector<8x32xf32> to vector<8x32xbf16>
    %cst_462 = arith.constant dense<0.000000e+00> : vector<8x8xf32>
    %1403 = tpu.matmul %1398, %1400, %cst_462 {dimension_numbers = #tpu.dot_dimension_numbers<[1], [1], [0], [0], [0, 0, 1, 0], [], []>} : vector<8x32xbf16>, vector<8x32xbf16>, vector<8x8xf32> -> vector<8x8xf32>
    %cst_463 = arith.constant 0.176776692 : f32
    %1404 = vector.broadcast %cst_463 : f32 to vector<8x8xf32>
    %1405 = arith.mulf %1403, %1404 : vector<8x8xf32>
    %cst_464 = arith.constant dense<0xFF800000> : vector<8xf32>
    %1406 = vector.multi_reduction <maximumf>, %1405, %cst_464 [1] : vector<8x8xf32> to vector<8xf32>
    %1407 = vector.shape_cast %1406 : vector<8xf32> to vector<8x1xf32>
    %1408 = vector.broadcast %1407 : vector<8x1xf32> to vector<8x8xf32>
    %1409 = arith.subf %1405, %1408 : vector<8x8xf32>
    %1410 = math.exp %1409 : vector<8x8xf32>
    %cst_465 = arith.constant dense<0.000000e+00> : vector<8xf32>
    %1411 = vector.multi_reduction <add>, %1410, %cst_465 [1] : vector<8x8xf32> to vector<8xf32>
    %1412 = vector.shape_cast %1411 : vector<8xf32> to vector<8x1xf32>
    %1413 = tpu.reciprocal %1412 {approx = true} : vector<8x1xf32> -> vector<8x1xf32>
    %1414 = vector.broadcast %1413 : vector<8x1xf32> to vector<8x8xf32>
    %1415 = arith.mulf %1410, %1414 : vector<8x8xf32>
    %1416 = arith.truncf %1415 : vector<8x8xf32> to vector<8x8xbf16>
    %cst_466 = arith.constant dense<0.000000e+00> : vector<8x32xf32>
    %1417 = tpu.matmul %1416, %1402, %cst_466 {dimension_numbers = #tpu.dot_dimension_numbers<[1], [0], [0], [1], [0, 0, 1, 1], [], []>} : vector<8x8xbf16>, vector<8x32xbf16>, vector<8x32xf32> -> vector<8x32xf32>
    %1418 = vector.extract_strided_slice %1259 {offsets = [8, 96], sizes = [8, 32], strides = [1, 1]} : vector<16x128xf32> to vector<8x32xf32>
    %1419 = arith.truncf %1418 : vector<8x32xf32> to vector<8x32xbf16>
    %1420 = vector.extract_strided_slice %1268 {offsets = [8, 96], sizes = [8, 32], strides = [1, 1]} : vector<16x128xf32> to vector<8x32xf32>
    %1421 = arith.truncf %1420 : vector<8x32xf32> to vector<8x32xbf16>
    %1422 = vector.extract_strided_slice %1269 {offsets = [8, 96], sizes = [8, 32], strides = [1, 1]} : vector<16x128xf32> to vector<8x32xf32>
    %1423 = arith.truncf %1422 : vector<8x32xf32> to vector<8x32xbf16>
    %cst_467 = arith.constant dense<0.000000e+00> : vector<8x8xf32>
    %1424 = tpu.matmul %1419, %1421, %cst_467 {dimension_numbers = #tpu.dot_dimension_numbers<[1], [1], [0], [0], [0, 0, 1, 0], [], []>} : vector<8x32xbf16>, vector<8x32xbf16>, vector<8x8xf32> -> vector<8x8xf32>
    %cst_468 = arith.constant 0.176776692 : f32
    %1425 = vector.broadcast %cst_468 : f32 to vector<8x8xf32>
    %1426 = arith.mulf %1424, %1425 : vector<8x8xf32>
    %cst_469 = arith.constant dense<0xFF800000> : vector<8xf32>
    %1427 = vector.multi_reduction <maximumf>, %1426, %cst_469 [1] : vector<8x8xf32> to vector<8xf32>
    %1428 = vector.shape_cast %1427 : vector<8xf32> to vector<8x1xf32>
    %1429 = vector.broadcast %1428 : vector<8x1xf32> to vector<8x8xf32>
    %1430 = arith.subf %1426, %1429 : vector<8x8xf32>
    %1431 = math.exp %1430 : vector<8x8xf32>
    %cst_470 = arith.constant dense<0.000000e+00> : vector<8xf32>
    %1432 = vector.multi_reduction <add>, %1431, %cst_470 [1] : vector<8x8xf32> to vector<8xf32>
    %1433 = vector.shape_cast %1432 : vector<8xf32> to vector<8x1xf32>
    %1434 = tpu.reciprocal %1433 {approx = true} : vector<8x1xf32> -> vector<8x1xf32>
    %1435 = vector.broadcast %1434 : vector<8x1xf32> to vector<8x8xf32>
    %1436 = arith.mulf %1431, %1435 : vector<8x8xf32>
    %1437 = arith.truncf %1436 : vector<8x8xf32> to vector<8x8xbf16>
    %cst_471 = arith.constant dense<0.000000e+00> : vector<8x32xf32>
    %1438 = tpu.matmul %1437, %1423, %cst_471 {dimension_numbers = #tpu.dot_dimension_numbers<[1], [0], [0], [1], [0, 0, 1, 1], [], []>} : vector<8x8xbf16>, vector<8x32xbf16>, vector<8x32xf32> -> vector<8x32xf32>
    %1439 = tpu.concatenate %1375, %1396, %1417, %1438 in 1 : vector<8x32xf32>, vector<8x32xf32>, vector<8x32xf32>, vector<8x32xf32> -> vector<8x128xf32>
    %1440 = tpu.concatenate %1354, %1439 in 0 : vector<8x128xf32>, vector<8x128xf32> -> vector<16x128xf32>
    %c1_472 = arith.constant 1 : index
    %c0_473 = arith.constant 0 : index
    %c0_474 = arith.constant 0 : index
    %1441 = vector.load %arg23[%c1_472, %c0_473, %c0_474] : memref<2x128x128xbf16, #tpu.memory_space<vmem>>, vector<1x128x128xbf16>
    %1442 = vector.shape_cast %1441 : vector<1x128x128xbf16> to vector<128x128xbf16>
    %c1_475 = arith.constant 1 : index
    %c0_476 = arith.constant 0 : index
    %c0_477 = arith.constant 0 : index
    %1443 = vector.load %arg24[%c1_475, %c0_476, %c0_477] : memref<2x1x128xf32, #tpu.memory_space<vmem>>, vector<1x1x128xf32>
    %1444 = vector.shape_cast %1443 : vector<1x1x128xf32> to vector<1x128xf32>
    %1445 = arith.truncf %1440 : vector<16x128xf32> to vector<16x128xbf16>
    %cst_478 = arith.constant dense<0.000000e+00> : vector<16x128xf32>
    %1446 = tpu.matmul %1445, %1442, %cst_478 {dimension_numbers = #tpu.dot_dimension_numbers<[1], [0], [0], [1], [0, 0, 1, 1], [], []>} : vector<16x128xbf16>, vector<128x128xbf16>, vector<16x128xf32> -> vector<16x128xf32>
    %1447 = vector.broadcast %1444 : vector<1x128xf32> to vector<16x128xf32>
    %1448 = arith.addf %1446, %1447 : vector<16x128xf32>
    %1449 = arith.addf %1251, %1448 : vector<16x128xf32>
    %c1_479 = arith.constant 1 : index
    %c0_480 = arith.constant 0 : index
    %c0_481 = arith.constant 0 : index
    %1450 = vector.load %arg25[%c1_479, %c0_480, %c0_481] : memref<2x1x128xf32, #tpu.memory_space<vmem>>, vector<1x1x128xf32>
    %1451 = vector.shape_cast %1450 : vector<1x1x128xf32> to vector<1x128xf32>
    %c1_482 = arith.constant 1 : index
    %c0_483 = arith.constant 0 : index
    %c0_484 = arith.constant 0 : index
    %1452 = vector.load %arg26[%c1_482, %c0_483, %c0_484] : memref<2x1x128xf32, #tpu.memory_space<vmem>>, vector<1x1x128xf32>
    %1453 = vector.shape_cast %1452 : vector<1x1x128xf32> to vector<1x128xf32>
    %cst_485 = arith.constant dense<0.000000e+00> : vector<16xf32>
    %1454 = vector.multi_reduction <add>, %1449, %cst_485 [1] : vector<16x128xf32> to vector<16xf32>
    %1455 = vector.shape_cast %1454 : vector<16xf32> to vector<16x1xf32>
    %cst_486 = arith.constant 1.280000e+02 : f32
    %1456 = vector.broadcast %cst_486 : f32 to vector<16x1xf32>
    %1457 = arith.divf %1455, %1456 : vector<16x1xf32>
    %1458 = vector.broadcast %1457 : vector<16x1xf32> to vector<16x128xf32>
    %1459 = arith.subf %1449, %1458 : vector<16x128xf32>
    %1460 = arith.mulf %1459, %1459 : vector<16x128xf32>
    %cst_487 = arith.constant dense<0.000000e+00> : vector<16xf32>
    %1461 = vector.multi_reduction <add>, %1460, %cst_487 [1] : vector<16x128xf32> to vector<16xf32>
    %1462 = vector.shape_cast %1461 : vector<16xf32> to vector<16x1xf32>
    %cst_488 = arith.constant 1.280000e+02 : f32
    %1463 = vector.broadcast %cst_488 : f32 to vector<16x1xf32>
    %1464 = arith.divf %1462, %1463 : vector<16x1xf32>
    %1465 = vector.broadcast %1457 : vector<16x1xf32> to vector<16x128xf32>
    %1466 = arith.subf %1449, %1465 : vector<16x128xf32>
    %cst_489 = arith.constant 9.99999974E-6 : f32
    %1467 = vector.broadcast %cst_489 : f32 to vector<16x1xf32>
    %1468 = arith.addf %1464, %1467 : vector<16x1xf32>
    %1469 = math.rsqrt %1468 : vector<16x1xf32>
    %1470 = vector.broadcast %1469 : vector<16x1xf32> to vector<16x128xf32>
    %1471 = arith.mulf %1466, %1470 : vector<16x128xf32>
    %1472 = vector.broadcast %1451 : vector<1x128xf32> to vector<16x128xf32>
    %1473 = arith.mulf %1471, %1472 : vector<16x128xf32>
    %1474 = vector.broadcast %1453 : vector<1x128xf32> to vector<16x128xf32>
    %1475 = arith.addf %1473, %1474 : vector<16x128xf32>
    %c1_490 = arith.constant 1 : index
    %c0_491 = arith.constant 0 : index
    %c0_492 = arith.constant 0 : index
    %1476 = vector.load %arg27[%c1_490, %c0_491, %c0_492] : memref<2x128x256xbf16, #tpu.memory_space<vmem>>, vector<1x128x256xbf16>
    %1477 = vector.shape_cast %1476 : vector<1x128x256xbf16> to vector<128x256xbf16>
    %c1_493 = arith.constant 1 : index
    %c0_494 = arith.constant 0 : index
    %c0_495 = arith.constant 0 : index
    %1478 = vector.load %arg28[%c1_493, %c0_494, %c0_495] : memref<2x1x256xf32, #tpu.memory_space<vmem>>, vector<1x1x256xf32>
    %1479 = vector.shape_cast %1478 : vector<1x1x256xf32> to vector<1x256xf32>
    %1480 = arith.truncf %1475 : vector<16x128xf32> to vector<16x128xbf16>
    %cst_496 = arith.constant dense<0.000000e+00> : vector<16x256xf32>
    %1481 = tpu.matmul %1480, %1477, %cst_496 {dimension_numbers = #tpu.dot_dimension_numbers<[1], [0], [0], [1], [0, 0, 1, 1], [], []>} : vector<16x128xbf16>, vector<128x256xbf16>, vector<16x256xf32> -> vector<16x256xf32>
    %1482 = vector.broadcast %1479 : vector<1x256xf32> to vector<16x256xf32>
    %1483 = arith.addf %1481, %1482 : vector<16x256xf32>
    %cst_497 = arith.constant 0.000000e+00 : f32
    %1484 = vector.broadcast %cst_497 : f32 to vector<16x256xf32>
    %1485 = arith.maximumf %1483, %1484 : vector<16x256xf32>
    %c1_498 = arith.constant 1 : index
    %c0_499 = arith.constant 0 : index
    %c0_500 = arith.constant 0 : index
    %1486 = vector.load %arg29[%c1_498, %c0_499, %c0_500] : memref<2x256x128xbf16, #tpu.memory_space<vmem>>, vector<1x256x128xbf16>
    %1487 = vector.shape_cast %1486 : vector<1x256x128xbf16> to vector<256x128xbf16>
    %c1_501 = arith.constant 1 : index
    %c0_502 = arith.constant 0 : index
    %c0_503 = arith.constant 0 : index
    %1488 = vector.load %arg30[%c1_501, %c0_502, %c0_503] : memref<2x1x128xf32, #tpu.memory_space<vmem>>, vector<1x1x128xf32>
    %1489 = vector.shape_cast %1488 : vector<1x1x128xf32> to vector<1x128xf32>
    %1490 = arith.truncf %1485 : vector<16x256xf32> to vector<16x256xbf16>
    %cst_504 = arith.constant dense<0.000000e+00> : vector<16x128xf32>
    %1491 = tpu.matmul %1490, %1487, %cst_504 {dimension_numbers = #tpu.dot_dimension_numbers<[1], [0], [0], [1], [0, 0, 1, 1], [], []>} : vector<16x256xbf16>, vector<256x128xbf16>, vector<16x128xf32> -> vector<16x128xf32>
    %1492 = vector.broadcast %1489 : vector<1x128xf32> to vector<16x128xf32>
    %1493 = arith.addf %1491, %1492 : vector<16x128xf32>
    %1494 = arith.addf %1475, %1493 : vector<16x128xf32>
    %c1_505 = arith.constant 1 : index
    %c0_506 = arith.constant 0 : index
    %c0_507 = arith.constant 0 : index
    %1495 = vector.load %arg31[%c1_505, %c0_506, %c0_507] : memref<2x1x128xf32, #tpu.memory_space<vmem>>, vector<1x1x128xf32>
    %1496 = vector.shape_cast %1495 : vector<1x1x128xf32> to vector<1x128xf32>
    %c1_508 = arith.constant 1 : index
    %c0_509 = arith.constant 0 : index
    %c0_510 = arith.constant 0 : index
    %1497 = vector.load %arg32[%c1_508, %c0_509, %c0_510] : memref<2x1x128xf32, #tpu.memory_space<vmem>>, vector<1x1x128xf32>
    %1498 = vector.shape_cast %1497 : vector<1x1x128xf32> to vector<1x128xf32>
    %cst_511 = arith.constant dense<0.000000e+00> : vector<16xf32>
    %1499 = vector.multi_reduction <add>, %1494, %cst_511 [1] : vector<16x128xf32> to vector<16xf32>
    %1500 = vector.shape_cast %1499 : vector<16xf32> to vector<16x1xf32>
    %cst_512 = arith.constant 1.280000e+02 : f32
    %1501 = vector.broadcast %cst_512 : f32 to vector<16x1xf32>
    %1502 = arith.divf %1500, %1501 : vector<16x1xf32>
    %1503 = vector.broadcast %1502 : vector<16x1xf32> to vector<16x128xf32>
    %1504 = arith.subf %1494, %1503 : vector<16x128xf32>
    %1505 = arith.mulf %1504, %1504 : vector<16x128xf32>
    %cst_513 = arith.constant dense<0.000000e+00> : vector<16xf32>
    %1506 = vector.multi_reduction <add>, %1505, %cst_513 [1] : vector<16x128xf32> to vector<16xf32>
    %1507 = vector.shape_cast %1506 : vector<16xf32> to vector<16x1xf32>
    %cst_514 = arith.constant 1.280000e+02 : f32
    %1508 = vector.broadcast %cst_514 : f32 to vector<16x1xf32>
    %1509 = arith.divf %1507, %1508 : vector<16x1xf32>
    %1510 = vector.broadcast %1502 : vector<16x1xf32> to vector<16x128xf32>
    %1511 = arith.subf %1494, %1510 : vector<16x128xf32>
    %cst_515 = arith.constant 9.99999974E-6 : f32
    %1512 = vector.broadcast %cst_515 : f32 to vector<16x1xf32>
    %1513 = arith.addf %1509, %1512 : vector<16x1xf32>
    %1514 = math.rsqrt %1513 : vector<16x1xf32>
    %1515 = vector.broadcast %1514 : vector<16x1xf32> to vector<16x128xf32>
    %1516 = arith.mulf %1511, %1515 : vector<16x128xf32>
    %1517 = vector.broadcast %1496 : vector<1x128xf32> to vector<16x128xf32>
    %1518 = arith.mulf %1516, %1517 : vector<16x128xf32>
    %1519 = vector.broadcast %1498 : vector<1x128xf32> to vector<16x128xf32>
    %1520 = arith.addf %1518, %1519 : vector<16x128xf32>
    %c0_516 = arith.constant 0 : index
    %c0_517 = arith.constant 0 : index
    %1521 = vector.load %arg35[%c0_516, %c0_517] : memref<1x128xf32, #tpu.memory_space<vmem>>, vector<1x128xf32>
    %c0_518 = arith.constant 0 : index
    %c0_519 = arith.constant 0 : index
    %1522 = vector.load %arg36[%c0_518, %c0_519] : memref<1x128xf32, #tpu.memory_space<vmem>>, vector<1x128xf32>
    %cst_520 = arith.constant dense<0.000000e+00> : vector<16xf32>
    %1523 = vector.multi_reduction <add>, %1520, %cst_520 [1] : vector<16x128xf32> to vector<16xf32>
    %1524 = vector.shape_cast %1523 : vector<16xf32> to vector<16x1xf32>
    %cst_521 = arith.constant 1.280000e+02 : f32
    %1525 = vector.broadcast %cst_521 : f32 to vector<16x1xf32>
    %1526 = arith.divf %1524, %1525 : vector<16x1xf32>
    %1527 = vector.broadcast %1526 : vector<16x1xf32> to vector<16x128xf32>
    %1528 = arith.subf %1520, %1527 : vector<16x128xf32>
    %1529 = arith.mulf %1528, %1528 : vector<16x128xf32>
    %cst_522 = arith.constant dense<0.000000e+00> : vector<16xf32>
    %1530 = vector.multi_reduction <add>, %1529, %cst_522 [1] : vector<16x128xf32> to vector<16xf32>
    %1531 = vector.shape_cast %1530 : vector<16xf32> to vector<16x1xf32>
    %cst_523 = arith.constant 1.280000e+02 : f32
    %1532 = vector.broadcast %cst_523 : f32 to vector<16x1xf32>
    %1533 = arith.divf %1531, %1532 : vector<16x1xf32>
    %1534 = vector.broadcast %1526 : vector<16x1xf32> to vector<16x128xf32>
    %1535 = arith.subf %1520, %1534 : vector<16x128xf32>
    %cst_524 = arith.constant 9.99999974E-6 : f32
    %1536 = vector.broadcast %cst_524 : f32 to vector<16x1xf32>
    %1537 = arith.addf %1533, %1536 : vector<16x1xf32>
    %1538 = math.rsqrt %1537 : vector<16x1xf32>
    %1539 = vector.broadcast %1538 : vector<16x1xf32> to vector<16x128xf32>
    %1540 = arith.mulf %1535, %1539 : vector<16x128xf32>
    %1541 = vector.broadcast %1521 : vector<1x128xf32> to vector<16x128xf32>
    %1542 = arith.mulf %1540, %1541 : vector<16x128xf32>
    %1543 = vector.broadcast %1522 : vector<1x128xf32> to vector<16x128xf32>
    %1544 = arith.addf %1542, %1543 : vector<16x128xf32>
    %1545 = vector.extract_strided_slice %1544 {offsets = [7, 0], sizes = [1, 128], strides = [1, 1]} : vector<16x128xf32> to vector<1x128xf32>
    %1546 = vector.extract_strided_slice %1544 {offsets = [15, 0], sizes = [1, 128], strides = [1, 1]} : vector<16x128xf32> to vector<1x128xf32>
    %1547 = tpu.concatenate %1545, %1546 in 0 : vector<1x128xf32>, vector<1x128xf32> -> vector<2x128xf32>
    %1548 = arith.truncf %1547 : vector<2x128xf32> to vector<2x128xbf16>
    %c0_525 = arith.constant 0 : index
    %c0_526 = arith.constant 0 : index
    %1549 = vector.load %arg37[%c0_525, %c0_526] : memref<128x512xbf16, #tpu.memory_space<vmem>>, vector<128x512xbf16>
    %cst_527 = arith.constant dense<0.000000e+00> : vector<2x512xf32>
    %1550 = tpu.matmul %1548, %1549, %cst_527 {dimension_numbers = #tpu.dot_dimension_numbers<[1], [0], [0], [1], [0, 0, 1, 1], [], []>} : vector<2x128xbf16>, vector<128x512xbf16>, vector<2x512xf32> -> vector<2x512xf32>
    %c0_528 = arith.constant 0 : index
    %c0_529 = arith.constant 0 : index
    %1551 = vector.load %arg38[%c0_528, %c0_529] : memref<1x512xf32, #tpu.memory_space<vmem>>, vector<1x512xf32>
    %1552 = vector.broadcast %1551 : vector<1x512xf32> to vector<2x512xf32>
    %1553 = arith.addf %1550, %1552 : vector<2x512xf32>
    %cst_530 = arith.constant dense<0xFF800000> : vector<2xf32>
    %1554 = vector.multi_reduction <maximumf>, %1553, %cst_530 [1] : vector<2x512xf32> to vector<2xf32>
    %1555 = vector.shape_cast %1554 : vector<2xf32> to vector<2x1xf32>
    %1556 = vector.broadcast %1555 : vector<2x1xf32> to vector<2x512xf32>
    %1557 = arith.subf %1553, %1556 : vector<2x512xf32>
    %1558 = math.exp %1557 : vector<2x512xf32>
    %cst_531 = arith.constant dense<0.000000e+00> : vector<2xf32>
    %1559 = vector.multi_reduction <add>, %1558, %cst_531 [1] : vector<2x512xf32> to vector<2xf32>
    %1560 = vector.shape_cast %1559 : vector<2xf32> to vector<2x1xf32>
    %cst_532 = arith.constant 1.000000e+00 : f32
    %1561 = vector.broadcast %cst_532 : f32 to vector<2x1xf32>
    %1562 = arith.divf %1561, %1560 : vector<2x1xf32>
    %1563 = vector.broadcast %1562 : vector<2x1xf32> to vector<2x512xf32>
    %1564 = arith.mulf %1558, %1563 : vector<2x512xf32>
    %c0_533 = arith.constant 0 : index
    %c0_534 = arith.constant 0 : index
    %1565 = vector.load %arg39[%c0_533, %c0_534] : memref<2x512xf32, #tpu.memory_space<vmem>>, vector<2x512xf32>
    tpu.vector_store %arg39[%c0_533, %c0_534], %1564 {strides = array<i32>} : memref<2x512xf32, #tpu.memory_space<vmem>>, vector<2x512xf32>,
    return
  }
}

</mosaic_0001>

<bundles_post_ra>
// kernel: toy_transformer_forward.1
= control target key start
LH: loop header
LB: loop body
LE: loop exit
PB: predicated region body
PF: predicated region fallthrough
CT: control target
= control target key end

     0   :  { %s14050_s6 = smov 1   ;;  %s14051_s10 = smov 2   ;;  %s15853_s0 = inlined_call_operand.smem [shape: u32[40], index: -1, kind: input, shape index: {}] }
   0x1   :  { %s14151_s5 = sld [smem:[%s15853_s0]]   ;;  %s14052_s14 = smov 3  }
   0x2   :  { %s14156_s9 = sld [smem:[%s15853_s0 + %s14050_s6]]   ;;  %s14053_s18 = smov 4  }
   0x3   :  { %s14161_s13 = sld [smem:[%s15853_s0 + %s14051_s10]]   ;;  %s14054_s22 = smov 5  }
   0x4   :  { %s14166_s17 = sld [smem:[%s15853_s0 + %s14052_s14]]   ;;  %s14055_s26 = smov 6  }
   0x5   :  { %s14171_s21 = sld [smem:[%s15853_s0 + %s14053_s18]]   ;;  %s14056_s30 = smov 7  }
   0x6   :  { %s14176_s25 = sld [smem:[%s15853_s0 + %s14054_s22]]   ;;  %s14057_s4 = smov 8  }
   0x7   :  { %15858 = sst [smem:[#allocation76_spill]] %s14151_s5  ;;  %s14058_s10 = smov 9  }
   0x8   :  { %15859 = sst [smem:[#allocation77_spill]] %s14156_s9  ;;  %s14059_s15 = smov 10  }
   0x9   :  { %s14181_s29 = sld [smem:[%s15853_s0 + %s14055_s26]]   ;;  %s14060_s20 = smov 11  }
   0xa   :  { %15860 = sst [smem:[#allocation78_spill]] %s14166_s17  ;;  %s14061_s26 = smov 12  }
   0xb   :  { %s14186_s3 = sld [smem:[%s15853_s0 + %s14056_s30]]   ;;  %s14062_s1 = smov 13  }
   0xc   :  { %15861 = sst [smem:[#allocation79_spill]] %s14176_s25  ;;  %s14063_s7 = smov 14  }
   0xd   :  { %s14191_s8 = sld [smem:[%s15853_s0 + %s14057_s4]]   ;;  %s14065_s22 = smov 16  }
   0xe   :  { %s14196_s14 = sld [smem:[%s15853_s0 + %s14058_s10]]   ;;  %s14066_s28 = smov 17  }
   0xf   :  { %s14201_s19 = sld [smem:[%s15853_s0 + %s14059_s15]]   ;;  %s14064_s15 = smov 15  }
  0x10   :  { %s14206_s24 = sld [smem:[%s15853_s0 + %s14060_s20]]  }
  0x11   :  { %15862 = sst [smem:[#allocation80_spill]] %s14186_s3 }
  0x12   :  { %s14211_s30 = sld [smem:[%s15853_s0 + %s14061_s26]]  }
  0x13   :  { %s14216_s6 = sld [smem:[%s15853_s0 + %s14062_s1]]  }
  0x14   :  { %15863 = sst [smem:[#allocation81_spill]] %s14196_s14 }
  0x15   :  { %s14221_s12 = sld [smem:[%s15853_s0 + %s14063_s7]]   ;;  %s14067_s7 = smov 18  }
  0x16   :  { %15864 = sst [smem:[#allocation82_spill]] %s14206_s24 }
  0x17   :  { %s14226_s20 = sld [smem:[%s15853_s0 + %s14064_s15]]   ;;  %s14068_s15 = smov 19  }
  0x18   :  { %s14231_s27 = sld [smem:[%s15853_s0 + %s14065_s22]]   ;;  %s14069_s22 = smov 20  }
  0x19   :  { %15865 = sst [smem:[#allocation83_spill]] %s14216_s6 }
  0x1a   :  { %s14236_s4 = sld [smem:[%s15853_s0 + %s14066_s28]]   ;;  %s14070_s28 = smov 21  }
  0x1b   :  { %s14241_s5 = sld [smem:[%s15853_s0 + %s14067_s7]]   ;;  %s14071_s7 = smov 22  }
  0x1c   :  { %s14251_s6 = sld [smem:[%s15853_s0 + %s14069_s22]]   ;;  %s14073_s22 = smov 24  }
  0x1d   :  { %15866 = sst [smem:[#allocation84_spill]] %s14226_s20 }
  0x1e   :  { %s14246_s20 = sld [smem:[%s15853_s0 + %s14068_s15]]   ;;  %s14072_s15 = smov 23  }
  0x1f   :  { %s14261_s24 = sld [smem:[%s15853_s0 + %s14071_s7]]   ;;  %s14075_s7 = smov 26  }
  0x20   :  { %15867 = sst [smem:[#allocation85_spill]] %s14236_s4 }
  0x21   :  { %s14256_s4 = sld [smem:[%s15853_s0 + %s14070_s28]]   ;;  %s14074_s28 = smov 25  }
  0x22   :  { %s14271_s14 = sld [smem:[%s15853_s0 + %s14073_s22]]   ;;  %s14077_s22 = smov 28  }
  0x23   :  { %s14291_s3 = sld [smem:[%s15853_s0 + %s14077_s22]]   ;;  %s14081_s22 = smov 32  }
  0x24   :  { %15868 = sst [smem:[#allocation86_spill]] %s14246_s20 }
  0x25   :  { %15870 = sst [smem:[#allocation88_spill]] %s14261_s24 }
  0x26   :  { %s14266_s20 = sld [smem:[%s15853_s0 + %s14072_s15]]   ;;  %s14076_s15 = smov 27  }
  0x27   :  { %15869 = sst [smem:[#allocation87_spill]] %s14256_s4 }
  0x28   :  { %s14276_s4 = sld [smem:[%s15853_s0 + %s14074_s28]]   ;;  %s14078_s28 = smov 29  }
  0x29   :  { %s14281_s24 = sld [smem:[%s15853_s0 + %s14075_s7]]   ;;  %s14079_s7 = smov 30  }
  0x2a   :  { %s14301_s25 = sld [smem:[%s15853_s0 + %s14079_s7]]   ;;  %s14083_s7 = smov 34  }
  0x2b   :  { %s14311_s17 = sld [smem:[%s15853_s0 + %s14081_s22]]   ;;  %s14085_s22 = smov 36  }
  0x2c   :  { %15871 = sst [smem:[#allocation89_spill]] %s14266_s20 }
  0x2d   :  { %s14286_s20 = sld [smem:[%s15853_s0 + %s14076_s15]]   ;;  %s14080_s15 = smov 31  }
  0x2e   :  { %15872 = sst [smem:[#allocation90_spill]] %s14276_s4 }
  0x2f   :  { %s14296_s4 = sld [smem:[%s15853_s0 + %s14078_s28]]   ;;  %s14082_s28 = smov 33  }
  0x30   :  { %15875 = sst [smem:[#allocation93_spill]] %s14301_s25 }
  0x31   :  { %15876 = sst [smem:[#allocation94_spill]] %s14311_s17 }
  0x32   :  { %s14321_s25 = sld [smem:[%s15853_s0 + %s14083_s7]]   ;;  %s14087_s7 = smov 38  }
  0x33   :  { %15873 = sst [smem:[#allocation91_spill]] %s14286_s20 }
  0x34   :  { %s14306_s20 = sld [smem:[%s15853_s0 + %s14080_s15]]   ;;  %s14084_s15 = smov 35  }
  0x35   :  { %15874 = sst [smem:[#allocation92_spill]] %s14296_s4 }
  0x36   :  { %s14316_s4 = sld [smem:[%s15853_s0 + %s14082_s28]]   ;;  %s14086_s28 = smov 37  }
  0x37   :  { %s14326_s9 = sld [smem:[%s15853_s0 + %s14084_s15]]   ;;  %s14088_s15 = smov 39  }
  0x38   :  { %15878 = sst [smem:[#allocation96_spill]] %s14321_s25 }
  0x39   :  { %s14331_s17 = sld [smem:[%s15853_s0 + %s14085_s22]]  }
  0x3a   :  { %s14341_s25 = sld [smem:[%s15853_s0 + %s14087_s7]]  }
  0x3c   :  { %15877 = sst [smem:[#allocation95_spill]] %s14316_s4 }
  0x3d   :  { %15879 = sst [smem:[#allocation97_spill]] %s14326_s9 }
  0x3e   :  { %s14336_s4 = sld [smem:[%s15853_s0 + %s14086_s28]]  }
  0x3f   :  { %s14346_s9 = sld [smem:[%s15853_s0 + %s14088_s15]]  }
  0x40   :  { %84 = vsyncpa [#allocation3], 0 }
  0x41   :  { %85 = vsyncpa [#allocation6], 0 }
  0x42   :  { %86 = vsyncpa [#allocation9], 0 }
  0x43   :  { %87 = vsyncpa [#allocation12], 0 }
  0x44   :  { %88 = vsyncpa [#allocation15], 0 }
  0x45   :  { %89 = vsyncpa [#allocation18], 0 }
  0x46   :  { %90 = vsyncpa [#allocation21], 0 }
  0x47   :  { %91 = vsyncpa [#allocation24], 0 }
  0x48   :  { %92 = vsyncpa [#allocation27], 0 }
  0x49   :  { %93 = vsyncpa [#allocation30], 0 }
  0x4a   :  { %94 = vsyncpa [#allocation33], 0 }
  0x4b   :  { %95 = vsyncpa [#allocation36], 0 }
  0x4c   :  { %96 = vsyncpa [#allocation39], 0 }
  0x4d   :  { %97 = vsyncpa [#allocation42], 0 }
  0x4e   :  { %98 = vsyncpa [#allocation45], 0 }
  0x4f   :  { %99 = vsyncpa [#allocation48], 0 }
  0x50   :  { %100 = vsyncpa [#allocation51], 0 }
  0x51   :  { %101 = vsyncpa [#allocation54], 0 }
  0x52   :  { %102 = vsyncpa [#allocation4], 0  ;;  %s14089_s0 = smov [#allocation5]  }
  0x53   :  { %s122_s22 = sshll.u32 %s14089_s0, 4  ;;  %s123_s22 = int_to_ptr.vmem [resolvable:$true] %s122_s22 }
  0x54   :  { %s13300_s23 = scalar_lea.vmem %s123_s22, 96  ;;  %p13305_p1 = scmp.lt.s32.totalorder %s123_s22, %s123_s22 }
  0x55   :  { %p13301_p0 = scmp.ne.s32.totalorder %s123_s22, %s13300_s23  ;;  %p13306_p2 = scmp.lt.s32.totalorder %s13300_s23, %s13300_s23 }
  0x57   :  { %p13307_p3 = por %p13306_p2, %p13305_p1 }
  0x59   :  { %p13308_p4 = pnand %p13307_p3, %p13301_p0 }
  0x5b   :  { %13311 = shalt.err (!%p13308_p4)
}
  0x5c   :  { %s14090_s26 = smov 48   ;;  %s14091_s28 = smov 3  }
  0x5d   :  { %128 = dma.hbm_to_vmem [thread:$0]  %s14161_s13, 96, %s123_s22, [#allocation6], %s14090_s26, %s14090_s26, %s14091_s28  }
  0x5e   :  { %s14092_s1 = smov [#allocation8]  }
  0x5f   :  { %s146_s2 = sshll.u32 %s14092_s1, 4  ;;  %s147_s2 = int_to_ptr.vmem [resolvable:$true] %s146_s2 }
  0x60   :  { %s13320_s7 = scalar_lea.vmem %s147_s2, 32  ;;  %p13325_p6 = scmp.lt.s32.totalorder %s147_s2, %s147_s2 }
  0x61   :  { %p13321_p5 = scmp.ne.s32.totalorder %s147_s2, %s13320_s7  ;;  %p13326_p7 = scmp.lt.s32.totalorder %s13320_s7, %s13320_s7 }
  0x63   :  { %p13327_p8 = por %p13326_p7, %p13325_p6 }
  0x65   :  { %p13328_p9 = pnand %p13327_p8, %p13321_p5 }
  0x67   :  { %13331 = shalt.err (!%p13328_p9)
}
  0x68   :  { %s14093_s10 = smov 16   ;;  %s14094_s11 = smov 1  }
  0x69   :  { %152 = dma.hbm_to_vmem [thread:$0]  %s14171_s21, 32, %s147_s2, [#allocation9], %s14093_s10, %s14093_s10, %s14094_s11  }
  0x6a   :  { %s14095_s15 = smov [#allocation11]   ;;  %s14096_s13 = smov [#allocation14]  }
  0x6b   :  { %s170_s16 = sshll.u32 %s14095_s15, 4  ;;  %s194_s18 = sshll.u32 %s14096_s13, 4  ;;  %s171_s16 = int_to_ptr.vmem [resolvable:$true] %s170_s16  ;;  %s195_s18 = int_to_ptr.vmem [resolvable:$true] %s194_s18 }
  0x6c   :  { %s13340_s0 = scalar_lea.vmem %s171_s16, 32  ;;  %p13345_p11 = scmp.lt.s32.totalorder %s171_s16, %s171_s16 }
  0x6d   :  { %p13341_p10 = scmp.ne.s32.totalorder %s171_s16, %s13340_s0  ;;  %p13346_p12 = scmp.lt.s32.totalorder %s13340_s0, %s13340_s0 }
  0x6f   :  { %p13347_p13 = por %p13346_p12, %p13345_p11 }
  0x71   :  { %p13348_p0 = pnand %p13347_p13, %p13341_p10 }
  0x73   :  { %13351 = shalt.err (!%p13348_p0)
}
  0x74   :  { %176 = dma.hbm_to_vmem [thread:$0]  %s14181_s29, 32, %s171_s16, [#allocation12], %s14093_s10, %s14093_s10, %s14094_s11  }
  0x75   :  { %s13360_s22 = scalar_lea.vmem %s195_s18, 64  ;;  %p13365_p2 = scmp.lt.s32.totalorder %s195_s18, %s195_s18 }
  0x76   :  { %p13361_p1 = scmp.ne.s32.totalorder %s195_s18, %s13360_s22  ;;  %p13366_p3 = scmp.lt.s32.totalorder %s13360_s22, %s13360_s22 }
  0x78   :  { %p13367_p4 = por %p13366_p3, %p13365_p2 }
  0x7a   :  { %p13368_p5 = pnand %p13367_p4, %p13361_p1 }
  0x7c   :  { %13371 = shalt.err (!%p13368_p5)
}
  0x7d   :  { %s14097_s21 = smov 32   ;;  %s14098_s23 = smov 2  }
  0x7e   :  { %200 = dma.hbm_to_vmem [thread:$0]  %s14191_s8, 64, %s195_s18, [#allocation15], %s14097_s21, %s14097_s21, %s14098_s23  }
  0x7f   :  { %s14099_s1 = smov [#allocation17]   ;;  %s14100_s7 = smov [#allocation20]  }
  0x80   :  { %s218_s2 = sshll.u32 %s14099_s1, 4  ;;  %s242_s15 = sshll.u32 %s14100_s7, 4  ;;  %s219_s2 = int_to_ptr.vmem [resolvable:$true] %s218_s2  ;;  %s243_s15 = int_to_ptr.vmem [resolvable:$true] %s242_s15 }
  0x81   :  { %s13380_s29 = scalar_lea.vmem %s219_s2, 32  ;;  %p13385_p7 = scmp.lt.s32.totalorder %s219_s2, %s219_s2 }
  0x82   :  { %p13381_p6 = scmp.ne.s32.totalorder %s219_s2, %s13380_s29  ;;  %p13386_p8 = scmp.lt.s32.totalorder %s13380_s29, %s13380_s29 }
  0x84   :  { %p13387_p9 = por %p13386_p8, %p13385_p7 }
  0x86   :  { %p13388_p10 = pnand %p13387_p9, %p13381_p6 }
  0x88   :  { %13391 = shalt.err (!%p13388_p10)
}
  0x89   :  { %224 = dma.hbm_to_vmem [thread:$0]  %s14201_s19, 32, %s219_s2, [#allocation18], %s14093_s10, %s14093_s10, %s14094_s11  }
  0x8a   :  { %s13400_s16 = scalar_lea.vmem %s243_s15, 32  ;;  %p13405_p12 = scmp.lt.s32.totalorder %s243_s15, %s243_s15 }
  0x8b   :  { %p13401_p11 = scmp.ne.s32.totalorder %s243_s15, %s13400_s16  ;;  %p13406_p13 = scmp.lt.s32.totalorder %s13400_s16, %s13400_s16 }
  0x8d   :  { %p13407_p0 = por %p13406_p13, %p13405_p12 }
  0x8f   :  { %p13408_p1 = pnand %p13407_p0, %p13401_p11 }
  0x91   :  { %13411 = shalt.err (!%p13408_p1)
}
  0x92   :  { %248 = dma.hbm_to_vmem [thread:$0]  %s14211_s30, 32, %s243_s15, [#allocation21], %s14093_s10, %s14093_s10, %s14094_s11  }
  0x93   :  { %s14101_s8 = smov [#allocation23]   ;;  %s14102_s18 = smov [#allocation26]  }
  0x94   :  { %s266_s13 = sshll.u32 %s14101_s8, 4  ;;  %s290_s0 = sshll.u32 %s14102_s18, 4  ;;  %s267_s13 = int_to_ptr.vmem [resolvable:$true] %s266_s13  ;;  %s291_s0 = int_to_ptr.vmem [resolvable:$true] %s290_s0 }
  0x95   :  { %s13420_s22 = scalar_lea.vmem %s267_s13, 96  ;;  %p13425_p3 = scmp.lt.s32.totalorder %s267_s13, %s267_s13 }
  0x96   :  { %p13421_p2 = scmp.ne.s32.totalorder %s267_s13, %s13420_s22  ;;  %p13426_p4 = scmp.lt.s32.totalorder %s13420_s22, %s13420_s22 }
  0x98   :  { %p13427_p5 = por %p13426_p4, %p13425_p3 }
  0x9a   :  { %p13428_p6 = pnand %p13427_p5, %p13421_p2 }
  0x9c   :  { %13431 = shalt.err (!%p13428_p6)
}
  0x9d   :  { %272 = dma.hbm_to_vmem [thread:$0]  %s14221_s12, 96, %s267_s13, [#allocation24], %s14090_s26, %s14090_s26, %s14091_s28  }
  0x9e   :  { %s13440_s19 = scalar_lea.vmem %s291_s0, 32  ;;  %p13445_p8 = scmp.lt.s32.totalorder %s291_s0, %s291_s0 }
  0x9f   :  { %p13441_p7 = scmp.ne.s32.totalorder %s291_s0, %s13440_s19  ;;  %p13446_p9 = scmp.lt.s32.totalorder %s13440_s19, %s13440_s19 }
  0xa1   :  { %p13447_p10 = por %p13446_p9, %p13445_p8 }
  0xa3   :  { %p13448_p11 = pnand %p13447_p10, %p13441_p7 }
  0xa5   :  { %13451 = shalt.err (!%p13448_p11)
}
  0xa6   :  { %296 = dma.hbm_to_vmem [thread:$0]  %s14231_s27, 32, %s291_s0, [#allocation27], %s14093_s10, %s14093_s10, %s14094_s11  }
  0xa7   :  { %s14103_s30 = smov [#allocation29]   ;;  %s14104_s2 = smov [#allocation32]  }
  0xa8   :  { %s314_s1 = sshll.u32 %s14103_s30, 4  ;;  %s338_s7 = sshll.u32 %s14104_s2, 4  ;;  %s315_s1 = int_to_ptr.vmem [resolvable:$true] %s314_s1  ;;  %s339_s7 = int_to_ptr.vmem [resolvable:$true] %s338_s7 }
  0xa9   :  { %s13460_s15 = scalar_lea.vmem %s315_s1, 32  ;;  %p13465_p13 = scmp.lt.s32.totalorder %s315_s1, %s315_s1 }
  0xaa   :  { %p13461_p12 = scmp.ne.s32.totalorder %s315_s1, %s13460_s15  ;;  %p13466_p0 = scmp.lt.s32.totalorder %s13460_s15, %s13460_s15 }
  0xac   :  { %p13467_p1 = por %p13466_p0, %p13465_p13 }
  0xae   :  { %p13468_p2 = pnand %p13467_p1, %p13461_p12 }
  0xb0   :  { %13471 = shalt.err (!%p13468_p2)
}
  0xb1   :  { %320 = dma.hbm_to_vmem [thread:$0]  %s14241_s5, 32, %s315_s1, [#allocation30], %s14093_s10, %s14093_s10, %s14094_s11  }
  0xb2   :  { %s13480_s12 = scalar_lea.vmem %s339_s7, 32  ;;  %p13485_p4 = scmp.lt.s32.totalorder %s339_s7, %s339_s7 }
  0xb3   :  { %p13481_p3 = scmp.ne.s32.totalorder %s339_s7, %s13480_s12  ;;  %p13486_p5 = scmp.lt.s32.totalorder %s13480_s12, %s13480_s12 }
  0xb5   :  { %p13487_p6 = por %p13486_p5, %p13485_p4 }
  0xb7   :  { %p13488_p7 = pnand %p13487_p6, %p13481_p3 }
  0xb9   :  { %13491 = shalt.err (!%p13488_p7)
}
  0xba   :  { %344 = dma.hbm_to_vmem [thread:$0]  %s14251_s6, 32, %s339_s7, [#allocation33], %s14093_s10, %s14093_s10, %s14094_s11  }
  0xbb   :  { %s14105_s27 = smov [#allocation35]   ;;  %s14106_s28 = smov [#allocation38]  }
  0xbc   :  { %s366_s26 = sshll.u32 %s14105_s27, 4  ;;  %s390_s29 = sshll.u32 %s14106_s28, 4  ;;  %s367_s26 = int_to_ptr.vmem [resolvable:$true] %s366_s26  ;;  %s391_s29 = int_to_ptr.vmem [resolvable:$true] %s390_s29 }
  0xbd   :  { %s13500_s16 = scalar_lea.vmem %s367_s26, 32  ;;  %p13505_p9 = scmp.lt.s32.totalorder %s367_s26, %s367_s26 }
  0xbe   :  { %p13501_p8 = scmp.ne.s32.totalorder %s367_s26, %s13500_s16  ;;  %p13506_p10 = scmp.lt.s32.totalorder %s13500_s16, %s13500_s16 }
  0xc0   :  { %p13507_p11 = por %p13506_p10, %p13505_p9 }
  0xc2   :  { %p13508_p12 = pnand %p13507_p11, %p13501_p8 }
  0xc4   :  { %13511 = shalt.err (!%p13508_p12)
}
  0xc5   :  { %372 = dma.hbm_to_vmem [thread:$0]  %s14271_s14, 32, %s367_s26, [#allocation36], %s14093_s10, %s14093_s10, %s14094_s11  }
  0xc6   :  { %s13520_s5 = scalar_lea.vmem %s391_s29, 32  ;;  %p13525_p0 = scmp.lt.s32.totalorder %s391_s29, %s391_s29 }
  0xc7   :  { %p13521_p13 = scmp.ne.s32.totalorder %s391_s29, %s13520_s5  ;;  %p13526_p1 = scmp.lt.s32.totalorder %s13520_s5, %s13520_s5 }
  0xc9   :  { %p13527_p2 = por %p13526_p1, %p13525_p0 }
  0xcb   :  { %p13528_p3 = pnand %p13527_p2, %p13521_p13 }
  0xcd   :  { %13531 = shalt.err (!%p13528_p3)
}
  0xce   :  { %396 = dma.hbm_to_vmem [thread:$0]  %s14281_s24, 32, %s391_s29, [#allocation39], %s14093_s10, %s14093_s10, %s14094_s11  }
  0xcf   :  { %s14107_s6 = smov [#allocation41]   ;;  %s14108_s13 = smov [#allocation44]  }
  0xd0   :  { %s414_s8 = sshll.u32 %s14107_s6, 4  ;;  %s440_s18 = sshll.u32 %s14108_s13, 4  ;;  %s415_s8 = int_to_ptr.vmem [resolvable:$true] %s414_s8  ;;  %s441_s18 = int_to_ptr.vmem [resolvable:$true] %s440_s18 }
  0xd1   :  { %s13540_s0 = scalar_lea.vmem %s415_s8, 64  ;;  %p13545_p5 = scmp.lt.s32.totalorder %s415_s8, %s415_s8 }
  0xd2   :  { %p13541_p4 = scmp.ne.s32.totalorder %s415_s8, %s13540_s0  ;;  %p13546_p6 = scmp.lt.s32.totalorder %s13540_s0, %s13540_s0 }
  0xd4   :  { %p13547_p7 = por %p13546_p6, %p13545_p5 }
  0xd6   :  { %p13548_p8 = pnand %p13547_p7, %p13541_p4 }
  0xd8   :  { %13551 = shalt.err (!%p13548_p8)
}
  0xd9   :  { %420 = dma.hbm_to_vmem [thread:$0]  %s14291_s3, 64, %s415_s8, [#allocation42], %s14097_s21, %s14097_s21, %s14098_s23  }
  0xda   :  { %s13560_s14 = scalar_lea.vmem %s441_s18, 32  ;;  %p13565_p10 = scmp.lt.s32.totalorder %s441_s18, %s441_s18 }
  0xdb   :  { %p13561_p9 = scmp.ne.s32.totalorder %s441_s18, %s13560_s14  ;;  %p13566_p11 = scmp.lt.s32.totalorder %s13560_s14, %s13560_s14 }
  0xdd   :  { %p13567_p12 = por %p13566_p11, %p13565_p10 }
  0xdf   :  { %p13568_p13 = pnand %p13567_p12, %p13561_p9 }
  0xe1   :  { %13571 = shalt.err (!%p13568_p13)
}
  0xe2   :  { %446 = dma.hbm_to_vmem [thread:$0]  %s14306_s20, 32, %s441_s18, [#allocation45], %s14093_s10, %s14093_s10, %s14094_s11  }
  0xe3   :  { %s14109_s24 = smov [#allocation47]   ;;  %s14110_s19 = smov [#allocation50]  }
  0xe4   :  { %s465_s22 = sshll.u32 %s14109_s24, 4  ;;  %s485_s30 = sshll.u32 %s14110_s19, 4  ;;  %s466_s22 = int_to_ptr.vmem [resolvable:$true] %s465_s22  ;;  %s486_s30 = int_to_ptr.vmem [resolvable:$true] %s485_s30 }
  0xe5   :  { %s13580_s1 = scalar_lea.vmem %s466_s22, 16  ;;  %s13584_s3 = scalar_lea.vmem %s466_s22, 32 }
  0xe6   :  { %p13581_p0 = scmp.ne.s32.totalorder %s466_s22, %s13580_s1  ;;  %p13585_p1 = scmp.lt.s32.totalorder %s466_s22, %s466_s22 }
  0xe7   :  { %p13586_p2 = scmp.lt.s32.totalorder %s13584_s3, %s13580_s1 }
  0xe9   :  { %p13587_p3 = por %p13586_p2, %p13585_p1 }
  0xeb   :  { %p13588_p4 = pnand %p13587_p3, %p13581_p0 }
  0xed   :  { %13591 = shalt.err (!%p13588_p4)
}
  0xee   :  { %s15880_s23 = sld [smem:[#allocation95_spill]]  ;;  %s13600_s2 = scalar_lea.vmem %s486_s30, 16 }
  0xef   :  { %p13601_p5 = scmp.ne.s32.totalorder %s486_s30, %s13600_s2  ;;  %s13604_s7 = scalar_lea.vmem %s486_s30, 32 }
  0xf0   :  { %p13605_p6 = scmp.lt.s32.totalorder %s486_s30, %s486_s30  ;;  %p13606_p7 = scmp.lt.s32.totalorder %s13604_s7, %s13600_s2 }
  0xf2   :  { %p13607_p8 = por %p13606_p7, %p13605_p6 }
  0xf4   :  { %468 = dma.hbm_to_vmem [thread:$0]  %s15880_s23, 16, %s466_s22, [#allocation48]  }
  0xf5   :  { %p13608_p9 = pnand %p13607_p8, %p13601_p5 }
  0xf7   :  { %13611 = shalt.err (!%p13608_p9)
}
  0xf8   :  { %s15881_s20 = sld [smem:[#allocation97_spill]]  ;;  %s14111_s15 = smov [#allocation53]  }
  0xf9   :  { %s504_s12 = sshll.u32 %s14111_s15, 4  ;;  %s14112_s27 = smov [#allocation2]   ;;  %s505_s12 = int_to_ptr.vmem [resolvable:$true] %s504_s12 }
  0xfa   :  { %s110_s26 = sshll.u32 %s14112_s27, 4  ;;  %s13620_s28 = scalar_lea.vmem %s505_s12, 4096  ;;  %s111_s26 = int_to_ptr.vmem [resolvable:$true] %s110_s26 }
  0xfb   :  { %p13621_p10 = scmp.ne.s32.totalorder %s505_s12, %s13620_s28  ;;  %p13625_p11 = scmp.lt.s32.totalorder %s505_s12, %s505_s12 }
  0xfc   :  { %p13626_p12 = scmp.lt.s32.totalorder %s13620_s28, %s13620_s28 }
  0xfe   :  { %488 = dma.hbm_to_vmem [thread:$0]  %s15881_s20, 16, %s486_s30, [#allocation51]  }
  0xff   :  { %p13627_p13 = por %p13626_p12, %p13625_p11 }
 0x101   :  { %p13628_p0 = pnand %p13627_p13, %p13621_p10 }
 0x103   :  { %13631 = shalt.err (!%p13628_p0)
}
 0x104   :  { %s14113_s29 = smov 256   ;;  %s13640_s16 = scalar_lea.vmem %s111_s26, 6144 }
 0x105   :  { %510 = dma.hbm_to_vmem [thread:$0]  %s14336_s4, 4096, %s505_s12, [#allocation54], %s14113_s29, %s14113_s29, %s14093_s10  }
 0x106   :  { %p13641_p1 = scmp.ne.s32.totalorder %s111_s26, %s13640_s16  ;;  %p13645_p2 = scmp.lt.s32.totalorder %s111_s26, %s111_s26 }
 0x107   :  { %p13646_p3 = scmp.lt.s32.totalorder %s13640_s16, %s13640_s16 }
 0x109   :  { %p13647_p4 = por %p13646_p3, %p13645_p2 }
 0x10b   :  { %p13648_p5 = pnand %p13647_p4, %p13641_p1 }
 0x10d   :  { %13651 = shalt.err (!%p13648_p5)
}
 0x10e   :  { %s14114_s5 = smov 192   ;;  %s15882_s6 = sld [smem:[#allocation77_spill]] }
 0x10f   :  { %s14115_s8 = smov 12   ;;  %s14116_s13 = smov [#allocation7]  }
 0x110   :  { %s134_s18 = sshll.u32 %s14116_s13, 4  ;;  %s135_s18 = int_to_ptr.vmem [resolvable:$true] %s134_s18 }
 0x111   :  { %s13660_s0 = scalar_lea.vmem %s135_s18, 2048  ;;  %p13665_p7 = scmp.lt.s32.totalorder %s135_s18, %s135_s18 }
 0x112   :  { %p13661_p6 = scmp.ne.s32.totalorder %s135_s18, %s13660_s0  ;;  %p13666_p8 = scmp.lt.s32.totalorder %s13660_s0, %s13660_s0 }
 0x114   :  { %116 = dma.hbm_to_vmem [thread:$0]  %s15882_s6, 6144, %s111_s26, [#allocation3], %s14114_s5, %s14114_s5, %s14115_s8  }
 0x115   :  { %p13667_p9 = por %p13666_p8, %p13665_p7 }
 0x117   :  { %p13668_p10 = pnand %p13667_p9, %p13661_p6 }
 0x119   :  { %13671 = shalt.err (!%p13668_p10)
}
 0x11a   :  { %s14117_s4 = smov 64   ;;  %s15883_s14 = sld [smem:[#allocation78_spill]] }
 0x11b   :  { %s14118_s24 = smov 4   ;;  %s14119_s22 = smov [#allocation10]  }
 0x11c   :  { %s158_s19 = sshll.u32 %s14119_s22, 4  ;;  %s14120_s30 = smov [#allocation13]   ;;  %s159_s19 = int_to_ptr.vmem [resolvable:$true] %s158_s19 }
 0x11d   :  { %s182_s1 = sshll.u32 %s14120_s30, 4  ;;  %s13680_s3 = scalar_lea.vmem %s159_s19, 32  ;;  %s183_s1 = int_to_ptr.vmem [resolvable:$true] %s182_s1 }
 0x11e   :  { %p13681_p11 = scmp.ne.s32.totalorder %s159_s19, %s13680_s3  ;;  %p13685_p12 = scmp.lt.s32.totalorder %s159_s19, %s159_s19 }
 0x11f   :  { %p13686_p13 = scmp.lt.s32.totalorder %s13680_s3, %s13680_s3 }
 0x120   :  { %140 = dma.hbm_to_vmem [thread:$0]  %s15883_s14, 2048, %s135_s18, [#allocation6], %s14117_s4, %s14117_s4, %s14118_s24  }
 0x121   :  { %p13687_p0 = por %p13686_p13, %p13685_p12 }
 0x123   :  { %p13688_p1 = pnand %p13687_p0, %p13681_p11 }
 0x125   :  { %13691 = shalt.err (!%p13688_p1)
}
 0x126   :  { %s15884_s23 = sld [smem:[#allocation79_spill]]  ;;  %s13700_s2 = scalar_lea.vmem %s183_s1, 4096 }
 0x127   :  { %p13701_p2 = scmp.ne.s32.totalorder %s183_s1, %s13700_s2  ;;  %p13705_p3 = scmp.lt.s32.totalorder %s183_s1, %s183_s1 }
 0x128   :  { %p13706_p4 = scmp.lt.s32.totalorder %s13700_s2, %s13700_s2 }
 0x12a   :  { %p13707_p5 = por %p13706_p4, %p13705_p3 }
 0x12c   :  { %164 = dma.hbm_to_vmem [thread:$0]  %s15884_s23, 32, %s159_s19, [#allocation9], %s14093_s10, %s14093_s10, %s14094_s11  }
 0x12d   :  { %p13708_p6 = pnand %p13707_p5, %p13701_p2 }
 0x12f   :  { %13711 = shalt.err (!%p13708_p6)
}
 0x130   :  { %s14121_s7 = smov 128   ;;  %s15885_s20 = sld [smem:[#allocation80_spill]] }
 0x131   :  { %s14122_s15 = smov 8   ;;  %s14123_s12 = smov [#allocation16]  }
 0x132   :  { %s206_s27 = sshll.u32 %s14123_s12, 4  ;;  %s14124_s26 = smov [#allocation19]   ;;  %s207_s27 = int_to_ptr.vmem [resolvable:$true] %s206_s27 }
 0x133   :  { %s230_s28 = sshll.u32 %s14124_s26, 4  ;;  %s13720_s29 = scalar_lea.vmem %s207_s27, 4096  ;;  %s231_s28 = int_to_ptr.vmem [resolvable:$true] %s230_s28 }
 0x134   :  { %p13721_p7 = scmp.ne.s32.totalorder %s207_s27, %s13720_s29  ;;  %p13725_p8 = scmp.lt.s32.totalorder %s207_s27, %s207_s27 }
 0x135   :  { %p13726_p9 = scmp.lt.s32.totalorder %s13720_s29, %s13720_s29 }
 0x136   :  { %188 = dma.hbm_to_vmem [thread:$0]  %s15885_s20, 4096, %s183_s1, [#allocation12], %s14121_s7, %s14121_s7, %s14122_s15  }
 0x137   :  { %p13727_p10 = por %p13726_p9, %p13725_p8 }
 0x139   :  { %p13728_p11 = pnand %p13727_p10, %p13721_p7 }
 0x13b   :  { %13731 = shalt.err (!%p13728_p11)
}
 0x13c   :  { %s15886_s16 = sld [smem:[#allocation81_spill]]  ;;  %s13740_s6 = scalar_lea.vmem %s231_s28, 32 }
 0x13d   :  { %p13741_p12 = scmp.ne.s32.totalorder %s231_s28, %s13740_s6  ;;  %p13745_p13 = scmp.lt.s32.totalorder %s231_s28, %s231_s28 }
 0x13e   :  { %p13746_p0 = scmp.lt.s32.totalorder %s13740_s6, %s13740_s6 }
 0x140   :  { %p13747_p1 = por %p13746_p0, %p13745_p13 }
 0x142   :  { %212 = dma.hbm_to_vmem [thread:$0]  %s15886_s16, 4096, %s207_s27, [#allocation15], %s14117_s4, %s14117_s4, %s14118_s24  }
 0x143   :  { %p13748_p2 = pnand %p13747_p1, %p13741_p12 }
 0x145   :  { %13751 = shalt.err (!%p13748_p2)
}
 0x146   :  { %s15887_s13 = sld [smem:[#allocation82_spill]]  ;;  %s14125_s18 = smov [#allocation22]  }
 0x147   :  { %s254_s0 = sshll.u32 %s14125_s18, 4  ;;  %s14126_s14 = smov [#allocation25]   ;;  %s255_s0 = int_to_ptr.vmem [resolvable:$true] %s254_s0 }
 0x148   :  { %s278_s22 = sshll.u32 %s14126_s14, 4  ;;  %s13760_s19 = scalar_lea.vmem %s255_s0, 6144  ;;  %s279_s22 = int_to_ptr.vmem [resolvable:$true] %s278_s22 }
 0x149   :  { %p13761_p3 = scmp.ne.s32.totalorder %s255_s0, %s13760_s19  ;;  %p13765_p4 = scmp.lt.s32.totalorder %s255_s0, %s255_s0 }
 0x14a   :  { %p13766_p5 = scmp.lt.s32.totalorder %s13760_s19, %s13760_s19 }
 0x14c   :  { %236 = dma.hbm_to_vmem [thread:$0]  %s15887_s13, 32, %s231_s28, [#allocation18], %s14093_s10, %s14093_s10, %s14094_s11  }
 0x14d   :  { %p13767_p6 = por %p13766_p5, %p13765_p4 }
 0x14f   :  { %p13768_p7 = pnand %p13767_p6, %p13761_p3 }
 0x151   :  { %13771 = shalt.err (!%p13768_p7)
}
 0x152   :  { %s15888_s30 = sld [smem:[#allocation83_spill]]  ;;  %s13780_s1 = scalar_lea.vmem %s279_s22, 2048 }
 0x153   :  { %p13781_p8 = scmp.ne.s32.totalorder %s279_s22, %s13780_s1  ;;  %p13785_p9 = scmp.lt.s32.totalorder %s279_s22, %s279_s22 }
 0x154   :  { %p13786_p10 = scmp.lt.s32.totalorder %s13780_s1, %s13780_s1 }
 0x156   :  { %p13787_p11 = por %p13786_p10, %p13785_p9 }
 0x158   :  { %260 = dma.hbm_to_vmem [thread:$0]  %s15888_s30, 6144, %s255_s0, [#allocation21], %s14114_s5, %s14114_s5, %s14115_s8  }
 0x159   :  { %p13788_p12 = pnand %p13787_p11, %p13781_p8 }
 0x15b   :  { %13791 = shalt.err (!%p13788_p12)
}
 0x15c   :  { %s15889_s3 = sld [smem:[#allocation84_spill]]  ;;  %s14127_s23 = smov [#allocation28]  }
 0x15d   :  { %s302_s2 = sshll.u32 %s14127_s23, 4  ;;  %s14128_s20 = smov [#allocation31]   ;;  %s303_s2 = int_to_ptr.vmem [resolvable:$true] %s302_s2 }
 0x15e   :  { %s326_s12 = sshll.u32 %s14128_s20, 4  ;;  %s13800_s27 = scalar_lea.vmem %s303_s2, 32  ;;  %s327_s12 = int_to_ptr.vmem [resolvable:$true] %s326_s12 }
 0x15f   :  { %p13801_p13 = scmp.ne.s32.totalorder %s303_s2, %s13800_s27  ;;  %p13805_p0 = scmp.lt.s32.totalorder %s303_s2, %s303_s2 }
 0x160   :  { %p13806_p1 = scmp.lt.s32.totalorder %s13800_s27, %s13800_s27 }
 0x162   :  { %284 = dma.hbm_to_vmem [thread:$0]  %s15889_s3, 2048, %s279_s22, [#allocation24], %s14117_s4, %s14117_s4, %s14118_s24  }
 0x163   :  { %p13807_p2 = por %p13806_p1, %p13805_p0 }
 0x165   :  { %p13808_p3 = pnand %p13807_p2, %p13801_p13 }
 0x167   :  { %13811 = shalt.err (!%p13808_p3)
}
 0x168   :  { %s15890_s5 = sld [smem:[#allocation85_spill]]  ;;  %s13820_s8 = scalar_lea.vmem %s327_s12, 2048 }
 0x169   :  { %p13821_p4 = scmp.ne.s32.totalorder %s327_s12, %s13820_s8  ;;  %p13825_p5 = scmp.lt.s32.totalorder %s327_s12, %s327_s12 }
 0x16a   :  { %p13826_p6 = scmp.lt.s32.totalorder %s13820_s8, %s13820_s8 }
 0x16c   :  { %p13827_p7 = por %p13826_p6, %p13825_p5 }
 0x16e   :  { %308 = dma.hbm_to_vmem [thread:$0]  %s15890_s5, 32, %s303_s2, [#allocation27], %s14093_s10, %s14093_s10, %s14094_s11  }
 0x16f   :  { %p13828_p8 = pnand %p13827_p7, %p13821_p4 }
 0x171   :  { %13831 = shalt.err (!%p13828_p8)
}
 0x172   :  { %s15891_s26 = sld [smem:[#allocation86_spill]]  ;;  %s14129_s28 = smov [#allocation34]  }
 0x173   :  { %s354_s29 = sshll.u32 %s14129_s28, 4  ;;  %s14130_s16 = smov [#allocation37]   ;;  %s355_s29 = int_to_ptr.vmem [resolvable:$true] %s354_s29 }
 0x174   :  { %s378_s6 = sshll.u32 %s14130_s16, 4  ;;  %s13840_s13 = scalar_lea.vmem %s355_s29, 2048  ;;  %s379_s6 = int_to_ptr.vmem [resolvable:$true] %s378_s6 }
 0x175   :  { %p13841_p9 = scmp.ne.s32.totalorder %s355_s29, %s13840_s13  ;;  %p13845_p10 = scmp.lt.s32.totalorder %s355_s29, %s355_s29 }
 0x176   :  { %p13846_p11 = scmp.lt.s32.totalorder %s13840_s13, %s13840_s13 }
 0x178   :  { %332 = dma.hbm_to_vmem [thread:$0]  %s15891_s26, 2048, %s327_s12, [#allocation30], %s14117_s4, %s14117_s4, %s14118_s24  }
 0x179   :  { %p13847_p12 = por %p13846_p11, %p13845_p10 }
 0x17b   :  { %p13848_p13 = pnand %p13847_p12, %p13841_p9 }
 0x17d   :  { %13851 = shalt.err (!%p13848_p13)
}
 0x17e   :  { %s15892_s18 = sld [smem:[#allocation89_spill]]  ;;  %s13860_s0 = scalar_lea.vmem %s379_s6, 32 }
 0x17f   :  { %p13861_p0 = scmp.ne.s32.totalorder %s379_s6, %s13860_s0  ;;  %p13865_p1 = scmp.lt.s32.totalorder %s379_s6, %s379_s6 }
 0x180   :  { %p13866_p2 = scmp.lt.s32.totalorder %s13860_s0, %s13860_s0 }
 0x182   :  { %p13867_p3 = por %p13866_p2, %p13865_p1 }
 0x184   :  { %360 = dma.hbm_to_vmem [thread:$0]  %s15892_s18, 2048, %s355_s29, [#allocation33], %s14117_s4, %s14117_s4, %s14118_s24  }
 0x185   :  { %p13868_p4 = pnand %p13867_p3, %p13861_p0 }
 0x187   :  { %13871 = shalt.err (!%p13868_p4)
}
 0x188   :  { %s15893_s14 = sld [smem:[#allocation90_spill]]  ;;  %s14131_s22 = smov [#allocation40]  }
 0x189   :  { %s402_s19 = sshll.u32 %s14131_s22, 4  ;;  %s14132_s30 = smov [#allocation43]   ;;  %s403_s19 = int_to_ptr.vmem [resolvable:$true] %s402_s19 }
 0x18a   :  { %s426_s1 = sshll.u32 %s14132_s30, 4  ;;  %s13880_s3 = scalar_lea.vmem %s403_s19, 4096  ;;  %s427_s1 = int_to_ptr.vmem [resolvable:$true] %s426_s1 }
 0x18b   :  { %p13881_p5 = scmp.ne.s32.totalorder %s403_s19, %s13880_s3  ;;  %p13885_p6 = scmp.lt.s32.totalorder %s403_s19, %s403_s19 }
 0x18c   :  { %p13886_p7 = scmp.lt.s32.totalorder %s13880_s3, %s13880_s3 }
 0x18e   :  { %384 = dma.hbm_to_vmem [thread:$0]  %s15893_s14, 32, %s379_s6, [#allocation36], %s14093_s10, %s14093_s10, %s14094_s11  }
 0x18f   :  { %p13887_p8 = por %p13886_p7, %p13885_p6 }
 0x191   :  { %p13888_p9 = pnand %p13887_p8, %p13881_p5 }
 0x193   :  { %13891 = shalt.err (!%p13888_p9)
}
 0x194   :  { %s15894_s23 = sld [smem:[#allocation91_spill]]  ;;  %s13900_s2 = scalar_lea.vmem %s427_s1, 4096 }
 0x195   :  { %p13901_p10 = scmp.ne.s32.totalorder %s427_s1, %s13900_s2  ;;  %p13905_p11 = scmp.lt.s32.totalorder %s427_s1, %s427_s1 }
 0x196   :  { %p13906_p12 = scmp.lt.s32.totalorder %s13900_s2, %s13900_s2 }
 0x198   :  { %p13907_p13 = por %p13906_p12, %p13905_p11 }
 0x19a   :  { %408 = dma.hbm_to_vmem [thread:$0]  %s15894_s23, 4096, %s403_s19, [#allocation39], %s14121_s7, %s14121_s7, %s14122_s15  }
 0x19b   :  { %p13908_p0 = pnand %p13907_p13, %p13901_p10 }
 0x19d   :  { %13911 = shalt.err (!%p13908_p0)
}
 0x19e   :  { %s15895_s20 = sld [smem:[#allocation92_spill]]  ;;  %s14133_s12 = smov [#allocation46]  }
 0x19f   :  { %s452_s27 = sshll.u32 %s14133_s12, 4  ;;  %s14134_s5 = smov [#allocation49]   ;;  %s453_s27 = int_to_ptr.vmem [resolvable:$true] %s452_s27 }
 0x1a0   :  { %s475_s8 = sshll.u32 %s14134_s5, 4  ;;  %s13920_s26 = scalar_lea.vmem %s453_s27, 32  ;;  %s476_s8 = int_to_ptr.vmem [resolvable:$true] %s475_s8 }
 0x1a1   :  { %p13921_p1 = scmp.ne.s32.totalorder %s453_s27, %s13920_s26  ;;  %p13925_p2 = scmp.lt.s32.totalorder %s453_s27, %s453_s27 }
 0x1a2   :  { %p13926_p3 = scmp.lt.s32.totalorder %s13920_s26, %s13920_s26 }
 0x1a4   :  { %432 = dma.hbm_to_vmem [thread:$0]  %s15895_s20, 4096, %s427_s1, [#allocation42], %s14117_s4, %s14117_s4, %s14118_s24  }
 0x1a5   :  { %p13927_p4 = por %p13926_p3, %p13925_p2 }
 0x1a7   :  { %p13928_p5 = pnand %p13927_p4, %p13921_p1 }
 0x1a9   :  { %13931 = shalt.err (!%p13928_p5)
}
 0x1aa   :  { %s15896_s7 = sld [smem:[#allocation94_spill]]  ;;  %s13940_s15 = scalar_lea.vmem %s476_s8, 16 }
 0x1ab   :  { %p13941_p6 = scmp.ne.s32.totalorder %s476_s8, %s13940_s15  ;;  %s13944_s24 = scalar_lea.vmem %s476_s8, 32 }
 0x1ac   :  { %p13945_p7 = scmp.lt.s32.totalorder %s476_s8, %s476_s8  ;;  %p13946_p8 = scmp.lt.s32.totalorder %s13944_s24, %s13940_s15 }
 0x1ae   :  { %p13947_p9 = por %p13946_p8, %p13945_p7 }
 0x1b0   :  { %458 = dma.hbm_to_vmem [thread:$0]  %s15896_s7, 32, %s453_s27, [#allocation45], %s14093_s10, %s14093_s10, %s14094_s11  }
 0x1b1   :  { %p13948_p10 = pnand %p13947_p9, %p13941_p6 }
 0x1b3   :  { %13951 = shalt.err (!%p13948_p10)
}
 0x1b4   :  { %s15897_s28 = sld [smem:[#allocation96_spill]]  ;;  %s14135_s29 = smov [#allocation52]  }
 0x1b5   :  { %s495_s16 = sshll.u32 %s14135_s29, 4  ;;  %s14136_s6 = smov [#allocation55]   ;;  %s496_s16 = int_to_ptr.vmem [resolvable:$true] %s495_s16 }
 0x1b6   :  { %s517_s13 = sshll.u32 %s14136_s6, 4  ;;  %s13960_s18 = scalar_lea.vmem %s496_s16, 16  ;;  %s518_s13 = int_to_ptr.vmem [resolvable:$true] %s517_s13 }
 0x1b7   :  { %p13961_p11 = scmp.ne.s32.totalorder %s496_s16, %s13960_s18  ;;  %s13964_s0 = scalar_lea.vmem %s496_s16, 32 }
 0x1b8   :  { %p13965_p12 = scmp.lt.s32.totalorder %s496_s16, %s496_s16  ;;  %p13966_p13 = scmp.lt.s32.totalorder %s13964_s0, %s13960_s18 }
 0x1ba   :  { %478 = dma.hbm_to_vmem [thread:$0]  %s15897_s28, 16, %s476_s8, [#allocation48]  }
 0x1bb   :  { %p13967_p0 = por %p13966_p13, %p13965_p12 }
 0x1bd   :  { %p13968_p1 = pnand %p13967_p0, %p13961_p11 }
 0x1bf   :  { %13971 = shalt.err (!%p13968_p1)
}
 0x1c0   :  { %498 = dma.hbm_to_vmem [thread:$0]  %s14331_s17, 16, %s496_s16, [#allocation51]  }
 0x1c1   :  { %s13980_s10 = scalar_lea.vmem %s518_s13, 64  ;;  %p13985_p3 = scmp.lt.s32.totalorder %s518_s13, %s518_s13 }
 0x1c2   :  { %p13981_p2 = scmp.ne.s32.totalorder %s518_s13, %s13980_s10  ;;  %p13986_p4 = scmp.lt.s32.totalorder %s13980_s10, %s13980_s10 }
 0x1c4   :  { %p13987_p5 = por %p13986_p4, %p13985_p3 }
 0x1c6   :  { %p13988_p6 = pnand %p13987_p5, %p13981_p2 }
 0x1c8   :  { %13991 = shalt.err (!%p13988_p6)
}
 0x1c9   :  { %520 = dma.hbm_to_vmem [thread:$0]  %s14341_s25, 64, %s518_s13, [#allocation54]  }
 0x1ca   :  { %14012 = dma.done.wait [#allocation3], 6144  }
 0x1cb   :  { %14013 = vsyncadd [#allocation3], 4294961152 }
 0x1cc   :  { %14014 = dma.done.wait [#allocation6], 2144  }
 0x1cd   :  { %14015 = vsyncadd [#allocation6], 4294965152 }
 0x1ce   :  { %14016 = dma.done.wait [#allocation9], 64  }
 0x1cf   :  { %14017 = vsyncadd [#allocation9], 4294967232 }
 0x1d0   :  { %14018 = dma.done.wait [#allocation12], 4128  }
 0x1d1   :  { %14019 = vsyncadd [#allocation12], 4294963168 }
 0x1d2   :  { %14020 = dma.done.wait [#allocation15], 4160  }
 0x1d3   :  { %14021 = vsyncadd [#allocation15], 4294963136 }
 0x1d4   :  { %14022 = dma.done.wait [#allocation18], 64  }
 0x1d5   :  { %14023 = vsyncadd [#allocation18], 4294967232 }
 0x1d6   :  { %14024 = dma.done.wait [#allocation21], 6176  }
 0x1d7   :  { %14025 = vsyncadd [#allocation21], 4294961120 }
 0x1d8   :  { %14026 = dma.done.wait [#allocation24], 2144  }
 0x1d9   :  { %14027 = vsyncadd [#allocation24], 4294965152 }
 0x1da   :  { %14028 = dma.done.wait [#allocation27], 64  }
 0x1db   :  { %14029 = vsyncadd [#allocation27], 4294967232 }
 0x1dc   :  { %14030 = dma.done.wait [#allocation30], 2080  }
 0x1dd   :  { %14031 = vsyncadd [#allocation30], 4294965216 }
 0x1de   :  { %14032 = dma.done.wait [#allocation33], 2080  }
 0x1df   :  { %14033 = vsyncadd [#allocation33], 4294965216 }
 0x1e0   :  { %14034 = dma.done.wait [#allocation36], 64  }
 0x1e1   :  { %14035 = vsyncadd [#allocation36], 4294967232 }
 0x1e2   :  { %14036 = dma.done.wait [#allocation39], 4128  }
 0x1e3   :  { %14037 = vsyncadd [#allocation39], 4294963168 }
 0x1e4   :  { %14038 = dma.done.wait [#allocation42], 4160  }
 0x1e5   :  { %14039 = vsyncadd [#allocation42], 4294963136 }
 0x1e6   :  { %14040 = dma.done.wait [#allocation45], 64  }
 0x1e7   :  { %14041 = vsyncadd [#allocation45], 4294967232 }
 0x1e8   :  { %14042 = dma.done.wait [#allocation48], 32  }
 0x1e9   :  { %14043 = vsyncadd [#allocation48], 4294967264 }
 0x1ea   :  { %14044 = dma.done.wait [#allocation51], 32  }
 0x1eb   :  { %14045 = vsyncadd [#allocation51], 4294967264 }
 0x1ec   :  { %14046 = dma.done.wait [#allocation54], 4160  }
 0x1ed   :  { %14047 = vsyncadd [#allocation54], 4294963136  ;;  %v14137_v0 = vmov 0   ;;  %v14138_v1 = vmov 0.0   ;;  %v12590_v2 = vld [vmem:[#allocation2 + $0xac] ss:$12 sps:$4 sm:$0xff]   ;;  %v664_v29 = vlaneseq }
 0x1ee   :  { %839 = vmatprep.mubr.bf16.mxu0 %v14137_v0  ;;  %11591 = vmatprep.subr.bf16.mxu1 %v14138_v1  ;;  %v12592_v3 = vld [vmem:[#allocation2 + $0xa8] ss:$12 sps:$4 sm:$0xff]   ;;  %v12595_v5 = vld [vmem:[#allocation2 + $0x90] ss:$12 sps:$4 sm:$0xff]   ;;  %v12598_v7 = vld [vmem:[#allocation2 + $0x78] ss:$12 sps:$4 sm:$0xff]  }
 0x1ef   :  { %807 = vmatprep.subr.bf16.mxu0 %v12590_v2  ;;  %v12593_v4 = vld [vmem:[#allocation2 + $0x94] ss:$12 sps:$4 sm:$0xff]   ;;  %v12596_v6 = vld [vmem:[#allocation2 + $0x7c] ss:$12 sps:$4 sm:$0xff]   ;;  %v12599_v8 = vld [vmem:[#allocation2 + $0x64] ss:$12 sps:$4 sm:$0xff]  }
 0x1f0   :  { %808 = vmatpush1.bf16.msra.mxu0 %v12592_v3  ;;  %v12601_v9 = vld [vmem:[#allocation2 + $0x60] ss:$12 sps:$4 sm:$0xff]   ;;  %v12614_v11 = vld [vmem:[#allocation2 + $0xb0] ss:$12 sps:$4 sm:$0xff]   ;;  %v12615_v12 = vld [vmem:[#allocation2 + $0x98] ss:$12 sps:$4 sm:$0xff]  }
 0x1f1   :  { %809 = vmatprep.subr.bf16.mxu0 %v12593_v4  ;;  %v12602_v10 = vld [vmem:[#allocation2 + $0x4c] ss:$12 sps:$4 sm:$0xff]   ;;  %11592 = vmatpush3.bf16.msra.mxu1 %v12614_v11  ;;  %v12604_v13 = vld [vmem:[#allocation2 + $0x48] ss:$12 sps:$4 sm:$0xff]   ;;  %s15898_s17 = sld [smem:[#allocation76_spill]]  ;;  %vm14139_vm0 = vmmov 0  }
 0x1f2   :  { %11593 = vmatprep.subr.bf16.mxu1 %v14138_v1  ;;  %v12605_v14 = vld [vmem:[#allocation2 + $0x34] ss:$12 sps:$4 sm:$0xff]   ;;  %v12607_v16 = vld [vmem:[#allocation2 + $0x30] ss:$12 sps:$4 sm:$0xff]   ;;  %v12610_v19 = vld [vmem:[#allocation2 + $0x18] ss:$12 sps:$4 sm:$0xff]   ;;  %11607 = vmatprep.mubr.msk.bf16.mxu1 %vm14139_vm0, %v14138_v1 }
 0x1f3   :  { %v12616_v15 = vld [vmem:[#allocation2 + $0x80] ss:$12 sps:$4 sm:$0xff]   ;;  %v12608_v17 = vld [vmem:[#allocation2 + $0x1c] ss:$12 sps:$4 sm:$0xff]   ;;  %v12611_v20 = vld [vmem:[#allocation2 + $0x4] ss:$12 sps:$4 sm:$0xff]  }
 0x1f4   :  { %810 = vmatpush1.bf16.msra.mxu0 %v12595_v5  ;;  %v12617_v18 = vld [vmem:[#allocation2 + $0x68] ss:$12 sps:$4 sm:$0xff]   ;;  %v12618_v21 = vld [vmem:[#allocation2 + $0x50] ss:$12 sps:$4 sm:$0xff]   ;;  %v12613_v22 = vld [vmem:[#allocation2] ss:$12 sps:$4 sm:$0xff]  }
 0x1f5   :  { %811 = vmatprep.subr.bf16.mxu0 %v12596_v6  ;;  %11594 = vmatpush3.bf16.msra.mxu1 %v12615_v12  ;;  %v12619_v25 = vld [vmem:[#allocation2 + $0x38] ss:$12 sps:$4 sm:$0xff]   ;;  %v12620_v27 = vld [vmem:[#allocation2 + $0x20] ss:$12 sps:$4 sm:$0xff]   ;;  %v12621_v28 = vld [vmem:[#allocation2 + $0x8] ss:$12 sps:$4 sm:$0xff]  }
 0x1f6   :  { %11595 = vmatprep.subr.bf16.mxu1 %v14138_v1  ;;  %v14494_v30 = vshrl.u32 %v664_v29, 7  ;;  %v661_v33 = vld [vmem:[#allocation5] sm:$0x7]  ;;  %vm894_vm1 = vcmask 261120   ;;  %s14140_s25 = smov 96   ;;  %vm958_vm2 = vcmask 1043456  }
 0x1f7   :  { %v627_v23 = vld [vmem:[%s15898_s17] sm:$0xff]  ;;  %v628_v24 = vld [vmem:[%s15898_s17 + $0x8] sm:$0xff]  ;;  %vm942_vm3 = vcmask 64512   ;;  %vm1351_vm4 = vcmask 523264   ;;  %vm1353_vm5 = vcmask 785408   ;;  %s15899_s11 = sld [smem:[#allocation87_spill]] }
 0x1f8   :  { %812 = vmatpush1.bf16.msra.mxu0 %v12598_v7  ;;  %v14479_v26 = vpack.c.bf16 %v628_v24, %v627_v23  ;;  %v14497_v31 = vsub.s32 1, %v14494_v30  ;;  %v14500_v32 = vsub.s32 0, %v14494_v30  ;;  %v14522_v49 = vsub.s32 2, %v14494_v30  ;;  %s15900_s14 = sld [smem:[#allocation88_spill]] }
 0x1f9   :  { %813 = vmatprep.subr.bf16.mxu0 %v12599_v8  ;;  %11596 = vmatpush3.bf16.msra.mxu1 %v12616_v15  ;;  %s15901_s22 = sld [smem:[#allocation93_spill]]  ;;  %vm10271_vm6 = vcmask 1040384   ;;  %vm10570_vm7 = vcmask 1041408  }
 0x1fa   :  { %11597 = vmatprep.subr.bf16.mxu1 %v14138_v1  ;;  %v671_v34 = vrot.slane %v661_v33, %v14497_v31  ;;  %v667_v36 = vrot.slane %v661_v33, %v14500_v32  ;;  %v675_v50 = vrot.slane %v661_v33, %v14522_v49 }
 0x1fc   :  { %814 = vmatpush1.bf16.msra.mxu0 %v12601_v9 }
 0x1fd   :  { %815 = vmatprep.subr.bf16.mxu0 %v12602_v10  ;;  %11598 = vmatpush3.bf16.msra.mxu1 %v12617_v18 }
 0x1fe   :  { %11599 = vmatprep.subr.bf16.mxu1 %v14138_v1 }
 0x200   :  { %816 = vmatpush1.bf16.msra.mxu0 %v12604_v13 }
 0x201   :  { %817 = vmatprep.subr.bf16.mxu0 %v12605_v14  ;;  %11600 = vmatpush3.bf16.msra.mxu1 %v12618_v21 }
 0x202   :  { %11601 = vmatprep.subr.bf16.mxu1 %v14138_v1 }
 0x204   :  { %818 = vmatpush1.bf16.msra.mxu0 %v12607_v16 }
 0x205   :  { %819 = vmatprep.subr.bf16.mxu0 %v12608_v17  ;;  %11602 = vmatpush3.bf16.msra.mxu1 %v12619_v25 }
 0x206   :  { %11603 = vmatprep.subr.bf16.mxu1 %v14138_v1 }
 0x208   :  { %820 = vmatpush1.bf16.msra.mxu0 %v12610_v19 }
 0x209   :  { %821 = vmatprep.subr.bf16.mxu0 %v12611_v20  ;;  %11604 = vmatpush3.bf16.msra.mxu1 %v12620_v27 }
 0x20a   :  { %11605 = vmatprep.subr.bf16.mxu1 %v14138_v1 }
 0x20c   :  { %822 = vmatpush1.bf16.msra.mxu0 %v12613_v22 }
 0x20d   :  { %11635 = vmatprep.subr.bf16.mxu0 %v14138_v1  ;;  %11606 = vmatpush3.bf16.msra.mxu1 %v12621_v28 }
 0x20e   :  { %11611 = vmatprep.subr.bf16.mxu1 %v14138_v1 }
 0x20f   :  { %840 = vmatmul.mubr.bf16.vlgmr.msra.gmra.mxu0 %v14479_v26 }
 0x210   :  { %11637 = vmatprep.mubr.msk.bf16.mxu0 %vm14139_vm0, %v14138_v1  ;;  %11608 = vmatmul.mubr.bf16.vlgmr.msra.gmra.mxu1 %v14479_v26 }
 0x211   :  { %11613 = vmatprep.mubr.msk.bf16.mxu1 %vm14139_vm0, %v14138_v1 }
 0x2cf   :  { %v841_v35 = vpop.f32.mrf.mxu0 }
 0x2d0   :  { %v842_v39 = vadd.f32 %v841_v35, %v667_v36  ;;  %v884_v51 = vpop.f32.mrf.mxu1 }
 0x2d1   :  { %v843_v37 = vpop.f32.mrf.mxu0  ;;  %v885_v52 = vadd.f32 %v884_v51, %v675_v50 }
 0x2d2   :  { %v844_v38 = vadd.f32 %v843_v37, %v671_v34  ;;  %v891_v42 = vpack.c.bf16 %v842_v39, %v842_v39  ;;  %v11609_v53 = vpop.f32.mrf.mxu1 }
 0x2d3   :  { %v845_v43 = vpop.f32.mrf.mxu0  ;;  %v14525_v54 = vpack.c.bf16 %v885_v52, %v885_v52 }
 0x2d4   :  { %v892_v40 = vpack.c.bf16 %v844_v38, %v844_v38  ;;  %v846_v46 = vadd.f32 %v845_v43, %v667_v36  ;;  %v887_v55 = vpop.f32.mrf.mxu1 }
 0x2d5   :  { %v847_v44 = vpop.f32.mrf.mxu0  ;;  %v14527_v56 = vadd.f32 %v887_v55, %v675_v50  ;;  %v960_v57 = vsel %vm958_vm2, %v14525_v54, 0 }
 0x2d6   :  { %1006 = vrot.lane.b32.xlu1 %v892_v40, %s14140_s25  ;;  %v899_v41 = vsel %vm894_vm1, %v892_v40, 0  ;;  %v848_v45 = vadd.f32 %v847_v44, %v671_v34  ;;  %v14515_v48 = vpack.c.bf16 %v846_v46, %v846_v46  ;;  %v11610_v58 = vpop.f32.mrf.mxu1 }
 0x2d7   :  { %11612 = vmatpush3.bf16.xpose.msra.mxu1 %v899_v41 }
 0x2d8   :  { %11617 = vmatprep.subr.bf16.mxu1 %v14138_v1  ;;  %v1356_v47 = vpack.c.bf16 %v848_v45, %v848_v45 }
 0x2da   :  { %1003 = vrot.lane.b32.xlu1 %v891_v42, %s14140_s25  ;;  %v1362_v21 = vsel %vm894_vm1, %v1356_v47, 0 }
 0x2de   :  { %1116 = vrot.lane.b32.xlu1 %v891_v42, %s14117_s4  ;;  %11614 = vmatmul.mubr.msk.bf16.vlgmr.msra.gmra.mxu1 %vm894_vm1, %v891_v42 }
 0x2df   :  { %11619 = vmatprep.mubr.msk.bf16.mxu1 %vm14139_vm0, %v14138_v1  ;;  %11618 = vmatpush3.bf16.msra.mxu1 %v960_v57 }
 0x2e0   :  { %11623 = vmatprep.subr.bf16.mxu1 %v14138_v1 }
 0x2e2   :  { %1229 = vrot.lane.b32.xlu1 %v892_v40, %s14097_s21 }
 0x2e6   :  { %1227 = vrot.lane.b32.xlu1 %v891_v42, %s14097_s21 }
 0x2ea   :  { %1467 = vrot.lane.b32.xlu1 %v1356_v47, %s14140_s25 }
 0x2ee   :  { %1464 = vrot.lane.b32.xlu1 %v14515_v48, %s14140_s25 }
 0x2f2   :  { %1579 = vrot.lane.b32.xlu1 %v1356_v47, %s14117_s4 }
 0x2f6   :  { %1690 = vrot.lane.b32.xlu1 %v1356_v47, %s14097_s21 }
 0x348   :  { %v1007_v8 = vpop.permute.xlu1 %1006 }
 0x349   :  { %v1012_v20 = vsel %vm894_vm1, %v1007_v8, 0 }
 0x34c   :  { %v1004_v9 = vpop.permute.xlu1 %1003 }
 0x350   :  { %v1117_v11 = vpop.permute.xlu1 %1116 }
 0x354   :  { %v1230_v14 = vpop.permute.xlu1 %1229 }
 0x355   :  { %v1235_v15 = vsel %vm894_vm1, %v1230_v14, 0 }
 0x358   :  { %v1228_v18 = vpop.permute.xlu1 %1227 }
 0x35c   :  { %v1468_v22 = vpop.permute.xlu1 %1467 }
 0x35d   :  { %v1473_v24 = vsel %vm894_vm1, %v1468_v22, 0 }
 0x360   :  { %v1465_v23 = vpop.permute.xlu1 %1464 }
 0x364   :  { %v1580_v25 = vpop.permute.xlu1 %1579 }
 0x365   :  { %v1585_v27 = vsel %vm894_vm1, %v1580_v25, 0 }
 0x368   :  { %v1691_v28 = vpop.permute.xlu1 %1690 }
 0x369   :  { %v1696_v33 = vsel %vm894_vm1, %v1691_v28, 0 }
 0x39e   :  { %v935_v59 = vpop.f32.mrf.mxu1 }
 0x39f   :  { %v941_v60 = vmul.f32 0.17677669, %v935_v59 }
 0x3a0   :  { %v11615_v61 = vpop.f32.mrf.mxu1 }
 0x3a1   :  { %v943_v62 = vsel %vm942_vm3, %v941_v60, -inf }
 0x3a2   :  { %944 = vmax.xlane.f32.xlu0 %v943_v62  ;;  %v938_v63 = vpop.f32.mrf.mxu1 }
 0x3a4   :  { %v11616_v2 = vpop.f32.mrf.mxu1 }
 0x42b   :  { %v945_v3 = vpop.xlane.xlu0 %944 }
 0x42c   :  { %v946_v4 = vsub.f32 %v941_v60, %v945_v3 }
 0x42e   :  { %v947_v5 = vmul.f32 1.442695, %v946_v4 }
 0x430   :  { %13038 = vpow2.f32 %v947_v5 }
 0x43d   :  { %v13039_v6 = vpop.eup %13038 }
 0x43e   :  { %v949_v7 = vsel %vm942_vm3, %v13039_v6, 0.0 }
 0x43f   :  { %950 = vadd.xlane.f32.xlu0 %v949_v7 }
 0x455   :  { %1118 = vrot.lane.b32.xlu0 %v892_v40, %s14117_s4 }
 0x459   :  { %1577 = vrot.lane.b32.xlu0 %v14515_v48, %s14117_s4 }
 0x45d   :  { %1688 = vrot.lane.b32.xlu0 %v14515_v48, %s14097_s21 }
 0x4c8   :  { %v951_v10 = vpop.xlane.xlu0 %950 }
 0x4c9   :  { %13040 = vrcp.f32 %v951_v10 }
 0x4cc   :  { %v1119_v12 = vpop.permute.xlu0 %1118 }
 0x4cd   :  { %v1124_v13 = vsel %vm894_vm1, %v1119_v12, 0 }
 0x4ce   :  { %11636 = vmatpush3.bf16.xpose.msra.mxu0 %v1124_v13 }
 0x4cf   :  { %11647 = vmatprep.subr.bf16.mxu0 %v14138_v1 }
 0x4d0   :  { %v1578_v29 = vpop.permute.xlu0 %1577 }
 0x4d4   :  { %v1689_v34 = vpop.permute.xlu0 %1688 }
 0x4d5   :  { %11638 = vmatmul.mubr.msk.bf16.vlgmr.msra.gmra.mxu0 %vm894_vm1, %v1117_v11 }
 0x4d6   :  { %v13041_v16 = vpop.eup %13040  ;;  %11648 = vmatpush3.bf16.xpose.msra.mxu0 %v1235_v15  ;;  %11649 = vmatprep.mubr.msk.bf16.mxu0 %vm14139_vm0, %v14138_v1 }
 0x4d7   :  { %v953_v17 = vmul.f32 %v13041_v16, %v13039_v6  ;;  %11659 = vmatprep.subr.bf16.mxu0 %v14138_v1 }
 0x4d9   :  { %v954_v19 = vpack.c.bf16 %v953_v17, %v953_v17 }
 0x4db   :  { %11620 = vmatmul.mubr.msk.bf16.vlgmr.msra.gmra.mxu1 %vm942_vm3, %v954_v19 }
 0x4dc   :  { %11624 = vmatpush3.bf16.xpose.msra.mxu1 %v1012_v20  ;;  %11625 = vmatprep.mubr.msk.bf16.mxu1 %vm14139_vm0, %v14138_v1 }
 0x4dd   :  { %11650 = vmatmul.mubr.msk.bf16.vlgmr.msra.gmra.mxu0 %vm894_vm1, %v1228_v18  ;;  %11629 = vmatprep.subr.bf16.mxu1 %v14138_v1 }
 0x4de   :  { %11660 = vmatpush3.bf16.xpose.msra.mxu0 %v1362_v21  ;;  %11661 = vmatprep.mubr.msk.bf16.mxu0 %vm14139_vm0, %v14138_v1 }
 0x4df   :  { %11671 = vmatprep.subr.bf16.mxu0 %v14138_v1 }
 0x4e3   :  { %11626 = vmatmul.mubr.msk.bf16.vlgmr.msra.gmra.mxu1 %vm894_vm1, %v1004_v9 }
 0x4e4   :  { %11631 = vmatprep.mubr.msk.bf16.mxu1 %vm14139_vm0, %v14138_v1 }
 0x4e5   :  { %11662 = vmatmul.mubr.msk.bf16.vlgmr.msra.gmra.mxu0 %vm894_vm1, %v14515_v48 }
 0x4e6   :  { %11672 = vmatpush3.bf16.xpose.msra.mxu0 %v1473_v24  ;;  %11673 = vmatprep.mubr.msk.bf16.mxu0 %vm14139_vm0, %v14138_v1 }
 0x4e7   :  { %11683 = vmatprep.subr.bf16.mxu0 %v14138_v1 }
 0x4ed   :  { %11674 = vmatmul.mubr.msk.bf16.vlgmr.msra.gmra.mxu0 %vm894_vm1, %v1465_v23 }
 0x4ee   :  { %11684 = vmatpush3.bf16.xpose.msra.mxu0 %v1585_v27  ;;  %11685 = vmatprep.mubr.msk.bf16.mxu0 %vm14139_vm0, %v14138_v1 }
 0x4ef   :  { %11695 = vmatprep.subr.bf16.mxu0 %v14138_v1 }
 0x4f5   :  { %11686 = vmatmul.mubr.msk.bf16.vlgmr.msra.gmra.mxu0 %vm894_vm1, %v1578_v29 }
 0x4f6   :  { %11696 = vmatpush3.bf16.xpose.msra.mxu0 %v1696_v33  ;;  %11697 = vmatprep.mubr.msk.bf16.mxu0 %vm14139_vm0, %v14138_v1 }
 0x4f7   :  { %11707 = vmatprep.subr.bf16.mxu0 %v14138_v1 }
 0x4fd   :  { %11698 = vmatmul.mubr.msk.bf16.vlgmr.msra.gmra.mxu0 %vm894_vm1, %v1689_v34 }
 0x4fe   :  { %11723 = vmatprep.mubr.msk.bf16.mxu0 %vm14139_vm0, %v14138_v1 }
 0x595   :  { %v1160_v35 = vpop.f32.mrf.mxu0 }
 0x596   :  { %v1166_v36 = vmul.f32 0.17677669, %v1160_v35 }
 0x597   :  { %v11639_v37 = vpop.f32.mrf.mxu0 }
 0x598   :  { %v1167_v38 = vsel %vm942_vm3, %v1166_v36, -inf }
 0x599   :  { %1168 = vmax.xlane.f32.xlu0 %v1167_v38  ;;  %v1163_v39 = vpop.f32.mrf.mxu0 }
 0x59b   :  { %v14579_v40 = vpop.f32.mrf.mxu1  ;;  %v11640_v41 = vpop.f32.mrf.mxu0 }
 0x59d   :  { %v11621_v42 = vpop.f32.mrf.mxu1  ;;  %v1271_v43 = vpop.f32.mrf.mxu0 }
 0x59e   :  { %v1277_v44 = vmul.f32 0.17677669, %v1271_v43 }
 0x59f   :  { %v999_v45 = vpop.f32.mrf.mxu1  ;;  %v11651_v46 = vpop.f32.mrf.mxu0 }
 0x5a0   :  { %v1278_v47 = vsel %vm942_vm3, %v1277_v44, -inf }
 0x5a1   :  { %1279 = vmax.xlane.f32.xlu0 %v1278_v47  ;;  %v11622_v48 = vpop.f32.mrf.mxu1  ;;  %v1274_v50 = vpop.f32.mrf.mxu0 }
 0x5a3   :  { %v1048_v51 = vpop.f32.mrf.mxu1  ;;  %v11652_v52 = vpop.f32.mrf.mxu0 }
 0x5a4   :  { %v1054_v53 = vmul.f32 0.17677669, %v1048_v51 }
 0x5a5   :  { %v11627_v55 = vpop.f32.mrf.mxu1  ;;  %v1398_v57 = vpop.f32.mrf.mxu0 }
 0x5a6   :  { %v1404_v58 = vmul.f32 0.17677669, %v1398_v57  ;;  %v1055_v59 = vsel %vm942_vm3, %v1054_v53, -inf }
 0x5a7   :  { %v11663_v60 = vpop.f32.mrf.mxu0  ;;  %1056 = vmax.xlane.f32.xlu1 %v1055_v59  ;;  %v1051_v61 = vpop.f32.mrf.mxu1 }
 0x5a8   :  { %v1405_v2 = vsel %vm942_vm3, %v1404_v58, -inf }
 0x5a9   :  { %v11628_v62 = vpop.f32.mrf.mxu1  ;;  %v1401_v63 = vpop.f32.mrf.mxu0 }
 0x5ab   :  { %v11664_v3 = vpop.f32.mrf.mxu0  ;;  %1406 = vmax.xlane.f32.xlu1 %v1405_v2 }
 0x5ac   :  { %v1357_v3 = vpack.c.bf16 %v14527_v56, %v14527_v56 }
 0x5ad   :  { %v1509_v4 = vpop.f32.mrf.mxu0 }
 0x5ae   :  { %v1515_v5 = vmul.f32 0.17677669, %v1509_v4 }
 0x5af   :  { %v11675_v6 = vpop.f32.mrf.mxu0 }
 0x5b0   :  { %v1516_v7 = vsel %vm942_vm3, %v1515_v5, -inf }
 0x5b1   :  { %1517 = vmax.xlane.f32.xlu0 %v1516_v7  ;;  %v1512_v8 = vpop.f32.mrf.mxu0 }
 0x5b3   :  { %v11676_v9 = vpop.f32.mrf.mxu0 }
 0x5b5   :  { %v1621_v10 = vpop.f32.mrf.mxu0 }
 0x5b6   :  { %v1627_v11 = vmul.f32 0.17677669, %v1621_v10 }
 0x5b7   :  { %v11687_v12 = vpop.f32.mrf.mxu0 }
 0x5b8   :  { %v1628_v13 = vsel %vm942_vm3, %v1627_v11, -inf }
 0x5b9   :  { %v1624_v14 = vpop.f32.mrf.mxu0  ;;  %1629 = vmax.xlane.f32.xlu1 %v1628_v13 }
 0x5bb   :  { %v11688_v15 = vpop.f32.mrf.mxu0 }
 0x5bd   :  { %v1732_v16 = vpop.f32.mrf.mxu0 }
 0x5be   :  { %v1738_v17 = vmul.f32 0.17677669, %v1732_v16 }
 0x5bf   :  { %v11699_v18 = vpop.f32.mrf.mxu0 }
 0x5c0   :  { %v1739_v19 = vsel %vm942_vm3, %v1738_v17, -inf }
 0x5c1   :  { %1740 = vmax.xlane.f32.xlu0 %v1739_v19  ;;  %v1735_v20 = vpop.f32.mrf.mxu0 }
 0x5c3   :  { %v11700_v21 = vpop.f32.mrf.mxu0 }
 0x622   :  { %v1169_v22 = vpop.xlane.xlu0 %1168 }
 0x623   :  { %v1170_v23 = vsub.f32 %v1166_v36, %v1169_v22 }
 0x625   :  { %v1171_v24 = vmul.f32 1.442695, %v1170_v23  ;;  %v1421_v23 = vsel %vm958_vm2, %v1357_v3, 0 }
 0x627   :  { %13042 = vpow2.f32 %v1171_v24 }
 0x62a   :  { %v1280_v25 = vpop.xlane.xlu0 %1279 }
 0x62b   :  { %v1281_v27 = vsub.f32 %v1277_v44, %v1280_v25 }
 0x62d   :  { %v1282_v28 = vmul.f32 1.442695, %v1281_v27 }
 0x62f   :  { %13044 = vpow2.f32 %v1282_v28 }
 0x630   :  { %v1057_v29 = vpop.xlane.xlu1 %1056 }
 0x631   :  { %v1058_v33 = vsub.f32 %v1054_v53, %v1057_v29 }
 0x633   :  { %v1059_v34 = vmul.f32 1.442695, %v1058_v33 }
 0x634   :  { %v14587_v35 = vpop.eup %13042  ;;  %v1407_v37 = vpop.xlane.xlu1 %1406 }
 0x635   :  { %13046 = vpow2.f32 %v1059_v34  ;;  %v1408_v38 = vsub.f32 %v1404_v58, %v1407_v37  ;;  %v1173_v39 = vsel %vm942_vm3, %v14587_v35, 0.0 }
 0x636   :  { %1174 = vadd.xlane.f32.xlu0 %v1173_v39 }
 0x637   :  { %v1409_v41 = vmul.f32 1.442695, %v1408_v38 }
 0x639   :  { %13048 = vpow2.f32 %v1409_v41 }
 0x63a   :  { %v1518_v36 = vpop.xlane.xlu0 %1517 }
 0x63b   :  { %v1519_v42 = vsub.f32 %v1515_v5, %v1518_v36 }
 0x63c   :  { %v14591_v43 = vpop.eup %13044 }
 0x63d   :  { %v1520_v44 = vmul.f32 1.442695, %v1519_v42  ;;  %v1284_v45 = vsel %vm942_vm3, %v14591_v43, 0.0 }
 0x63e   :  { %1285 = vadd.xlane.f32.xlu1 %v1284_v45 }
 0x63f   :  { %13050 = vpow2.f32 %v1520_v44 }
 0x642   :  { %v13047_v46 = vpop.eup %13046  ;;  %v1630_v53 = vpop.xlane.xlu1 %1629 }
 0x643   :  { %v1061_v47 = vsel %vm942_vm3, %v13047_v46, 0.0  ;;  %v1631_v55 = vsub.f32 %v1627_v11, %v1630_v53 }
 0x644   :  { %1062 = vadd.xlane.f32.xlu1 %v1061_v47 }
 0x645   :  { %v1632_v57 = vmul.f32 1.442695, %v1631_v55 }
 0x646   :  { %v14596_v48 = vpop.eup %13048 }
 0x647   :  { %v1411_v50 = vsel %vm942_vm3, %v14596_v48, 0.0  ;;  %13052 = vpow2.f32 %v1632_v57 }
 0x648   :  { %1412 = vadd.xlane.f32.xlu0 %v1411_v50 }
 0x64a   :  { %v1741_v58 = vpop.xlane.xlu0 %1740 }
 0x64b   :  { %v1742_v59 = vsub.f32 %v1738_v17, %v1741_v58 }
 0x64c   :  { %v14600_v51 = vpop.eup %13050 }
 0x64d   :  { %v1522_v52 = vsel %vm942_vm3, %v14600_v51, 0.0  ;;  %v1743_v60 = vmul.f32 1.442695, %v1742_v59 }
 0x64e   :  { %1523 = vadd.xlane.f32.xlu0 %v1522_v52 }
 0x64f   :  { %13054 = vpow2.f32 %v1743_v60 }
 0x654   :  { %v14610_v61 = vpop.eup %13052 }
 0x655   :  { %1068 = vrot.lane.b32.xlu1 %v14525_v54, %s14140_s25  ;;  %v1634_v62 = vsel %vm942_vm3, %v14610_v61, 0.0 }
 0x65c   :  { %v14614_v63 = vpop.eup %13054 }
 0x65d   :  { %v1745_v2 = vsel %vm942_vm3, %v14614_v63, 0.0 }
 0x664   :  { %1179 = vrot.lane.b32.xlu0 %v14525_v54, %s14117_s4 }
 0x668   :  { %1290 = vrot.lane.b32.xlu0 %v14525_v54, %s14097_s21 }
 0x679   :  { %1635 = vadd.xlane.f32.xlu1 %v1634_v62 }
 0x687   :  { %1746 = vadd.xlane.f32.xlu0 %v1745_v2 }
 0x68a   :  { %1529 = vrot.lane.b32.xlu1 %v1357_v3, %s14140_s25 }
 0x68e   :  { %1751 = vrot.lane.b32.xlu1 %v1357_v3, %s14097_s21 }
 0x69d   :  { %1640 = vrot.lane.b32.xlu0 %v1357_v3, %s14117_s4 }
 0x6bf   :  { %v1175_v5 = vpop.xlane.xlu0 %1174 }
 0x6c7   :  { %v1286_v54 = vpop.xlane.xlu1 %1285 }
 0x6cd   :  { %v1063_v4 = vpop.xlane.xlu1 %1062 }
 0x6ce   :  { %13056 = vrcp.f32 %v1063_v4 }
 0x6cf   :  { %13058 = vrcp.f32 %v1175_v5  ;;  %v12623_v5 = vld [vmem:[#allocation7 + $0x30] sm:$0xff]  }
 0x6d0   :  { %13060 = vrcp.f32 %v1286_v54 }
 0x6d1   :  { %v1069_v6 = vpop.permute.xlu1 %1068  ;;  %v1413_v8 = vpop.xlane.xlu0 %1412 }
 0x6d2   :  { %v1074_v7 = vsel %vm958_vm2, %v1069_v6, 0  ;;  %13062 = vrcp.f32 %v1413_v8  ;;  %v12624_v6 = vld [vmem:[#allocation7 + $0x28] sm:$0xff]  }
 0x6d3   :  { %11630 = vmatpush3.bf16.msra.mxu1 %v1074_v7  ;;  %v12625_v7 = vld [vmem:[#allocation7 + $0x20] sm:$0xff]  }
 0x6d4   :  { %11641 = vmatprep.subr.bf16.mxu1 %v14138_v1 }
 0x6d7   :  { %v1524_v9 = vpop.xlane.xlu0 %1523 }
 0x6d8   :  { %13064 = vrcp.f32 %v1524_v9 }
 0x6db   :  { %v13057_v56 = vpop.eup %13056  ;;  %v1180_v11 = vpop.permute.xlu0 %1179 }
 0x6dc   :  { %v1065_v10 = vmul.f32 %v13057_v56, %v13047_v46  ;;  %v13059_v13 = vpop.eup %13058  ;;  %v1185_v14 = vsel %vm958_vm2, %v1180_v11, 0 }
 0x6dd   :  { %v1177_v15 = vmul.f32 %v13059_v13, %v14587_v35  ;;  %v13061_v18 = vpop.eup %13060  ;;  %v12627_v13 = vld [vmem:[#allocation7 + $0x10] sm:$0xff]  }
 0x6de   :  { %v1066_v12 = vpack.c.bf16 %v1065_v10, %v1065_v10  ;;  %v1288_v20 = vmul.f32 %v13061_v18, %v14591_v43  ;;  %v12626_v10 = vld [vmem:[#allocation7 + $0x18] sm:$0xff]  }
 0x6df   :  { %v1291_v16 = vpop.permute.xlu0 %1290  ;;  %v1178_v17 = vpack.c.bf16 %v1177_v15, %v1177_v15  ;;  %v13063_v22 = vpop.eup %13062 }
 0x6e0   :  { %11632 = vmatmul.mubr.msk.bf16.vlgmr.msra.gmra.mxu1 %vm942_vm3, %v1066_v12  ;;  %v1296_v19 = vsel %vm958_vm2, %v1291_v16, 0  ;;  %v1289_v21 = vpack.c.bf16 %v1288_v20, %v1288_v20  ;;  %v1415_v24 = vmul.f32 %v13063_v22, %v14596_v48  ;;  %v12622_v48 = vld [vmem:[#allocation7 + $0x38] sm:$0xff]  }
 0x6e1   :  { %11642 = vmatpush3.bf16.msra.mxu1 %v1185_v14  ;;  %11643 = vmatprep.mubr.msk.bf16.mxu1 %vm14139_vm0, %v14138_v1  ;;  %v12628_v14 = vld [vmem:[#allocation7 + $0x8] sm:$0xff]  }
 0x6e2   :  { %11653 = vmatprep.subr.bf16.mxu1 %v14138_v1  ;;  %v1416_v25 = vpack.c.bf16 %v1415_v24, %v1415_v24  ;;  %11708 = vmatpush3.bf16.msra.mxu0 %v12622_v48 }
 0x6e3   :  { %11709 = vmatprep.subr.bf16.mxu0 %v14138_v1 }
 0x6e5   :  { %v13065_v27 = vpop.eup %13064 }
 0x6e6   :  { %v1526_v29 = vmul.f32 %v13065_v27, %v14600_v51  ;;  %11710 = vmatpush3.bf16.msra.mxu0 %v12623_v5 }
 0x6e7   :  { %11711 = vmatprep.subr.bf16.mxu0 %v14138_v1 }
 0x6e8   :  { %11644 = vmatmul.mubr.msk.bf16.vlgmr.msra.gmra.mxu1 %vm942_vm3, %v1178_v17  ;;  %v1527_v35 = vpack.c.bf16 %v1526_v29, %v1526_v29  ;;  %v12629_v17 = vld [vmem:[#allocation7] sm:$0xff]  }
 0x6e9   :  { %11654 = vmatpush3.bf16.msra.mxu1 %v1296_v19  ;;  %11655 = vmatprep.mubr.msk.bf16.mxu1 %vm14139_vm0, %v14138_v1 }
 0x6ea   :  { %11665 = vmatprep.subr.bf16.mxu1 %v14138_v1  ;;  %11712 = vmatpush3.bf16.msra.mxu0 %v12624_v6 }
 0x6eb   :  { %11713 = vmatprep.subr.bf16.mxu0 %v14138_v1 }
 0x6ee   :  { %11714 = vmatpush3.bf16.msra.mxu0 %v12625_v7  ;;  %v12635_v7 = vld [vmem:[#allocation13 + $0x64] ss:$8 sps:$4 sm:$0xff]  }
 0x6ef   :  { %11715 = vmatprep.subr.bf16.mxu0 %v14138_v1 }
 0x6f0   :  { %11656 = vmatmul.mubr.msk.bf16.vlgmr.msra.gmra.mxu1 %vm942_vm3, %v1289_v21 }
 0x6f1   :  { %11666 = vmatpush3.bf16.msra.mxu1 %v1421_v23  ;;  %11667 = vmatprep.mubr.msk.bf16.mxu1 %vm14139_vm0, %v14138_v1 }
 0x6f2   :  { %11677 = vmatprep.subr.bf16.mxu1 %v14138_v1  ;;  %11716 = vmatpush3.bf16.msra.mxu0 %v12626_v10  ;;  %v12639_v10 = vld [vmem:[#allocation13 + $0x40] ss:$8 sps:$4 sm:$0xff]  }
 0x6f3   :  { %11717 = vmatprep.subr.bf16.mxu0 %v14138_v1 }
 0x6f6   :  { %11718 = vmatpush3.bf16.msra.mxu0 %v12627_v13  ;;  %v12642_v13 = vld [vmem:[#allocation13 + $0x30] ss:$8 sps:$4 sm:$0xff]  }
 0x6f7   :  { %11719 = vmatprep.subr.bf16.mxu0 %v14138_v1 }
 0x6f8   :  { %11668 = vmatmul.mubr.msk.bf16.vlgmr.msra.gmra.mxu1 %vm942_vm3, %v1416_v25 }
 0x6f9   :  { %11679 = vmatprep.mubr.msk.bf16.mxu1 %vm14139_vm0, %v14138_v1 }
 0x6fa   :  { %11720 = vmatpush3.bf16.msra.mxu0 %v12628_v14  ;;  %v12647_v14 = vld [vmem:[#allocation13 + $0x24] ss:$8 sps:$4 sm:$0xff]  }
 0x6fb   :  { %11721 = vmatprep.subr.bf16.mxu0 %v14138_v1 }
 0x6fe   :  { %11722 = vmatpush3.bf16.msra.mxu0 %v12629_v17  ;;  %v12648_v17 = vld [vmem:[#allocation13 + $0x10] ss:$8 sps:$4 sm:$0xff]  }
 0x702   :  { %v1636_v28 = vpop.xlane.xlu1 %1635 }
 0x703   :  { %13066 = vrcp.f32 %v1636_v28 }
 0x706   :  { %v1530_v33 = vpop.permute.xlu1 %1529 }
 0x707   :  { %v1535_v34 = vsel %vm958_vm2, %v1530_v33, 0 }
 0x708   :  { %11678 = vmatpush3.bf16.msra.mxu1 %v1535_v34 }
 0x709   :  { %11689 = vmatprep.subr.bf16.mxu1 %v14138_v1 }
 0x70a   :  { %v1752_v42 = vpop.permute.xlu1 %1751 }
 0x70b   :  { %11680 = vmatmul.mubr.msk.bf16.vlgmr.msra.gmra.mxu1 %vm942_vm3, %v1527_v35  ;;  %v1757_v44 = vsel %vm958_vm2, %v1752_v42, 0 }
 0x70c   :  { %11691 = vmatprep.mubr.msk.bf16.mxu1 %vm14139_vm0, %v14138_v1 }
 0x710   :  { %v13067_v37 = vpop.eup %13066  ;;  %v1747_v38 = vpop.xlane.xlu0 %1746 }
 0x711   :  { %13068 = vrcp.f32 %v1747_v38  ;;  %v1638_v39 = vmul.f32 %v13067_v37, %v14610_v61 }
 0x713   :  { %v1639_v43 = vpack.c.bf16 %v1638_v39, %v1638_v39 }
 0x714   :  { %v1641_v41 = vpop.permute.xlu0 %1640 }
 0x715   :  { %v1646_v36 = vsel %vm958_vm2, %v1641_v41, 0 }
 0x716   :  { %11690 = vmatpush3.bf16.msra.mxu1 %v1646_v36 }
 0x717   :  { %11701 = vmatprep.subr.bf16.mxu1 %v14138_v1 }
 0x719   :  { %11692 = vmatmul.mubr.msk.bf16.vlgmr.msra.gmra.mxu1 %vm942_vm3, %v1639_v43 }
 0x71a   :  { %11702 = vmatpush3.bf16.msra.mxu1 %v1757_v44  ;;  %11703 = vmatprep.mubr.msk.bf16.mxu1 %vm14139_vm0, %v14138_v1 }
 0x71e   :  { %v13069_v45 = vpop.eup %13068 }
 0x71f   :  { %v1749_v46 = vmul.f32 %v13069_v45, %v14614_v63 }
 0x721   :  { %v1750_v47 = vpack.c.bf16 %v1749_v46, %v1749_v46 }
 0x723   :  { %11704 = vmatmul.mubr.msk.bf16.vlgmr.msra.gmra.mxu1 %vm942_vm3, %v1750_v47  ;;  %v10741_v47 = vld [vmem:[#allocation8] ss:$0 sm:$0xff] }
 0x724   :  { %2111 = vmatprep.mubr.bf16.mxu1 %v14137_v0 }
 0x7a0   :  { %v1110_v50 = vpop.f32.mrf.mxu1 }
 0x7a2   :  { %v11633_v51 = vpop.f32.mrf.mxu1 }
 0x7a4   :  { %v1113_v52 = vpop.f32.mrf.mxu1 }
 0x7a5   :  { %v13288_v52 = vld [vmem:[%s15898_s17] sm:$0xff] }
 0x7a6   :  { %v11634_v53 = vpop.f32.mrf.mxu1 }
 0x7a8   :  { %v1221_v55 = vpop.f32.mrf.mxu1 }
 0x7aa   :  { %v11645_v57 = vpop.f32.mrf.mxu1 }
 0x7ac   :  { %v1224_v58 = vpop.f32.mrf.mxu1 }
 0x7ad   :  { %v13289_v58 = vld [vmem:[%s15898_s17 + $0x8] sm:$0xff] }
 0x7ae   :  { %v11646_v59 = vpop.f32.mrf.mxu1 }
 0x7b0   :  { %v1332_v60 = vpop.f32.mrf.mxu1 }
 0x7b2   :  { %v11657_v61 = vpop.f32.mrf.mxu1 }
 0x7b3   :  { %v12632_v61 = vld [vmem:[#allocation13 + $0x74] ss:$8 sps:$4 sm:$0xff]  }
 0x7b4   :  { %v1335_v62 = vpop.f32.mrf.mxu1  ;;  %2079 = vmatprep.subr.bf16.mxu1 %v12632_v61 }
 0x7b6   :  { %v11658_v63 = vpop.f32.mrf.mxu1 }
 0x7b8   :  { %v1457_v2 = vpop.f32.mrf.mxu1 }
 0x7ba   :  { %v11669_v3 = vpop.f32.mrf.mxu1 }
 0x7bc   :  { %v1460_v54 = vpop.f32.mrf.mxu1 }
 0x7be   :  { %v11670_v4 = vpop.f32.mrf.mxu1 }
 0x7cb   :  { %v1571_v8 = vpop.f32.mrf.mxu1 }
 0x7cc   :  { %v12500_v9 = vpack.i.bf16 %v1571_v8, %v1110_v50  ;;  %v12633_v8 = vld [vmem:[#allocation13 + $0x60] ss:$8 sps:$4 sm:$0xff]  }
 0x7cd   :  { %v11681_v56 = vpop.f32.mrf.mxu1 }
 0x7ce   :  { %12501 = vrot.lane.b32.xlu1 %v12500_v9, %s14097_s21  ;;  %v12638_v9 = vld [vmem:[#allocation13 + $0x54] ss:$8 sps:$4 sm:$0xff]   ;;  %v12636_v56 = vld [vmem:[#allocation13 + $0x50] ss:$8 sps:$4 sm:$0xff]  }
 0x7cf   :  { %v1574_v11 = vpop.f32.mrf.mxu1 }
 0x7d0   :  { %v12641_v11 = vld [vmem:[#allocation13 + $0x44] ss:$8 sps:$4 sm:$0xff]  }
 0x7d1   :  { %v11682_v12 = vpop.f32.mrf.mxu1 }
 0x7d2   :  { %v12644_v12 = vld [vmem:[#allocation13 + $0x34] ss:$8 sps:$4 sm:$0xff]  }
 0x7d9   :  { %v1682_v15 = vpop.f32.mrf.mxu1 }
 0x7da   :  { %v12505_v16 = vpack.i.bf16 %v1682_v15, %v1221_v55  ;;  %v12645_v15 = vld [vmem:[#allocation13 + $0x20] ss:$8 sps:$4 sm:$0xff]  }
 0x7db   :  { %v11693_v18 = vpop.f32.mrf.mxu1 }
 0x7dc   :  { %12506 = vrot.lane.b32.xlu1 %v12505_v16, %s14117_s4  ;;  %v12650_v16 = vld [vmem:[#allocation13 + $0x14] ss:$8 sps:$4 sm:$0xff]   ;;  %v12653_v18 = vld [vmem:[#allocation13 + $0x4] ss:$8 sps:$4 sm:$0xff]  }
 0x7dd   :  { %v1685_v19 = vpop.f32.mrf.mxu1 }
 0x7de   :  { %v12651_v19 = vld [vmem:[#allocation13] ss:$8 sps:$4 sm:$0xff]  }
 0x7df   :  { %v11694_v20 = vpop.f32.mrf.mxu1 }
 0x7e0   :  { %v12654_v20 = vld [vmem:[#allocation16 + $0x78] sm:$0xff]  }
 0x7e1   :  { %11253 = vmatprep.subr.bf16.mxu0 %v12654_v20 }
 0x7e3   :  { %v1793_v21 = vpop.f32.mrf.mxu1 }
 0x7e4   :  { %v12510_v22 = vpack.i.bf16 %v1793_v21, %v1332_v60  ;;  %v12630_v60 = vld [vmem:[#allocation13 + $0x70] ss:$8 sps:$4 sm:$0xff]   ;;  %v12655_v21 = vld [vmem:[#allocation16 + $0x38] sm:$0xff]  }
 0x7e5   :  { %v11705_v23 = vpop.f32.mrf.mxu1  ;;  %2080 = vmatpush1.bf16.msra.mxu1 %v12630_v60  ;;  %v1986_v60 = vld [vmem:[#allocation14] sm:$0x3] }
 0x7e6   :  { %12511 = vrot.lane.b32.xlu1 %v12510_v22, %s14140_s25  ;;  %2081 = vmatprep.subr.bf16.mxu1 %v12635_v7  ;;  %v12656_v22 = vld [vmem:[#allocation16 + $0x70] sm:$0xff]  }
 0x7e7   :  { %v1796_v24 = vpop.f32.mrf.mxu1  ;;  %v12657_v23 = vld [vmem:[#allocation16 + $0x30] sm:$0xff]  }
 0x7e8   :  { %v12658_v24 = vld [vmem:[#allocation16 + $0x68] sm:$0xff]  }
 0x7e9   :  { %v11706_v25 = vpop.f32.mrf.mxu1  ;;  %2082 = vmatpush1.bf16.msra.mxu1 %v12633_v8 }
 0x7ea   :  { %2083 = vmatprep.subr.bf16.mxu1 %v12638_v9  ;;  %v12659_v25 = vld [vmem:[#allocation16 + $0x28] sm:$0xff]  }
 0x7ed   :  { %2084 = vmatpush1.bf16.msra.mxu1 %v12636_v56 }
 0x7ee   :  { %2085 = vmatprep.subr.bf16.mxu1 %v12641_v11 }
 0x7f1   :  { %2086 = vmatpush1.bf16.msra.mxu1 %v12639_v10 }
 0x7f2   :  { %2087 = vmatprep.subr.bf16.mxu1 %v12644_v12 }
 0x7f5   :  { %2088 = vmatpush1.bf16.msra.mxu1 %v12642_v13 }
 0x7f6   :  { %2089 = vmatprep.subr.bf16.mxu1 %v12647_v14  ;;  %v10768_v14 = vld [vmem:[#allocation17] ss:$0 sm:$0xff] }
 0x7f9   :  { %2090 = vmatpush1.bf16.msra.mxu1 %v12645_v15 }
 0x7fa   :  { %2091 = vmatprep.subr.bf16.mxu1 %v12650_v16 }
 0x7fd   :  { %2092 = vmatpush1.bf16.msra.mxu1 %v12648_v17 }
 0x7fe   :  { %2093 = vmatprep.subr.bf16.mxu1 %v12653_v18 }
 0x801   :  { %2094 = vmatpush1.bf16.msra.mxu1 %v12651_v19 }
 0x840   :  { %v12502_v27 = vpop.permute.xlu1 %12501 }
 0x841   :  { %v12504_v29 = vunpack.i.h.bf16 %v12502_v27  ;;  %v12503_v33 = vunpack.i.l.bf16 %v12502_v27  ;;  %v12660_v27 = vld [vmem:[#allocation16 + $0x60] sm:$0xff]  }
 0x843   :  { %v1811_v38 = vsel %vm894_vm1, %v1457_v2, %v12504_v29  ;;  %v1350_v39 = vsel %vm894_vm1, %v14579_v40, %v12503_v33  ;;  %v12662_v29 = vld [vmem:[#allocation16 + $0x58] sm:$0xff]  }
 0x844   :  { %v12663_v33 = vld [vmem:[#allocation16 + $0x18] sm:$0xff]  }
 0x84e   :  { %v12507_v28 = vpop.permute.xlu1 %12506 }
 0x84f   :  { %v12509_v34 = vunpack.i.h.bf16 %v12507_v28  ;;  %v12508_v35 = vunpack.i.l.bf16 %v12507_v28  ;;  %v12661_v28 = vld [vmem:[#allocation16 + $0x20] sm:$0xff]  }
 0x851   :  { %v1812_v42 = vsel %vm1351_vm4, %v1811_v38, %v12509_v34  ;;  %v1352_v43 = vsel %vm1351_vm4, %v1350_v39, %v12508_v35 }
 0x858   :  { %v12512_v37 = vpop.permute.xlu1 %12511 }
 0x859   :  { %v12514_v41 = vunpack.i.h.bf16 %v12512_v37  ;;  %v12513_v36 = vunpack.i.l.bf16 %v12512_v37 }
 0x85b   :  { %v1813_v44 = vsel %vm1353_vm5, %v1812_v42, %v12514_v41  ;;  %v1354_v45 = vsel %vm1353_vm5, %v1352_v43, %v12513_v36  ;;  %v10750_v43 = vld [vmem:[#allocation10] ss:$0 sm:$0xff] }
 0x85c   :  { %v1831_v46 = vpack.c.bf16 %v1813_v44, %v1354_v45 }
 0x85e   :  { %11724 = vmatmul.mubr.bf16.vlgmr.msra.gmra.mxu0 %v1831_v46 }
 0x85f   :  { %11254 = vmatpush3.bf16.msra.mxu0 %v12655_v21 }
 0x860   :  { %11255 = vmatprep.subr.bf16.mxu0 %v12656_v22 }
 0x863   :  { %11256 = vmatpush3.bf16.msra.mxu0 %v12657_v23 }
 0x864   :  { %11257 = vmatprep.subr.bf16.mxu0 %v12658_v24  ;;  %v12670_v24 = vld [vmem:[#allocation2 + $0x168] ss:$12 sps:$4 sm:$0xff]  }
 0x867   :  { %11258 = vmatpush3.bf16.msra.mxu0 %v12659_v25  ;;  %v12672_v25 = vld [vmem:[#allocation2 + $0x16c] ss:$12 sps:$4 sm:$0xff]  }
 0x868   :  { %11259 = vmatprep.subr.bf16.mxu0 %v12660_v27  ;;  %v12673_v27 = vld [vmem:[#allocation2 + $0x170] ss:$12 sps:$4 sm:$0xff]   ;;  %2526 = vmatprep.subr.bf16.mxu1 %v12672_v25 }
 0x86b   :  { %11260 = vmatpush3.bf16.msra.mxu0 %v12661_v28 }
 0x86c   :  { %11261 = vmatprep.subr.bf16.mxu0 %v12662_v29 }
 0x86f   :  { %11262 = vmatpush3.bf16.msra.mxu0 %v12663_v33 }
 0x91e   :  { %v1920_v48 = vpop.f32.mrf.mxu0 }
 0x91f   :  { %v1921_v50 = vadd.f32 %v10741_v47, %v1920_v48 }
 0x920   :  { %v11725_v51 = vpop.f32.mrf.mxu0 }
 0x921   :  { %v1927_v53 = vadd.f32 %v13288_v52, %v1921_v50 }
 0x922   :  { %v1923_v40 = vpop.f32.mrf.mxu0 }
 0x923   :  { %v1924_v55 = vadd.f32 %v10741_v47, %v1923_v40  ;;  %1931 = vadd.xlane.f32.xlu0 %v1927_v53  ;;  %v10751_v47 = vld [vmem:[#allocation11] ss:$0 sm:$0xff]  ;;  %v12665_v40 = vld [vmem:[#allocation16 + $0x10] sm:$0xff]  }
 0x924   :  { %v11726_v57 = vpop.f32.mrf.mxu0 }
 0x925   :  { %v1928_v59 = vadd.f32 %v13289_v58, %v1924_v55  ;;  %v12666_v55 = vld [vmem:[#allocation16 + $0x48] sm:$0xff]   ;;  %v12668_v58 = vld [vmem:[#allocation16 + $0x40] sm:$0xff]  }
 0x926   :  { %v12667_v57 = vld [vmem:[#allocation16 + $0x8] sm:$0xff]  }
 0x927   :  { %1933 = vadd.xlane.f32.xlu1 %v1928_v59 }
 0x9ac   :  { %v1932_v62 = vpop.xlane.xlu0 %1931 }
 0x9ad   :  { %v1936_v63 = vmul.f32 0.0078125, %v1932_v62  ;;  %v1996_v62 = vrot.slane %v1986_v60, %v14497_v31 }
 0x9af   :  { %v14681_v2 = vsub.f32 %v1927_v53, %v1936_v63  ;;  %v12664_v53 = vld [vmem:[#allocation16 + $0x50] sm:$0xff]   ;;  %v1992_v63 = vrot.slane %v1986_v60, %v14500_v32 }
 0x9b0   :  { %v1934_v3 = vpop.xlane.xlu1 %1933  ;;  %11263 = vmatprep.subr.bf16.mxu0 %v12664_v53  ;;  %v12692_v53 = vld [vmem:[#allocation2 + $0xf4] ss:$12 sps:$4 sm:$0xff]   ;;  %v12700_v60 = vld [vmem:[#allocation2 + $0xc4] ss:$12 sps:$4 sm:$0xff]  }
 0x9b1   :  { %v1937_v54 = vmul.f32 0.0078125, %v1934_v3  ;;  %v1940_v4 = vmul.f32 %v14681_v2, %v14681_v2  ;;  %11264 = vmatpush3.bf16.msra.mxu0 %v12665_v40  ;;  %v12690_v40 = vld [vmem:[#allocation2 + $0xf0] ss:$12 sps:$4 sm:$0xff]  }
 0x9b2   :  { %11265 = vmatprep.subr.bf16.mxu0 %v12666_v55  ;;  %v12693_v55 = vld [vmem:[#allocation2 + $0xf8] ss:$12 sps:$4 sm:$0xff]  }
 0x9b3   :  { %1942 = vadd.xlane.f32.xlu0 %v1940_v4  ;;  %v14685_v5 = vsub.f32 %v1928_v59, %v1937_v54  ;;  %v12669_v59 = vld [vmem:[#allocation16] sm:$0xff]  }
 0x9b5   :  { %v1941_v6 = vmul.f32 %v14685_v5, %v14685_v5  ;;  %11266 = vmatpush3.bf16.msra.mxu0 %v12667_v57  ;;  %v12696_v57 = vld [vmem:[#allocation2 + $0xdc] ss:$12 sps:$4 sm:$0xff]  }
 0x9b6   :  { %11267 = vmatprep.subr.bf16.mxu0 %v12668_v58  ;;  %v12694_v58 = vld [vmem:[#allocation2 + $0xd8] ss:$12 sps:$4 sm:$0xff]  }
 0x9b7   :  { %1944 = vadd.xlane.f32.xlu0 %v1941_v6 }
 0x9b9   :  { %11268 = vmatpush3.bf16.msra.mxu0 %v12669_v59  ;;  %v12697_v59 = vld [vmem:[#allocation2 + $0xe0] ss:$12 sps:$4 sm:$0xff]  }
 0x9ba   :  { %11727 = vmatprep.subr.bf16.mxu0 %v14138_v1 }
 0xa3c   :  { %v1943_v34 = vpop.xlane.xlu0 %1942 }
 0xa3d   :  { %v1946_v35 = vmul.f32 0.0078125, %v1943_v34 }
 0xa3f   :  { %v1948_v37 = vadd.f32 1e-05, %v1946_v35 }
 0xa40   :  { %v1945_v38 = vpop.xlane.xlu0 %1944 }
 0xa41   :  { %13070 = vrsqrt.f32 %v1948_v37  ;;  %v1947_v39 = vmul.f32 0.0078125, %v1945_v38 }
 0xa43   :  { %v1949_v41 = vadd.f32 1e-05, %v1947_v39 }
 0xa45   :  { %13072 = vrsqrt.f32 %v1949_v41  ;;  %v12676_v41 = vld [vmem:[#allocation2 + $0x154] ss:$12 sps:$4 sm:$0xff]  }
 0xa4e   :  { %v13071_v36 = vpop.eup %13070 }
 0xa4f   :  { %v1952_v42 = vmul.f32 %v13071_v36, %v14681_v2  ;;  %v12674_v36 = vld [vmem:[#allocation2 + $0x150] ss:$12 sps:$4 sm:$0xff]  }
 0xa51   :  { %v1960_v46 = vmul.f32 %v10750_v43, %v1952_v42  ;;  %v12677_v42 = vld [vmem:[#allocation2 + $0x158] ss:$12 sps:$4 sm:$0xff]  }
 0xa52   :  { %v13073_v44 = vpop.eup %13072 }
 0xa53   :  { %v1953_v45 = vmul.f32 %v13073_v44, %v14685_v5  ;;  %v1968_v50 = vadd.f32 %v10751_v47, %v1960_v46  ;;  %v12678_v44 = vld [vmem:[#allocation2 + $0x138] ss:$12 sps:$4 sm:$0xff]   ;;  %v12682_v46 = vld [vmem:[#allocation2 + $0x120] ss:$12 sps:$4 sm:$0xff]  }
 0xa55   :  { %v1961_v48 = vmul.f32 %v10750_v43, %v1953_v45  ;;  %v12680_v43 = vld [vmem:[#allocation2 + $0x13c] ss:$12 sps:$4 sm:$0xff]   ;;  %v12681_v45 = vld [vmem:[#allocation2 + $0x140] ss:$12 sps:$4 sm:$0xff]  }
 0xa57   :  { %v1969_v51 = vadd.f32 %v10751_v47, %v1961_v48  ;;  %v12684_v47 = vld [vmem:[#allocation2 + $0x124] ss:$12 sps:$4 sm:$0xff]   ;;  %v12685_v48 = vld [vmem:[#allocation2 + $0x128] ss:$12 sps:$4 sm:$0xff]  }
 0xa59   :  { %v1987_v52 = vpack.c.bf16 %v1969_v51, %v1968_v50 }
 0xa5b   :  { %2112 = vmatmul.mubr.bf16.vlgmr.msra.gmra.mxu1 %v1987_v52  ;;  %v12689_v52 = vld [vmem:[#allocation2 + $0x110] ss:$12 sps:$4 sm:$0xff]  }
 0xa5c   :  { %2558 = vmatprep.mubr.bf16.mxu1 %v14137_v0  ;;  %2527 = vmatpush1.bf16.msra.mxu1 %v12670_v24 }
 0xa5d   :  { %2528 = vmatprep.subr.bf16.mxu1 %v12676_v41 }
 0xa60   :  { %2529 = vmatpush1.bf16.msra.mxu1 %v12674_v36 }
 0xa61   :  { %2530 = vmatprep.subr.bf16.mxu1 %v12680_v43 }
 0xa64   :  { %2531 = vmatpush1.bf16.msra.mxu1 %v12678_v44 }
 0xa65   :  { %2532 = vmatprep.subr.bf16.mxu1 %v12684_v47 }
 0xa68   :  { %2533 = vmatpush1.bf16.msra.mxu1 %v12682_v46 }
 0xb1b   :  { %v2113_v61 = vpop.f32.mrf.mxu1 }
 0xb1c   :  { %v2114_v5 = vadd.f32 %v2113_v61, %v1992_v63  ;;  %v12698_v61 = vld [vmem:[#allocation2 + $0xc0] ss:$12 sps:$4 sm:$0xff]  }
 0xb1d   :  { %v2115_v2 = vpop.f32.mrf.mxu1 }
 0xb1e   :  { %v2116_v54 = vadd.f32 %v2115_v2, %v1996_v62  ;;  %v2122_v10 = vmax.f32 %v2114_v5, 0.0 }
 0xb1f   :  { %v2117_v3 = vpop.f32.mrf.mxu1 }
 0xb20   :  { %v2118_v4 = vadd.f32 %v2117_v3, %v1992_v63  ;;  %v2123_v9 = vmax.f32 %v2116_v54, 0.0 }
 0xb21   :  { %v2119_v6 = vpop.f32.mrf.mxu1 }
 0xb22   :  { %v2120_v7 = vadd.f32 %v2119_v6, %v1996_v62  ;;  %v2124_v8 = vmax.f32 %v2118_v4, 0.0  ;;  %v12701_v62 = vld [vmem:[#allocation2 + $0xc8] ss:$12 sps:$4 sm:$0xff]  }
 0xb24   :  { %v2125_v56 = vmax.f32 %v2120_v7, 0.0  ;;  %v2159_v12 = vpack.c.bf16 %v2124_v8, %v2122_v10  ;;  %v10785_v8 = vld [vmem:[#allocation19] ss:$0 sm:$0xff] }
 0xb26   :  { %v2160_v11 = vpack.c.bf16 %v2125_v56, %v2123_v9 }
 0xb28   :  { %2295 = vmatprep.mubr.bf16.mxu0 %v2160_v11  ;;  %v10786_v11 = vld [vmem:[#allocation20] ss:$0 sm:$0xff] }
 0xb29   :  { %2296 = vmatmul.mubr.bf16.vlgmr.msra.gmra.mxu0 %v2159_v12 }
 0xb2a   :  { %11743 = vmatprep.mubr.msk.bf16.mxu0 %vm14139_vm0, %v14138_v1  ;;  %11728 = vmatpush3.bf16.msra.mxu0 %v12673_v27 }
 0xb2b   :  { %11729 = vmatprep.subr.bf16.mxu0 %v14138_v1 }
 0xb2e   :  { %11730 = vmatpush3.bf16.msra.mxu0 %v12677_v42 }
 0xb2f   :  { %11731 = vmatprep.subr.bf16.mxu0 %v14138_v1 }
 0xb32   :  { %11732 = vmatpush3.bf16.msra.mxu0 %v12681_v45 }
 0xb33   :  { %11733 = vmatprep.subr.bf16.mxu0 %v14138_v1 }
 0xb36   :  { %11734 = vmatpush3.bf16.msra.mxu0 %v12685_v48 }
 0xb37   :  { %11735 = vmatprep.subr.bf16.mxu0 %v14138_v1 }
 0xb3a   :  { %11736 = vmatpush3.bf16.msra.mxu0 %v12689_v52 }
 0xb3b   :  { %11737 = vmatprep.subr.bf16.mxu0 %v14138_v1 }
 0xb3e   :  { %11738 = vmatpush3.bf16.msra.mxu0 %v12693_v55 }
 0xb3f   :  { %11739 = vmatprep.subr.bf16.mxu0 %v14138_v1 }
 0xb42   :  { %11740 = vmatpush3.bf16.msra.mxu0 %v12697_v59 }
 0xb43   :  { %11741 = vmatprep.subr.bf16.mxu0 %v14138_v1 }
 0xb46   :  { %11742 = vmatpush3.bf16.msra.mxu0 %v12701_v62 }
 0xb47   :  { %11771 = vmatprep.subr.bf16.mxu0 %v14138_v1 }
 0xbe9   :  { %v11269_v13 = vpop.f32.mrf.mxu0 }
 0xbeb   :  { %v11270_v15 = vpop.f32.mrf.mxu0 }
 0xbec   :  { %v11271_v16 = vadd.f32 %v11270_v15, %v11269_v13 }
 0xbed   :  { %v11272_v17 = vpop.f32.mrf.mxu0 }
 0xbee   :  { %v2298_v18 = vadd.f32 %v11271_v16, %v10768_v14  ;;  %v2380_v16 = vld [vmem:[#allocation5 + $0x3] sm:$0x7] }
 0xbef   :  { %v11273_v19 = vpop.f32.mrf.mxu0  ;;  %v2386_v25 = vrot.slane %v2380_v16, %v14500_v32 }
 0xbf0   :  { %v11274_v20 = vadd.f32 %v11273_v19, %v11272_v17  ;;  %v2304_v21 = vadd.f32 %v2298_v18, %v1968_v50  ;;  %v12688_v50 = vld [vmem:[#allocation2 + $0x10c] ss:$12 sps:$4 sm:$0xff]   ;;  %v2390_v17 = vrot.slane %v2380_v16, %v14497_v31 }
 0xbf1   :  { %2534 = vmatprep.subr.bf16.mxu1 %v12688_v50 }
 0xbf2   :  { %2308 = vadd.xlane.f32.xlu1 %v2304_v21  ;;  %v2301_v22 = vadd.f32 %v11274_v20, %v10768_v14 }
 0xbf4   :  { %v2305_v23 = vadd.f32 %v2301_v22, %v1969_v51  ;;  %v12686_v51 = vld [vmem:[#allocation2 + $0x108] ss:$12 sps:$4 sm:$0xff]   ;;  %v2394_v22 = vrot.slane %v2380_v16, %v14522_v49 }
 0xbf5   :  { %2535 = vmatpush1.bf16.msra.mxu1 %v12686_v51 }
 0xbf6   :  { %2310 = vadd.xlane.f32.xlu0 %v2305_v23  ;;  %2536 = vmatprep.subr.bf16.mxu1 %v12692_v53 }
 0xbf9   :  { %2537 = vmatpush1.bf16.msra.mxu1 %v12690_v40 }
 0xbfa   :  { %2538 = vmatprep.subr.bf16.mxu1 %v12696_v57 }
 0xbfd   :  { %2539 = vmatpush1.bf16.msra.mxu1 %v12694_v58 }
 0xbfe   :  { %2540 = vmatprep.subr.bf16.mxu1 %v12700_v60 }
 0xc01   :  { %2541 = vmatpush1.bf16.msra.mxu1 %v12698_v61 }
 0xc02   :  { %11747 = vmatprep.subr.bf16.mxu1 %v14138_v1 }
 0xc7b   :  { %v2309_v28 = vpop.xlane.xlu1 %2308 }
 0xc7c   :  { %v2312_v29 = vmul.f32 0.0078125, %v2309_v28 }
 0xc7e   :  { %v14698_v33 = vsub.f32 %v2304_v21, %v2312_v29 }
 0xc7f   :  { %v2311_v34 = vpop.xlane.xlu0 %2310 }
 0xc80   :  { %v2313_v35 = vmul.f32 0.0078125, %v2311_v34  ;;  %v2316_v37 = vmul.f32 %v14698_v33, %v14698_v33 }
 0xc82   :  { %2318 = vadd.xlane.f32.xlu1 %v2316_v37  ;;  %v14702_v38 = vsub.f32 %v2305_v23, %v2313_v35 }
 0xc84   :  { %v2317_v39 = vmul.f32 %v14702_v38, %v14702_v38 }
 0xc86   :  { %2320 = vadd.xlane.f32.xlu0 %v2317_v39 }
 0xd0b   :  { %v2319_v63 = vpop.xlane.xlu1 %2318 }
 0xd0c   :  { %v2322_v2 = vmul.f32 0.0078125, %v2319_v63 }
 0xd0e   :  { %v2324_v3 = vadd.f32 1e-05, %v2322_v2 }
 0xd0f   :  { %v2321_v54 = vpop.xlane.xlu0 %2320 }
 0xd10   :  { %13074 = vrsqrt.f32 %v2324_v3  ;;  %v2323_v4 = vmul.f32 0.0078125, %v2321_v54 }
 0xd12   :  { %v2325_v5 = vadd.f32 1e-05, %v2323_v4 }
 0xd14   :  { %13076 = vrsqrt.f32 %v2325_v5 }
 0xd1d   :  { %v13075_v6 = vpop.eup %13074 }
 0xd1e   :  { %v2328_v7 = vmul.f32 %v13075_v6, %v14698_v33 }
 0xd20   :  { %v2336_v10 = vmul.f32 %v10785_v8, %v2328_v7 }
 0xd21   :  { %v13077_v9 = vpop.eup %13076 }
 0xd22   :  { %v2329_v56 = vmul.f32 %v13077_v9, %v14702_v38  ;;  %v14716_v13 = vadd.f32 %v10786_v11, %v2336_v10 }
 0xd24   :  { %v2337_v12 = vmul.f32 %v10785_v8, %v2329_v56 }
 0xd26   :  { %v14718_v14 = vadd.f32 %v10786_v11, %v2337_v12 }
 0xd28   :  { %v2381_v15 = vpack.c.bf16 %v14718_v14, %v14716_v13 }
 0xd2a   :  { %2559 = vmatmul.mubr.bf16.vlgmr.msra.gmra.mxu1 %v2381_v15  ;;  %11744 = vmatmul.mubr.bf16.vlgmr.msra.gmra.mxu0 %v2381_v15 }
 0xd2b   :  { %11749 = vmatprep.mubr.msk.bf16.mxu1 %vm14139_vm0, %v14138_v1  ;;  %11773 = vmatprep.mubr.msk.bf16.mxu0 %vm14139_vm0, %v14138_v1 }
 0xdea   :  { %v2560_v18 = vpop.f32.mrf.mxu1  ;;  %v2603_v19 = vpop.f32.mrf.mxu0 }
 0xdeb   :  { %v2604_v33 = vadd.f32 %v2603_v19, %v2394_v22  ;;  %v2561_v35 = vadd.f32 %v2560_v18, %v2386_v25 }
 0xdec   :  { %v2562_v20 = vpop.f32.mrf.mxu1  ;;  %v11745_v21 = vpop.f32.mrf.mxu0 }
 0xded   :  { %v2563_v23 = vadd.f32 %v2562_v20, %v2390_v17  ;;  %v14733_v37 = vpack.c.bf16 %v2604_v33, %v2604_v33  ;;  %v2610_v38 = vpack.c.bf16 %v2561_v35, %v2561_v35 }
 0xdee   :  { %v2606_v24 = vpop.f32.mrf.mxu0  ;;  %v2564_v41 = vpop.f32.mrf.mxu1 }
 0xdef   :  { %v2611_v27 = vpack.c.bf16 %v2563_v23, %v2563_v23  ;;  %v14729_v28 = vadd.f32 %v2606_v24, %v2394_v22  ;;  %v2676_v39 = vsel %vm958_vm2, %v14733_v37, 0  ;;  %v2565_v48 = vadd.f32 %v2564_v41, %v2386_v25 }
 0xdf0   :  { %v11746_v29 = vpop.f32.mrf.mxu0  ;;  %v2566_v36 = vpop.f32.mrf.mxu1 }
 0xdf1   :  { %v2617_v34 = vsel %vm894_vm1, %v2611_v27, 0  ;;  %v3069_v50 = vpack.c.bf16 %v2565_v48, %v2565_v48  ;;  %v2567_v61 = vadd.f32 %v2566_v36, %v2390_v17 }
 0xdf2   :  { %11748 = vmatpush3.bf16.xpose.msra.mxu1 %v2617_v34 }
 0xdf3   :  { %11753 = vmatprep.subr.bf16.mxu1 %v14138_v1  ;;  %v3070_v62 = vpack.c.bf16 %v2567_v61, %v2567_v61 }
 0xdf5   :  { %v3076_v7 = vsel %vm894_vm1, %v3070_v62, 0 }
 0xdf9   :  { %11750 = vmatmul.mubr.msk.bf16.vlgmr.msra.gmra.mxu1 %vm894_vm1, %v2610_v38 }
 0xdfa   :  { %11754 = vmatpush3.bf16.msra.mxu1 %v2676_v39  ;;  %11755 = vmatprep.mubr.msk.bf16.mxu1 %vm14139_vm0, %v14138_v1 }
 0xdfb   :  { %11759 = vmatprep.subr.bf16.mxu1 %v14138_v1 }
 0xeb9   :  { %v2653_v42 = vpop.f32.mrf.mxu1 }
 0xeba   :  { %v2659_v43 = vmul.f32 0.17677669, %v2653_v42 }
 0xebb   :  { %v11751_v44 = vpop.f32.mrf.mxu1 }
 0xebc   :  { %v2660_v45 = vsel %vm942_vm3, %v2659_v43, -inf }
 0xebd   :  { %2661 = vmax.xlane.f32.xlu1 %v2660_v45  ;;  %v2656_v46 = vpop.f32.mrf.mxu1 }
 0xebf   :  { %v11752_v47 = vpop.f32.mrf.mxu1 }
 0xece   :  { %2722 = vrot.lane.b32.xlu1 %v2611_v27, %s14140_s25 }
 0xed2   :  { %2834 = vrot.lane.b32.xlu1 %v2611_v27, %s14117_s4 }
 0xed6   :  { %2832 = vrot.lane.b32.xlu1 %v2610_v38, %s14117_s4 }
 0xeda   :  { %2943 = vrot.lane.b32.xlu1 %v2610_v38, %s14097_s21 }
 0xede   :  { %3178 = vrot.lane.b32.xlu1 %v3069_v50, %s14140_s25 }
 0xee2   :  { %3291 = vrot.lane.b32.xlu1 %v3069_v50, %s14117_s4 }
 0xee6   :  { %3402 = vrot.lane.b32.xlu1 %v3069_v50, %s14097_s21 }
 0xf46   :  { %v2662_v51 = vpop.xlane.xlu1 %2661 }
 0xf47   :  { %v2663_v52 = vsub.f32 %v2659_v43, %v2662_v51 }
 0xf49   :  { %v2664_v53 = vmul.f32 1.442695, %v2663_v52 }
 0xf4a   :  { %v2723_v40 = vpop.permute.xlu1 %2722 }
 0xf4b   :  { %13078 = vpow2.f32 %v2664_v53  ;;  %v2728_v9 = vsel %vm894_vm1, %v2723_v40, 0 }
 0xf4e   :  { %v2835_v55 = vpop.permute.xlu1 %2834 }
 0xf4f   :  { %v2840_v57 = vsel %vm894_vm1, %v2835_v55, 0 }
 0xf50   :  { %11772 = vmatpush3.bf16.xpose.msra.mxu0 %v2840_v57 }
 0xf51   :  { %11783 = vmatprep.subr.bf16.mxu0 %v14138_v1 }
 0xf52   :  { %v2833_v58 = vpop.permute.xlu1 %2832 }
 0xf56   :  { %v2944_v6 = vpop.permute.xlu1 %2943 }
 0xf57   :  { %11774 = vmatmul.mubr.msk.bf16.vlgmr.msra.gmra.mxu0 %vm894_vm1, %v2833_v58 }
 0xf58   :  { %v13079_v59 = vpop.eup %13078  ;;  %11785 = vmatprep.mubr.msk.bf16.mxu0 %vm14139_vm0, %v14138_v1 }
 0xf59   :  { %v2666_v60 = vsel %vm942_vm3, %v13079_v59, 0.0 }
 0xf5a   :  { %2667 = vadd.xlane.f32.xlu0 %v2666_v60  ;;  %v3179_v12 = vpop.permute.xlu1 %3178 }
 0xf5e   :  { %v3292_v17 = vpop.permute.xlu1 %3291 }
 0xf62   :  { %v3403_v19 = vpop.permute.xlu1 %3402 }
 0xf70   :  { %2719 = vrot.lane.b32.xlu0 %v2610_v38, %s14140_s25 }
 0xf74   :  { %2945 = vrot.lane.b32.xlu0 %v2611_v27, %s14097_s21 }
 0xf78   :  { %3181 = vrot.lane.b32.xlu0 %v3070_v62, %s14140_s25 }
 0xf7c   :  { %3293 = vrot.lane.b32.xlu0 %v3070_v62, %s14117_s4 }
 0xf80   :  { %3404 = vrot.lane.b32.xlu0 %v3070_v62, %s14097_s21 }
 0xfe3   :  { %v2668_v63 = vpop.xlane.xlu0 %2667 }
 0xfe4   :  { %13080 = vrcp.f32 %v2668_v63 }
 0xfe7   :  { %v2720_v2 = vpop.permute.xlu0 %2719 }
 0xfeb   :  { %v2946_v3 = vpop.permute.xlu0 %2945 }
 0xfec   :  { %v2951_v54 = vsel %vm894_vm1, %v2946_v3, 0 }
 0xfed   :  { %11784 = vmatpush3.bf16.xpose.msra.mxu0 %v2951_v54 }
 0xfee   :  { %11795 = vmatprep.subr.bf16.mxu0 %v14138_v1 }
 0xfef   :  { %v3182_v56 = vpop.permute.xlu0 %3181 }
 0xff0   :  { %v3187_v10 = vsel %vm894_vm1, %v3182_v56, 0 }
 0xff1   :  { %v13081_v4 = vpop.eup %13080 }
 0xff2   :  { %v2670_v5 = vmul.f32 %v13081_v4, %v13079_v59 }
 0xff3   :  { %v3294_v11 = vpop.permute.xlu0 %3293 }
 0xff4   :  { %11786 = vmatmul.mubr.msk.bf16.vlgmr.msra.gmra.mxu0 %vm894_vm1, %v2944_v6  ;;  %v2671_v8 = vpack.c.bf16 %v2670_v5, %v2670_v5  ;;  %v3299_v15 = vsel %vm894_vm1, %v3294_v11, 0 }
 0xff5   :  { %11796 = vmatpush3.bf16.xpose.msra.mxu0 %v3076_v7  ;;  %11797 = vmatprep.mubr.msk.bf16.mxu0 %vm14139_vm0, %v14138_v1 }
 0xff6   :  { %11756 = vmatmul.mubr.msk.bf16.vlgmr.msra.gmra.mxu1 %vm942_vm3, %v2671_v8  ;;  %11807 = vmatprep.subr.bf16.mxu0 %v14138_v1 }
 0xff7   :  { %11760 = vmatpush3.bf16.xpose.msra.mxu1 %v2728_v9  ;;  %11761 = vmatprep.mubr.msk.bf16.mxu1 %vm14139_vm0, %v14138_v1  ;;  %v3405_v16 = vpop.permute.xlu0 %3404 }
 0xff8   :  { %11765 = vmatprep.subr.bf16.mxu1 %v14138_v1  ;;  %v3410_v18 = vsel %vm894_vm1, %v3405_v16, 0 }
 0xffc   :  { %11798 = vmatmul.mubr.msk.bf16.vlgmr.msra.gmra.mxu0 %vm894_vm1, %v3069_v50 }
 0xffd   :  { %11808 = vmatpush3.bf16.xpose.msra.mxu0 %v3187_v10  ;;  %11809 = vmatprep.mubr.msk.bf16.mxu0 %vm14139_vm0, %v14138_v1 }
 0xffe   :  { %11762 = vmatmul.mubr.msk.bf16.vlgmr.msra.gmra.mxu1 %vm894_vm1, %v2720_v2  ;;  %11819 = vmatprep.subr.bf16.mxu0 %v14138_v1 }
 0xfff   :  { %11767 = vmatprep.mubr.msk.bf16.mxu1 %vm14139_vm0, %v14138_v1 }
0x1004   :  { %11810 = vmatmul.mubr.msk.bf16.vlgmr.msra.gmra.mxu0 %vm894_vm1, %v3179_v12 }
0x1005   :  { %11820 = vmatpush3.bf16.xpose.msra.mxu0 %v3299_v15  ;;  %11821 = vmatprep.mubr.msk.bf16.mxu0 %vm14139_vm0, %v14138_v1 }
0x1006   :  { %11831 = vmatprep.subr.bf16.mxu0 %v14138_v1 }
0x100c   :  { %11822 = vmatmul.mubr.msk.bf16.vlgmr.msra.gmra.mxu0 %vm894_vm1, %v3292_v17 }
0x100d   :  { %11832 = vmatpush3.bf16.xpose.msra.mxu0 %v3410_v18  ;;  %11833 = vmatprep.mubr.msk.bf16.mxu0 %vm14139_vm0, %v14138_v1 }
0x100e   :  { %11843 = vmatprep.subr.bf16.mxu0 %v14138_v1 }
0x1014   :  { %11834 = vmatmul.mubr.msk.bf16.vlgmr.msra.gmra.mxu0 %vm894_vm1, %v3403_v19 }
0x1015   :  { %11859 = vmatprep.mubr.msk.bf16.mxu0 %vm14139_vm0, %v14138_v1 }
0x1017   :  { %v2876_v20 = vpop.f32.mrf.mxu0 }
0x1018   :  { %v2882_v21 = vmul.f32 0.17677669, %v2876_v20 }
0x1019   :  { %v11775_v22 = vpop.f32.mrf.mxu0 }
0x101a   :  { %v2883_v23 = vsel %vm942_vm3, %v2882_v21, -inf }
0x101b   :  { %2884 = vmax.xlane.f32.xlu1 %v2883_v23  ;;  %v2879_v24 = vpop.f32.mrf.mxu0 }
0x101d   :  { %v11776_v25 = vpop.f32.mrf.mxu0 }
0x10a4   :  { %v2885_v44 = vpop.xlane.xlu1 %2884 }
0x10a5   :  { %v2886_v53 = vsub.f32 %v2882_v21, %v2885_v44 }
0x10a7   :  { %v2887_v61 = vmul.f32 1.442695, %v2886_v53 }
0x10a9   :  { %13082 = vpow2.f32 %v2887_v61 }
0x10b4   :  { %v2987_v27 = vpop.f32.mrf.mxu0 }
0x10b5   :  { %v2993_v48 = vmul.f32 0.17677669, %v2987_v27 }
0x10b6   :  { %v14794_v29 = vpop.f32.mrf.mxu1  ;;  %v11787_v33 = vpop.f32.mrf.mxu0 }
0x10b7   :  { %v2994_v59 = vsel %vm942_vm3, %v2993_v48, -inf  ;;  %v14802_v12 = vpop.eup %13082 }
0x10b8   :  { %v11757_v34 = vpop.f32.mrf.mxu1  ;;  %v2990_v35 = vpop.f32.mrf.mxu0  ;;  %v2889_v17 = vsel %vm942_vm3, %v14802_v12, 0.0 }
0x10ba   :  { %v2715_v38 = vpop.f32.mrf.mxu1  ;;  %v11788_v39 = vpop.f32.mrf.mxu0 }
0x10bc   :  { %v11758_v41 = vpop.f32.mrf.mxu1  ;;  %v3112_v36 = vpop.f32.mrf.mxu0 }
0x10bd   :  { %v3118_v57 = vmul.f32 0.17677669, %v3112_v36 }
0x10be   :  { %v2764_v42 = vpop.f32.mrf.mxu1  ;;  %v11799_v43 = vpop.f32.mrf.mxu0 }
0x10bf   :  { %v2770_v45 = vmul.f32 0.17677669, %v2764_v42  ;;  %v3119_v2 = vsel %vm942_vm3, %v3118_v57, -inf }
0x10c0   :  { %v11763_v46 = vpop.f32.mrf.mxu1  ;;  %v3115_v47 = vpop.f32.mrf.mxu0 }
0x10c1   :  { %v2771_v50 = vsel %vm942_vm3, %v2770_v45, -inf }
0x10c2   :  { %v11800_v51 = vpop.f32.mrf.mxu0  ;;  %2772 = vmax.xlane.f32.xlu0 %v2771_v50  ;;  %v2767_v52 = vpop.f32.mrf.mxu1 }
0x10c4   :  { %v11764_v40 = vpop.f32.mrf.mxu1  ;;  %v3223_v55 = vpop.f32.mrf.mxu0 }
0x10c5   :  { %v3229_v58 = vmul.f32 0.17677669, %v3223_v55 }
0x10c6   :  { %v11811_v60 = vpop.f32.mrf.mxu0  ;;  %2995 = vmax.xlane.f32.xlu0 %v2994_v59 }
0x10c7   :  { %v3230_v62 = vsel %vm942_vm3, %v3229_v58, -inf }
0x10c8   :  { %3231 = vmax.xlane.f32.xlu1 %v3230_v62  ;;  %v3226_v63 = vpop.f32.mrf.mxu0 }
0x10ca   :  { %v11812_v3 = vpop.f32.mrf.mxu0  ;;  %3120 = vmax.xlane.f32.xlu0 %v3119_v2 }
0x10cc   :  { %v3335_v54 = vpop.f32.mrf.mxu0 }
0x10cd   :  { %v3341_v4 = vmul.f32 0.17677669, %v3335_v54 }
0x10ce   :  { %v11823_v5 = vpop.f32.mrf.mxu0 }
0x10cf   :  { %v3342_v6 = vsel %vm942_vm3, %v3341_v4, -inf }
0x10d0   :  { %v3338_v7 = vpop.f32.mrf.mxu0  ;;  %3343 = vmax.xlane.f32.xlu0 %v3342_v6 }
0x10d2   :  { %v11824_v8 = vpop.f32.mrf.mxu0 }
0x10d4   :  { %v3446_v9 = vpop.f32.mrf.mxu0 }
0x10d5   :  { %v3452_v56 = vmul.f32 0.17677669, %v3446_v9 }
0x10d6   :  { %v11835_v10 = vpop.f32.mrf.mxu0 }
0x10d7   :  { %v3453_v11 = vsel %vm942_vm3, %v3452_v56, -inf }
0x10d8   :  { %3454 = vmax.xlane.f32.xlu1 %v3453_v11  ;;  %v3449_v15 = vpop.f32.mrf.mxu0 }
0x10da   :  { %v11836_v16 = vpop.f32.mrf.mxu0 }
0x10dc   :  { %2890 = vadd.xlane.f32.xlu1 %v2889_v17 }
0x114b   :  { %v2773_v18 = vpop.xlane.xlu0 %2772 }
0x114c   :  { %v2774_v19 = vsub.f32 %v2770_v45, %v2773_v18 }
0x114e   :  { %v2775_v23 = vmul.f32 1.442695, %v2774_v19 }
0x114f   :  { %v2996_v20 = vpop.xlane.xlu0 %2995 }
0x1150   :  { %v2997_v21 = vsub.f32 %v2993_v48, %v2996_v20 }
0x1151   :  { %v3232_v22 = vpop.xlane.xlu1 %3231 }
0x1152   :  { %v2998_v24 = vmul.f32 1.442695, %v2997_v21  ;;  %v3233_v25 = vsub.f32 %v3229_v58, %v3232_v22 }
0x1153   :  { %v3121_v27 = vpop.xlane.xlu0 %3120 }
0x1154   :  { %13084 = vpow2.f32 %v2998_v24  ;;  %v3122_v33 = vsub.f32 %v3118_v57, %v3121_v27  ;;  %v3234_v34 = vmul.f32 1.442695, %v3233_v25 }
0x1155   :  { %13086 = vpow2.f32 %v2775_v23 }
0x1156   :  { %v3123_v35 = vmul.f32 1.442695, %v3122_v33 }
0x1158   :  { %13088 = vpow2.f32 %v3123_v35 }
0x1159   :  { %13090 = vpow2.f32 %v3234_v34  ;;  %v3344_v46 = vpop.xlane.xlu0 %3343 }
0x115a   :  { %v3345_v47 = vsub.f32 %v3341_v4, %v3344_v46 }
0x115c   :  { %v3346_v48 = vmul.f32 1.442695, %v3345_v47 }
0x115e   :  { %13092 = vpow2.f32 %v3346_v48 }
0x1161   :  { %v14806_v38 = vpop.eup %13084  ;;  %v3455_v50 = vpop.xlane.xlu1 %3454 }
0x1162   :  { %v3000_v39 = vsel %vm942_vm3, %v14806_v38, 0.0  ;;  %v13087_v41 = vpop.eup %13086  ;;  %v3456_v51 = vsub.f32 %v3452_v56, %v3455_v50 }
0x1163   :  { %3001 = vadd.xlane.f32.xlu0 %v3000_v39  ;;  %v2777_v42 = vsel %vm942_vm3, %v13087_v41, 0.0 }
0x1164   :  { %v3457_v52 = vmul.f32 1.442695, %v3456_v51 }
0x1165   :  { %v14810_v36 = vpop.eup %13088  ;;  %v2891_v60 = vpop.xlane.xlu1 %2890 }
0x1166   :  { %v3125_v43 = vsel %vm942_vm3, %v14810_v36, 0.0  ;;  %v14815_v44 = vpop.eup %13090  ;;  %13094 = vpow2.f32 %v3457_v52 }
0x1167   :  { %2778 = vadd.xlane.f32.xlu0 %v2777_v42  ;;  %3126 = vadd.xlane.f32.xlu1 %v3125_v43  ;;  %v3236_v45 = vsel %vm942_vm3, %v14815_v44, 0.0 }
0x116b   :  { %3237 = vadd.xlane.f32.xlu1 %v3236_v45  ;;  %v14825_v53 = vpop.eup %13092  ;;  %v12703_v45 = vld [vmem:[#allocation7 + $0x70] sm:$0xff]  }
0x116c   :  { %v3348_v40 = vsel %vm942_vm3, %v14825_v53, 0.0 }
0x1173   :  { %v14829_v55 = vpop.eup %13094 }
0x1174   :  { %v3459_v57 = vsel %vm942_vm3, %v14829_v55, 0.0 }
0x117c   :  { %2895 = vrot.lane.b32.xlu1 %v14733_v37, %s14117_s4 }
0x117d   :  { %2784 = vrot.lane.b32.xlu0 %v14733_v37, %s14140_s25 }
0x1180   :  { %3006 = vrot.lane.b32.xlu1 %v14733_v37, %s14097_s21  ;;  %v3071_v37 = vpack.c.bf16 %v14729_v28, %v14729_v28 }
0x119c   :  { %3349 = vadd.xlane.f32.xlu0 %v3348_v40 }
0x11a4   :  { %3460 = vadd.xlane.f32.xlu1 %v3459_v57 }
0x11b2   :  { %3243 = vrot.lane.b32.xlu0 %v3071_v37, %s14140_s25 }
0x11b5   :  { %3354 = vrot.lane.b32.xlu1 %v3071_v37, %s14117_s4 }
0x11b6   :  { %3465 = vrot.lane.b32.xlu0 %v3071_v37, %s14097_s21 }
0x11ec   :  { %v3002_v58 = vpop.xlane.xlu0 %3001 }
0x11f0   :  { %v2779_v59 = vpop.xlane.xlu0 %2778  ;;  %v3127_v62 = vpop.xlane.xlu1 %3126 }
0x11f1   :  { %13096 = vrcp.f32 %v2779_v59 }
0x11f2   :  { %13098 = vrcp.f32 %v2891_v60 }
0x11f3   :  { %13100 = vrcp.f32 %v3002_v58 }
0x11f4   :  { %v2785_v61 = vpop.permute.xlu0 %2784  ;;  %v3238_v2 = vpop.xlane.xlu1 %3237  ;;  %13102 = vrcp.f32 %v3127_v62 }
0x11f5   :  { %v2790_v63 = vsel %vm958_vm2, %v2785_v61, 0  ;;  %13104 = vrcp.f32 %v3238_v2  ;;  %v12705_v2 = vld [vmem:[#allocation7 + $0x60] sm:$0xff]  }
0x11f6   :  { %11766 = vmatpush3.bf16.msra.mxu1 %v2790_v63  ;;  %v12704_v63 = vld [vmem:[#allocation7 + $0x68] sm:$0xff]  }
0x11f7   :  { %11777 = vmatprep.subr.bf16.mxu1 %v14138_v1 }
0x11f8   :  { %v2896_v54 = vpop.permute.xlu1 %2895 }
0x11f9   :  { %v2901_v6 = vsel %vm958_vm2, %v2896_v54, 0 }
0x11fc   :  { %v3007_v8 = vpop.permute.xlu1 %3006 }
0x11fd   :  { %v3012_v10 = vsel %vm958_vm2, %v3007_v8, 0 }
0x11fe   :  { %v13097_v28 = vpop.eup %13096 }
0x11ff   :  { %v2781_v3 = vmul.f32 %v13097_v28, %v13087_v41  ;;  %v13099_v5 = vpop.eup %13098  ;;  %v12706_v28 = vld [vmem:[#allocation7 + $0x58] sm:$0xff]  }
0x1200   :  { %v2893_v7 = vmul.f32 %v13099_v5, %v14802_v12  ;;  %v13101_v56 = vpop.eup %13100  ;;  %v3135_v12 = vsel %vm958_vm2, %v3071_v37, 0  ;;  %v12707_v5 = vld [vmem:[#allocation7 + $0x50] sm:$0xff]  }
0x1201   :  { %v2782_v4 = vpack.c.bf16 %v2781_v3, %v2781_v3  ;;  %v3004_v11 = vmul.f32 %v13101_v56, %v14806_v38  ;;  %v13103_v16 = vpop.eup %13102  ;;  %v12709_v56 = vld [vmem:[#allocation7 + $0x40] sm:$0xff]  }
0x1202   :  { %v2894_v9 = vpack.c.bf16 %v2893_v7, %v2893_v7  ;;  %v3129_v17 = vmul.f32 %v13103_v16, %v14810_v36  ;;  %v13105_v19 = vpop.eup %13104  ;;  %v12708_v7 = vld [vmem:[#allocation7 + $0x48] sm:$0xff]  }
0x1203   :  { %11768 = vmatmul.mubr.msk.bf16.vlgmr.msra.gmra.mxu1 %vm942_vm3, %v2782_v4  ;;  %v3005_v15 = vpack.c.bf16 %v3004_v11, %v3004_v11  ;;  %v3240_v21 = vmul.f32 %v13105_v19, %v14815_v44  ;;  %v12702_v44 = vld [vmem:[#allocation7 + $0x78] sm:$0xff]  }
0x1204   :  { %11778 = vmatpush3.bf16.msra.mxu1 %v2901_v6  ;;  %11779 = vmatprep.mubr.msk.bf16.mxu1 %vm14139_vm0, %v14138_v1  ;;  %v3130_v18 = vpack.c.bf16 %v3129_v17, %v3129_v17 }
0x1205   :  { %11789 = vmatprep.subr.bf16.mxu1 %v14138_v1  ;;  %v3241_v24 = vpack.c.bf16 %v3240_v21, %v3240_v21  ;;  %11844 = vmatpush3.bf16.msra.mxu0 %v12702_v44 }
0x1206   :  { %11845 = vmatprep.subr.bf16.mxu0 %v14138_v1 }
0x1209   :  { %11846 = vmatpush3.bf16.msra.mxu0 %v12703_v45  ;;  %v10827_v45 = vld [vmem:[#allocation8 + $0x1] ss:$0 sm:$0xff] }
0x120a   :  { %11847 = vmatprep.subr.bf16.mxu0 %v14138_v1 }
0x120b   :  { %11780 = vmatmul.mubr.msk.bf16.vlgmr.msra.gmra.mxu1 %vm942_vm3, %v2894_v9 }
0x120c   :  { %11790 = vmatpush3.bf16.msra.mxu1 %v3012_v10  ;;  %11791 = vmatprep.mubr.msk.bf16.mxu1 %vm14139_vm0, %v14138_v1 }
0x120d   :  { %11801 = vmatprep.subr.bf16.mxu1 %v14138_v1  ;;  %11848 = vmatpush3.bf16.msra.mxu0 %v12704_v63  ;;  %v12713_v63 = vld [vmem:[#allocation13 + $0xe0] ss:$8 sps:$4 sm:$0xff]  }
0x120e   :  { %11849 = vmatprep.subr.bf16.mxu0 %v14138_v1 }
0x1211   :  { %11850 = vmatpush3.bf16.msra.mxu0 %v12705_v2  ;;  %v12718_v2 = vld [vmem:[#allocation13 + $0xd4] ss:$8 sps:$4 sm:$0xff]  }
0x1212   :  { %11851 = vmatprep.subr.bf16.mxu0 %v14138_v1 }
0x1213   :  { %11792 = vmatmul.mubr.msk.bf16.vlgmr.msra.gmra.mxu1 %vm942_vm3, %v3005_v15 }
0x1214   :  { %11802 = vmatpush3.bf16.msra.mxu1 %v3135_v12  ;;  %11803 = vmatprep.mubr.msk.bf16.mxu1 %vm14139_vm0, %v14138_v1 }
0x1215   :  { %11813 = vmatprep.subr.bf16.mxu1 %v14138_v1  ;;  %11852 = vmatpush3.bf16.msra.mxu0 %v12706_v28  ;;  %v12716_v28 = vld [vmem:[#allocation13 + $0xd0] ss:$8 sps:$4 sm:$0xff]  }
0x1216   :  { %11853 = vmatprep.subr.bf16.mxu0 %v14138_v1 }
0x1219   :  { %11854 = vmatpush3.bf16.msra.mxu0 %v12707_v5  ;;  %v12722_v5 = vld [vmem:[#allocation13 + $0xb0] ss:$8 sps:$4 sm:$0xff]  }
0x121a   :  { %11855 = vmatprep.subr.bf16.mxu0 %v14138_v1 }
0x121b   :  { %11804 = vmatmul.mubr.msk.bf16.vlgmr.msra.gmra.mxu1 %vm942_vm3, %v3130_v18 }
0x121c   :  { %11815 = vmatprep.mubr.msk.bf16.mxu1 %vm14139_vm0, %v14138_v1 }
0x121d   :  { %11856 = vmatpush3.bf16.msra.mxu0 %v12708_v7  ;;  %v12725_v7 = vld [vmem:[#allocation13 + $0xa0] ss:$8 sps:$4 sm:$0xff]  }
0x121e   :  { %11857 = vmatprep.subr.bf16.mxu0 %v14138_v1 }
0x1221   :  { %11858 = vmatpush3.bf16.msra.mxu0 %v12709_v56  ;;  %v12733_v56 = vld [vmem:[#allocation13 + $0x84] ss:$8 sps:$4 sm:$0xff]  }
0x1225   :  { %v3350_v20 = vpop.xlane.xlu0 %3349 }
0x1226   :  { %13106 = vrcp.f32 %v3350_v20 }
0x1229   :  { %v3244_v22 = vpop.permute.xlu0 %3243 }
0x122a   :  { %v3249_v23 = vsel %vm958_vm2, %v3244_v22, 0 }
0x122b   :  { %11814 = vmatpush3.bf16.msra.mxu1 %v3249_v23 }
0x122c   :  { %11825 = vmatprep.subr.bf16.mxu1 %v14138_v1 }
0x122d   :  { %v3461_v25 = vpop.xlane.xlu1 %3460  ;;  %v3466_v38 = vpop.permute.xlu0 %3465 }
0x122e   :  { %13108 = vrcp.f32 %v3461_v25  ;;  %11816 = vmatmul.mubr.msk.bf16.vlgmr.msra.gmra.mxu1 %vm942_vm3, %v3241_v24  ;;  %v3471_v41 = vsel %vm958_vm2, %v3466_v38, 0 }
0x122f   :  { %11827 = vmatprep.mubr.msk.bf16.mxu1 %vm14139_vm0, %v14138_v1 }
0x1231   :  { %v3355_v27 = vpop.permute.xlu1 %3354 }
0x1232   :  { %v3360_v33 = vsel %vm958_vm2, %v3355_v27, 0 }
0x1233   :  { %v13107_v34 = vpop.eup %13106  ;;  %11826 = vmatpush3.bf16.msra.mxu1 %v3360_v33 }
0x1234   :  { %11837 = vmatprep.subr.bf16.mxu1 %v14138_v1  ;;  %v3352_v35 = vmul.f32 %v13107_v34, %v14825_v53 }
0x1236   :  { %v3353_v39 = vpack.c.bf16 %v3352_v35, %v3352_v35 }
0x1238   :  { %11828 = vmatmul.mubr.msk.bf16.vlgmr.msra.gmra.mxu1 %vm942_vm3, %v3353_v39 }
0x1239   :  { %11838 = vmatpush3.bf16.msra.mxu1 %v3471_v41  ;;  %11839 = vmatprep.mubr.msk.bf16.mxu1 %vm14139_vm0, %v14138_v1 }
0x123b   :  { %v13109_v36 = vpop.eup %13108 }
0x123c   :  { %v3463_v42 = vmul.f32 %v13109_v36, %v14829_v55 }
0x123e   :  { %v3464_v43 = vpack.c.bf16 %v3463_v42, %v3463_v42 }
0x1240   :  { %11840 = vmatmul.mubr.msk.bf16.vlgmr.msra.gmra.mxu1 %vm942_vm3, %v3464_v43 }
0x1241   :  { %3830 = vmatprep.mubr.bf16.mxu1 %v14137_v0 }
0x12c3   :  { %v2826_v46 = vpop.f32.mrf.mxu1 }
0x12c5   :  { %v11769_v47 = vpop.f32.mrf.mxu1 }
0x12c7   :  { %v2829_v48 = vpop.f32.mrf.mxu1 }
0x12c9   :  { %v11770_v50 = vpop.f32.mrf.mxu1 }
0x12cb   :  { %v2937_v51 = vpop.f32.mrf.mxu1 }
0x12cd   :  { %v11781_v52 = vpop.f32.mrf.mxu1 }
0x12cf   :  { %v2940_v53 = vpop.f32.mrf.mxu1 }
0x12d1   :  { %v11782_v40 = vpop.f32.mrf.mxu1 }
0x12d2   :  { %v12710_v40 = vld [vmem:[#allocation13 + $0xf0] ss:$8 sps:$4 sm:$0xff]  }
0x12d3   :  { %v3048_v55 = vpop.f32.mrf.mxu1 }
0x12d5   :  { %v11793_v57 = vpop.f32.mrf.mxu1 }
0x12d7   :  { %v3051_v37 = vpop.f32.mrf.mxu1 }
0x12d9   :  { %v11794_v58 = vpop.f32.mrf.mxu1 }
0x12db   :  { %v3171_v59 = vpop.f32.mrf.mxu1 }
0x12dd   :  { %v11805_v60 = vpop.f32.mrf.mxu1 }
0x12df   :  { %v3174_v61 = vpop.f32.mrf.mxu1 }
0x12e1   :  { %v11806_v62 = vpop.f32.mrf.mxu1 }
0x12e2   :  { %v12715_v62 = vld [vmem:[#allocation13 + $0xe4] ss:$8 sps:$4 sm:$0xff]  }
0x12ee   :  { %v3285_v3 = vpop.f32.mrf.mxu1 }
0x12ef   :  { %v12515_v54 = vpack.i.bf16 %v3285_v3, %v2826_v46  ;;  %v12719_v3 = vld [vmem:[#allocation13 + $0xc0] ss:$8 sps:$4 sm:$0xff]  }
0x12f0   :  { %v11817_v4 = vpop.f32.mrf.mxu1 }
0x12f1   :  { %12516 = vrot.lane.b32.xlu0 %v12515_v54, %s14097_s21  ;;  %v12721_v54 = vld [vmem:[#allocation13 + $0xc4] ss:$8 sps:$4 sm:$0xff]   ;;  %v12724_v4 = vld [vmem:[#allocation13 + $0xb4] ss:$8 sps:$4 sm:$0xff]  }
0x12f2   :  { %v3288_v6 = vpop.f32.mrf.mxu1 }
0x12f3   :  { %v12727_v6 = vld [vmem:[#allocation13 + $0xa4] ss:$8 sps:$4 sm:$0xff]  }
0x12f4   :  { %v11818_v8 = vpop.f32.mrf.mxu1 }
0x12f5   :  { %v12730_v8 = vld [vmem:[#allocation13 + $0x94] ss:$8 sps:$4 sm:$0xff]  }
0x12f8   :  { %v3396_v9 = vpop.f32.mrf.mxu1 }
0x12f9   :  { %v12520_v10 = vpack.i.bf16 %v3396_v9, %v2937_v51  ;;  %v12728_v9 = vld [vmem:[#allocation13 + $0x90] ss:$8 sps:$4 sm:$0xff]  }
0x12fa   :  { %v11829_v11 = vpop.f32.mrf.mxu1 }
0x12fb   :  { %12521 = vrot.lane.b32.xlu1 %v12520_v10, %s14117_s4  ;;  %v12731_v10 = vld [vmem:[#allocation13 + $0x80] ss:$8 sps:$4 sm:$0xff]  }
0x12fc   :  { %v3399_v15 = vpop.f32.mrf.mxu1  ;;  %v12736_v11 = vld [vmem:[#allocation22 + $0xac] ss:$12 sps:$4 sm:$0xff]  }
0x12fd   :  { %v12758_v15 = vld [vmem:[#allocation16 + $0xf8] sm:$0xff]  }
0x12fe   :  { %v11830_v16 = vpop.f32.mrf.mxu1  ;;  %11325 = vmatprep.subr.bf16.mxu0 %v12758_v15 }
0x12ff   :  { %v12759_v16 = vld [vmem:[#allocation16 + $0xb8] sm:$0xff]  }
0x1300   :  { %v3507_v12 = vpop.f32.mrf.mxu1 }
0x1301   :  { %v12525_v17 = vpack.i.bf16 %v3507_v12, %v3048_v55  ;;  %v12712_v55 = vld [vmem:[#allocation13 + $0xf4] ss:$8 sps:$4 sm:$0xff]  }
0x1302   :  { %v11841_v18 = vpop.f32.mrf.mxu1  ;;  %3798 = vmatprep.subr.bf16.mxu1 %v12712_v55  ;;  %v12760_v12 = vld [vmem:[#allocation16 + $0xf0] sm:$0xff]  }
0x1303   :  { %12526 = vrot.lane.b32.xlu0 %v12525_v17, %s14140_s25  ;;  %3799 = vmatpush1.bf16.msra.mxu1 %v12710_v40  ;;  %v12761_v17 = vld [vmem:[#allocation16 + $0xb0] sm:$0xff]   ;;  %v12762_v18 = vld [vmem:[#allocation16 + $0xe8] sm:$0xff]  }
0x1304   :  { %v3510_v19 = vpop.f32.mrf.mxu1  ;;  %3800 = vmatprep.subr.bf16.mxu1 %v12715_v62  ;;  %v12745_v40 = vld [vmem:[#allocation22 + $0x64] ss:$12 sps:$4 sm:$0xff]   ;;  %v12743_v55 = vld [vmem:[#allocation22 + $0x60] ss:$12 sps:$4 sm:$0xff]  }
0x1305   :  { %v12763_v19 = vld [vmem:[#allocation16 + $0xa8] sm:$0xff]   ;;  %v12768_v62 = vld [vmem:[#allocation16 + $0xd0] sm:$0xff]  }
0x1306   :  { %v11842_v20 = vpop.f32.mrf.mxu1 }
0x1307   :  { %3801 = vmatpush1.bf16.msra.mxu1 %v12713_v63  ;;  %v12764_v20 = vld [vmem:[#allocation16 + $0xe0] sm:$0xff]   ;;  %v12769_v63 = vld [vmem:[#allocation16 + $0x90] sm:$0xff]  }
0x1308   :  { %3802 = vmatprep.subr.bf16.mxu1 %v12718_v2  ;;  %v12770_v2 = vld [vmem:[#allocation16 + $0xc8] sm:$0xff]  }
0x130b   :  { %3803 = vmatpush1.bf16.msra.mxu1 %v12716_v28  ;;  %v12771_v28 = vld [vmem:[#allocation16 + $0x88] sm:$0xff]  }
0x130c   :  { %3804 = vmatprep.subr.bf16.mxu1 %v12721_v54  ;;  %v12773_v54 = vld [vmem:[#allocation16 + $0x80] sm:$0xff]  }
0x130f   :  { %3805 = vmatpush1.bf16.msra.mxu1 %v12719_v3  ;;  %v12772_v3 = vld [vmem:[#allocation16 + $0xc0] sm:$0xff]  }
0x1310   :  { %3806 = vmatprep.subr.bf16.mxu1 %v12724_v4  ;;  %v3705_v4 = vld [vmem:[#allocation14 + $0x2] sm:$0x3] }
0x1313   :  { %3807 = vmatpush1.bf16.msra.mxu1 %v12722_v5 }
0x1314   :  { %3808 = vmatprep.subr.bf16.mxu1 %v12727_v6  ;;  %v3715_v6 = vrot.slane %v3705_v4, %v14497_v31 }
0x1317   :  { %3809 = vmatpush1.bf16.msra.mxu1 %v12725_v7  ;;  %v3711_v7 = vrot.slane %v3705_v4, %v14500_v32 }
0x1318   :  { %3810 = vmatprep.subr.bf16.mxu1 %v12730_v8 }
0x131b   :  { %3811 = vmatpush1.bf16.msra.mxu1 %v12728_v9 }
0x131c   :  { %3812 = vmatprep.subr.bf16.mxu1 %v12733_v56 }
0x131f   :  { %3813 = vmatpush1.bf16.msra.mxu1 %v12731_v10 }
0x1320   :  { %4286 = vmatprep.subr.bf16.mxu1 %v12736_v11 }
0x1363   :  { %v12517_v21 = vpop.permute.xlu0 %12516 }
0x1364   :  { %v12519_v23 = vunpack.i.h.bf16 %v12517_v21  ;;  %v12518_v24 = vunpack.i.l.bf16 %v12517_v21  ;;  %v12765_v21 = vld [vmem:[#allocation16 + $0xa0] sm:$0xff]  }
0x1366   :  { %v3525_v34 = vsel %vm894_vm1, %v3171_v59, %v12519_v23  ;;  %v3066_v35 = vsel %vm894_vm1, %v14794_v29, %v12518_v24  ;;  %v12767_v23 = vld [vmem:[#allocation16 + $0x98] sm:$0xff]  }
0x136d   :  { %v12522_v22 = vpop.permute.xlu1 %12521 }
0x136e   :  { %v12524_v25 = vunpack.i.h.bf16 %v12522_v22  ;;  %v12523_v27 = vunpack.i.l.bf16 %v12522_v22  ;;  %v12766_v22 = vld [vmem:[#allocation16 + $0xd8] sm:$0xff]  }
0x1370   :  { %v3526_v41 = vsel %vm1351_vm4, %v3525_v34, %v12524_v25  ;;  %v3067_v36 = vsel %vm1351_vm4, %v3066_v35, %v12523_v27 }
0x1375   :  { %v12527_v33 = vpop.permute.xlu0 %12526 }
0x1376   :  { %v12529_v38 = vunpack.i.h.bf16 %v12527_v33  ;;  %v12528_v39 = vunpack.i.l.bf16 %v12527_v33 }
0x1378   :  { %v3527_v42 = vsel %vm1353_vm5, %v3526_v41, %v12529_v38  ;;  %v3068_v43 = vsel %vm1353_vm5, %v3067_v36, %v12528_v39  ;;  %v10836_v41 = vld [vmem:[#allocation10 + $0x1] ss:$0 sm:$0xff] }
0x1379   :  { %v3547_v44 = vpack.c.bf16 %v3527_v42, %v3068_v43 }
0x137b   :  { %11860 = vmatmul.mubr.bf16.vlgmr.msra.gmra.mxu0 %v3547_v44  ;;  %v10837_v44 = vld [vmem:[#allocation11 + $0x1] ss:$0 sm:$0xff] }
0x137c   :  { %11326 = vmatpush3.bf16.msra.mxu0 %v12759_v16 }
0x137d   :  { %11327 = vmatprep.subr.bf16.mxu0 %v12760_v12 }
0x1380   :  { %11328 = vmatpush3.bf16.msra.mxu0 %v12761_v17 }
0x1381   :  { %11329 = vmatprep.subr.bf16.mxu0 %v12762_v18 }
0x1384   :  { %11330 = vmatpush3.bf16.msra.mxu0 %v12763_v19 }
0x1385   :  { %11331 = vmatprep.subr.bf16.mxu0 %v12764_v20 }
0x1388   :  { %11332 = vmatpush3.bf16.msra.mxu0 %v12765_v21 }
0x1389   :  { %11333 = vmatprep.subr.bf16.mxu0 %v12766_v22  ;;  %v14922_v22 = vld [vmem:[#allocation23] sm:$0x7] }
0x138c   :  { %11334 = vmatpush3.bf16.msra.mxu0 %v12767_v23  ;;  %v14926_v23 = vrot.slane %v14922_v22, %v14497_v31 }
0x138d   :  { %11335 = vmatprep.subr.bf16.mxu0 %v12768_v62 }
0x1390   :  { %11336 = vmatpush3.bf16.msra.mxu0 %v12769_v63 }
0x1391   :  { %11337 = vmatprep.subr.bf16.mxu0 %v12770_v2 }
0x1394   :  { %11338 = vmatpush3.bf16.msra.mxu0 %v12771_v28 }
0x1395   :  { %11339 = vmatprep.subr.bf16.mxu0 %v12772_v3 }
0x1398   :  { %11340 = vmatpush3.bf16.msra.mxu0 %v12773_v54 }
0x1399   :  { %11863 = vmatprep.subr.bf16.mxu0 %v14138_v1 }
0x143b   :  { %v3636_v46 = vpop.f32.mrf.mxu0 }
0x143c   :  { %v3637_v47 = vadd.f32 %v10827_v45, %v3636_v46 }
0x143d   :  { %v11861_v48 = vpop.f32.mrf.mxu0 }
0x143e   :  { %v3643_v50 = vadd.f32 %v3637_v47, %v14716_v13  ;;  %v12734_v48 = vld [vmem:[#allocation22 + $0xa8] ss:$12 sps:$4 sm:$0xff]  }
0x143f   :  { %v3639_v51 = vpop.f32.mrf.mxu0 }
0x1440   :  { %v3640_v29 = vadd.f32 %v10827_v45, %v3639_v51  ;;  %3649 = vadd.xlane.f32.xlu1 %v3643_v50  ;;  %v12739_v51 = vld [vmem:[#allocation22 + $0x94] ss:$12 sps:$4 sm:$0xff]  }
0x1441   :  { %v11862_v52 = vpop.f32.mrf.mxu0 }
0x1442   :  { %v3644_v53 = vadd.f32 %v3640_v29, %v14718_v14  ;;  %v12737_v29 = vld [vmem:[#allocation22 + $0x90] ss:$12 sps:$4 sm:$0xff]  }
0x1443   :  { %v12742_v52 = vld [vmem:[#allocation22 + $0x7c] ss:$12 sps:$4 sm:$0xff]  }
0x1444   :  { %3651 = vadd.xlane.f32.xlu0 %v3644_v53 }
0x14c9   :  { %v3650_v57 = vpop.xlane.xlu1 %3649 }
0x14ca   :  { %v3653_v37 = vmul.f32 0.0078125, %v3650_v57  ;;  %v12748_v57 = vld [vmem:[#allocation22 + $0x4c] ss:$12 sps:$4 sm:$0xff]  }
0x14cc   :  { %v14896_v58 = vsub.f32 %v3643_v50, %v3653_v37  ;;  %v12746_v37 = vld [vmem:[#allocation22 + $0x48] ss:$12 sps:$4 sm:$0xff]  }
0x14cd   :  { %v3652_v59 = vpop.xlane.xlu0 %3651 }
0x14ce   :  { %v3654_v60 = vmul.f32 0.0078125, %v3652_v59  ;;  %v3657_v13 = vmul.f32 %v14896_v58, %v14896_v58  ;;  %v12749_v59 = vld [vmem:[#allocation22 + $0x30] ss:$12 sps:$4 sm:$0xff]  }
0x14d0   :  { %3659 = vadd.xlane.f32.xlu0 %v3657_v13  ;;  %v14900_v61 = vsub.f32 %v3644_v53, %v3654_v60  ;;  %v12740_v53 = vld [vmem:[#allocation22 + $0x78] ss:$12 sps:$4 sm:$0xff]   ;;  %v12754_v60 = vld [vmem:[#allocation22 + $0x1c] ss:$12 sps:$4 sm:$0xff]  }
0x14d1   :  { %v12752_v13 = vld [vmem:[#allocation22 + $0x18] ss:$12 sps:$4 sm:$0xff]  }
0x14d2   :  { %v3658_v14 = vmul.f32 %v14900_v61, %v14900_v61 }
0x14d4   :  { %3661 = vadd.xlane.f32.xlu1 %v3658_v14  ;;  %v12755_v14 = vld [vmem:[#allocation22] ss:$12 sps:$4 sm:$0xff]  }
0x1559   :  { %v3660_v24 = vpop.xlane.xlu0 %3659 }
0x155a   :  { %v3663_v25 = vmul.f32 0.0078125, %v3660_v24 }
0x155c   :  { %v3665_v27 = vadd.f32 1e-05, %v3663_v25 }
0x155d   :  { %v3662_v33 = vpop.xlane.xlu1 %3661 }
0x155e   :  { %13110 = vrsqrt.f32 %v3665_v27  ;;  %v3664_v34 = vmul.f32 0.0078125, %v3662_v33  ;;  %v4146_v33 = vrot.slane %v14922_v22, %v14500_v32 }
0x1560   :  { %v3666_v35 = vadd.f32 1e-05, %v3664_v34 }
0x1562   :  { %13112 = vrsqrt.f32 %v3666_v35 }
0x156b   :  { %v13111_v38 = vpop.eup %13110 }
0x156c   :  { %v3669_v39 = vmul.f32 %v13111_v38, %v14896_v58  ;;  %v12751_v58 = vld [vmem:[#allocation22 + $0x34] ss:$12 sps:$4 sm:$0xff]  }
0x156e   :  { %v3677_v43 = vmul.f32 %v10836_v41, %v3669_v39 }
0x156f   :  { %v13113_v36 = vpop.eup %13112 }
0x1570   :  { %v3670_v42 = vmul.f32 %v13113_v36, %v14900_v61  ;;  %v14906_v46 = vadd.f32 %v10837_v44, %v3677_v43  ;;  %v12757_v61 = vld [vmem:[#allocation22 + $0x4] ss:$12 sps:$4 sm:$0xff]   ;;  %v12777_v43 = vld [vmem:[#allocation22 + $0x68] ss:$12 sps:$4 sm:$0xff]  }
0x1571   :  { %v12775_v36 = vld [vmem:[#allocation22 + $0x98] ss:$12 sps:$4 sm:$0xff]  }
0x1572   :  { %v3678_v45 = vmul.f32 %v10836_v41, %v3670_v42  ;;  %v12774_v41 = vld [vmem:[#allocation22 + $0xb0] ss:$12 sps:$4 sm:$0xff]   ;;  %v12776_v42 = vld [vmem:[#allocation22 + $0x80] ss:$12 sps:$4 sm:$0xff]  }
0x1574   :  { %v14908_v47 = vadd.f32 %v10837_v44, %v3678_v45  ;;  %v12778_v44 = vld [vmem:[#allocation22 + $0x50] ss:$12 sps:$4 sm:$0xff]   ;;  %v12779_v45 = vld [vmem:[#allocation22 + $0x38] ss:$12 sps:$4 sm:$0xff]  }
0x1576   :  { %v3706_v50 = vpack.c.bf16 %v14908_v47, %v14906_v46 }
0x1578   :  { %3831 = vmatmul.mubr.bf16.vlgmr.msra.gmra.mxu1 %v3706_v50  ;;  %v12781_v50 = vld [vmem:[#allocation22 + $0x8] ss:$12 sps:$4 sm:$0xff]  }
0x1579   :  { %4287 = vmatpush1.bf16.msra.mxu1 %v12734_v48  ;;  %4318 = vmatprep.mubr.bf16.mxu1 %v14137_v0  ;;  %v12780_v48 = vld [vmem:[#allocation22 + $0x20] ss:$12 sps:$4 sm:$0xff]  }
0x157a   :  { %4288 = vmatprep.subr.bf16.mxu1 %v12739_v51 }
0x157d   :  { %4289 = vmatpush1.bf16.msra.mxu1 %v12737_v29 }
0x157e   :  { %4290 = vmatprep.subr.bf16.mxu1 %v12742_v52 }
0x1581   :  { %4291 = vmatpush1.bf16.msra.mxu1 %v12740_v53 }
0x1582   :  { %4292 = vmatprep.subr.bf16.mxu1 %v12745_v40 }
0x1585   :  { %4293 = vmatpush1.bf16.msra.mxu1 %v12743_v55 }
0x1586   :  { %4294 = vmatprep.subr.bf16.mxu1 %v12748_v57  ;;  %v14952_v57 = vld [vmem:[#allocation17 + $0x1] ss:$0 sm:$0xff] }
0x1589   :  { %4295 = vmatpush1.bf16.msra.mxu1 %v12746_v37 }
0x158a   :  { %4296 = vmatprep.subr.bf16.mxu1 %v12751_v58 }
0x158d   :  { %4297 = vmatpush1.bf16.msra.mxu1 %v12749_v59 }
0x158e   :  { %4298 = vmatprep.subr.bf16.mxu1 %v12754_v60 }
0x1591   :  { %4299 = vmatpush1.bf16.msra.mxu1 %v12752_v13 }
0x1592   :  { %4300 = vmatprep.subr.bf16.mxu1 %v12757_v61 }
0x1595   :  { %4301 = vmatpush1.bf16.msra.mxu1 %v12755_v14 }
0x1596   :  { %11883 = vmatprep.subr.bf16.mxu1 %v14138_v1 }
0x1598   :  { %4319 = vmatmul.mubr.bf16.vlgmr.msra.gmra.mxu1 %v14479_v26 }
0x1599   :  { %11885 = vmatprep.mubr.msk.bf16.mxu1 %vm14139_vm0, %v14138_v1 }
0x1638   :  { %v3832_v5 = vpop.f32.mrf.mxu1 }
0x1639   :  { %v3833_v11 = vadd.f32 %v3832_v5, %v3711_v7 }
0x163a   :  { %v3834_v8 = vpop.f32.mrf.mxu1 }
0x163b   :  { %v3835_v56 = vadd.f32 %v3834_v8, %v3715_v6  ;;  %v3841_v19 = vmax.f32 %v3833_v11, 0.0 }
0x163c   :  { %v3836_v9 = vpop.f32.mrf.mxu1 }
0x163d   :  { %v3837_v10 = vadd.f32 %v3836_v9, %v3711_v7  ;;  %v3842_v17 = vmax.f32 %v3835_v56, 0.0 }
0x163e   :  { %v3838_v15 = vpop.f32.mrf.mxu1 }
0x163f   :  { %v3839_v16 = vadd.f32 %v3838_v15, %v3715_v6  ;;  %v3843_v12 = vmax.f32 %v3837_v10, 0.0  ;;  %v4154_v6 = vrot.slane %v14922_v22, %v14522_v49 }
0x1641   :  { %v3844_v18 = vmax.f32 %v3839_v16, 0.0  ;;  %v3880_v21 = vpack.c.bf16 %v3843_v12, %v3841_v19 }
0x1643   :  { %v3881_v20 = vpack.c.bf16 %v3844_v18, %v3842_v17 }
0x1645   :  { %4016 = vmatprep.mubr.bf16.mxu0 %v3881_v20 }
0x1646   :  { %4017 = vmatmul.mubr.bf16.vlgmr.msra.gmra.mxu0 %v3880_v21 }
0x1647   :  { %11879 = vmatprep.mubr.msk.bf16.mxu0 %vm14139_vm0, %v14138_v1  ;;  %11864 = vmatpush3.bf16.msra.mxu0 %v12774_v41 }
0x1648   :  { %11865 = vmatprep.subr.bf16.mxu0 %v14138_v1 }
0x164b   :  { %11866 = vmatpush3.bf16.msra.mxu0 %v12775_v36 }
0x164c   :  { %11867 = vmatprep.subr.bf16.mxu0 %v14138_v1 }
0x164f   :  { %11868 = vmatpush3.bf16.msra.mxu0 %v12776_v42 }
0x1650   :  { %11869 = vmatprep.subr.bf16.mxu0 %v14138_v1 }
0x1653   :  { %11870 = vmatpush3.bf16.msra.mxu0 %v12777_v43 }
0x1654   :  { %11871 = vmatprep.subr.bf16.mxu0 %v14138_v1 }
0x1657   :  { %11872 = vmatpush3.bf16.msra.mxu0 %v12778_v44 }
0x1658   :  { %v4320_v24 = vpop.f32.mrf.mxu1  ;;  %11873 = vmatprep.subr.bf16.mxu0 %v14138_v1 }
0x1659   :  { %v4321_v38 = vadd.f32 %v4320_v24, %v4146_v33 }
0x165a   :  { %v4322_v25 = vpop.f32.mrf.mxu1 }
0x165b   :  { %v4323_v27 = vadd.f32 %v4322_v25, %v14926_v23  ;;  %v4370_v39 = vpack.c.bf16 %v4321_v38, %v4321_v38  ;;  %11874 = vmatpush3.bf16.msra.mxu0 %v12779_v45 }
0x165c   :  { %11875 = vmatprep.subr.bf16.mxu0 %v14138_v1  ;;  %v4324_v58 = vpop.f32.mrf.mxu1 }
0x165d   :  { %v14931_v34 = vpack.c.bf16 %v4323_v27, %v4323_v27  ;;  %v4325_v63 = vadd.f32 %v4324_v58, %v4146_v33 }
0x165e   :  { %v4326_v59 = vpop.f32.mrf.mxu1 }
0x165f   :  { %v4377_v35 = vsel %vm894_vm1, %v14931_v34, 0  ;;  %11876 = vmatpush3.bf16.msra.mxu0 %v12780_v48  ;;  %v14962_v2 = vpack.c.bf16 %v4325_v63, %v4325_v63  ;;  %v4327_v11 = vadd.f32 %v4326_v59, %v14926_v23 }
0x1660   :  { %11884 = vmatpush3.bf16.xpose.msra.mxu1 %v4377_v35  ;;  %11877 = vmatprep.subr.bf16.mxu0 %v14138_v1 }
0x1661   :  { %11889 = vmatprep.subr.bf16.mxu1 %v14138_v1  ;;  %v4830_v17 = vpack.c.bf16 %v4327_v11, %v4327_v11 }
0x1663   :  { %11878 = vmatpush3.bf16.msra.mxu0 %v12781_v50 }
0x1664   :  { %11907 = vmatprep.subr.bf16.mxu0 %v14138_v1 }
0x1666   :  { %11880 = vmatmul.mubr.bf16.vlgmr.msra.gmra.mxu0 %v14479_v26 }
0x1667   :  { %11886 = vmatmul.mubr.msk.bf16.vlgmr.msra.gmra.mxu1 %vm894_vm1, %v4370_v39  ;;  %11909 = vmatprep.mubr.msk.bf16.mxu0 %vm14139_vm0, %v14138_v1 }
0x1668   :  { %11891 = vmatprep.mubr.msk.bf16.mxu1 %vm14139_vm0, %v14138_v1 }
0x1706   :  { %v11341_v51 = vpop.f32.mrf.mxu0 }
0x1708   :  { %v11342_v29 = vpop.f32.mrf.mxu0 }
0x1709   :  { %v14950_v52 = vadd.f32 %v11342_v29, %v11341_v51 }
0x170a   :  { %v11344_v53 = vpop.f32.mrf.mxu0 }
0x170c   :  { %v11345_v40 = vpop.f32.mrf.mxu0 }
0x170d   :  { %v11346_v55 = vadd.f32 %v11345_v40, %v11344_v53 }
0x170f   :  { %v14955_v37 = vadd.f32 %v11346_v55, %v14952_v57 }
0x1726   :  { %v4363_v7 = vpop.f32.mrf.mxu0 }
0x1727   :  { %v4413_v60 = vpop.f32.mrf.mxu1  ;;  %v4364_v8 = vadd.f32 %v4363_v7, %v4154_v6 }
0x1728   :  { %v4419_v13 = vmul.f32 0.17677669, %v4413_v60  ;;  %v11881_v9 = vpop.f32.mrf.mxu0 }
0x1729   :  { %v11887_v26 = vpop.f32.mrf.mxu1  ;;  %v14976_v56 = vpack.c.bf16 %v4364_v8, %v4364_v8 }
0x172a   :  { %v4420_v61 = vsel %vm942_vm3, %v4419_v13, -inf  ;;  %v4366_v10 = vpop.f32.mrf.mxu0 }
0x172b   :  { %4421 = vmax.xlane.f32.xlu0 %v4420_v61  ;;  %v4416_v14 = vpop.f32.mrf.mxu1  ;;  %v14979_v15 = vadd.f32 %v4366_v10, %v4154_v6  ;;  %v4436_v12 = vsel %vm958_vm2, %v14976_v56, 0 }
0x172c   :  { %v11882_v16 = vpop.f32.mrf.mxu0  ;;  %11890 = vmatpush3.bf16.msra.mxu1 %v4436_v12 }
0x172d   :  { %v11888_v62 = vpop.f32.mrf.mxu1  ;;  %11895 = vmatprep.subr.bf16.mxu1 %v14138_v1 }
0x1741   :  { %4482 = vrot.lane.b32.xlu0 %v14931_v34, %s14140_s25 }
0x1745   :  { %4592 = vrot.lane.b32.xlu0 %v4370_v39, %s14117_s4 }
0x1749   :  { %4703 = vrot.lane.b32.xlu0 %v4370_v39, %s14097_s21 }
0x174d   :  { %4938 = vrot.lane.b32.xlu0 %v14962_v2, %s14140_s25 }
0x1751   :  { %5051 = vrot.lane.b32.xlu0 %v14962_v2, %s14117_s4 }
0x1755   :  { %5162 = vrot.lane.b32.xlu0 %v14962_v2, %s14097_s21 }
0x17b4   :  { %v4422_v28 = vpop.xlane.xlu0 %4421 }
0x17b5   :  { %v4423_v3 = vsub.f32 %v4419_v13, %v4422_v28 }
0x17b7   :  { %v4424_v54 = vmul.f32 1.442695, %v4423_v3 }
0x17b8   :  { %v4483_v22 = vpop.permute.xlu0 %4482 }
0x17b9   :  { %13114 = vpow2.f32 %v4424_v54  ;;  %v4488_v35 = vsel %vm894_vm1, %v4483_v22, 0 }
0x17bc   :  { %v4593_v27 = vpop.permute.xlu0 %4592 }
0x17c0   :  { %v4704_v38 = vpop.permute.xlu0 %4703 }
0x17c4   :  { %v4939_v43 = vpop.permute.xlu0 %4938 }
0x17c6   :  { %v13115_v4 = vpop.eup %13114 }
0x17c7   :  { %v4426_v5 = vsel %vm942_vm3, %v13115_v4, 0.0 }
0x17c8   :  { %4427 = vadd.xlane.f32.xlu1 %v4426_v5  ;;  %v5052_v48 = vpop.permute.xlu0 %5051 }
0x17cc   :  { %v5163_v51 = vpop.permute.xlu0 %5162 }
0x17d9   :  { %4479 = vrot.lane.b32.xlu1 %v4370_v39, %s14140_s25  ;;  %v4836_v39 = vsel %vm894_vm1, %v4830_v17, 0 }
0x17dd   :  { %4594 = vrot.lane.b32.xlu1 %v14931_v34, %s14117_s4 }
0x17e1   :  { %4705 = vrot.lane.b32.xlu1 %v14931_v34, %s14097_s21 }
0x17e5   :  { %4941 = vrot.lane.b32.xlu1 %v4830_v17, %s14140_s25 }
0x17e9   :  { %5053 = vrot.lane.b32.xlu1 %v4830_v17, %s14117_s4 }
0x17ed   :  { %5164 = vrot.lane.b32.xlu1 %v4830_v17, %s14097_s21 }
0x1851   :  { %v4428_v18 = vpop.xlane.xlu1 %4427 }
0x1852   :  { %13116 = vrcp.f32 %v4428_v18 }
0x1855   :  { %v4480_v19 = vpop.permute.xlu1 %4479 }
0x1859   :  { %v4595_v20 = vpop.permute.xlu1 %4594 }
0x185a   :  { %v4600_v21 = vsel %vm894_vm1, %v4595_v20, 0 }
0x185b   :  { %11908 = vmatpush3.bf16.xpose.msra.mxu0 %v4600_v21 }
0x185c   :  { %11919 = vmatprep.subr.bf16.mxu0 %v14138_v1 }
0x185d   :  { %v4706_v24 = vpop.permute.xlu1 %4705 }
0x185e   :  { %v4711_v33 = vsel %vm894_vm1, %v4706_v24, 0 }
0x185f   :  { %v13117_v23 = vpop.eup %13116 }
0x1860   :  { %v4430_v25 = vmul.f32 %v13117_v23, %v13115_v4 }
0x1861   :  { %v4942_v41 = vpop.permute.xlu1 %4941 }
0x1862   :  { %11910 = vmatmul.mubr.msk.bf16.vlgmr.msra.gmra.mxu0 %vm894_vm1, %v4593_v27  ;;  %v4431_v34 = vpack.c.bf16 %v4430_v25, %v4430_v25  ;;  %v4947_v36 = vsel %vm894_vm1, %v4942_v41, 0 }
0x1863   :  { %11920 = vmatpush3.bf16.xpose.msra.mxu0 %v4711_v33  ;;  %11921 = vmatprep.mubr.msk.bf16.mxu0 %vm14139_vm0, %v14138_v1 }
0x1864   :  { %11892 = vmatmul.mubr.msk.bf16.vlgmr.msra.gmra.mxu1 %vm942_vm3, %v4431_v34  ;;  %11931 = vmatprep.subr.bf16.mxu0 %v14138_v1 }
0x1865   :  { %11896 = vmatpush3.bf16.xpose.msra.mxu1 %v4488_v35  ;;  %11897 = vmatprep.mubr.msk.bf16.mxu1 %vm14139_vm0, %v14138_v1  ;;  %v5054_v42 = vpop.permute.xlu1 %5053 }
0x1866   :  { %11901 = vmatprep.subr.bf16.mxu1 %v14138_v1  ;;  %v5059_v44 = vsel %vm894_vm1, %v5054_v42, 0 }
0x1869   :  { %v5165_v45 = vpop.permute.xlu1 %5164 }
0x186a   :  { %11922 = vmatmul.mubr.msk.bf16.vlgmr.msra.gmra.mxu0 %vm894_vm1, %v4704_v38  ;;  %v5170_v50 = vsel %vm894_vm1, %v5165_v45, 0 }
0x186b   :  { %11932 = vmatpush3.bf16.xpose.msra.mxu0 %v4836_v39  ;;  %11933 = vmatprep.mubr.msk.bf16.mxu0 %vm14139_vm0, %v14138_v1 }
0x186c   :  { %11898 = vmatmul.mubr.msk.bf16.vlgmr.msra.gmra.mxu1 %vm894_vm1, %v4480_v19  ;;  %11943 = vmatprep.subr.bf16.mxu0 %v14138_v1 }
0x186d   :  { %11903 = vmatprep.mubr.msk.bf16.mxu1 %vm14139_vm0, %v14138_v1 }
0x1872   :  { %11934 = vmatmul.mubr.msk.bf16.vlgmr.msra.gmra.mxu0 %vm894_vm1, %v14962_v2 }
0x1873   :  { %11944 = vmatpush3.bf16.xpose.msra.mxu0 %v4947_v36  ;;  %11945 = vmatprep.mubr.msk.bf16.mxu0 %vm14139_vm0, %v14138_v1 }
0x1874   :  { %11955 = vmatprep.subr.bf16.mxu0 %v14138_v1 }
0x187a   :  { %11946 = vmatmul.mubr.msk.bf16.vlgmr.msra.gmra.mxu0 %vm894_vm1, %v4939_v43 }
0x187b   :  { %11956 = vmatpush3.bf16.xpose.msra.mxu0 %v5059_v44  ;;  %11957 = vmatprep.mubr.msk.bf16.mxu0 %vm14139_vm0, %v14138_v1 }
0x187c   :  { %11967 = vmatprep.subr.bf16.mxu0 %v14138_v1 }
0x1882   :  { %11958 = vmatmul.mubr.msk.bf16.vlgmr.msra.gmra.mxu0 %vm894_vm1, %v5052_v48 }
0x1883   :  { %11968 = vmatpush3.bf16.xpose.msra.mxu0 %v5170_v50  ;;  %11969 = vmatprep.mubr.msk.bf16.mxu0 %vm14139_vm0, %v14138_v1 }
0x1884   :  { %11979 = vmatprep.subr.bf16.mxu0 %v14138_v1 }
0x188a   :  { %11970 = vmatmul.mubr.msk.bf16.vlgmr.msra.gmra.mxu0 %vm894_vm1, %v5163_v51 }
0x188b   :  { %11995 = vmatprep.mubr.msk.bf16.mxu0 %vm14139_vm0, %v14138_v1 }
0x1922   :  { %v4636_v29 = vpop.f32.mrf.mxu0 }
0x1923   :  { %v4642_v53 = vmul.f32 0.17677669, %v4636_v29 }
0x1924   :  { %v15028_v40 = vpop.f32.mrf.mxu1  ;;  %v11911_v55 = vpop.f32.mrf.mxu0 }
0x1925   :  { %v4643_v58 = vsel %vm942_vm3, %v4642_v53, -inf }
0x1926   :  { %v11893_v59 = vpop.f32.mrf.mxu1  ;;  %4644 = vmax.xlane.f32.xlu0 %v4643_v58  ;;  %v4639_v60 = vpop.f32.mrf.mxu0 }
0x1928   :  { %v4475_v13 = vpop.f32.mrf.mxu1  ;;  %v11912_v26 = vpop.f32.mrf.mxu0 }
0x192a   :  { %v11894_v61 = vpop.f32.mrf.mxu1  ;;  %v4747_v14 = vpop.f32.mrf.mxu0 }
0x192b   :  { %v4753_v62 = vmul.f32 0.17677669, %v4747_v14 }
0x192c   :  { %v4524_v63 = vpop.f32.mrf.mxu1  ;;  %v11923_v2 = vpop.f32.mrf.mxu0 }
0x192d   :  { %v4530_v28 = vmul.f32 0.17677669, %v4524_v63  ;;  %v4754_v3 = vsel %vm942_vm3, %v4753_v62, -inf }
0x192e   :  { %v11899_v54 = vpop.f32.mrf.mxu1  ;;  %4755 = vmax.xlane.f32.xlu0 %v4754_v3  ;;  %v4750_v4 = vpop.f32.mrf.mxu0 }
0x192f   :  { %v4531_v5 = vsel %vm942_vm3, %v4530_v28, -inf }
0x1930   :  { %4532 = vmax.xlane.f32.xlu1 %v4531_v5  ;;  %v4527_v6 = vpop.f32.mrf.mxu1  ;;  %v11924_v7 = vpop.f32.mrf.mxu0 }
0x1932   :  { %v11900_v8 = vpop.f32.mrf.mxu1  ;;  %v4872_v9 = vpop.f32.mrf.mxu0 }
0x1933   :  { %v4878_v10 = vmul.f32 0.17677669, %v4872_v9 }
0x1934   :  { %v11935_v11 = vpop.f32.mrf.mxu0 }
0x1935   :  { %v4879_v16 = vsel %vm942_vm3, %v4878_v10, -inf }
0x1936   :  { %4880 = vmax.xlane.f32.xlu1 %v4879_v16  ;;  %v4875_v12 = vpop.f32.mrf.mxu0 }
0x1938   :  { %v11936_v17 = vpop.f32.mrf.mxu0 }
0x193a   :  { %v4983_v18 = vpop.f32.mrf.mxu0 }
0x193b   :  { %v4989_v19 = vmul.f32 0.17677669, %v4983_v18 }
0x193c   :  { %v11947_v20 = vpop.f32.mrf.mxu0 }
0x193d   :  { %v4990_v21 = vsel %vm942_vm3, %v4989_v19, -inf  ;;  %v4831_v20 = vpack.c.bf16 %v14979_v15, %v14979_v15 }
0x193e   :  { %4991 = vmax.xlane.f32.xlu0 %v4990_v21  ;;  %v4986_v22 = vpop.f32.mrf.mxu0 }
0x1940   :  { %v11948_v23 = vpop.f32.mrf.mxu0 }
0x1942   :  { %v5095_v24 = vpop.f32.mrf.mxu0 }
0x1943   :  { %v5101_v25 = vmul.f32 0.17677669, %v5095_v24 }
0x1944   :  { %v11959_v27 = vpop.f32.mrf.mxu0 }
0x1945   :  { %v5102_v33 = vsel %vm942_vm3, %v5101_v25, -inf }
0x1946   :  { %5103 = vmax.xlane.f32.xlu1 %v5102_v33  ;;  %v5098_v34 = vpop.f32.mrf.mxu0 }
0x1948   :  { %v11960_v35 = vpop.f32.mrf.mxu0 }
0x194a   :  { %v5206_v38 = vpop.f32.mrf.mxu0 }
0x194b   :  { %v5212_v39 = vmul.f32 0.17677669, %v5206_v38 }
0x194c   :  { %v11971_v41 = vpop.f32.mrf.mxu0 }
0x194d   :  { %v5213_v36 = vsel %vm942_vm3, %v5212_v39, -inf }
0x194e   :  { %5214 = vmax.xlane.f32.xlu0 %v5213_v36  ;;  %v5209_v42 = vpop.f32.mrf.mxu0 }
0x1950   :  { %v11972_v43 = vpop.f32.mrf.mxu0 }
0x19af   :  { %v4645_v44 = vpop.xlane.xlu0 %4644 }
0x19b0   :  { %v4646_v45 = vsub.f32 %v4642_v53, %v4645_v44 }
0x19b2   :  { %v4647_v48 = vmul.f32 1.442695, %v4646_v45 }
0x19b4   :  { %13118 = vpow2.f32 %v4647_v48 }
0x19b7   :  { %v4756_v50 = vpop.xlane.xlu0 %4755 }
0x19b8   :  { %v4757_v51 = vsub.f32 %v4753_v62, %v4756_v50 }
0x19b9   :  { %v4533_v29 = vpop.xlane.xlu1 %4532 }
0x19ba   :  { %v4758_v55 = vmul.f32 1.442695, %v4757_v51  ;;  %v4534_v58 = vsub.f32 %v4530_v28, %v4533_v29  ;;  %v4895_v51 = vsel %vm958_vm2, %v4831_v20, 0 }
0x19bc   :  { %13120 = vpow2.f32 %v4758_v55  ;;  %v4535_v59 = vmul.f32 1.442695, %v4534_v58 }
0x19be   :  { %13122 = vpow2.f32 %v4535_v59 }
0x19bf   :  { %v4881_v60 = vpop.xlane.xlu1 %4880 }
0x19c0   :  { %v4882_v13 = vsub.f32 %v4878_v10, %v4881_v60 }
0x19c1   :  { %v15037_v26 = vpop.eup %13118 }
0x19c2   :  { %v4883_v61 = vmul.f32 1.442695, %v4882_v13  ;;  %v4649_v14 = vsel %vm942_vm3, %v15037_v26, 0.0 }
0x19c3   :  { %4650 = vadd.xlane.f32.xlu0 %v4649_v14 }
0x19c4   :  { %13124 = vpow2.f32 %v4883_v61 }
0x19c7   :  { %v4992_v53 = vpop.xlane.xlu0 %4991 }
0x19c8   :  { %v4993_v63 = vsub.f32 %v4989_v19, %v4992_v53 }
0x19c9   :  { %v15041_v2 = vpop.eup %13120 }
0x19ca   :  { %v4994_v62 = vmul.f32 1.442695, %v4993_v63  ;;  %v4760_v28 = vsel %vm942_vm3, %v15041_v2, 0.0 }
0x19cb   :  { %v13123_v3 = vpop.eup %13122  ;;  %4761 = vadd.xlane.f32.xlu1 %v4760_v28 }
0x19cc   :  { %13126 = vpow2.f32 %v4994_v62  ;;  %v4537_v54 = vsel %vm942_vm3, %v13123_v3, 0.0 }
0x19cf   :  { %4538 = vadd.xlane.f32.xlu1 %v4537_v54  ;;  %v5104_v8 = vpop.xlane.xlu1 %5103 }
0x19d0   :  { %v5105_v9 = vsub.f32 %v5101_v25, %v5104_v8 }
0x19d1   :  { %v15046_v4 = vpop.eup %13124 }
0x19d2   :  { %v4885_v5 = vsel %vm942_vm3, %v15046_v4, 0.0  ;;  %v5106_v10 = vmul.f32 1.442695, %v5105_v9 }
0x19d3   :  { %4886 = vadd.xlane.f32.xlu0 %v4885_v5 }
0x19d4   :  { %13128 = vpow2.f32 %v5106_v10 }
0x19d7   :  { %v5215_v11 = vpop.xlane.xlu0 %5214 }
0x19d8   :  { %v5216_v16 = vsub.f32 %v5212_v39, %v5215_v11 }
0x19d9   :  { %v15050_v6 = vpop.eup %13126 }
0x19da   :  { %v4996_v7 = vsel %vm942_vm3, %v15050_v6, 0.0  ;;  %v5217_v12 = vmul.f32 1.442695, %v5216_v16 }
0x19db   :  { %4997 = vadd.xlane.f32.xlu0 %v4996_v7 }
0x19dc   :  { %13130 = vpow2.f32 %v5217_v12 }
0x19e0   :  { %4544 = vrot.lane.b32.xlu1 %v14976_v56, %s14140_s25 }
0x19e1   :  { %v15060_v17 = vpop.eup %13128 }
0x19e2   :  { %v5108_v18 = vsel %vm942_vm3, %v15060_v17, 0.0 }
0x19e9   :  { %v15064_v19 = vpop.eup %13130 }
0x19ea   :  { %v5219_v21 = vsel %vm942_vm3, %v15064_v19, 0.0 }
0x19f1   :  { %4655 = vrot.lane.b32.xlu0 %v14976_v56, %s14117_s4 }
0x19f5   :  { %4766 = vrot.lane.b32.xlu0 %v14976_v56, %s14097_s21  ;;  %v4019_v56 = vadd.f32 %v14950_v52, %v14952_v57 }
0x19f7   :  { %v15076_v22 = vadd.f32 %v4019_v56, %v14906_v46 }
0x1a04   :  { %5109 = vadd.xlane.f32.xlu1 %v5108_v18 }
0x1a14   :  { %5220 = vadd.xlane.f32.xlu0 %v5219_v21 }
0x1a15   :  { %5003 = vrot.lane.b32.xlu1 %v4831_v20, %s14140_s25 }
0x1a19   :  { %5225 = vrot.lane.b32.xlu1 %v4831_v20, %s14097_s21 }
0x1a2a   :  { %5114 = vrot.lane.b32.xlu0 %v4831_v20, %s14117_s4 }
0x1a49   :  { %4031 = vadd.xlane.f32.xlu0 %v15076_v22 }
0x1a4c   :  { %v4651_v24 = vpop.xlane.xlu0 %4650 }
0x1a54   :  { %v4762_v23 = vpop.xlane.xlu1 %4761 }
0x1a58   :  { %v4539_v15 = vpop.xlane.xlu1 %4538 }
0x1a59   :  { %13132 = vrcp.f32 %v4539_v15 }
0x1a5a   :  { %13134 = vrcp.f32 %v4651_v24 }
0x1a5b   :  { %13136 = vrcp.f32 %v4762_v23 }
0x1a5c   :  { %v4545_v25 = vpop.permute.xlu1 %4544  ;;  %v4887_v33 = vpop.xlane.xlu0 %4886 }
0x1a5d   :  { %v4550_v27 = vsel %vm958_vm2, %v4545_v25, 0  ;;  %13138 = vrcp.f32 %v4887_v33 }
0x1a5e   :  { %11902 = vmatpush3.bf16.msra.mxu1 %v4550_v27 }
0x1a5f   :  { %11913 = vmatprep.subr.bf16.mxu1 %v14138_v1 }
0x1a64   :  { %v4998_v34 = vpop.xlane.xlu0 %4997 }
0x1a65   :  { %13140 = vrcp.f32 %v4998_v34  ;;  %v12782_v34 = vld [vmem:[#allocation25 + $0x38] sm:$0xff]  }
0x1a66   :  { %v13133_v52 = vpop.eup %13132  ;;  %11980 = vmatpush3.bf16.msra.mxu0 %v12782_v34 }
0x1a67   :  { %v4541_v57 = vmul.f32 %v13133_v52, %v13123_v3  ;;  %v13135_v39 = vpop.eup %13134  ;;  %11981 = vmatprep.subr.bf16.mxu0 %v14138_v1  ;;  %v12783_v52 = vld [vmem:[#allocation25 + $0x30] sm:$0xff]  }
0x1a68   :  { %v4656_v46 = vpop.permute.xlu0 %4655  ;;  %v4653_v41 = vmul.f32 %v13135_v39, %v15037_v26  ;;  %v13137_v43 = vpop.eup %13136 }
0x1a69   :  { %v4542_v35 = vpack.c.bf16 %v4541_v57, %v4541_v57  ;;  %v4661_v38 = vsel %vm958_vm2, %v4656_v46, 0  ;;  %v4764_v45 = vmul.f32 %v13137_v43, %v15041_v2  ;;  %v12784_v57 = vld [vmem:[#allocation25 + $0x28] sm:$0xff]   ;;  %v12785_v46 = vld [vmem:[#allocation25 + $0x20] sm:$0xff]   ;;  %v12787_v43 = vld [vmem:[#allocation25 + $0x10] sm:$0xff]  }
0x1a6a   :  { %v4654_v42 = vpack.c.bf16 %v4653_v41, %v4653_v41  ;;  %v13139_v50 = vpop.eup %13138  ;;  %11982 = vmatpush3.bf16.msra.mxu0 %v12783_v52 }
0x1a6b   :  { %11904 = vmatmul.mubr.msk.bf16.vlgmr.msra.gmra.mxu1 %vm942_vm3, %v4542_v35  ;;  %v4765_v48 = vpack.c.bf16 %v4764_v45, %v4764_v45  ;;  %v4889_v29 = vmul.f32 %v13139_v50, %v15046_v4  ;;  %11983 = vmatprep.subr.bf16.mxu0 %v14138_v1  ;;  %v12789_v50 = vld [vmem:[#allocation25] sm:$0xff]  }
0x1a6c   :  { %11914 = vmatpush3.bf16.msra.mxu1 %v4661_v38  ;;  %11915 = vmatprep.mubr.msk.bf16.mxu1 %vm14139_vm0, %v14138_v1  ;;  %v4767_v36 = vpop.permute.xlu0 %4766 }
0x1a6d   :  { %11925 = vmatprep.subr.bf16.mxu1 %v14138_v1  ;;  %v4772_v44 = vsel %vm958_vm2, %v4767_v36, 0  ;;  %v4890_v55 = vpack.c.bf16 %v4889_v29, %v4889_v29  ;;  %v12786_v36 = vld [vmem:[#allocation25 + $0x18] sm:$0xff]  }
0x1a6e   :  { %11984 = vmatpush3.bf16.msra.mxu0 %v12784_v57  ;;  %v13290_v57 = vld [vmem:[%s15898_s17] sm:$0xff] }
0x1a6f   :  { %11985 = vmatprep.subr.bf16.mxu0 %v14138_v1 }
0x1a72   :  { %v13141_v58 = vpop.eup %13140  ;;  %11986 = vmatpush3.bf16.msra.mxu0 %v12785_v46 }
0x1a73   :  { %11916 = vmatmul.mubr.msk.bf16.vlgmr.msra.gmra.mxu1 %vm942_vm3, %v4654_v42  ;;  %v5000_v60 = vmul.f32 %v13141_v58, %v15050_v6  ;;  %11987 = vmatprep.subr.bf16.mxu0 %v14138_v1 }
0x1a74   :  { %11926 = vmatpush3.bf16.msra.mxu1 %v4772_v44  ;;  %11927 = vmatprep.mubr.msk.bf16.mxu1 %vm14139_vm0, %v14138_v1  ;;  %v12788_v44 = vld [vmem:[#allocation25 + $0x8] sm:$0xff]  }
0x1a75   :  { %11937 = vmatprep.subr.bf16.mxu1 %v14138_v1  ;;  %v5001_v61 = vpack.c.bf16 %v5000_v60, %v5000_v60 }
0x1a76   :  { %11988 = vmatpush3.bf16.msra.mxu0 %v12786_v36 }
0x1a77   :  { %11989 = vmatprep.subr.bf16.mxu0 %v14138_v1 }
0x1a7a   :  { %11990 = vmatpush3.bf16.msra.mxu0 %v12787_v43 }
0x1a7b   :  { %11928 = vmatmul.mubr.msk.bf16.vlgmr.msra.gmra.mxu1 %vm942_vm3, %v4765_v48  ;;  %11991 = vmatprep.subr.bf16.mxu0 %v14138_v1 }
0x1a7c   :  { %11938 = vmatpush3.bf16.msra.mxu1 %v4895_v51  ;;  %11939 = vmatprep.mubr.msk.bf16.mxu1 %vm14139_vm0, %v14138_v1 }
0x1a7d   :  { %11949 = vmatprep.subr.bf16.mxu1 %v14138_v1 }
0x1a7e   :  { %11992 = vmatpush3.bf16.msra.mxu0 %v12788_v44 }
0x1a7f   :  { %11993 = vmatprep.subr.bf16.mxu0 %v14138_v1 }
0x1a82   :  { %11994 = vmatpush3.bf16.msra.mxu0 %v12789_v50 }
0x1a83   :  { %11940 = vmatmul.mubr.msk.bf16.vlgmr.msra.gmra.mxu1 %vm942_vm3, %v4890_v55 }
0x1a84   :  { %11951 = vmatprep.mubr.msk.bf16.mxu1 %vm14139_vm0, %v14138_v1 }
0x1a8d   :  { %v5110_v59 = vpop.xlane.xlu1 %5109 }
0x1a8e   :  { %13142 = vrcp.f32 %v5110_v59 }
0x1a91   :  { %v5004_v13 = vpop.permute.xlu1 %5003 }
0x1a92   :  { %v5009_v26 = vsel %vm958_vm2, %v5004_v13, 0 }
0x1a93   :  { %11950 = vmatpush3.bf16.msra.mxu1 %v5009_v26 }
0x1a94   :  { %11961 = vmatprep.subr.bf16.mxu1 %v14138_v1 }
0x1a95   :  { %v5226_v28 = vpop.permute.xlu1 %5225 }
0x1a96   :  { %11952 = vmatmul.mubr.msk.bf16.vlgmr.msra.gmra.mxu1 %vm942_vm3, %v5001_v61  ;;  %v5231_v54 = vsel %vm958_vm2, %v5226_v28, 0  ;;  %v4026_v28 = vadd.f32 %v14955_v37, %v14908_v47 }
0x1a97   :  { %11963 = vmatprep.mubr.msk.bf16.mxu1 %vm14139_vm0, %v14138_v1 }
0x1a9b   :  { %v13143_v14 = vpop.eup %13142 }
0x1a9c   :  { %v5112_v63 = vmul.f32 %v13143_v14, %v15060_v17 }
0x1a9d   :  { %v5221_v53 = vpop.xlane.xlu0 %5220 }
0x1a9e   :  { %13144 = vrcp.f32 %v5221_v53  ;;  %v5113_v3 = vpack.c.bf16 %v5112_v63, %v5112_v63 }
0x1aa1   :  { %v5115_v2 = vpop.permute.xlu0 %5114 }
0x1aa2   :  { %v5120_v62 = vsel %vm958_vm2, %v5115_v2, 0 }
0x1aa3   :  { %11962 = vmatpush3.bf16.msra.mxu1 %v5120_v62  ;;  %v10871_v62 = vld [vmem:[#allocation19 + $0x1] ss:$0 sm:$0xff] }
0x1aa4   :  { %11973 = vmatprep.subr.bf16.mxu1 %v14138_v1 }
0x1aa6   :  { %11964 = vmatmul.mubr.msk.bf16.vlgmr.msra.gmra.mxu1 %vm942_vm3, %v5113_v3 }
0x1aa7   :  { %11974 = vmatpush3.bf16.msra.mxu1 %v5231_v54  ;;  %11975 = vmatprep.mubr.msk.bf16.mxu1 %vm14139_vm0, %v14138_v1  ;;  %v10872_v54 = vld [vmem:[#allocation20 + $0x1] ss:$0 sm:$0xff] }
0x1aa8   :  { %11999 = vmatprep.subr.bf16.mxu1 %v14138_v1 }
0x1aab   :  { %v13145_v4 = vpop.eup %13144 }
0x1aac   :  { %v5223_v5 = vmul.f32 %v13145_v4, %v15064_v19 }
0x1aae   :  { %v5224_v6 = vpack.c.bf16 %v5223_v5, %v5223_v5 }
0x1ab0   :  { %11976 = vmatmul.mubr.msk.bf16.vlgmr.msra.gmra.mxu1 %vm942_vm3, %v5224_v6 }
0x1ab1   :  { %12015 = vmatprep.mubr.msk.bf16.mxu1 %vm14139_vm0, %v14138_v1 }
0x1ad2   :  { %v4032_v7 = vpop.xlane.xlu0 %4031 }
0x1ad3   :  { %v4035_v8 = vmul.f32 0.0078125, %v4032_v7 }
0x1ad5   :  { %v15121_v9 = vsub.f32 %v15076_v22, %v4035_v8 }
0x1ad7   :  { %v4039_v10 = vmul.f32 %v15121_v9, %v15121_v9 }
0x1ad9   :  { %4041 = vadd.xlane.f32.xlu0 %v4039_v10 }
0x1b2b   :  { %v4586_v11 = vpop.f32.mrf.mxu1 }
0x1b2d   :  { %v11905_v16 = vpop.f32.mrf.mxu1 }
0x1b2f   :  { %v4589_v12 = vpop.f32.mrf.mxu1 }
0x1b31   :  { %v11906_v17 = vpop.f32.mrf.mxu1 }
0x1b33   :  { %v4697_v18 = vpop.f32.mrf.mxu1 }
0x1b35   :  { %v11917_v19 = vpop.f32.mrf.mxu1 }
0x1b37   :  { %v4700_v20 = vpop.f32.mrf.mxu1 }
0x1b39   :  { %v11918_v21 = vpop.f32.mrf.mxu1 }
0x1b3b   :  { %v4808_v56 = vpop.f32.mrf.mxu1 }
0x1b3d   :  { %v11929_v23 = vpop.f32.mrf.mxu1 }
0x1b3f   :  { %v4811_v15 = vpop.f32.mrf.mxu1 }
0x1b41   :  { %v11930_v24 = vpop.f32.mrf.mxu1 }
0x1b43   :  { %v15125_v25 = vpop.f32.mrf.mxu1 }
0x1b45   :  { %v11941_v22 = vpop.f32.mrf.mxu1 }
0x1b47   :  { %v4934_v27 = vpop.f32.mrf.mxu1 }
0x1b49   :  { %v11942_v33 = vpop.f32.mrf.mxu1 }
0x1b56   :  { %v5045_v35 = vpop.f32.mrf.mxu1 }
0x1b57   :  { %v12530_v38 = vpack.i.bf16 %v5045_v35, %v4586_v11 }
0x1b58   :  { %v11953_v39 = vpop.f32.mrf.mxu1 }
0x1b59   :  { %12531 = vrot.lane.b32.xlu1 %v12530_v38, %s14097_s21 }
0x1b5a   :  { %v5048_v41 = vpop.f32.mrf.mxu1 }
0x1b5c   :  { %v11954_v42 = vpop.f32.mrf.mxu1 }
0x1b62   :  { %v4042_v26 = vpop.xlane.xlu0 %4041 }
0x1b63   :  { %v4045_v14 = vmul.f32 0.0078125, %v4042_v26 }
0x1b65   :  { %v4047_v53 = vadd.f32 1e-05, %v4045_v14 }
0x1b66   :  { %v5156_v45 = vpop.f32.mrf.mxu1 }
0x1b67   :  { %v12535_v48 = vpack.i.bf16 %v5156_v45, %v4697_v18  ;;  %13146 = vrsqrt.f32 %v4047_v53 }
0x1b68   :  { %v11965_v51 = vpop.f32.mrf.mxu1 }
0x1b69   :  { %12536 = vrot.lane.b32.xlu1 %v12535_v48, %s14117_s4  ;;  %v13291_v51 = vld [vmem:[%s15898_s17 + $0x8] sm:$0xff] }
0x1b6a   :  { %v5159_v29 = vpop.f32.mrf.mxu1 }
0x1b6c   :  { %v11966_v55 = vpop.f32.mrf.mxu1 }
0x1b70   :  { %v5267_v58 = vpop.f32.mrf.mxu1 }
0x1b71   :  { %v12540_v59 = vpack.i.bf16 %v5267_v58, %v4808_v56 }
0x1b72   :  { %v11977_v60 = vpop.f32.mrf.mxu1 }
0x1b73   :  { %12541 = vrot.lane.b32.xlu1 %v12540_v59, %s14140_s25 }
0x1b74   :  { %v5270_v13 = vpop.f32.mrf.mxu1  ;;  %v13147_v63 = vpop.eup %13146 }
0x1b75   :  { %v4051_v2 = vmul.f32 %v13147_v63, %v15121_v9 }
0x1b76   :  { %v11978_v61 = vpop.f32.mrf.mxu1 }
0x1b77   :  { %v4059_v3 = vmul.f32 %v10871_v62, %v4051_v2 }
0x1b79   :  { %v4067_v4 = vadd.f32 %v10872_v54, %v4059_v3  ;;  %v12792_v3 = vld [vmem:[%s15899_s11 + $0x74] ss:$8 sps:$4 sm:$0xff]  }
0x1b7a   :  { %5665 = vmatprep.subr.bf16.mxu0 %v12792_v3 }
0x1b97   :  { %4033 = vadd.xlane.f32.xlu1 %v4026_v28 }
0x1b9b   :  { %4071 = vadd.xlane.f32.xlu1 %v4067_v4 }
0x1bcb   :  { %v12532_v5 = vpop.permute.xlu1 %12531 }
0x1bcc   :  { %v12534_v7 = vunpack.i.h.bf16 %v12532_v5  ;;  %v12533_v8 = vunpack.i.l.bf16 %v12532_v5  ;;  %v12793_v5 = vld [vmem:[%s15899_s11 + $0x60] ss:$8 sps:$4 sm:$0xff]  }
0x1bce   :  { %v5285_v12 = vsel %vm894_vm1, %v15125_v25, %v12534_v7  ;;  %v4826_v9 = vsel %vm894_vm1, %v15028_v40, %v12533_v8  ;;  %v10915_v25 = vld [vmem:[#allocation26] ss:$0 sm:$0xff]  ;;  %v12797_v7 = vld [vmem:[%s15899_s11 + $0x50] ss:$8 sps:$4 sm:$0xff]  }
0x1bcf   :  { %v12800_v8 = vld [vmem:[#allocation31 + $0x30] sm:$0xff]  }
0x1bdb   :  { %v12537_v6 = vpop.permute.xlu1 %12536 }
0x1bdc   :  { %v12539_v10 = vunpack.i.h.bf16 %v12537_v6  ;;  %v12538_v11 = vunpack.i.l.bf16 %v12537_v6  ;;  %v12799_v6 = vld [vmem:[%s15899_s11 + $0x54] ss:$8 sps:$4 sm:$0xff]  }
0x1bde   :  { %v5286_v37 = vsel %vm1351_vm4, %v5285_v12, %v12539_v10  ;;  %v4827_v18 = vsel %vm1351_vm4, %v4826_v9, %v12538_v11  ;;  %v12803_v10 = vld [vmem:[%s15899_s11 + $0x44] ss:$8 sps:$4 sm:$0xff]   ;;  %v12801_v11 = vld [vmem:[%s15899_s11 + $0x40] ss:$8 sps:$4 sm:$0xff]   ;;  %v12807_v12 = vld [vmem:[%s15899_s11 + $0x34] ss:$8 sps:$4 sm:$0xff]  }
0x1bdf   :  { %v12805_v9 = vld [vmem:[%s15899_s11 + $0x30] ss:$8 sps:$4 sm:$0xff]  }
0x1be5   :  { %v12542_v16 = vpop.permute.xlu1 %12541 }
0x1be6   :  { %v12544_v17 = vunpack.i.h.bf16 %v12542_v16  ;;  %v12543_v47 = vunpack.i.l.bf16 %v12542_v16  ;;  %v12804_v16 = vld [vmem:[#allocation31 + $0x28] sm:$0xff]  }
0x1be8   :  { %v5287_v19 = vsel %vm1353_vm5, %v5286_v37, %v12544_v17  ;;  %v4828_v20 = vsel %vm1353_vm5, %v4827_v18, %v12543_v47  ;;  %v12808_v17 = vld [vmem:[#allocation31 + $0x20] sm:$0xff]   ;;  %v12812_v18 = vld [vmem:[#allocation31 + $0x18] sm:$0xff]  }
0x1be9   :  { %v5305_v21 = vpack.c.bf16 %v5287_v19, %v4828_v20  ;;  %v12811_v47 = vld [vmem:[%s15899_s11 + $0x24] ss:$8 sps:$4 sm:$0xff]   ;;  %v12809_v37 = vld [vmem:[%s15899_s11 + $0x20] ss:$8 sps:$4 sm:$0xff]   ;;  %v12815_v19 = vld [vmem:[%s15899_s11 + $0x14] ss:$8 sps:$4 sm:$0xff]  }
0x1bea   :  { %v12813_v20 = vld [vmem:[%s15899_s11 + $0x10] ss:$8 sps:$4 sm:$0xff]  }
0x1beb   :  { %11996 = vmatmul.mubr.bf16.vlgmr.msra.gmra.mxu0 %v5305_v21  ;;  %v12816_v21 = vld [vmem:[#allocation31 + $0x10] sm:$0xff]  }
0x1bec   :  { %5697 = vmatprep.mubr.bf16.mxu0 %v14137_v0 }
0x1c20   :  { %v4034_v56 = vpop.xlane.xlu1 %4033 }
0x1c21   :  { %v4036_v23 = vmul.f32 0.0078125, %v4034_v56  ;;  %v12819_v56 = vld [vmem:[%s15899_s11 + $0x4] ss:$8 sps:$4 sm:$0xff]  }
0x1c23   :  { %v4038_v15 = vsub.f32 %v4026_v28, %v4036_v23  ;;  %v12790_v28 = vld [vmem:[%s15899_s11 + $0x70] ss:$8 sps:$4 sm:$0xff]   ;;  %v12817_v23 = vld [vmem:[%s15899_s11] ss:$8 sps:$4 sm:$0xff]  }
0x1c24   :  { %v4072_v40 = vpop.xlane.xlu1 %4071  ;;  %5666 = vmatpush1.bf16.msra.mxu0 %v12790_v28 }
0x1c25   :  { %v4040_v24 = vmul.f32 %v4038_v15, %v4038_v15  ;;  %v4075_v22 = vmul.f32 0.0078125, %v4072_v40 }
0x1c27   :  { %4043 = vadd.xlane.f32.xlu0 %v4040_v24  ;;  %v15149_v52 = vsub.f32 %v4067_v4, %v4075_v22  ;;  %v12796_v4 = vld [vmem:[#allocation31 + $0x38] sm:$0xff]   ;;  %v12821_v24 = vld [vmem:[#allocation31] sm:$0xff]  }
0x1c28   :  { %12000 = vmatpush3.bf16.msra.mxu1 %v12796_v4 }
0x1c29   :  { %v4079_v36 = vmul.f32 %v15149_v52, %v15149_v52  ;;  %12001 = vmatprep.subr.bf16.mxu1 %v14138_v1 }
0x1c2c   :  { %12002 = vmatpush3.bf16.msra.mxu1 %v12800_v8  ;;  %v10926_v8 = vld [vmem:[#allocation32] ss:$0 sm:$0xff] }
0x1c2d   :  { %12003 = vmatprep.subr.bf16.mxu1 %v14138_v1 }
0x1c30   :  { %12004 = vmatpush3.bf16.msra.mxu1 %v12804_v16 }
0x1c31   :  { %12005 = vmatprep.subr.bf16.mxu1 %v14138_v1 }
0x1c34   :  { %12006 = vmatpush3.bf16.msra.mxu1 %v12808_v17 }
0x1c35   :  { %12007 = vmatprep.subr.bf16.mxu1 %v14138_v1 }
0x1c38   :  { %12008 = vmatpush3.bf16.msra.mxu1 %v12812_v18 }
0x1c39   :  { %12009 = vmatprep.subr.bf16.mxu1 %v14138_v1 }
0x1c3c   :  { %12010 = vmatpush3.bf16.msra.mxu1 %v12816_v21 }
0x1c3d   :  { %12011 = vmatprep.subr.bf16.mxu1 %v14138_v1 }
0x1cab   :  { %v5394_v27 = vpop.f32.mrf.mxu0 }
0x1cac   :  { %v5395_v33 = vadd.f32 %v10915_v25, %v5394_v27 }
0x1cad   :  { %v11997_v34 = vpop.f32.mrf.mxu0 }
0x1cae   :  { %v5401_v46 = vadd.f32 %v13290_v57, %v5395_v33 }
0x1caf   :  { %v5397_v35 = vpop.f32.mrf.mxu0 }
0x1cb0   :  { %5405 = vadd.xlane.f32.xlu1 %v5401_v46  ;;  %v4044_v38 = vpop.xlane.xlu0 %4043  ;;  %v5398_v48 = vadd.f32 %v10915_v25, %v5397_v35 }
0x1cb1   :  { %v4046_v39 = vmul.f32 0.0078125, %v4044_v38  ;;  %v11998_v41 = vpop.f32.mrf.mxu0 }
0x1cb2   :  { %v5402_v29 = vadd.f32 %v13291_v51, %v5398_v48 }
0x1cb3   :  { %v4048_v42 = vadd.f32 1e-05, %v4046_v39 }
0x1cb4   :  { %4081 = vadd.xlane.f32.xlu1 %v4079_v36 }
0x1cb5   :  { %13148 = vrsqrt.f32 %v4048_v42 }
0x1cc2   :  { %v13149_v43 = vpop.eup %13148 }
0x1cc3   :  { %v4052_v44 = vmul.f32 %v13149_v43, %v4038_v15  ;;  %v12820_v15 = vld [vmem:[#allocation31 + $0x8] sm:$0xff]  }
0x1cc4   :  { %12012 = vmatpush3.bf16.msra.mxu1 %v12820_v15 }
0x1cc5   :  { %v4060_v45 = vmul.f32 %v10871_v62, %v4052_v44  ;;  %12013 = vmatprep.subr.bf16.mxu1 %v14138_v1  ;;  %v10873_v44 = vld [vmem:[#allocation47] ss:$0 sm:$0xff] }
0x1cc7   :  { %v4068_v50 = vadd.f32 %v10872_v54, %v4060_v45  ;;  %v12795_v54 = vld [vmem:[%s15899_s11 + $0x64] ss:$8 sps:$4 sm:$0xff]  }
0x1cc8   :  { %5667 = vmatprep.subr.bf16.mxu0 %v12795_v54  ;;  %12014 = vmatpush3.bf16.msra.mxu1 %v12821_v24 }
0x1cc9   :  { %4073 = vadd.xlane.f32.xlu0 %v4068_v50  ;;  %5668 = vmatpush1.bf16.msra.mxu0 %v12793_v5 }
0x1cca   :  { %5669 = vmatprep.subr.bf16.mxu0 %v12799_v6  ;;  %12019 = vmatprep.subr.bf16.mxu1 %v14138_v1 }
0x1ccd   :  { %5407 = vadd.xlane.f32.xlu0 %v5402_v29  ;;  %5670 = vmatpush1.bf16.msra.mxu0 %v12797_v7 }
0x1cce   :  { %5671 = vmatprep.subr.bf16.mxu0 %v12803_v10 }
0x1cd1   :  { %5672 = vmatpush1.bf16.msra.mxu0 %v12801_v11 }
0x1cd2   :  { %5673 = vmatprep.subr.bf16.mxu0 %v12807_v12 }
0x1cd5   :  { %5674 = vmatpush1.bf16.msra.mxu0 %v12805_v9 }
0x1cd6   :  { %5675 = vmatprep.subr.bf16.mxu0 %v12811_v47 }
0x1cd9   :  { %5676 = vmatpush1.bf16.msra.mxu0 %v12809_v37 }
0x1cda   :  { %5677 = vmatprep.subr.bf16.mxu0 %v12815_v19 }
0x1cdd   :  { %5678 = vmatpush1.bf16.msra.mxu0 %v12813_v20 }
0x1cde   :  { %5679 = vmatprep.subr.bf16.mxu0 %v12819_v56 }
0x1ce1   :  { %5680 = vmatpush1.bf16.msra.mxu0 %v12817_v23 }
0x1ce2   :  { %12043 = vmatprep.subr.bf16.mxu0 %v14138_v1 }
0x1d39   :  { %v5406_v55 = vpop.xlane.xlu1 %5405 }
0x1d3a   :  { %v5409_v58 = vmul.f32 0.0078125, %v5406_v55  ;;  %v10924_v55 = vld [vmem:[#allocation28] ss:$0 sm:$0xff] }
0x1d3c   :  { %v15155_v59 = vsub.f32 %v5401_v46, %v5409_v58 }
0x1d3d   :  { %v4082_v40 = vpop.xlane.xlu1 %4081 }
0x1d3e   :  { %v5413_v60 = vmul.f32 %v15155_v59, %v15155_v59  ;;  %v4085_v25 = vmul.f32 0.0078125, %v4082_v40 }
0x1d40   :  { %5415 = vadd.xlane.f32.xlu1 %v5413_v60  ;;  %v4087_v27 = vadd.f32 1e-05, %v4085_v25 }
0x1d42   :  { %13150 = vrsqrt.f32 %v4087_v27 }
0x1d4f   :  { %v13151_v36 = vpop.eup %13150 }
0x1d50   :  { %v4091_v42 = vmul.f32 %v13151_v36, %v15149_v52 }
0x1d52   :  { %v4074_v13 = vpop.xlane.xlu0 %4073  ;;  %v4099_v51 = vmul.f32 %v10873_v44, %v4091_v42 }
0x1d53   :  { %v4076_v26 = vmul.f32 0.0078125, %v4074_v13 }
0x1d55   :  { %v15159_v61 = vsub.f32 %v4068_v50, %v4076_v26 }
0x1d56   :  { %v5408_v14 = vpop.xlane.xlu0 %5407 }
0x1d57   :  { %v5410_v53 = vmul.f32 0.0078125, %v5408_v14  ;;  %v4080_v63 = vmul.f32 %v15159_v61, %v15159_v61 }
0x1d59   :  { %v15163_v2 = vsub.f32 %v5402_v29, %v5410_v53  ;;  %4083 = vadd.xlane.f32.xlu0 %v4080_v63  ;;  %v10874_v29 = vld [vmem:[#allocation49] ss:$0 sm:$0xff]  ;;  %v10925_v63 = vld [vmem:[#allocation29] ss:$0 sm:$0xff] }
0x1d5a   :  { %v4107_v26 = vadd.f32 %v10874_v29, %v4099_v51 }
0x1d5b   :  { %v5414_v62 = vmul.f32 %v15163_v2, %v15163_v2 }
0x1d5d   :  { %5417 = vadd.xlane.f32.xlu0 %v5414_v62 }
0x1dc9   :  { %v5416_v22 = vpop.xlane.xlu1 %5415 }
0x1dca   :  { %v5419_v33 = vmul.f32 0.0078125, %v5416_v22 }
0x1dcc   :  { %v5421_v34 = vadd.f32 1e-05, %v5419_v33 }
0x1dce   :  { %13152 = vrsqrt.f32 %v5421_v34 }
0x1ddb   :  { %v13153_v43 = vpop.eup %13152 }
0x1ddc   :  { %v5425_v48 = vmul.f32 %v13153_v43, %v15155_v59 }
0x1dde   :  { %v5433_v53 = vmul.f32 %v10924_v55, %v5425_v48 }
0x1de0   :  { %v15199_v59 = vadd.f32 %v10925_v63, %v5433_v53 }
0x1de2   :  { %v4084_v57 = vpop.xlane.xlu0 %4083 }
0x1de3   :  { %v4086_v46 = vmul.f32 0.0078125, %v4084_v57 }
0x1de5   :  { %v4088_v35 = vadd.f32 1e-05, %v4086_v46 }
0x1de6   :  { %v5418_v38 = vpop.xlane.xlu0 %5417 }
0x1de7   :  { %13154 = vrsqrt.f32 %v4088_v35  ;;  %v5420_v39 = vmul.f32 0.0078125, %v5418_v38 }
0x1de9   :  { %v5422_v41 = vadd.f32 1e-05, %v5420_v39 }
0x1deb   :  { %13156 = vrsqrt.f32 %v5422_v41 }
0x1df4   :  { %v13155_v45 = vpop.eup %13154 }
0x1df5   :  { %v4092_v50 = vmul.f32 %v13155_v45, %v15159_v61 }
0x1df7   :  { %v4100_v58 = vmul.f32 %v10873_v44, %v4092_v50 }
0x1df8   :  { %v13157_v60 = vpop.eup %13156 }
0x1df9   :  { %v5426_v13 = vmul.f32 %v13157_v60, %v15163_v2  ;;  %v4108_v14 = vadd.f32 %v10874_v29, %v4100_v58  ;;  %v5572_v2 = vld [vmem:[%s15900_s14] sm:$0x3] }
0x1dfa   :  { %v5578_v3 = vrot.slane %v5572_v2, %v14500_v32  ;;  %v15212_v5 = vrot.slane %v5572_v2, %v14497_v31 }
0x1dfb   :  { %v15196_v52 = vpack.c.bf16 %v4108_v14, %v4107_v26  ;;  %v5434_v62 = vmul.f32 %v10924_v55, %v5426_v13 }
0x1dfd   :  { %5698 = vmatmul.mubr.bf16.vlgmr.msra.gmra.mxu0 %v15196_v52  ;;  %v15201_v61 = vadd.f32 %v10925_v63, %v5434_v62 }
0x1dfe   :  { %12045 = vmatprep.mubr.msk.bf16.mxu0 %vm14139_vm0, %v14138_v1 }
0x1dff   :  { %v5460_v28 = vpack.c.bf16 %v15201_v61, %v15199_v59 }
0x1e01   :  { %12016 = vmatmul.mubr.bf16.vlgmr.msra.gmra.mxu1 %v5460_v28 }
0x1e02   :  { %12021 = vmatprep.mubr.msk.bf16.mxu1 %vm14139_vm0, %v14138_v1 }
0x1ebd   :  { %v5699_v54 = vpop.f32.mrf.mxu0 }
0x1ebe   :  { %v5700_v4 = vadd.f32 %v5699_v54, %v5578_v3 }
0x1ebf   :  { %v5701_v6 = vpop.f32.mrf.mxu0 }
0x1ec0   :  { %v5709_v7 = vpack.c.bf16 %v5700_v4, %v5700_v4  ;;  %v5702_v11 = vadd.f32 %v5701_v6, %v15212_v5 }
0x1ec1   :  { %v5549_v10 = vpop.f32.mrf.mxu1  ;;  %v5703_v41 = vpop.f32.mrf.mxu0 }
0x1ec2   :  { %v5715_v16 = vsel %vm894_vm1, %v5709_v7, 0  ;;  %v5550_v9 = vadd.f32 %v10926_v8, %v5549_v10  ;;  %v15217_v47 = vpack.c.bf16 %v5702_v11, %v5702_v11  ;;  %v5704_v36 = vadd.f32 %v5703_v41, %v5578_v3 }
0x1ec3   :  { %v12017_v12 = vpop.f32.mrf.mxu1  ;;  %12020 = vmatpush3.bf16.xpose.msra.mxu1 %v5715_v16  ;;  %v15275_v54 = vpop.f32.mrf.mxu0 }
0x1ec4   :  { %12025 = vmatprep.subr.bf16.mxu1 %v14138_v1  ;;  %v5708_v19 = vpack.c.bf16 %v5550_v9, %v5550_v9  ;;  %v5774_v20 = vsel %vm958_vm2, %v15217_v47, 0  ;;  %v6168_v42 = vpack.c.bf16 %v5704_v36, %v5704_v36 }
0x1ec5   :  { %v5552_v17 = vpop.f32.mrf.mxu1 }
0x1ec6   :  { %v5553_v37 = vadd.f32 %v10926_v8, %v5552_v17  ;;  %v6174_v58 = vsel %vm894_vm1, %v6168_v42, 0 }
0x1ec7   :  { %v12018_v18 = vpop.f32.mrf.mxu1 }
0x1ec8   :  { %v6167_v25 = vpack.c.bf16 %v5553_v37, %v5553_v37 }
0x1eca   :  { %12022 = vmatmul.mubr.msk.bf16.vlgmr.msra.gmra.mxu1 %vm894_vm1, %v5708_v19 }
0x1ecb   :  { %12026 = vmatpush3.bf16.msra.mxu1 %v5774_v20  ;;  %12027 = vmatprep.mubr.msk.bf16.mxu1 %vm14139_vm0, %v14138_v1 }
0x1ecc   :  { %12031 = vmatprep.subr.bf16.mxu1 %v14138_v1 }
0x1f8a   :  { %v5751_v21 = vpop.f32.mrf.mxu1 }
0x1f8b   :  { %v5757_v56 = vmul.f32 0.17677669, %v5751_v21 }
0x1f8c   :  { %v12023_v23 = vpop.f32.mrf.mxu1 }
0x1f8d   :  { %v5758_v15 = vsel %vm942_vm3, %v5757_v56, -inf }
0x1f8e   :  { %5759 = vmax.xlane.f32.xlu1 %v5758_v15  ;;  %v5754_v24 = vpop.f32.mrf.mxu1 }
0x1f90   :  { %v12024_v40 = vpop.f32.mrf.mxu1 }
0x1f9f   :  { %5820 = vrot.lane.b32.xlu1 %v5709_v7, %s14140_s25 }
0x1fa3   :  { %5932 = vrot.lane.b32.xlu1 %v5709_v7, %s14117_s4 }
0x1fa7   :  { %5930 = vrot.lane.b32.xlu1 %v5708_v19, %s14117_s4 }
0x1fab   :  { %6041 = vrot.lane.b32.xlu1 %v5708_v19, %s14097_s21 }
0x1faf   :  { %6276 = vrot.lane.b32.xlu1 %v6167_v25, %s14140_s25 }
0x1fb3   :  { %6389 = vrot.lane.b32.xlu1 %v6167_v25, %s14117_s4 }
0x1fb7   :  { %6500 = vrot.lane.b32.xlu1 %v6167_v25, %s14097_s21 }
0x2017   :  { %v5760_v22 = vpop.xlane.xlu1 %5759 }
0x2018   :  { %v5761_v27 = vsub.f32 %v5757_v56, %v5760_v22 }
0x201a   :  { %v5762_v33 = vmul.f32 1.442695, %v5761_v27 }
0x201b   :  { %v5821_v34 = vpop.permute.xlu1 %5820 }
0x201c   :  { %13158 = vpow2.f32 %v5762_v33  ;;  %v5826_v60 = vsel %vm894_vm1, %v5821_v34, 0 }
0x201f   :  { %v5933_v57 = vpop.permute.xlu1 %5932 }
0x2020   :  { %v5938_v46 = vsel %vm894_vm1, %v5933_v57, 0 }
0x2021   :  { %12044 = vmatpush3.bf16.xpose.msra.mxu0 %v5938_v46 }
0x2022   :  { %12055 = vmatprep.subr.bf16.mxu0 %v14138_v1 }
0x2023   :  { %v5931_v35 = vpop.permute.xlu1 %5930 }
0x2027   :  { %v6042_v29 = vpop.permute.xlu1 %6041 }
0x2028   :  { %12046 = vmatmul.mubr.msk.bf16.vlgmr.msra.gmra.mxu0 %vm894_vm1, %v5931_v35 }
0x2029   :  { %v13159_v38 = vpop.eup %13158  ;;  %12057 = vmatprep.mubr.msk.bf16.mxu0 %vm14139_vm0, %v14138_v1 }
0x202a   :  { %v5764_v39 = vsel %vm942_vm3, %v13159_v38, 0.0 }
0x202b   :  { %5765 = vadd.xlane.f32.xlu0 %v5764_v39  ;;  %v6277_v53 = vpop.permute.xlu1 %6276 }
0x202f   :  { %v6390_v28 = vpop.permute.xlu1 %6389 }
0x2033   :  { %v6501_v3 = vpop.permute.xlu1 %6500 }
0x2041   :  { %5817 = vrot.lane.b32.xlu0 %v5708_v19, %s14140_s25 }
0x2045   :  { %6043 = vrot.lane.b32.xlu0 %v5709_v7, %s14097_s21 }
0x2049   :  { %6279 = vrot.lane.b32.xlu0 %v6168_v42, %s14140_s25 }
0x204d   :  { %6391 = vrot.lane.b32.xlu0 %v6168_v42, %s14117_s4 }
0x2051   :  { %6502 = vrot.lane.b32.xlu0 %v6168_v42, %s14097_s21 }
0x20b4   :  { %v5766_v43 = vpop.xlane.xlu0 %5765 }
0x20b5   :  { %13160 = vrcp.f32 %v5766_v43 }
0x20b8   :  { %v5818_v44 = vpop.permute.xlu0 %5817 }
0x20bc   :  { %v6044_v45 = vpop.permute.xlu0 %6043 }
0x20bd   :  { %v6049_v48 = vsel %vm894_vm1, %v6044_v45, 0 }
0x20be   :  { %12056 = vmatpush3.bf16.xpose.msra.mxu0 %v6049_v48 }
0x20bf   :  { %12067 = vmatprep.subr.bf16.mxu0 %v14138_v1 }
0x20c0   :  { %v6280_v13 = vpop.permute.xlu0 %6279 }
0x20c1   :  { %v6285_v26 = vsel %vm894_vm1, %v6280_v13, 0 }
0x20c2   :  { %v13161_v50 = vpop.eup %13160 }
0x20c3   :  { %v5768_v51 = vmul.f32 %v13161_v50, %v13159_v38 }
0x20c4   :  { %v6392_v14 = vpop.permute.xlu0 %6391 }
0x20c5   :  { %v5769_v55 = vpack.c.bf16 %v5768_v51, %v5768_v51  ;;  %12058 = vmatmul.mubr.msk.bf16.vlgmr.msra.gmra.mxu0 %vm894_vm1, %v6042_v29  ;;  %v6397_v63 = vsel %vm894_vm1, %v6392_v14, 0 }
0x20c6   :  { %12068 = vmatpush3.bf16.xpose.msra.mxu0 %v6174_v58  ;;  %12069 = vmatprep.mubr.msk.bf16.mxu0 %vm14139_vm0, %v14138_v1 }
0x20c7   :  { %12028 = vmatmul.mubr.msk.bf16.vlgmr.msra.gmra.mxu1 %vm942_vm3, %v5769_v55  ;;  %12079 = vmatprep.subr.bf16.mxu0 %v14138_v1 }
0x20c8   :  { %12032 = vmatpush3.bf16.xpose.msra.mxu1 %v5826_v60  ;;  %12033 = vmatprep.mubr.msk.bf16.mxu1 %vm14139_vm0, %v14138_v1  ;;  %v6503_v62 = vpop.permute.xlu0 %6502 }
0x20c9   :  { %12037 = vmatprep.subr.bf16.mxu1 %v14138_v1  ;;  %v6508_v2 = vsel %vm894_vm1, %v6503_v62, 0 }
0x20cd   :  { %12070 = vmatmul.mubr.msk.bf16.vlgmr.msra.gmra.mxu0 %vm894_vm1, %v6167_v25 }
0x20ce   :  { %12080 = vmatpush3.bf16.xpose.msra.mxu0 %v6285_v26  ;;  %12081 = vmatprep.mubr.msk.bf16.mxu0 %vm14139_vm0, %v14138_v1 }
0x20cf   :  { %12034 = vmatmul.mubr.msk.bf16.vlgmr.msra.gmra.mxu1 %vm894_vm1, %v5818_v44  ;;  %12091 = vmatprep.subr.bf16.mxu0 %v14138_v1 }
0x20d0   :  { %12039 = vmatprep.mubr.msk.bf16.mxu1 %vm14139_vm0, %v14138_v1 }
0x20d5   :  { %12082 = vmatmul.mubr.msk.bf16.vlgmr.msra.gmra.mxu0 %vm894_vm1, %v6277_v53 }
0x20d6   :  { %12092 = vmatpush3.bf16.xpose.msra.mxu0 %v6397_v63  ;;  %12093 = vmatprep.mubr.msk.bf16.mxu0 %vm14139_vm0, %v14138_v1 }
0x20d7   :  { %12103 = vmatprep.subr.bf16.mxu0 %v14138_v1 }
0x20dd   :  { %12094 = vmatmul.mubr.msk.bf16.vlgmr.msra.gmra.mxu0 %vm894_vm1, %v6390_v28 }
0x20de   :  { %12104 = vmatpush3.bf16.xpose.msra.mxu0 %v6508_v2  ;;  %12105 = vmatprep.mubr.msk.bf16.mxu0 %vm14139_vm0, %v14138_v1 }
0x20df   :  { %12115 = vmatprep.subr.bf16.mxu0 %v14138_v1 }
0x20e5   :  { %12106 = vmatmul.mubr.msk.bf16.vlgmr.msra.gmra.mxu0 %vm894_vm1, %v6501_v3 }
0x20e6   :  { %12131 = vmatprep.mubr.msk.bf16.mxu0 %vm14139_vm0, %v14138_v1 }
0x20e8   :  { %v5974_v4 = vpop.f32.mrf.mxu0 }
0x20e9   :  { %v5980_v6 = vmul.f32 0.17677669, %v5974_v4 }
0x20ea   :  { %v12047_v7 = vpop.f32.mrf.mxu0 }
0x20eb   :  { %v5981_v8 = vsel %vm942_vm3, %v5980_v6, -inf }
0x20ec   :  { %5982 = vmax.xlane.f32.xlu1 %v5981_v8  ;;  %v5977_v10 = vpop.f32.mrf.mxu0 }
0x20ee   :  { %v12048_v11 = vpop.f32.mrf.mxu0 }
0x2175   :  { %v5983_v15 = vpop.xlane.xlu1 %5982 }
0x2176   :  { %v5984_v57 = vsub.f32 %v5980_v6, %v5983_v15 }
0x2178   :  { %v5985_v42 = vmul.f32 1.442695, %v5984_v57 }
0x217a   :  { %13162 = vpow2.f32 %v5985_v42 }
0x2185   :  { %v6085_v16 = vpop.f32.mrf.mxu0 }
0x2186   :  { %v6091_v22 = vmul.f32 0.17677669, %v6085_v16 }
0x2187   :  { %v15280_v12 = vpop.f32.mrf.mxu1  ;;  %v12059_v9 = vpop.f32.mrf.mxu0 }
0x2188   :  { %v6092_v41 = vsel %vm942_vm3, %v6091_v22, -inf  ;;  %v15288_v63 = vpop.eup %13162 }
0x2189   :  { %v12029_v17 = vpop.f32.mrf.mxu1  ;;  %v6088_v37 = vpop.f32.mrf.mxu0  ;;  %v5987_v2 = vsel %vm942_vm3, %v15288_v63, 0.0 }
0x218b   :  { %v5813_v18 = vpop.f32.mrf.mxu1  ;;  %v12060_v19 = vpop.f32.mrf.mxu0 }
0x218d   :  { %v12030_v20 = vpop.f32.mrf.mxu1  ;;  %v6210_v21 = vpop.f32.mrf.mxu0 }
0x218e   :  { %v6216_v38 = vmul.f32 0.17677669, %v6210_v21 }
0x218f   :  { %v5862_v56 = vpop.f32.mrf.mxu1  ;;  %v12071_v23 = vpop.f32.mrf.mxu0 }
0x2190   :  { %v5868_v24 = vmul.f32 0.17677669, %v5862_v56  ;;  %v6217_v45 = vsel %vm942_vm3, %v6216_v38, -inf }
0x2191   :  { %v12035_v40 = vpop.f32.mrf.mxu1  ;;  %v6213_v25 = vpop.f32.mrf.mxu0 }
0x2192   :  { %v5869_v27 = vsel %vm942_vm3, %v5868_v24, -inf }
0x2193   :  { %v12072_v33 = vpop.f32.mrf.mxu0  ;;  %5870 = vmax.xlane.f32.xlu0 %v5869_v27  ;;  %v5865_v34 = vpop.f32.mrf.mxu1 }
0x2195   :  { %v12036_v46 = vpop.f32.mrf.mxu1  ;;  %v6321_v35 = vpop.f32.mrf.mxu0 }
0x2196   :  { %v6327_v39 = vmul.f32 0.17677669, %v6321_v35 }
0x2197   :  { %v12083_v36 = vpop.f32.mrf.mxu0  ;;  %6093 = vmax.xlane.f32.xlu0 %v6092_v41 }
0x2198   :  { %v6328_v43 = vsel %vm942_vm3, %v6327_v39, -inf }
0x2199   :  { %6329 = vmax.xlane.f32.xlu1 %v6328_v43  ;;  %v6324_v44 = vpop.f32.mrf.mxu0 }
0x219b   :  { %v12084_v48 = vpop.f32.mrf.mxu0  ;;  %6218 = vmax.xlane.f32.xlu0 %v6217_v45 }
0x219d   :  { %v6433_v50 = vpop.f32.mrf.mxu0 }
0x219e   :  { %v6439_v51 = vmul.f32 0.17677669, %v6433_v50 }
0x219f   :  { %v12095_v29 = vpop.f32.mrf.mxu0 }
0x21a0   :  { %v6440_v55 = vsel %vm942_vm3, %v6439_v51, -inf }
0x21a1   :  { %v6436_v58 = vpop.f32.mrf.mxu0  ;;  %6441 = vmax.xlane.f32.xlu0 %v6440_v55 }
0x21a3   :  { %v12096_v60 = vpop.f32.mrf.mxu0 }
0x21a5   :  { %v6544_v13 = vpop.f32.mrf.mxu0 }
0x21a6   :  { %v6550_v26 = vmul.f32 0.17677669, %v6544_v13 }
0x21a7   :  { %v12107_v14 = vpop.f32.mrf.mxu0 }
0x21a8   :  { %v6551_v53 = vsel %vm942_vm3, %v6550_v26, -inf }
0x21a9   :  { %6552 = vmax.xlane.f32.xlu1 %v6551_v53  ;;  %v6547_v62 = vpop.f32.mrf.mxu0 }
0x21ab   :  { %v12108_v28 = vpop.f32.mrf.mxu0 }
0x21ad   :  { %5988 = vadd.xlane.f32.xlu1 %v5987_v2 }
0x221c   :  { %v5871_v3 = vpop.xlane.xlu0 %5870 }
0x221d   :  { %v5872_v4 = vsub.f32 %v5868_v24, %v5871_v3 }
0x221f   :  { %v5873_v10 = vmul.f32 1.442695, %v5872_v4 }
0x2220   :  { %v6094_v6 = vpop.xlane.xlu0 %6093 }
0x2221   :  { %v6095_v7 = vsub.f32 %v6091_v22, %v6094_v6 }
0x2222   :  { %v6330_v8 = vpop.xlane.xlu1 %6329 }
0x2223   :  { %v6096_v11 = vmul.f32 1.442695, %v6095_v7  ;;  %v6331_v16 = vsub.f32 %v6327_v39, %v6330_v8 }
0x2224   :  { %v6219_v9 = vpop.xlane.xlu0 %6218 }
0x2225   :  { %13164 = vpow2.f32 %v6096_v11  ;;  %v6220_v17 = vsub.f32 %v6216_v38, %v6219_v9  ;;  %v6332_v37 = vmul.f32 1.442695, %v6331_v16 }
0x2226   :  { %13166 = vpow2.f32 %v5873_v10 }
0x2227   :  { %v6221_v18 = vmul.f32 1.442695, %v6220_v17 }
0x2229   :  { %13168 = vpow2.f32 %v6221_v18 }
0x222a   :  { %13170 = vpow2.f32 %v6332_v37  ;;  %v6442_v25 = vpop.xlane.xlu0 %6441 }
0x222b   :  { %v6443_v22 = vsub.f32 %v6439_v51, %v6442_v25  ;;  %v12823_v25 = vld [vmem:[#allocation34 + $0x30] sm:$0xff]  }
0x222d   :  { %v6444_v27 = vmul.f32 1.442695, %v6443_v22 }
0x222f   :  { %13172 = vpow2.f32 %v6444_v27 }
0x2232   :  { %v15292_v19 = vpop.eup %13164  ;;  %v6553_v33 = vpop.xlane.xlu1 %6552 }
0x2233   :  { %v6098_v20 = vsel %vm942_vm3, %v15292_v19, 0.0  ;;  %v13167_v21 = vpop.eup %13166  ;;  %v6554_v34 = vsub.f32 %v6550_v26, %v6553_v33 }
0x2234   :  { %6099 = vadd.xlane.f32.xlu0 %v6098_v20  ;;  %v5875_v23 = vsel %vm942_vm3, %v13167_v21, 0.0 }
0x2235   :  { %v6555_v57 = vmul.f32 1.442695, %v6554_v34 }
0x2236   :  { %v15296_v56 = vpop.eup %13168  ;;  %v5989_v43 = vpop.xlane.xlu1 %5988 }
0x2237   :  { %v6223_v15 = vsel %vm942_vm3, %v15296_v56, 0.0  ;;  %v15301_v24 = vpop.eup %13170  ;;  %13174 = vpow2.f32 %v6555_v57 }
0x2238   :  { %5876 = vadd.xlane.f32.xlu0 %v5875_v23  ;;  %6224 = vadd.xlane.f32.xlu1 %v6223_v15  ;;  %v6334_v40 = vsel %vm942_vm3, %v15301_v24, 0.0 }
0x223c   :  { %6335 = vadd.xlane.f32.xlu1 %v6334_v40  ;;  %v15311_v46 = vpop.eup %13172  ;;  %v12822_v40 = vld [vmem:[#allocation34 + $0x38] sm:$0xff]  }
0x223d   :  { %v6446_v35 = vsel %vm942_vm3, %v15311_v46, 0.0  ;;  %12116 = vmatpush3.bf16.msra.mxu0 %v12822_v40 }
0x223e   :  { %12117 = vmatprep.subr.bf16.mxu0 %v14138_v1 }
0x2241   :  { %12118 = vmatpush3.bf16.msra.mxu0 %v12823_v25  ;;  %v10967_v25 = vld [vmem:[#allocation35] ss:$0 sm:$0xff] }
0x2242   :  { %12119 = vmatprep.subr.bf16.mxu0 %v14138_v1 }
0x2244   :  { %v15315_v38 = vpop.eup %13174 }
0x2245   :  { %v6557_v39 = vsel %vm942_vm3, %v15315_v38, 0.0 }
0x224d   :  { %5993 = vrot.lane.b32.xlu1 %v15217_v47, %s14117_s4 }
0x224e   :  { %5882 = vrot.lane.b32.xlu0 %v15217_v47, %s14140_s25 }
0x2251   :  { %6104 = vrot.lane.b32.xlu1 %v15217_v47, %s14097_s21  ;;  %v5706_v47 = vadd.f32 %v15275_v54, %v15212_v5 }
0x2253   :  { %v6169_v41 = vpack.c.bf16 %v5706_v47, %v5706_v47 }
0x2255   :  { %v6233_v2 = vsel %vm958_vm2, %v6169_v41, 0 }
0x226d   :  { %6447 = vadd.xlane.f32.xlu0 %v6446_v35 }
0x2275   :  { %6558 = vadd.xlane.f32.xlu1 %v6557_v39 }
0x2283   :  { %6341 = vrot.lane.b32.xlu0 %v6169_v41, %s14140_s25 }
0x2286   :  { %6452 = vrot.lane.b32.xlu1 %v6169_v41, %s14117_s4 }
0x2287   :  { %6563 = vrot.lane.b32.xlu0 %v6169_v41, %s14097_s21 }
0x22bd   :  { %v6100_v36 = vpop.xlane.xlu0 %6099 }
0x22c1   :  { %v5877_v42 = vpop.xlane.xlu0 %5876  ;;  %v6225_v45 = vpop.xlane.xlu1 %6224 }
0x22c2   :  { %13176 = vrcp.f32 %v5877_v42 }
0x22c3   :  { %13178 = vrcp.f32 %v5989_v43 }
0x22c4   :  { %13180 = vrcp.f32 %v6100_v36 }
0x22c5   :  { %v5883_v44 = vpop.permute.xlu0 %5882  ;;  %v6336_v5 = vpop.xlane.xlu1 %6335  ;;  %13182 = vrcp.f32 %v6225_v45 }
0x22c6   :  { %v5888_v48 = vsel %vm958_vm2, %v5883_v44, 0  ;;  %13184 = vrcp.f32 %v6336_v5  ;;  %v12825_v5 = vld [vmem:[#allocation34 + $0x20] sm:$0xff]  }
0x22c7   :  { %12038 = vmatpush3.bf16.msra.mxu1 %v5888_v48  ;;  %v12824_v48 = vld [vmem:[#allocation34 + $0x28] sm:$0xff]  }
0x22c8   :  { %12049 = vmatprep.subr.bf16.mxu1 %v14138_v1  ;;  %12120 = vmatpush3.bf16.msra.mxu0 %v12824_v48  ;;  %v12833_v48 = vld [vmem:[#allocation40 + $0x60] ss:$8 sps:$4 sm:$0xff]  }
0x22c9   :  { %v5994_v51 = vpop.permute.xlu1 %5993  ;;  %12121 = vmatprep.subr.bf16.mxu0 %v14138_v1 }
0x22ca   :  { %v5999_v58 = vsel %vm958_vm2, %v5994_v51, 0 }
0x22cc   :  { %12122 = vmatpush3.bf16.msra.mxu0 %v12825_v5  ;;  %v12838_v5 = vld [vmem:[#allocation40 + $0x54] ss:$8 sps:$4 sm:$0xff]  }
0x22cd   :  { %v6105_v13 = vpop.permute.xlu1 %6104  ;;  %12123 = vmatprep.subr.bf16.mxu0 %v14138_v1 }
0x22ce   :  { %v6110_v53 = vsel %vm958_vm2, %v6105_v13, 0 }
0x22cf   :  { %v13177_v54 = vpop.eup %13176 }
0x22d0   :  { %v5879_v50 = vmul.f32 %v13177_v54, %v13167_v21  ;;  %v13179_v55 = vpop.eup %13178  ;;  %v12826_v54 = vld [vmem:[#allocation34 + $0x18] sm:$0xff]  }
0x22d1   :  { %v5991_v60 = vmul.f32 %v13179_v55, %v15288_v63  ;;  %v13181_v14 = vpop.eup %13180  ;;  %12124 = vmatpush3.bf16.msra.mxu0 %v12826_v54  ;;  %v12827_v55 = vld [vmem:[#allocation34 + $0x10] sm:$0xff]  }
0x22d2   :  { %v5880_v29 = vpack.c.bf16 %v5879_v50, %v5879_v50  ;;  %v6102_v62 = vmul.f32 %v13181_v14, %v15292_v19  ;;  %v13183_v63 = vpop.eup %13182  ;;  %12125 = vmatprep.subr.bf16.mxu0 %v14138_v1  ;;  %v12829_v14 = vld [vmem:[#allocation34] sm:$0xff]  }
0x22d3   :  { %v5992_v26 = vpack.c.bf16 %v5991_v60, %v5991_v60  ;;  %v6227_v3 = vmul.f32 %v13183_v63, %v15296_v56  ;;  %v13185_v6 = vpop.eup %13184  ;;  %v12828_v60 = vld [vmem:[#allocation34 + $0x8] sm:$0xff]   ;;  %v12836_v54 = vld [vmem:[#allocation40 + $0x50] ss:$8 sps:$4 sm:$0xff]  }
0x22d4   :  { %12040 = vmatmul.mubr.msk.bf16.vlgmr.msra.gmra.mxu1 %vm942_vm3, %v5880_v29  ;;  %v6103_v28 = vpack.c.bf16 %v6102_v62, %v6102_v62  ;;  %v6338_v8 = vmul.f32 %v13185_v6, %v15301_v24 }
0x22d5   :  { %12050 = vmatpush3.bf16.msra.mxu1 %v5999_v58  ;;  %12051 = vmatprep.mubr.msk.bf16.mxu1 %vm14139_vm0, %v14138_v1  ;;  %v6228_v4 = vpack.c.bf16 %v6227_v3, %v6227_v3 }
0x22d6   :  { %12061 = vmatprep.subr.bf16.mxu1 %v14138_v1  ;;  %v6339_v16 = vpack.c.bf16 %v6338_v8, %v6338_v8  ;;  %12126 = vmatpush3.bf16.msra.mxu0 %v12827_v55  ;;  %v12842_v55 = vld [vmem:[#allocation40 + $0x30] ss:$8 sps:$4 sm:$0xff]  }
0x22d7   :  { %12127 = vmatprep.subr.bf16.mxu0 %v14138_v1 }
0x22da   :  { %12128 = vmatpush3.bf16.msra.mxu0 %v12828_v60  ;;  %v12845_v60 = vld [vmem:[#allocation40 + $0x20] ss:$8 sps:$4 sm:$0xff]  }
0x22db   :  { %12129 = vmatprep.subr.bf16.mxu0 %v14138_v1 }
0x22dc   :  { %12052 = vmatmul.mubr.msk.bf16.vlgmr.msra.gmra.mxu1 %vm942_vm3, %v5992_v26 }
0x22dd   :  { %12062 = vmatpush3.bf16.msra.mxu1 %v6110_v53  ;;  %12063 = vmatprep.mubr.msk.bf16.mxu1 %vm14139_vm0, %v14138_v1 }
0x22de   :  { %12073 = vmatprep.subr.bf16.mxu1 %v14138_v1  ;;  %12130 = vmatpush3.bf16.msra.mxu0 %v12829_v14  ;;  %v12853_v14 = vld [vmem:[#allocation40 + $0x4] ss:$8 sps:$4 sm:$0xff]  }
0x22e4   :  { %12064 = vmatmul.mubr.msk.bf16.vlgmr.msra.gmra.mxu1 %vm942_vm3, %v6103_v28 }
0x22e5   :  { %12074 = vmatpush3.bf16.msra.mxu1 %v6233_v2  ;;  %12075 = vmatprep.mubr.msk.bf16.mxu1 %vm14139_vm0, %v14138_v1 }
0x22e6   :  { %12085 = vmatprep.subr.bf16.mxu1 %v14138_v1 }
0x22ec   :  { %12076 = vmatmul.mubr.msk.bf16.vlgmr.msra.gmra.mxu1 %vm942_vm3, %v6228_v4 }
0x22ed   :  { %12087 = vmatprep.mubr.msk.bf16.mxu1 %vm14139_vm0, %v14138_v1 }
0x22f6   :  { %v6448_v7 = vpop.xlane.xlu0 %6447 }
0x22f7   :  { %13186 = vrcp.f32 %v6448_v7 }
0x22fa   :  { %v6342_v10 = vpop.permute.xlu0 %6341 }
0x22fb   :  { %v6347_v11 = vsel %vm958_vm2, %v6342_v10, 0 }
0x22fc   :  { %12086 = vmatpush3.bf16.msra.mxu1 %v6347_v11 }
0x22fd   :  { %12097 = vmatprep.subr.bf16.mxu1 %v14138_v1 }
0x22fe   :  { %v6559_v9 = vpop.xlane.xlu1 %6558  ;;  %v6564_v20 = vpop.permute.xlu0 %6563 }
0x22ff   :  { %13188 = vrcp.f32 %v6559_v9  ;;  %12088 = vmatmul.mubr.msk.bf16.vlgmr.msra.gmra.mxu1 %vm942_vm3, %v6339_v16  ;;  %v6569_v56 = vsel %vm958_vm2, %v6564_v20, 0 }
0x2300   :  { %12099 = vmatprep.mubr.msk.bf16.mxu1 %vm14139_vm0, %v14138_v1 }
0x2302   :  { %v6453_v17 = vpop.permute.xlu1 %6452 }
0x2303   :  { %v6458_v37 = vsel %vm958_vm2, %v6453_v17, 0 }
0x2304   :  { %v13187_v18 = vpop.eup %13186  ;;  %12098 = vmatpush3.bf16.msra.mxu1 %v6458_v37 }
0x2305   :  { %v6450_v19 = vmul.f32 %v13187_v18, %v15311_v46  ;;  %12109 = vmatprep.subr.bf16.mxu1 %v14138_v1 }
0x2307   :  { %v6451_v21 = vpack.c.bf16 %v6450_v19, %v6450_v19 }
0x2309   :  { %12100 = vmatmul.mubr.msk.bf16.vlgmr.msra.gmra.mxu1 %vm942_vm3, %v6451_v21 }
0x230a   :  { %12110 = vmatpush3.bf16.msra.mxu1 %v6569_v56  ;;  %12111 = vmatprep.mubr.msk.bf16.mxu1 %vm14139_vm0, %v14138_v1 }
0x230c   :  { %v13189_v23 = vpop.eup %13188 }
0x230d   :  { %v6561_v15 = vmul.f32 %v13189_v23, %v15315_v38 }
0x230f   :  { %v6562_v24 = vpack.c.bf16 %v6561_v15, %v6561_v15 }
0x2311   :  { %12112 = vmatmul.mubr.msk.bf16.vlgmr.msra.gmra.mxu1 %vm942_vm3, %v6562_v24 }
0x2312   :  { %6922 = vmatprep.mubr.bf16.mxu1 %v14137_v0 }
0x2394   :  { %v5924_v22 = vpop.f32.mrf.mxu1 }
0x2396   :  { %v12041_v27 = vpop.f32.mrf.mxu1 }
0x2398   :  { %v5927_v33 = vpop.f32.mrf.mxu1 }
0x239a   :  { %v12042_v34 = vpop.f32.mrf.mxu1 }
0x239c   :  { %v6035_v57 = vpop.f32.mrf.mxu1 }
0x239e   :  { %v12053_v46 = vpop.f32.mrf.mxu1 }
0x23a0   :  { %v6038_v35 = vpop.f32.mrf.mxu1 }
0x23a2   :  { %v12054_v38 = vpop.f32.mrf.mxu1 }
0x23a3   :  { %v12830_v38 = vld [vmem:[#allocation40 + $0x70] ss:$8 sps:$4 sm:$0xff]  }
0x23a4   :  { %v6146_v39 = vpop.f32.mrf.mxu1 }
0x23a6   :  { %v12065_v47 = vpop.f32.mrf.mxu1 }
0x23a8   :  { %v6149_v41 = vpop.f32.mrf.mxu1 }
0x23aa   :  { %v12066_v36 = vpop.f32.mrf.mxu1 }
0x23ac   :  { %v6269_v42 = vpop.f32.mrf.mxu1 }
0x23ae   :  { %v12077_v43 = vpop.f32.mrf.mxu1 }
0x23b0   :  { %v6272_v44 = vpop.f32.mrf.mxu1 }
0x23b2   :  { %v12078_v45 = vpop.f32.mrf.mxu1 }
0x23b3   :  { %v12835_v45 = vld [vmem:[#allocation40 + $0x64] ss:$8 sps:$4 sm:$0xff]  }
0x23bf   :  { %v6383_v50 = vpop.f32.mrf.mxu1 }
0x23c0   :  { %v12545_v51 = vpack.i.bf16 %v6383_v50, %v5924_v22  ;;  %v12841_v50 = vld [vmem:[#allocation40 + $0x44] ss:$8 sps:$4 sm:$0xff]  }
0x23c1   :  { %v12089_v29 = vpop.f32.mrf.mxu1 }
0x23c2   :  { %12546 = vrot.lane.b32.xlu0 %v12545_v51, %s14097_s21  ;;  %v12839_v51 = vld [vmem:[#allocation40 + $0x40] ss:$8 sps:$4 sm:$0xff]   ;;  %v12844_v29 = vld [vmem:[#allocation40 + $0x34] ss:$8 sps:$4 sm:$0xff]  }
0x23c3   :  { %v6386_v58 = vpop.f32.mrf.mxu1 }
0x23c4   :  { %v12847_v58 = vld [vmem:[#allocation40 + $0x24] ss:$8 sps:$4 sm:$0xff]  }
0x23c5   :  { %v12090_v13 = vpop.f32.mrf.mxu1 }
0x23c6   :  { %v12848_v13 = vld [vmem:[#allocation40 + $0x10] ss:$8 sps:$4 sm:$0xff]  }
0x23c9   :  { %v6494_v26 = vpop.f32.mrf.mxu1 }
0x23ca   :  { %v12550_v53 = vpack.i.bf16 %v6494_v26, %v6035_v57  ;;  %v12850_v26 = vld [vmem:[#allocation40 + $0x14] ss:$8 sps:$4 sm:$0xff]  }
0x23cb   :  { %v12101_v62 = vpop.f32.mrf.mxu1 }
0x23cc   :  { %12551 = vrot.lane.b32.xlu1 %v12550_v53, %s14117_s4  ;;  %v12851_v53 = vld [vmem:[#allocation40] ss:$8 sps:$4 sm:$0xff]  }
0x23cd   :  { %v6497_v28 = vpop.f32.mrf.mxu1  ;;  %v12854_v62 = vld [vmem:[#allocation43 + $0x78] sm:$0xff]  }
0x23ce   :  { %v12855_v28 = vld [vmem:[#allocation43 + $0x38] sm:$0xff]   ;;  %11447 = vmatprep.subr.bf16.mxu0 %v12854_v62 }
0x23cf   :  { %v12102_v63 = vpop.f32.mrf.mxu1 }
0x23d0   :  { %v12856_v63 = vld [vmem:[#allocation43 + $0x70] sm:$0xff]  }
0x23d1   :  { %v6605_v2 = vpop.f32.mrf.mxu1 }
0x23d2   :  { %v12555_v3 = vpack.i.bf16 %v6605_v2, %v6146_v39  ;;  %v12832_v39 = vld [vmem:[#allocation40 + $0x74] ss:$8 sps:$4 sm:$0xff]  }
0x23d3   :  { %v12113_v4 = vpop.f32.mrf.mxu1  ;;  %6890 = vmatprep.subr.bf16.mxu1 %v12832_v39  ;;  %v12857_v2 = vld [vmem:[#allocation43 + $0x30] sm:$0xff]  }
0x23d4   :  { %12556 = vrot.lane.b32.xlu0 %v12555_v3, %s14140_s25  ;;  %6891 = vmatpush1.bf16.msra.mxu1 %v12830_v38  ;;  %v12858_v3 = vld [vmem:[#allocation43 + $0x68] sm:$0xff]   ;;  %v6797_v38 = vld [vmem:[#allocation41] sm:$0x3] }
0x23d5   :  { %v6608_v6 = vpop.f32.mrf.mxu1  ;;  %6892 = vmatprep.subr.bf16.mxu1 %v12835_v45  ;;  %v12859_v4 = vld [vmem:[#allocation43 + $0x28] sm:$0xff]  }
0x23d6   :  { %v12860_v6 = vld [vmem:[#allocation43 + $0x60] sm:$0xff]  }
0x23d7   :  { %v12114_v7 = vpop.f32.mrf.mxu1 }
0x23d8   :  { %6893 = vmatpush1.bf16.msra.mxu1 %v12833_v48  ;;  %v12861_v7 = vld [vmem:[#allocation43 + $0x20] sm:$0xff]  }
0x23d9   :  { %6894 = vmatprep.subr.bf16.mxu1 %v12838_v5 }
0x23dc   :  { %6895 = vmatpush1.bf16.msra.mxu1 %v12836_v54 }
0x23dd   :  { %6896 = vmatprep.subr.bf16.mxu1 %v12841_v50 }
0x23e0   :  { %6897 = vmatpush1.bf16.msra.mxu1 %v12839_v51 }
0x23e1   :  { %6898 = vmatprep.subr.bf16.mxu1 %v12844_v29 }
0x23e4   :  { %6899 = vmatpush1.bf16.msra.mxu1 %v12842_v55 }
0x23e5   :  { %6900 = vmatprep.subr.bf16.mxu1 %v12847_v58  ;;  %v10994_v58 = vld [vmem:[%s15901_s22] ss:$0 sm:$0xff] }
0x23e8   :  { %6901 = vmatpush1.bf16.msra.mxu1 %v12845_v60 }
0x23e9   :  { %6902 = vmatprep.subr.bf16.mxu1 %v12850_v26 }
0x23ec   :  { %6903 = vmatpush1.bf16.msra.mxu1 %v12848_v13 }
0x23ed   :  { %6904 = vmatprep.subr.bf16.mxu1 %v12853_v14 }
0x23f0   :  { %6905 = vmatpush1.bf16.msra.mxu1 %v12851_v53 }
0x2434   :  { %v12547_v8 = vpop.permute.xlu0 %12546 }
0x2435   :  { %v12549_v11 = vunpack.i.h.bf16 %v12547_v8  ;;  %v12548_v16 = vunpack.i.l.bf16 %v12547_v8  ;;  %v12862_v8 = vld [vmem:[#allocation43 + $0x58] sm:$0xff]  }
0x2437   :  { %v6623_v18 = vsel %vm894_vm1, %v6269_v42, %v12549_v11  ;;  %v6164_v19 = vsel %vm894_vm1, %v15280_v12, %v12548_v16 }
0x243e   :  { %v12552_v10 = vpop.permute.xlu1 %12551 }
0x243f   :  { %v12554_v9 = vunpack.i.h.bf16 %v12552_v10  ;;  %v12553_v17 = vunpack.i.l.bf16 %v12552_v10  ;;  %v12863_v10 = vld [vmem:[#allocation43 + $0x18] sm:$0xff]  }
0x2441   :  { %v6624_v56 = vsel %vm1351_vm4, %v6623_v18, %v12554_v9  ;;  %v6165_v23 = vsel %vm1351_vm4, %v6164_v19, %v12553_v17 }
0x2446   :  { %v12557_v37 = vpop.permute.xlu0 %12556 }
0x2447   :  { %v12559_v20 = vunpack.i.h.bf16 %v12557_v37  ;;  %v12558_v21 = vunpack.i.l.bf16 %v12557_v37 }
0x2449   :  { %v6625_v15 = vsel %vm1353_vm5, %v6624_v56, %v12559_v20  ;;  %v6166_v24 = vsel %vm1353_vm5, %v6165_v23, %v12558_v21  ;;  %v10976_v21 = vld [vmem:[#allocation37] ss:$0 sm:$0xff] }
0x244a   :  { %v6643_v40 = vpack.c.bf16 %v6625_v15, %v6166_v24  ;;  %v10977_v24 = vld [vmem:[#allocation38] ss:$0 sm:$0xff] }
0x244c   :  { %12132 = vmatmul.mubr.bf16.vlgmr.msra.gmra.mxu0 %v6643_v40 }
0x244d   :  { %11448 = vmatpush3.bf16.msra.mxu0 %v12855_v28 }
0x244e   :  { %11449 = vmatprep.subr.bf16.mxu0 %v12856_v63 }
0x2451   :  { %11450 = vmatpush3.bf16.msra.mxu0 %v12857_v2 }
0x2452   :  { %11451 = vmatprep.subr.bf16.mxu0 %v12858_v3  ;;  %v12870_v3 = vld [vmem:[#allocation22 + $0x168] ss:$12 sps:$4 sm:$0xff]  }
0x2455   :  { %11452 = vmatpush3.bf16.msra.mxu0 %v12859_v4  ;;  %v12872_v4 = vld [vmem:[#allocation22 + $0x16c] ss:$12 sps:$4 sm:$0xff]  }
0x2456   :  { %11453 = vmatprep.subr.bf16.mxu0 %v12860_v6  ;;  %v12873_v6 = vld [vmem:[#allocation22 + $0x170] ss:$12 sps:$4 sm:$0xff]   ;;  %7337 = vmatprep.subr.bf16.mxu1 %v12872_v4 }
0x2459   :  { %11454 = vmatpush3.bf16.msra.mxu0 %v12861_v7 }
0x245a   :  { %11455 = vmatprep.subr.bf16.mxu0 %v12862_v8 }
0x245d   :  { %11456 = vmatpush3.bf16.msra.mxu0 %v12863_v10 }
0x250c   :  { %v6732_v22 = vpop.f32.mrf.mxu0 }
0x250d   :  { %v6733_v27 = vadd.f32 %v10967_v25, %v6732_v22 }
0x250e   :  { %v12133_v33 = vpop.f32.mrf.mxu0 }
0x250f   :  { %v6739_v34 = vadd.f32 %v6733_v27, %v15199_v59  ;;  %v12864_v33 = vld [vmem:[#allocation43 + $0x50] sm:$0xff]  }
0x2510   :  { %v6735_v57 = vpop.f32.mrf.mxu0  ;;  %11457 = vmatprep.subr.bf16.mxu0 %v12864_v33  ;;  %v12892_v33 = vld [vmem:[#allocation22 + $0xf4] ss:$12 sps:$4 sm:$0xff]  }
0x2511   :  { %v6736_v12 = vadd.f32 %v10967_v25, %v6735_v57  ;;  %6743 = vadd.xlane.f32.xlu1 %v6739_v34  ;;  %v12866_v57 = vld [vmem:[#allocation43 + $0x48] sm:$0xff]  }
0x2512   :  { %v12134_v46 = vpop.f32.mrf.mxu0 }
0x2513   :  { %v6740_v35 = vadd.f32 %v6736_v12, %v15201_v61  ;;  %v12867_v12 = vld [vmem:[#allocation43 + $0x8] sm:$0xff]   ;;  %v12868_v46 = vld [vmem:[#allocation43 + $0x40] sm:$0xff]  }
0x2515   :  { %6745 = vadd.xlane.f32.xlu0 %v6740_v35 }
0x259a   :  { %v6744_v47 = vpop.xlane.xlu1 %6743 }
0x259b   :  { %v6747_v41 = vmul.f32 0.0078125, %v6744_v47  ;;  %v6807_v47 = vrot.slane %v6797_v38, %v14497_v31 }
0x259d   :  { %v15382_v36 = vsub.f32 %v6739_v34, %v6747_v41  ;;  %v12865_v34 = vld [vmem:[#allocation43 + $0x10] sm:$0xff]   ;;  %v6803_v41 = vrot.slane %v6797_v38, %v14500_v32  ;;  %v12900_v38 = vld [vmem:[#allocation22 + $0xc4] ss:$12 sps:$4 sm:$0xff]  }
0x259e   :  { %v6746_v42 = vpop.xlane.xlu0 %6745  ;;  %11458 = vmatpush3.bf16.msra.mxu0 %v12865_v34  ;;  %v12890_v34 = vld [vmem:[#allocation22 + $0xf0] ss:$12 sps:$4 sm:$0xff]  }
0x259f   :  { %v6748_v43 = vmul.f32 0.0078125, %v6746_v42  ;;  %v6751_v59 = vmul.f32 %v15382_v36, %v15382_v36  ;;  %11459 = vmatprep.subr.bf16.mxu0 %v12866_v57  ;;  %v12893_v57 = vld [vmem:[#allocation22 + $0xf8] ss:$12 sps:$4 sm:$0xff]  }
0x25a1   :  { %v15386_v44 = vsub.f32 %v6740_v35, %v6748_v43  ;;  %6753 = vadd.xlane.f32.xlu0 %v6751_v59  ;;  %v12869_v35 = vld [vmem:[#allocation43] sm:$0xff]  }
0x25a2   :  { %11460 = vmatpush3.bf16.msra.mxu0 %v12867_v12  ;;  %v12894_v12 = vld [vmem:[#allocation22 + $0xd8] ss:$12 sps:$4 sm:$0xff]  }
0x25a3   :  { %v6752_v61 = vmul.f32 %v15386_v44, %v15386_v44  ;;  %11461 = vmatprep.subr.bf16.mxu0 %v12868_v46  ;;  %v12896_v46 = vld [vmem:[#allocation22 + $0xdc] ss:$12 sps:$4 sm:$0xff]  }
0x25a5   :  { %6755 = vadd.xlane.f32.xlu1 %v6752_v61 }
0x25a6   :  { %11462 = vmatpush3.bf16.msra.mxu0 %v12869_v35  ;;  %v12897_v35 = vld [vmem:[#allocation22 + $0xe0] ss:$12 sps:$4 sm:$0xff]  }
0x25a7   :  { %12135 = vmatprep.subr.bf16.mxu0 %v14138_v1 }
0x262a   :  { %v6754_v11 = vpop.xlane.xlu0 %6753 }
0x262b   :  { %v6757_v16 = vmul.f32 0.0078125, %v6754_v11 }
0x262d   :  { %v6759_v9 = vadd.f32 1e-05, %v6757_v16 }
0x262e   :  { %v6756_v17 = vpop.xlane.xlu1 %6755 }
0x262f   :  { %13190 = vrsqrt.f32 %v6759_v9  ;;  %v6758_v37 = vmul.f32 0.0078125, %v6756_v17 }
0x2631   :  { %v6760_v18 = vadd.f32 1e-05, %v6758_v37 }
0x2633   :  { %13192 = vrsqrt.f32 %v6760_v18  ;;  %v12876_v18 = vld [vmem:[#allocation22 + $0x154] ss:$12 sps:$4 sm:$0xff]  }
0x263c   :  { %v13191_v19 = vpop.eup %13190 }
0x263d   :  { %v6763_v20 = vmul.f32 %v13191_v19, %v15382_v36  ;;  %v12874_v19 = vld [vmem:[#allocation22 + $0x150] ss:$12 sps:$4 sm:$0xff]  }
0x263f   :  { %v6771_v15 = vmul.f32 %v10976_v21, %v6763_v20  ;;  %v12877_v20 = vld [vmem:[#allocation22 + $0x158] ss:$12 sps:$4 sm:$0xff]  }
0x2640   :  { %v13193_v56 = vpop.eup %13192 }
0x2641   :  { %v6764_v23 = vmul.f32 %v13193_v56, %v15386_v44  ;;  %v6779_v25 = vadd.f32 %v10977_v24, %v6771_v15  ;;  %v12878_v56 = vld [vmem:[#allocation22 + $0x138] ss:$12 sps:$4 sm:$0xff]  }
0x2642   :  { %v12884_v15 = vld [vmem:[#allocation22 + $0x124] ss:$12 sps:$4 sm:$0xff]  }
0x2643   :  { %v6772_v40 = vmul.f32 %v10976_v21, %v6764_v23  ;;  %v12880_v21 = vld [vmem:[#allocation22 + $0x13c] ss:$12 sps:$4 sm:$0xff]   ;;  %v12881_v23 = vld [vmem:[#allocation22 + $0x140] ss:$12 sps:$4 sm:$0xff]  }
0x2645   :  { %v6780_v22 = vadd.f32 %v10977_v24, %v6772_v40  ;;  %v12882_v24 = vld [vmem:[#allocation22 + $0x120] ss:$12 sps:$4 sm:$0xff]   ;;  %v12885_v40 = vld [vmem:[#allocation22 + $0x128] ss:$12 sps:$4 sm:$0xff]  }
0x2647   :  { %v6798_v27 = vpack.c.bf16 %v6780_v22, %v6779_v25 }
0x2649   :  { %6923 = vmatmul.mubr.bf16.vlgmr.msra.gmra.mxu1 %v6798_v27  ;;  %v12889_v27 = vld [vmem:[#allocation22 + $0x110] ss:$12 sps:$4 sm:$0xff]  }
0x264a   :  { %7369 = vmatprep.mubr.bf16.mxu1 %v14137_v0  ;;  %7338 = vmatpush1.bf16.msra.mxu1 %v12870_v3 }
0x264b   :  { %7339 = vmatprep.subr.bf16.mxu1 %v12876_v18 }
0x264e   :  { %7340 = vmatpush1.bf16.msra.mxu1 %v12874_v19 }
0x264f   :  { %7341 = vmatprep.subr.bf16.mxu1 %v12880_v21 }
0x2652   :  { %7342 = vmatpush1.bf16.msra.mxu1 %v12878_v56 }
0x2653   :  { %7343 = vmatprep.subr.bf16.mxu1 %v12884_v15 }
0x2656   :  { %7344 = vmatpush1.bf16.msra.mxu1 %v12882_v24 }
0x2709   :  { %v6924_v39 = vpop.f32.mrf.mxu1 }
0x270a   :  { %v6925_v44 = vadd.f32 %v6924_v39, %v6803_v41  ;;  %v12898_v39 = vld [vmem:[#allocation22 + $0xc0] ss:$12 sps:$4 sm:$0xff]  }
0x270b   :  { %v6926_v36 = vpop.f32.mrf.mxu1 }
0x270c   :  { %v6927_v43 = vadd.f32 %v6926_v36, %v6807_v47  ;;  %v6933_v50 = vmax.f32 %v6925_v44, 0.0 }
0x270d   :  { %v6928_v42 = vpop.f32.mrf.mxu1 }
0x270e   :  { %v6929_v59 = vadd.f32 %v6928_v42, %v6803_v41  ;;  %v6934_v5 = vmax.f32 %v6927_v43, 0.0 }
0x270f   :  { %v6930_v61 = vpop.f32.mrf.mxu1 }
0x2710   :  { %v6931_v45 = vadd.f32 %v6930_v61, %v6807_v47  ;;  %v6935_v48 = vmax.f32 %v6929_v59, 0.0  ;;  %v12901_v47 = vld [vmem:[#allocation22 + $0xc8] ss:$12 sps:$4 sm:$0xff]  }
0x2712   :  { %v6936_v54 = vmax.f32 %v6931_v45, 0.0  ;;  %v6970_v29 = vpack.c.bf16 %v6935_v48, %v6933_v50  ;;  %v11011_v48 = vld [vmem:[#allocation44] ss:$0 sm:$0xff] }
0x2714   :  { %v6971_v51 = vpack.c.bf16 %v6936_v54, %v6934_v5 }
0x2716   :  { %7106 = vmatprep.mubr.bf16.mxu0 %v6971_v51  ;;  %v11012_v51 = vld [vmem:[#allocation46] ss:$0 sm:$0xff] }
0x2717   :  { %7107 = vmatmul.mubr.bf16.vlgmr.msra.gmra.mxu0 %v6970_v29 }
0x2718   :  { %12151 = vmatprep.mubr.msk.bf16.mxu0 %vm14139_vm0, %v14138_v1  ;;  %12136 = vmatpush3.bf16.msra.mxu0 %v12873_v6 }
0x2719   :  { %12137 = vmatprep.subr.bf16.mxu0 %v14138_v1 }
0x271c   :  { %12138 = vmatpush3.bf16.msra.mxu0 %v12877_v20 }
0x271d   :  { %12139 = vmatprep.subr.bf16.mxu0 %v14138_v1 }
0x2720   :  { %12140 = vmatpush3.bf16.msra.mxu0 %v12881_v23 }
0x2721   :  { %12141 = vmatprep.subr.bf16.mxu0 %v14138_v1 }
0x2724   :  { %12142 = vmatpush3.bf16.msra.mxu0 %v12885_v40 }
0x2725   :  { %12143 = vmatprep.subr.bf16.mxu0 %v14138_v1 }
0x2728   :  { %12144 = vmatpush3.bf16.msra.mxu0 %v12889_v27 }
0x2729   :  { %12145 = vmatprep.subr.bf16.mxu0 %v14138_v1 }
0x272c   :  { %12146 = vmatpush3.bf16.msra.mxu0 %v12893_v57 }
0x272d   :  { %12147 = vmatprep.subr.bf16.mxu0 %v14138_v1 }
0x2730   :  { %12148 = vmatpush3.bf16.msra.mxu0 %v12897_v35 }
0x2731   :  { %12149 = vmatprep.subr.bf16.mxu0 %v14138_v1 }
0x2734   :  { %12150 = vmatpush3.bf16.msra.mxu0 %v12901_v47 }
0x2735   :  { %12179 = vmatprep.subr.bf16.mxu0 %v14138_v1 }
0x27d7   :  { %v11463_v55 = vpop.f32.mrf.mxu0 }
0x27d9   :  { %v11464_v60 = vpop.f32.mrf.mxu0 }
0x27da   :  { %v11465_v13 = vadd.f32 %v11464_v60, %v11463_v55 }
0x27db   :  { %v11466_v26 = vpop.f32.mrf.mxu0 }
0x27dc   :  { %v7109_v14 = vadd.f32 %v11465_v13, %v10994_v58  ;;  %v7191_v13 = vld [vmem:[#allocation23 + $0x3] sm:$0x7] }
0x27dd   :  { %v11467_v53 = vpop.f32.mrf.mxu0  ;;  %v7197_v4 = vrot.slane %v7191_v13, %v14500_v32 }
0x27de   :  { %v11468_v62 = vadd.f32 %v11467_v53, %v11466_v26  ;;  %v7115_v28 = vadd.f32 %v7109_v14, %v6779_v25  ;;  %v12888_v25 = vld [vmem:[#allocation22 + $0x10c] ss:$12 sps:$4 sm:$0xff]   ;;  %v7201_v26 = vrot.slane %v7191_v13, %v14497_v31 }
0x27df   :  { %7345 = vmatprep.subr.bf16.mxu1 %v12888_v25 }
0x27e0   :  { %v7112_v63 = vadd.f32 %v11468_v62, %v10994_v58  ;;  %7119 = vadd.xlane.f32.xlu0 %v7115_v28 }
0x27e2   :  { %v7116_v2 = vadd.f32 %v7112_v63, %v6780_v22  ;;  %v12886_v22 = vld [vmem:[#allocation22 + $0x108] ss:$12 sps:$4 sm:$0xff]   ;;  %v7205_v63 = vrot.slane %v7191_v13, %v14522_v49 }
0x27e3   :  { %7346 = vmatpush1.bf16.msra.mxu1 %v12886_v22 }
0x27e4   :  { %7121 = vadd.xlane.f32.xlu1 %v7116_v2  ;;  %7347 = vmatprep.subr.bf16.mxu1 %v12892_v33 }
0x27e7   :  { %7348 = vmatpush1.bf16.msra.mxu1 %v12890_v34 }
0x27e8   :  { %7349 = vmatprep.subr.bf16.mxu1 %v12896_v46 }
0x27eb   :  { %7350 = vmatpush1.bf16.msra.mxu1 %v12894_v12 }
0x27ec   :  { %7351 = vmatprep.subr.bf16.mxu1 %v12900_v38 }
0x27ef   :  { %7352 = vmatpush1.bf16.msra.mxu1 %v12898_v39 }
0x27f0   :  { %12155 = vmatprep.subr.bf16.mxu1 %v14138_v1 }
0x2869   :  { %v7120_v7 = vpop.xlane.xlu0 %7119 }
0x286a   :  { %v7123_v8 = vmul.f32 0.0078125, %v7120_v7 }
0x286c   :  { %v15400_v10 = vsub.f32 %v7115_v28, %v7123_v8 }
0x286d   :  { %v7122_v11 = vpop.xlane.xlu1 %7121 }
0x286e   :  { %v7124_v16 = vmul.f32 0.0078125, %v7122_v11  ;;  %v7127_v9 = vmul.f32 %v15400_v10, %v15400_v10 }
0x2870   :  { %v15404_v17 = vsub.f32 %v7116_v2, %v7124_v16  ;;  %7129 = vadd.xlane.f32.xlu0 %v7127_v9 }
0x2872   :  { %v7128_v37 = vmul.f32 %v15404_v17, %v15404_v17 }
0x2874   :  { %7131 = vadd.xlane.f32.xlu1 %v7128_v37 }
0x28f9   :  { %v7130_v41 = vpop.xlane.xlu0 %7129 }
0x28fa   :  { %v7133_v36 = vmul.f32 0.0078125, %v7130_v41 }
0x28fc   :  { %v7135_v42 = vadd.f32 1e-05, %v7133_v36 }
0x28fd   :  { %v7132_v43 = vpop.xlane.xlu1 %7131 }
0x28fe   :  { %13194 = vrsqrt.f32 %v7135_v42  ;;  %v7134_v59 = vmul.f32 0.0078125, %v7132_v43 }
0x2900   :  { %v7136_v44 = vadd.f32 1e-05, %v7134_v59 }
0x2902   :  { %13196 = vrsqrt.f32 %v7136_v44 }
0x290b   :  { %v13195_v61 = vpop.eup %13194 }
0x290c   :  { %v7139_v45 = vmul.f32 %v13195_v61, %v15400_v10 }
0x290e   :  { %v7147_v50 = vmul.f32 %v11011_v48, %v7139_v45 }
0x290f   :  { %v13197_v5 = vpop.eup %13196 }
0x2910   :  { %v7140_v54 = vmul.f32 %v13197_v5, %v15404_v17  ;;  %v15418_v55 = vadd.f32 %v11012_v51, %v7147_v50 }
0x2912   :  { %v7148_v29 = vmul.f32 %v11011_v48, %v7140_v54 }
0x2914   :  { %v15420_v58 = vadd.f32 %v11012_v51, %v7148_v29 }
0x2916   :  { %v7192_v60 = vpack.c.bf16 %v15420_v58, %v15418_v55 }
0x2918   :  { %7370 = vmatmul.mubr.bf16.vlgmr.msra.gmra.mxu1 %v7192_v60  ;;  %12152 = vmatmul.mubr.bf16.vlgmr.msra.gmra.mxu0 %v7192_v60 }
0x2919   :  { %12157 = vmatprep.mubr.msk.bf16.mxu1 %vm14139_vm0, %v14138_v1  ;;  %12181 = vmatprep.mubr.msk.bf16.mxu0 %vm14139_vm0, %v14138_v1 }
0x29d8   :  { %v7371_v14 = vpop.f32.mrf.mxu1  ;;  %v7414_v53 = vpop.f32.mrf.mxu0 }
0x29d9   :  { %v7415_v10 = vadd.f32 %v7414_v53, %v7205_v63  ;;  %v7372_v16 = vadd.f32 %v7371_v14, %v7197_v4 }
0x29da   :  { %v7373_v62 = vpop.f32.mrf.mxu1  ;;  %v12153_v28 = vpop.f32.mrf.mxu0 }
0x29db   :  { %v7374_v2 = vadd.f32 %v7373_v62, %v7201_v26  ;;  %v15435_v9 = vpack.c.bf16 %v7415_v10, %v7415_v10  ;;  %v7421_v17 = vpack.c.bf16 %v7372_v16, %v7372_v16 }
0x29dc   :  { %v7417_v3 = vpop.f32.mrf.mxu0  ;;  %v7375_v18 = vpop.f32.mrf.mxu1 }
0x29dd   :  { %v7422_v6 = vpack.c.bf16 %v7374_v2, %v7374_v2  ;;  %v15431_v7 = vadd.f32 %v7417_v3, %v7205_v63  ;;  %v7487_v37 = vsel %vm958_vm2, %v15435_v9, 0  ;;  %v7376_v40 = vadd.f32 %v7375_v18, %v7197_v4 }
0x29de   :  { %v12154_v8 = vpop.f32.mrf.mxu0  ;;  %v7377_v19 = vpop.f32.mrf.mxu1 }
0x29df   :  { %v7428_v11 = vsel %vm894_vm1, %v7422_v6, 0  ;;  %v7880_v25 = vpack.c.bf16 %v7376_v40, %v7376_v40  ;;  %v7378_v12 = vadd.f32 %v7377_v19, %v7201_v26 }
0x29e0   :  { %12156 = vmatpush3.bf16.xpose.msra.mxu1 %v7428_v11 }
0x29e1   :  { %12161 = vmatprep.subr.bf16.mxu1 %v14138_v1  ;;  %v7881_v46 = vpack.c.bf16 %v7378_v12, %v7378_v12 }
0x29e3   :  { %v7887_v5 = vsel %vm894_vm1, %v7881_v46, 0 }
0x29e7   :  { %12158 = vmatmul.mubr.msk.bf16.vlgmr.msra.gmra.mxu1 %vm894_vm1, %v7421_v17 }
0x29e8   :  { %12162 = vmatpush3.bf16.msra.mxu1 %v7487_v37  ;;  %12163 = vmatprep.mubr.msk.bf16.mxu1 %vm14139_vm0, %v14138_v1 }
0x29e9   :  { %12167 = vmatprep.subr.bf16.mxu1 %v14138_v1 }
0x2aa7   :  { %v7464_v20 = vpop.f32.mrf.mxu1 }
0x2aa8   :  { %v7470_v21 = vmul.f32 0.17677669, %v7464_v20 }
0x2aa9   :  { %v12159_v56 = vpop.f32.mrf.mxu1 }
0x2aaa   :  { %v7471_v23 = vsel %vm942_vm3, %v7470_v21, -inf }
0x2aab   :  { %7472 = vmax.xlane.f32.xlu0 %v7471_v23  ;;  %v7467_v15 = vpop.f32.mrf.mxu1 }
0x2aad   :  { %v12160_v24 = vpop.f32.mrf.mxu1 }
0x2ac1   :  { %7533 = vrot.lane.b32.xlu0 %v7422_v6, %s14140_s25 }
0x2ac5   :  { %7643 = vrot.lane.b32.xlu0 %v7421_v17, %s14117_s4 }
0x2ac9   :  { %7754 = vrot.lane.b32.xlu0 %v7421_v17, %s14097_s21 }
0x2acd   :  { %7989 = vrot.lane.b32.xlu0 %v7880_v25, %s14140_s25 }
0x2ad1   :  { %8102 = vrot.lane.b32.xlu0 %v7880_v25, %s14117_s4 }
0x2ad5   :  { %8213 = vrot.lane.b32.xlu0 %v7880_v25, %s14097_s21 }
0x2b34   :  { %v7473_v22 = vpop.xlane.xlu0 %7472 }
0x2b35   :  { %v7474_v27 = vsub.f32 %v7470_v21, %v7473_v22 }
0x2b37   :  { %v7475_v33 = vmul.f32 1.442695, %v7474_v27 }
0x2b38   :  { %v7534_v41 = vpop.permute.xlu0 %7533 }
0x2b39   :  { %13198 = vpow2.f32 %v7475_v33  ;;  %v7539_v45 = vsel %vm894_vm1, %v7534_v41, 0 }
0x2b3c   :  { %v7644_v59 = vpop.permute.xlu0 %7643 }
0x2b40   :  { %v7755_v48 = vpop.permute.xlu0 %7754 }
0x2b44   :  { %v7990_v29 = vpop.permute.xlu0 %7989 }
0x2b46   :  { %v13199_v34 = vpop.eup %13198 }
0x2b47   :  { %v7477_v57 = vsel %vm942_vm3, %v13199_v34, 0.0 }
0x2b48   :  { %7478 = vadd.xlane.f32.xlu1 %v7477_v57  ;;  %v8103_v26 = vpop.permute.xlu0 %8102 }
0x2b4c   :  { %v8214_v53 = vpop.permute.xlu0 %8213 }
0x2b59   :  { %7530 = vrot.lane.b32.xlu1 %v7421_v17, %s14140_s25 }
0x2b5d   :  { %7645 = vrot.lane.b32.xlu1 %v7422_v6, %s14117_s4 }
0x2b61   :  { %7756 = vrot.lane.b32.xlu1 %v7422_v6, %s14097_s21 }
0x2b65   :  { %7992 = vrot.lane.b32.xlu1 %v7881_v46, %s14140_s25 }
0x2b69   :  { %8104 = vrot.lane.b32.xlu1 %v7881_v46, %s14117_s4 }
0x2b6d   :  { %8215 = vrot.lane.b32.xlu1 %v7881_v46, %s14097_s21 }
0x2bd1   :  { %v7479_v35 = vpop.xlane.xlu1 %7478 }
0x2bd2   :  { %13200 = vrcp.f32 %v7479_v35 }
0x2bd5   :  { %v7531_v38 = vpop.permute.xlu1 %7530 }
0x2bd9   :  { %v7646_v39 = vpop.permute.xlu1 %7645 }
0x2bda   :  { %v7651_v47 = vsel %vm894_vm1, %v7646_v39, 0 }
0x2bdb   :  { %12180 = vmatpush3.bf16.xpose.msra.mxu0 %v7651_v47 }
0x2bdc   :  { %12191 = vmatprep.subr.bf16.mxu0 %v14138_v1 }
0x2bdd   :  { %v7757_v42 = vpop.permute.xlu1 %7756 }
0x2bde   :  { %v7762_v61 = vsel %vm894_vm1, %v7757_v42, 0 }
0x2bdf   :  { %v13201_v36 = vpop.eup %13200 }
0x2be0   :  { %v7481_v43 = vmul.f32 %v13201_v36, %v13199_v34 }
0x2be1   :  { %v7993_v54 = vpop.permute.xlu1 %7992 }
0x2be2   :  { %v7482_v44 = vpack.c.bf16 %v7481_v43, %v7481_v43  ;;  %12182 = vmatmul.mubr.msk.bf16.vlgmr.msra.gmra.mxu0 %vm894_vm1, %v7644_v59  ;;  %v7998_v50 = vsel %vm894_vm1, %v7993_v54, 0 }
0x2be3   :  { %12192 = vmatpush3.bf16.xpose.msra.mxu0 %v7762_v61  ;;  %12193 = vmatprep.mubr.msk.bf16.mxu0 %vm14139_vm0, %v14138_v1 }
0x2be4   :  { %12164 = vmatmul.mubr.msk.bf16.vlgmr.msra.gmra.mxu1 %vm942_vm3, %v7482_v44  ;;  %12203 = vmatprep.subr.bf16.mxu0 %v14138_v1 }
0x2be5   :  { %12168 = vmatpush3.bf16.xpose.msra.mxu1 %v7539_v45  ;;  %12169 = vmatprep.mubr.msk.bf16.mxu1 %vm14139_vm0, %v14138_v1  ;;  %v8105_v51 = vpop.permute.xlu1 %8104 }
0x2be6   :  { %12173 = vmatprep.subr.bf16.mxu1 %v14138_v1  ;;  %v8110_v60 = vsel %vm894_vm1, %v8105_v51, 0 }
0x2be9   :  { %v8216_v13 = vpop.permute.xlu1 %8215 }
0x2bea   :  { %12194 = vmatmul.mubr.msk.bf16.vlgmr.msra.gmra.mxu0 %vm894_vm1, %v7755_v48  ;;  %v8221_v14 = vsel %vm894_vm1, %v8216_v13, 0 }
0x2beb   :  { %12204 = vmatpush3.bf16.xpose.msra.mxu0 %v7887_v5  ;;  %12205 = vmatprep.mubr.msk.bf16.mxu0 %vm14139_vm0, %v14138_v1 }
0x2bec   :  { %12170 = vmatmul.mubr.msk.bf16.vlgmr.msra.gmra.mxu1 %vm894_vm1, %v7531_v38  ;;  %12215 = vmatprep.subr.bf16.mxu0 %v14138_v1 }
0x2bed   :  { %12175 = vmatprep.mubr.msk.bf16.mxu1 %vm14139_vm0, %v14138_v1 }
0x2bf2   :  { %12206 = vmatmul.mubr.msk.bf16.vlgmr.msra.gmra.mxu0 %vm894_vm1, %v7880_v25 }
0x2bf3   :  { %12216 = vmatpush3.bf16.xpose.msra.mxu0 %v7998_v50  ;;  %12217 = vmatprep.mubr.msk.bf16.mxu0 %vm14139_vm0, %v14138_v1 }
0x2bf4   :  { %12227 = vmatprep.subr.bf16.mxu0 %v14138_v1 }
0x2bfa   :  { %12218 = vmatmul.mubr.msk.bf16.vlgmr.msra.gmra.mxu0 %vm894_vm1, %v7990_v29 }
0x2bfb   :  { %12228 = vmatpush3.bf16.xpose.msra.mxu0 %v8110_v60  ;;  %12229 = vmatprep.mubr.msk.bf16.mxu0 %vm14139_vm0, %v14138_v1 }
0x2bfc   :  { %12239 = vmatprep.subr.bf16.mxu0 %v14138_v1 }
0x2c02   :  { %12230 = vmatmul.mubr.msk.bf16.vlgmr.msra.gmra.mxu0 %vm894_vm1, %v8103_v26 }
0x2c03   :  { %12240 = vmatpush3.bf16.xpose.msra.mxu0 %v8221_v14  ;;  %12241 = vmatprep.mubr.msk.bf16.mxu0 %vm14139_vm0, %v14138_v1 }
0x2c04   :  { %12251 = vmatprep.subr.bf16.mxu0 %v14138_v1 }
0x2c0a   :  { %12242 = vmatmul.mubr.msk.bf16.vlgmr.msra.gmra.mxu0 %vm894_vm1, %v8214_v53 }
0x2c0b   :  { %12267 = vmatprep.mubr.msk.bf16.mxu0 %vm14139_vm0, %v14138_v1 }
0x2ca2   :  { %v7687_v62 = vpop.f32.mrf.mxu0 }
0x2ca3   :  { %v7693_v28 = vmul.f32 0.17677669, %v7687_v62 }
0x2ca4   :  { %v15495_v63 = vpop.f32.mrf.mxu1  ;;  %v12183_v2 = vpop.f32.mrf.mxu0 }
0x2ca5   :  { %v7694_v3 = vsel %vm942_vm3, %v7693_v28, -inf }
0x2ca6   :  { %7695 = vmax.xlane.f32.xlu0 %v7694_v3  ;;  %v12165_v4 = vpop.f32.mrf.mxu1  ;;  %v7690_v6 = vpop.f32.mrf.mxu0 }
0x2ca8   :  { %v7526_v8 = vpop.f32.mrf.mxu1  ;;  %v12184_v10 = vpop.f32.mrf.mxu0 }
0x2caa   :  { %v12166_v11 = vpop.f32.mrf.mxu1  ;;  %v7798_v16 = vpop.f32.mrf.mxu0 }
0x2cab   :  { %v7804_v17 = vmul.f32 0.17677669, %v7798_v16 }
0x2cac   :  { %v7575_v37 = vpop.f32.mrf.mxu1  ;;  %v12195_v18 = vpop.f32.mrf.mxu0 }
0x2cad   :  { %v7581_v19 = vmul.f32 0.17677669, %v7575_v37  ;;  %v7805_v20 = vsel %vm942_vm3, %v7804_v17, -inf }
0x2cae   :  { %7806 = vmax.xlane.f32.xlu0 %v7805_v20  ;;  %v12171_v21 = vpop.f32.mrf.mxu1  ;;  %v7801_v56 = vpop.f32.mrf.mxu0 }
0x2caf   :  { %v7582_v23 = vsel %vm942_vm3, %v7581_v19, -inf }
0x2cb0   :  { %v12196_v15 = vpop.f32.mrf.mxu0  ;;  %7583 = vmax.xlane.f32.xlu1 %v7582_v23  ;;  %v7578_v24 = vpop.f32.mrf.mxu1 }
0x2cb2   :  { %v12172_v40 = vpop.f32.mrf.mxu1  ;;  %v7923_v25 = vpop.f32.mrf.mxu0 }
0x2cb3   :  { %v7929_v22 = vmul.f32 0.17677669, %v7923_v25 }
0x2cb4   :  { %v12207_v27 = vpop.f32.mrf.mxu0 }
0x2cb5   :  { %v7930_v33 = vsel %vm942_vm3, %v7929_v22, -inf }
0x2cb6   :  { %v7926_v34 = vpop.f32.mrf.mxu0  ;;  %7931 = vmax.xlane.f32.xlu1 %v7930_v33 }
0x2cb8   :  { %v12208_v57 = vpop.f32.mrf.mxu0 }
0x2cba   :  { %v8034_v12 = vpop.f32.mrf.mxu0 }
0x2cbb   :  { %v8040_v46 = vmul.f32 0.17677669, %v8034_v12  ;;  %v7882_v12 = vpack.c.bf16 %v15431_v7, %v15431_v7 }
0x2cbc   :  { %v12219_v35 = vpop.f32.mrf.mxu0 }
0x2cbd   :  { %v8041_v38 = vsel %vm942_vm3, %v8040_v46, -inf }
0x2cbe   :  { %8042 = vmax.xlane.f32.xlu0 %v8041_v38  ;;  %v8037_v39 = vpop.f32.mrf.mxu0 }
0x2cc0   :  { %v12220_v47 = vpop.f32.mrf.mxu0 }
0x2cc2   :  { %v8146_v41 = vpop.f32.mrf.mxu0 }
0x2cc3   :  { %v8152_v36 = vmul.f32 0.17677669, %v8146_v41 }
0x2cc4   :  { %v12231_v42 = vpop.f32.mrf.mxu0 }
0x2cc5   :  { %v8153_v43 = vsel %vm942_vm3, %v8152_v36, -inf }
0x2cc6   :  { %v8149_v59 = vpop.f32.mrf.mxu0  ;;  %8154 = vmax.xlane.f32.xlu1 %v8153_v43 }
0x2cc8   :  { %v12232_v44 = vpop.f32.mrf.mxu0 }
0x2cca   :  { %v8257_v61 = vpop.f32.mrf.mxu0 }
0x2ccb   :  { %v8263_v45 = vmul.f32 0.17677669, %v8257_v61 }
0x2ccc   :  { %v12243_v48 = vpop.f32.mrf.mxu0 }
0x2ccd   :  { %v8264_v5 = vsel %vm942_vm3, %v8263_v45, -inf }
0x2cce   :  { %8265 = vmax.xlane.f32.xlu0 %v8264_v5  ;;  %v8260_v54 = vpop.f32.mrf.mxu0 }
0x2cd0   :  { %v12244_v50 = vpop.f32.mrf.mxu0 }
0x2d2f   :  { %v7696_v51 = vpop.xlane.xlu0 %7695 }
0x2d30   :  { %v7697_v29 = vsub.f32 %v7693_v28, %v7696_v51 }
0x2d32   :  { %v7698_v60 = vmul.f32 1.442695, %v7697_v29 }
0x2d34   :  { %13202 = vpow2.f32 %v7698_v60 }
0x2d37   :  { %v7807_v13 = vpop.xlane.xlu0 %7806 }
0x2d38   :  { %v7808_v26 = vsub.f32 %v7804_v17, %v7807_v13  ;;  %v7946_v13 = vsel %vm958_vm2, %v7882_v12, 0 }
0x2d39   :  { %v7584_v14 = vpop.xlane.xlu1 %7583 }
0x2d3a   :  { %v7809_v53 = vmul.f32 1.442695, %v7808_v26  ;;  %v7585_v62 = vsub.f32 %v7581_v19, %v7584_v14 }
0x2d3c   :  { %13204 = vpow2.f32 %v7809_v53  ;;  %v7586_v2 = vmul.f32 1.442695, %v7585_v62 }
0x2d3e   :  { %13206 = vpow2.f32 %v7586_v2 }
0x2d3f   :  { %v7932_v3 = vpop.xlane.xlu1 %7931 }
0x2d40   :  { %v7933_v4 = vsub.f32 %v7929_v22, %v7932_v3 }
0x2d41   :  { %v15504_v6 = vpop.eup %13202 }
0x2d42   :  { %v7934_v8 = vmul.f32 1.442695, %v7933_v4  ;;  %v7700_v10 = vsel %vm942_vm3, %v15504_v6, 0.0 }
0x2d43   :  { %7701 = vadd.xlane.f32.xlu0 %v7700_v10 }
0x2d44   :  { %13208 = vpow2.f32 %v7934_v8 }
0x2d47   :  { %v8043_v28 = vpop.xlane.xlu0 %8042 }
0x2d48   :  { %v8044_v11 = vsub.f32 %v8040_v46, %v8043_v28 }
0x2d49   :  { %v15508_v16 = vpop.eup %13204 }
0x2d4a   :  { %v8045_v17 = vmul.f32 1.442695, %v8044_v11  ;;  %v7811_v37 = vsel %vm942_vm3, %v15508_v16, 0.0 }
0x2d4b   :  { %v13207_v18 = vpop.eup %13206  ;;  %7812 = vadd.xlane.f32.xlu1 %v7811_v37 }
0x2d4c   :  { %13210 = vpow2.f32 %v8045_v17  ;;  %v7588_v19 = vsel %vm942_vm3, %v13207_v18, 0.0 }
0x2d4f   :  { %7589 = vadd.xlane.f32.xlu1 %v7588_v19  ;;  %v8155_v15 = vpop.xlane.xlu1 %8154 }
0x2d50   :  { %v8156_v24 = vsub.f32 %v8152_v36, %v8155_v15 }
0x2d51   :  { %v15513_v20 = vpop.eup %13208 }
0x2d52   :  { %v7936_v21 = vsel %vm942_vm3, %v15513_v20, 0.0  ;;  %v8157_v40 = vmul.f32 1.442695, %v8156_v24 }
0x2d53   :  { %7937 = vadd.xlane.f32.xlu0 %v7936_v21 }
0x2d54   :  { %13212 = vpow2.f32 %v8157_v40 }
0x2d57   :  { %v8266_v25 = vpop.xlane.xlu0 %8265 }
0x2d58   :  { %v8267_v22 = vsub.f32 %v8263_v45, %v8266_v25 }
0x2d59   :  { %v15517_v56 = vpop.eup %13210 }
0x2d5a   :  { %v8047_v23 = vsel %vm942_vm3, %v15517_v56, 0.0  ;;  %v8268_v27 = vmul.f32 1.442695, %v8267_v22 }
0x2d5b   :  { %8048 = vadd.xlane.f32.xlu0 %v8047_v23 }
0x2d5c   :  { %13214 = vpow2.f32 %v8268_v27 }
0x2d60   :  { %7595 = vrot.lane.b32.xlu1 %v15435_v9, %s14140_s25 }
0x2d61   :  { %v15527_v33 = vpop.eup %13212 }
0x2d62   :  { %v8159_v34 = vsel %vm942_vm3, %v15527_v33, 0.0 }
0x2d69   :  { %v15531_v57 = vpop.eup %13214 }
0x2d6a   :  { %v8270_v46 = vsel %vm942_vm3, %v15531_v57, 0.0 }
0x2d71   :  { %7706 = vrot.lane.b32.xlu0 %v15435_v9, %s14117_s4 }
0x2d75   :  { %7817 = vrot.lane.b32.xlu0 %v15435_v9, %s14097_s21 }
0x2d84   :  { %8160 = vadd.xlane.f32.xlu1 %v8159_v34 }
0x2d94   :  { %8271 = vadd.xlane.f32.xlu0 %v8270_v46 }
0x2d95   :  { %8054 = vrot.lane.b32.xlu1 %v7882_v12, %s14140_s25 }
0x2d99   :  { %8276 = vrot.lane.b32.xlu1 %v7882_v12, %s14097_s21 }
0x2daa   :  { %8165 = vrot.lane.b32.xlu0 %v7882_v12, %s14117_s4 }
0x2dcc   :  { %v7702_v38 = vpop.xlane.xlu0 %7701 }
0x2dd4   :  { %v7813_v9 = vpop.xlane.xlu1 %7812 }
0x2dd8   :  { %v7590_v35 = vpop.xlane.xlu1 %7589 }
0x2dd9   :  { %13216 = vrcp.f32 %v7590_v35 }
0x2dda   :  { %13218 = vrcp.f32 %v7702_v38 }
0x2ddb   :  { %13220 = vrcp.f32 %v7813_v9 }
0x2ddc   :  { %v7596_v39 = vpop.permute.xlu1 %7595  ;;  %v7938_v7 = vpop.xlane.xlu0 %7937 }
0x2ddd   :  { %v7601_v47 = vsel %vm958_vm2, %v7596_v39, 0  ;;  %13222 = vrcp.f32 %v7938_v7  ;;  %v12904_v7 = vld [vmem:[#allocation25 + $0x68] sm:$0xff]  }
0x2dde   :  { %12174 = vmatpush3.bf16.msra.mxu1 %v7601_v47  ;;  %v12903_v47 = vld [vmem:[#allocation25 + $0x70] sm:$0xff]  }
0x2ddf   :  { %12185 = vmatprep.subr.bf16.mxu1 %v14138_v1 }
0x2de4   :  { %v8049_v41 = vpop.xlane.xlu0 %8048 }
0x2de5   :  { %13224 = vrcp.f32 %v8049_v41  ;;  %v12905_v41 = vld [vmem:[#allocation25 + $0x60] sm:$0xff]  }
0x2de6   :  { %v13217_v36 = vpop.eup %13216 }
0x2de7   :  { %v7592_v42 = vmul.f32 %v13217_v36, %v13207_v18  ;;  %v13219_v61 = vpop.eup %13218 }
0x2de8   :  { %v7707_v43 = vpop.permute.xlu0 %7706  ;;  %v7704_v45 = vmul.f32 %v13219_v61, %v15504_v6  ;;  %v13221_v54 = vpop.eup %13220 }
0x2de9   :  { %v7593_v59 = vpack.c.bf16 %v7592_v42, %v7592_v42  ;;  %v7712_v44 = vsel %vm958_vm2, %v7707_v43, 0  ;;  %v7815_v51 = vmul.f32 %v13221_v54, %v15508_v16 }
0x2dea   :  { %v7705_v5 = vpack.c.bf16 %v7704_v45, %v7704_v45  ;;  %v13223_v60 = vpop.eup %13222  ;;  %v12907_v45 = vld [vmem:[#allocation25 + $0x50] sm:$0xff]  }
0x2deb   :  { %12176 = vmatmul.mubr.msk.bf16.vlgmr.msra.gmra.mxu1 %vm942_vm3, %v7593_v59  ;;  %v7816_v29 = vpack.c.bf16 %v7815_v51, %v7815_v51  ;;  %v7940_v26 = vmul.f32 %v13223_v60, %v15513_v20  ;;  %v12906_v59 = vld [vmem:[#allocation25 + $0x58] sm:$0xff]  }
0x2dec   :  { %12186 = vmatpush3.bf16.msra.mxu1 %v7712_v44  ;;  %12187 = vmatprep.mubr.msk.bf16.mxu1 %vm14139_vm0, %v14138_v1  ;;  %v7818_v48 = vpop.permute.xlu0 %7817 }
0x2ded   :  { %12197 = vmatprep.subr.bf16.mxu1 %v14138_v1  ;;  %v7823_v50 = vsel %vm958_vm2, %v7818_v48, 0  ;;  %v7941_v14 = vpack.c.bf16 %v7940_v26, %v7940_v26  ;;  %v12908_v48 = vld [vmem:[#allocation25 + $0x48] sm:$0xff]  }
0x2df2   :  { %v13225_v53 = vpop.eup %13224 }
0x2df3   :  { %12188 = vmatmul.mubr.msk.bf16.vlgmr.msra.gmra.mxu1 %vm942_vm3, %v7705_v5  ;;  %v8051_v2 = vmul.f32 %v13225_v53, %v15517_v56  ;;  %v12902_v56 = vld [vmem:[#allocation25 + $0x78] sm:$0xff]  }
0x2df4   :  { %12198 = vmatpush3.bf16.msra.mxu1 %v7823_v50  ;;  %12199 = vmatprep.mubr.msk.bf16.mxu1 %vm14139_vm0, %v14138_v1  ;;  %v12909_v50 = vld [vmem:[#allocation25 + $0x40] sm:$0xff]  }
0x2df5   :  { %12209 = vmatprep.subr.bf16.mxu1 %v14138_v1  ;;  %v8052_v6 = vpack.c.bf16 %v8051_v2, %v8051_v2  ;;  %12252 = vmatpush3.bf16.msra.mxu0 %v12902_v56 }
0x2df6   :  { %12253 = vmatprep.subr.bf16.mxu0 %v14138_v1 }
0x2df9   :  { %12254 = vmatpush3.bf16.msra.mxu0 %v12903_v47 }
0x2dfa   :  { %12255 = vmatprep.subr.bf16.mxu0 %v14138_v1 }
0x2dfb   :  { %12200 = vmatmul.mubr.msk.bf16.vlgmr.msra.gmra.mxu1 %vm942_vm3, %v7816_v29  ;;  %v12912_v29 = vld [vmem:[%s15899_s11 + $0xf4] ss:$8 sps:$4 sm:$0xff]  }
0x2dfc   :  { %12210 = vmatpush3.bf16.msra.mxu1 %v7946_v13  ;;  %12211 = vmatprep.mubr.msk.bf16.mxu1 %vm14139_vm0, %v14138_v1 }
0x2dfd   :  { %12221 = vmatprep.subr.bf16.mxu1 %v14138_v1  ;;  %12256 = vmatpush3.bf16.msra.mxu0 %v12904_v7 }
0x2dfe   :  { %12257 = vmatprep.subr.bf16.mxu0 %v14138_v1 }
0x2e01   :  { %12258 = vmatpush3.bf16.msra.mxu0 %v12905_v41 }
0x2e02   :  { %12259 = vmatprep.subr.bf16.mxu0 %v14138_v1 }
0x2e03   :  { %12212 = vmatmul.mubr.msk.bf16.vlgmr.msra.gmra.mxu1 %vm942_vm3, %v7941_v14 }
0x2e04   :  { %12223 = vmatprep.mubr.msk.bf16.mxu1 %vm14139_vm0, %v14138_v1 }
0x2e05   :  { %12260 = vmatpush3.bf16.msra.mxu0 %v12906_v59 }
0x2e06   :  { %12261 = vmatprep.subr.bf16.mxu0 %v14138_v1 }
0x2e09   :  { %12262 = vmatpush3.bf16.msra.mxu0 %v12907_v45 }
0x2e0a   :  { %12263 = vmatprep.subr.bf16.mxu0 %v14138_v1 }
0x2e0d   :  { %v8161_v62 = vpop.xlane.xlu1 %8160  ;;  %12264 = vmatpush3.bf16.msra.mxu0 %v12908_v48 }
0x2e0e   :  { %13226 = vrcp.f32 %v8161_v62  ;;  %12265 = vmatprep.subr.bf16.mxu0 %v14138_v1 }
0x2e11   :  { %v8055_v3 = vpop.permute.xlu1 %8054  ;;  %12266 = vmatpush3.bf16.msra.mxu0 %v12909_v50 }
0x2e12   :  { %v8060_v4 = vsel %vm958_vm2, %v8055_v3, 0  ;;  %8723 = vmatprep.subr.bf16.mxu0 %v12912_v29  ;;  %v12935_v29 = vld [vmem:[#allocation31 + $0x70] sm:$0xff]  }
0x2e13   :  { %12222 = vmatpush3.bf16.msra.mxu1 %v8060_v4 }
0x2e14   :  { %12233 = vmatprep.subr.bf16.mxu1 %v14138_v1 }
0x2e15   :  { %v8277_v17 = vpop.permute.xlu1 %8276 }
0x2e16   :  { %12224 = vmatmul.mubr.msk.bf16.vlgmr.msra.gmra.mxu1 %vm942_vm3, %v8052_v6  ;;  %v8282_v18 = vsel %vm958_vm2, %v8277_v17, 0 }
0x2e17   :  { %12235 = vmatprep.mubr.msk.bf16.mxu1 %vm14139_vm0, %v14138_v1 }
0x2e1b   :  { %v13227_v8 = vpop.eup %13226 }
0x2e1c   :  { %v8163_v28 = vmul.f32 %v13227_v8, %v15527_v33 }
0x2e1d   :  { %v8272_v10 = vpop.xlane.xlu0 %8271 }
0x2e1e   :  { %13228 = vrcp.f32 %v8272_v10  ;;  %v8164_v37 = vpack.c.bf16 %v8163_v28, %v8163_v28 }
0x2e21   :  { %v8166_v11 = vpop.permute.xlu0 %8165 }
0x2e22   :  { %v8171_v16 = vsel %vm958_vm2, %v8166_v11, 0 }
0x2e23   :  { %12234 = vmatpush3.bf16.msra.mxu1 %v8171_v16 }
0x2e24   :  { %12245 = vmatprep.subr.bf16.mxu1 %v14138_v1 }
0x2e26   :  { %12236 = vmatmul.mubr.msk.bf16.vlgmr.msra.gmra.mxu1 %vm942_vm3, %v8164_v37 }
0x2e27   :  { %12246 = vmatpush3.bf16.msra.mxu1 %v8282_v18  ;;  %12247 = vmatprep.mubr.msk.bf16.mxu1 %vm14139_vm0, %v14138_v1 }
0x2e28   :  { %12271 = vmatprep.subr.bf16.mxu1 %v14138_v1 }
0x2e2b   :  { %v13229_v19 = vpop.eup %13228 }
0x2e2c   :  { %v8274_v20 = vmul.f32 %v13229_v19, %v15531_v57 }
0x2e2e   :  { %v8275_v21 = vpack.c.bf16 %v8274_v20, %v8274_v20 }
0x2e30   :  { %12248 = vmatmul.mubr.msk.bf16.vlgmr.msra.gmra.mxu1 %vm942_vm3, %v8275_v21 }
0x2e31   :  { %12287 = vmatprep.mubr.msk.bf16.mxu1 %vm14139_vm0, %v14138_v1 }
0x2eab   :  { %v7637_v23 = vpop.f32.mrf.mxu1 }
0x2ead   :  { %v12177_v15 = vpop.f32.mrf.mxu1 }
0x2eaf   :  { %v7640_v24 = vpop.f32.mrf.mxu1 }
0x2eb0   :  { %v12915_v24 = vld [vmem:[%s15899_s11 + $0xe4] ss:$8 sps:$4 sm:$0xff]  }
0x2eb1   :  { %v12178_v40 = vpop.f32.mrf.mxu1 }
0x2eb2   :  { %v12918_v40 = vld [vmem:[%s15899_s11 + $0xd4] ss:$8 sps:$4 sm:$0xff]  }
0x2eb3   :  { %v7748_v25 = vpop.f32.mrf.mxu1 }
0x2eb5   :  { %v12189_v22 = vpop.f32.mrf.mxu1 }
0x2eb6   :  { %v12921_v22 = vld [vmem:[%s15899_s11 + $0xc4] ss:$8 sps:$4 sm:$0xff]  }
0x2eb7   :  { %v7751_v27 = vpop.f32.mrf.mxu1 }
0x2eb8   :  { %v12919_v27 = vld [vmem:[%s15899_s11 + $0xc0] ss:$8 sps:$4 sm:$0xff]  }
0x2eb9   :  { %v12190_v33 = vpop.f32.mrf.mxu1 }
0x2eba   :  { %v12924_v33 = vld [vmem:[%s15899_s11 + $0xb4] ss:$8 sps:$4 sm:$0xff]  }
0x2ebb   :  { %v7859_v34 = vpop.f32.mrf.mxu1 }
0x2ebd   :  { %v12201_v57 = vpop.f32.mrf.mxu1 }
0x2ebe   :  { %v12927_v57 = vld [vmem:[%s15899_s11 + $0xa4] ss:$8 sps:$4 sm:$0xff]  }
0x2ebf   :  { %v7862_v12 = vpop.f32.mrf.mxu1 }
0x2ec0   :  { %v12925_v12 = vld [vmem:[%s15899_s11 + $0xa0] ss:$8 sps:$4 sm:$0xff]  }
0x2ec1   :  { %v12202_v46 = vpop.f32.mrf.mxu1 }
0x2ec2   :  { %v12930_v46 = vld [vmem:[%s15899_s11 + $0x94] ss:$8 sps:$4 sm:$0xff]  }
0x2ec3   :  { %v7982_v9 = vpop.f32.mrf.mxu1 }
0x2ec5   :  { %v12213_v35 = vpop.f32.mrf.mxu1 }
0x2ec6   :  { %v12933_v35 = vld [vmem:[%s15899_s11 + $0x84] ss:$8 sps:$4 sm:$0xff]  }
0x2ec7   :  { %v7985_v38 = vpop.f32.mrf.mxu1 }
0x2ec8   :  { %v12931_v38 = vld [vmem:[%s15899_s11 + $0x80] ss:$8 sps:$4 sm:$0xff]  }
0x2ec9   :  { %v12214_v39 = vpop.f32.mrf.mxu1 }
0x2eca   :  { %v11053_v39 = vld [vmem:[#allocation26 + $0x1] ss:$0 sm:$0xff] }
0x2ed6   :  { %v8096_v36 = vpop.f32.mrf.mxu1 }
0x2ed7   :  { %v12560_v42 = vpack.i.bf16 %v8096_v36, %v7637_v23  ;;  %v12910_v23 = vld [vmem:[%s15899_s11 + $0xf0] ss:$8 sps:$4 sm:$0xff]  }
0x2ed8   :  { %v12225_v43 = vpop.f32.mrf.mxu1 }
0x2ed9   :  { %12561 = vrot.lane.b32.xlu1 %v12560_v42, %s14097_s21 }
0x2eda   :  { %v8099_v44 = vpop.f32.mrf.mxu1 }
0x2edc   :  { %v12226_v61 = vpop.f32.mrf.mxu1 }
0x2edd   :  { %v12934_v61 = vld [vmem:[#allocation31 + $0x78] sm:$0xff]  }
0x2ede   :  { %12272 = vmatpush3.bf16.msra.mxu1 %v12934_v61 }
0x2edf   :  { %12273 = vmatprep.subr.bf16.mxu1 %v14138_v1 }
0x2ee2   :  { %12274 = vmatpush3.bf16.msra.mxu1 %v12935_v29 }
0x2ee3   :  { %12275 = vmatprep.subr.bf16.mxu1 %v14138_v1 }
0x2ee6   :  { %v8207_v5 = vpop.f32.mrf.mxu1 }
0x2ee7   :  { %v12565_v54 = vpack.i.bf16 %v8207_v5, %v7748_v25  ;;  %v12916_v25 = vld [vmem:[%s15899_s11 + $0xd0] ss:$8 sps:$4 sm:$0xff]  }
0x2ee8   :  { %v12237_v51 = vpop.f32.mrf.mxu1 }
0x2ee9   :  { %12566 = vrot.lane.b32.xlu1 %v12565_v54, %s14117_s4 }
0x2eea   :  { %v8210_v60 = vpop.f32.mrf.mxu1 }
0x2eeb   :  { %v12937_v60 = vld [vmem:[#allocation31 + $0x60] sm:$0xff]  }
0x2eec   :  { %v12238_v13 = vpop.f32.mrf.mxu1 }
0x2eed   :  { %v12938_v13 = vld [vmem:[#allocation31 + $0x58] sm:$0xff]  }
0x2ef0   :  { %v8318_v26 = vpop.f32.mrf.mxu1 }
0x2ef1   :  { %v12570_v14 = vpack.i.bf16 %v8318_v26, %v7859_v34  ;;  %v12922_v34 = vld [vmem:[%s15899_s11 + $0xb0] ss:$8 sps:$4 sm:$0xff]  }
0x2ef2   :  { %v12249_v53 = vpop.f32.mrf.mxu1  ;;  %v12939_v26 = vld [vmem:[#allocation31 + $0x50] sm:$0xff]  }
0x2ef3   :  { %12571 = vrot.lane.b32.xlu1 %v12570_v14, %s14140_s25  ;;  %v12940_v14 = vld [vmem:[#allocation31 + $0x48] sm:$0xff]   ;;  %v12941_v53 = vld [vmem:[#allocation31 + $0x40] sm:$0xff]  }
0x2ef4   :  { %v8321_v62 = vpop.f32.mrf.mxu1 }
0x2ef6   :  { %v12250_v2 = vpop.f32.mrf.mxu1 }
0x2f4b   :  { %v12562_v3 = vpop.permute.xlu1 %12561 }
0x2f4c   :  { %v12564_v6 = vunpack.i.h.bf16 %v12562_v3  ;;  %v12563_v8 = vunpack.i.l.bf16 %v12562_v3 }
0x2f4e   :  { %v8336_v16 = vsel %vm894_vm1, %v7982_v9, %v12564_v6  ;;  %v7877_v17 = vsel %vm894_vm1, %v15495_v63, %v12563_v8  ;;  %v12913_v63 = vld [vmem:[%s15899_s11 + $0xe0] ss:$8 sps:$4 sm:$0xff]   ;;  %v12928_v9 = vld [vmem:[%s15899_s11 + $0x90] ss:$8 sps:$4 sm:$0xff]  }
0x2f5b   :  { %v12567_v4 = vpop.permute.xlu1 %12566 }
0x2f5c   :  { %v12569_v10 = vunpack.i.h.bf16 %v12567_v4  ;;  %v12568_v28 = vunpack.i.l.bf16 %v12567_v4 }
0x2f5e   :  { %v8337_v19 = vsel %vm1351_vm4, %v8336_v16, %v12569_v10  ;;  %v7878_v20 = vsel %vm1351_vm4, %v7877_v17, %v12568_v28  ;;  %v11089_v10 = vld [vmem:[%s15900_s14 + $0x2] sm:$0x3] }
0x2f65   :  { %v12572_v11 = vpop.permute.xlu1 %12571 }
0x2f66   :  { %v12574_v37 = vunpack.i.h.bf16 %v12572_v11  ;;  %v12573_v18 = vunpack.i.l.bf16 %v12572_v11  ;;  %v15631_v11 = vrot.slane %v11089_v10, %v14500_v32 }
0x2f68   :  { %v8338_v21 = vsel %vm1353_vm5, %v8337_v19, %v12574_v37  ;;  %v7879_v56 = vsel %vm1353_vm5, %v7878_v20, %v12573_v18  ;;  %v11062_v37 = vld [vmem:[#allocation28 + $0x1] ss:$0 sm:$0xff] }
0x2f69   :  { %v8358_v15 = vpack.c.bf16 %v8338_v21, %v7879_v56  ;;  %v11063_v56 = vld [vmem:[#allocation29 + $0x1] ss:$0 sm:$0xff] }
0x2f6b   :  { %12268 = vmatmul.mubr.bf16.vlgmr.msra.gmra.mxu0 %v8358_v15 }
0x2f6c   :  { %8724 = vmatpush1.bf16.msra.mxu0 %v12910_v23  ;;  %8755 = vmatprep.mubr.bf16.mxu0 %v14137_v0 }
0x2f6d   :  { %8725 = vmatprep.subr.bf16.mxu0 %v12915_v24 }
0x2f70   :  { %8726 = vmatpush1.bf16.msra.mxu0 %v12913_v63 }
0x2f71   :  { %8727 = vmatprep.subr.bf16.mxu0 %v12918_v40 }
0x2f74   :  { %8728 = vmatpush1.bf16.msra.mxu0 %v12916_v25 }
0x2f75   :  { %8729 = vmatprep.subr.bf16.mxu0 %v12921_v22  ;;  %v15645_v22 = vrot.slane %v11089_v10, %v14497_v31 }
0x2f78   :  { %8730 = vmatpush1.bf16.msra.mxu0 %v12919_v27 }
0x2f79   :  { %8731 = vmatprep.subr.bf16.mxu0 %v12924_v33 }
0x2f7c   :  { %8732 = vmatpush1.bf16.msra.mxu0 %v12922_v34  ;;  %v11064_v34 = vld [vmem:[#allocation32 + $0x1] ss:$0 sm:$0xff] }
0x2f7d   :  { %8733 = vmatprep.subr.bf16.mxu0 %v12927_v57 }
0x2f80   :  { %8734 = vmatpush1.bf16.msra.mxu0 %v12925_v12 }
0x2f81   :  { %8735 = vmatprep.subr.bf16.mxu0 %v12930_v46 }
0x2f84   :  { %8736 = vmatpush1.bf16.msra.mxu0 %v12928_v9 }
0x2f85   :  { %8737 = vmatprep.subr.bf16.mxu0 %v12933_v35 }
0x2f88   :  { %8738 = vmatpush1.bf16.msra.mxu0 %v12931_v38 }
0x2f89   :  { %12315 = vmatprep.subr.bf16.mxu0 %v14138_v1 }
0x2f8b   :  { %8756 = vmatmul.mubr.bf16.vlgmr.msra.gmra.mxu0 %v15196_v52 }
0x2f8c   :  { %12317 = vmatprep.mubr.msk.bf16.mxu0 %vm14139_vm0, %v14138_v1 }
0x302b   :  { %v8447_v47 = vpop.f32.mrf.mxu0 }
0x302c   :  { %v8448_v7 = vadd.f32 %v11053_v39, %v8447_v47 }
0x302d   :  { %v12269_v41 = vpop.f32.mrf.mxu0 }
0x302e   :  { %v8454_v36 = vadd.f32 %v8448_v7, %v15418_v55 }
0x302f   :  { %v8450_v42 = vpop.f32.mrf.mxu0 }
0x3030   :  { %v8451_v43 = vadd.f32 %v11053_v39, %v8450_v42  ;;  %8460 = vadd.xlane.f32.xlu0 %v8454_v36 }
0x3031   :  { %v12270_v59 = vpop.f32.mrf.mxu0 }
0x3032   :  { %v8455_v44 = vadd.f32 %v8451_v43, %v15420_v58  ;;  %v12936_v58 = vld [vmem:[#allocation31 + $0x68] sm:$0xff]  }
0x3033   :  { %12276 = vmatpush3.bf16.msra.mxu1 %v12936_v58 }
0x3034   :  { %8462 = vadd.xlane.f32.xlu1 %v8455_v44  ;;  %12277 = vmatprep.subr.bf16.mxu1 %v14138_v1 }
0x3037   :  { %12278 = vmatpush3.bf16.msra.mxu1 %v12937_v60 }
0x3038   :  { %12279 = vmatprep.subr.bf16.mxu1 %v14138_v1 }
0x303b   :  { %12280 = vmatpush3.bf16.msra.mxu1 %v12938_v13 }
0x303c   :  { %12281 = vmatprep.subr.bf16.mxu1 %v14138_v1 }
0x303f   :  { %12282 = vmatpush3.bf16.msra.mxu1 %v12939_v26 }
0x3040   :  { %12283 = vmatprep.subr.bf16.mxu1 %v14138_v1 }
0x3043   :  { %12284 = vmatpush3.bf16.msra.mxu1 %v12940_v14 }
0x3044   :  { %12285 = vmatprep.subr.bf16.mxu1 %v14138_v1 }
0x3047   :  { %12286 = vmatpush3.bf16.msra.mxu1 %v12941_v53 }
0x3048   :  { %12291 = vmatprep.subr.bf16.mxu1 %v14138_v1 }
0x304b   :  { %v8757_v17 = vpop.f32.mrf.mxu0 }
0x304c   :  { %v8758_v19 = vadd.f32 %v8757_v17, %v15631_v11 }
0x304d   :  { %v8759_v27 = vpop.f32.mrf.mxu0 }
0x304e   :  { %v8767_v15 = vpack.c.bf16 %v8758_v19, %v8758_v19  ;;  %v8760_v33 = vadd.f32 %v8759_v27, %v15645_v22 }
0x304f   :  { %v8761_v58 = vpop.f32.mrf.mxu0 }
0x3050   :  { %v8773_v25 = vsel %vm894_vm1, %v8767_v15, 0  ;;  %v15648_v12 = vpack.c.bf16 %v8760_v33, %v8760_v33  ;;  %v8762_v60 = vadd.f32 %v8761_v58, %v15631_v11 }
0x3052   :  { %v8832_v47 = vsel %vm958_vm2, %v15648_v12, 0  ;;  %v9226_v13 = vpack.c.bf16 %v8762_v60, %v8762_v60 }
0x30b9   :  { %v8461_v52 = vpop.xlane.xlu0 %8460 }
0x30ba   :  { %v8464_v45 = vmul.f32 0.0078125, %v8461_v52 }
0x30bc   :  { %v8466_v48 = vsub.f32 %v8454_v36, %v8464_v45 }
0x30bd   :  { %v8463_v5 = vpop.xlane.xlu1 %8462 }
0x30be   :  { %v8465_v54 = vmul.f32 0.0078125, %v8463_v5  ;;  %v8468_v50 = vmul.f32 %v8466_v48, %v8466_v48 }
0x30c0   :  { %v8467_v51 = vsub.f32 %v8455_v44, %v8465_v54  ;;  %8470 = vadd.xlane.f32.xlu0 %v8468_v50 }
0x30c2   :  { %v8469_v55 = vmul.f32 %v8467_v51, %v8467_v51 }
0x30c4   :  { %8472 = vadd.xlane.f32.xlu0 %v8469_v55 }
0x3149   :  { %v8471_v62 = vpop.xlane.xlu0 %8470 }
0x314a   :  { %v8474_v2 = vmul.f32 0.0078125, %v8471_v62 }
0x314c   :  { %v8476_v3 = vadd.f32 1e-05, %v8474_v2 }
0x314d   :  { %v8473_v4 = vpop.xlane.xlu0 %8472 }
0x314e   :  { %13230 = vrsqrt.f32 %v8476_v3  ;;  %v8475_v6 = vmul.f32 0.0078125, %v8473_v4 }
0x3150   :  { %v8477_v8 = vadd.f32 1e-05, %v8475_v6 }
0x3152   :  { %13232 = vrsqrt.f32 %v8477_v8  ;;  %v9232_v8 = vsel %vm894_vm1, %v9226_v13, 0 }
0x315b   :  { %v13231_v28 = vpop.eup %13230 }
0x315c   :  { %v8480_v16 = vmul.f32 %v13231_v28, %v8466_v48 }
0x315e   :  { %v8488_v21 = vmul.f32 %v11062_v37, %v8480_v16 }
0x315f   :  { %v13233_v18 = vpop.eup %13232 }
0x3160   :  { %v8481_v20 = vmul.f32 %v13233_v18, %v8467_v51  ;;  %v15634_v24 = vadd.f32 %v11063_v56, %v8488_v21 }
0x3162   :  { %v8489_v23 = vmul.f32 %v11062_v37, %v8481_v20 }
0x3164   :  { %v15636_v63 = vadd.f32 %v11063_v56, %v8489_v23  ;;  %v15707_v56 = vpop.f32.mrf.mxu0 }
0x3166   :  { %v8517_v40 = vpack.c.bf16 %v15636_v63, %v15634_v24 }
0x3168   :  { %12288 = vmatmul.mubr.bf16.vlgmr.msra.gmra.mxu1 %v8517_v40 }
0x3169   :  { %12292 = vmatpush3.bf16.xpose.msra.mxu1 %v8773_v25  ;;  %12293 = vmatprep.mubr.msk.bf16.mxu1 %vm14139_vm0, %v14138_v1 }
0x316a   :  { %12297 = vmatprep.subr.bf16.mxu1 %v14138_v1 }
0x3228   :  { %v8606_v57 = vpop.f32.mrf.mxu1 }
0x3229   :  { %v8607_v46 = vadd.f32 %v11064_v34, %v8606_v57 }
0x322a   :  { %v12289_v9 = vpop.f32.mrf.mxu1 }
0x322b   :  { %v8766_v35 = vpack.c.bf16 %v8607_v46, %v8607_v46 }
0x322c   :  { %v8609_v38 = vpop.f32.mrf.mxu1 }
0x322d   :  { %v8610_v39 = vadd.f32 %v11064_v34, %v8609_v38  ;;  %12294 = vmatmul.mubr.msk.bf16.vlgmr.msra.gmra.mxu1 %vm894_vm1, %v8766_v35 }
0x322e   :  { %12298 = vmatpush3.bf16.msra.mxu1 %v8832_v47  ;;  %v12290_v7 = vpop.f32.mrf.mxu1  ;;  %12299 = vmatprep.mubr.msk.bf16.mxu1 %vm14139_vm0, %v14138_v1 }
0x322f   :  { %12303 = vmatprep.subr.bf16.mxu1 %v14138_v1  ;;  %v9225_v61 = vpack.c.bf16 %v8610_v39, %v8610_v39 }
0x32ed   :  { %v8809_v41 = vpop.f32.mrf.mxu1 }
0x32ee   :  { %v8815_v36 = vmul.f32 0.17677669, %v8809_v41 }
0x32ef   :  { %v12295_v42 = vpop.f32.mrf.mxu1 }
0x32f0   :  { %v8816_v43 = vsel %vm942_vm3, %v8815_v36, -inf }
0x32f1   :  { %8817 = vmax.xlane.f32.xlu1 %v8816_v43  ;;  %v8812_v59 = vpop.f32.mrf.mxu1 }
0x32f3   :  { %v12296_v44 = vpop.f32.mrf.mxu1 }
0x3302   :  { %8878 = vrot.lane.b32.xlu1 %v8767_v15, %s14140_s25 }
0x3306   :  { %8990 = vrot.lane.b32.xlu1 %v8767_v15, %s14117_s4 }
0x330a   :  { %8988 = vrot.lane.b32.xlu1 %v8766_v35, %s14117_s4 }
0x330e   :  { %9099 = vrot.lane.b32.xlu1 %v8766_v35, %s14097_s21 }
0x3312   :  { %9334 = vrot.lane.b32.xlu1 %v9225_v61, %s14140_s25 }
0x3316   :  { %9447 = vrot.lane.b32.xlu1 %v9225_v61, %s14117_s4 }
0x331a   :  { %9558 = vrot.lane.b32.xlu1 %v9225_v61, %s14097_s21 }
0x337a   :  { %v8818_v52 = vpop.xlane.xlu1 %8817 }
0x337b   :  { %v8819_v45 = vsub.f32 %v8815_v36, %v8818_v52 }
0x337d   :  { %v8820_v48 = vmul.f32 1.442695, %v8819_v45 }
0x337e   :  { %v8879_v5 = vpop.permute.xlu1 %8878 }
0x337f   :  { %13234 = vpow2.f32 %v8820_v48  ;;  %v8884_v10 = vsel %vm894_vm1, %v8879_v5, 0 }
0x3382   :  { %v8991_v54 = vpop.permute.xlu1 %8990 }
0x3383   :  { %v8996_v50 = vsel %vm894_vm1, %v8991_v54, 0 }
0x3384   :  { %12316 = vmatpush3.bf16.xpose.msra.mxu0 %v8996_v50 }
0x3385   :  { %12327 = vmatprep.subr.bf16.mxu0 %v14138_v1 }
0x3386   :  { %v8989_v51 = vpop.permute.xlu1 %8988 }
0x338a   :  { %v9100_v4 = vpop.permute.xlu1 %9099 }
0x338b   :  { %12318 = vmatmul.mubr.msk.bf16.vlgmr.msra.gmra.mxu0 %vm894_vm1, %v8989_v51 }
0x338c   :  { %v13235_v55 = vpop.eup %13234  ;;  %12329 = vmatprep.mubr.msk.bf16.mxu0 %vm14139_vm0, %v14138_v1 }
0x338d   :  { %v8822_v29 = vsel %vm942_vm3, %v13235_v55, 0.0 }
0x338e   :  { %8823 = vadd.xlane.f32.xlu0 %v8822_v29  ;;  %v9335_v17 = vpop.permute.xlu1 %9334 }
0x3392   :  { %v9448_v19 = vpop.permute.xlu1 %9447 }
0x3396   :  { %v9559_v21 = vpop.permute.xlu1 %9558 }
0x33a4   :  { %8875 = vrot.lane.b32.xlu0 %v8766_v35, %s14140_s25 }
0x33a8   :  { %9101 = vrot.lane.b32.xlu0 %v8767_v15, %s14097_s21 }
0x33ac   :  { %9337 = vrot.lane.b32.xlu0 %v9226_v13, %s14140_s25 }
0x33b0   :  { %9449 = vrot.lane.b32.xlu0 %v9226_v13, %s14117_s4 }
0x33b4   :  { %9560 = vrot.lane.b32.xlu0 %v9226_v13, %s14097_s21 }
0x3417   :  { %v8824_v26 = vpop.xlane.xlu0 %8823 }
0x3418   :  { %13236 = vrcp.f32 %v8824_v26 }
0x341b   :  { %v8876_v14 = vpop.permute.xlu0 %8875 }
0x341f   :  { %v9102_v53 = vpop.permute.xlu0 %9101 }
0x3420   :  { %v9107_v62 = vsel %vm894_vm1, %v9102_v53, 0 }
0x3421   :  { %12328 = vmatpush3.bf16.xpose.msra.mxu0 %v9107_v62 }
0x3422   :  { %12339 = vmatprep.subr.bf16.mxu0 %v14138_v1 }
0x3423   :  { %v9338_v28 = vpop.permute.xlu0 %9337 }
0x3424   :  { %v9343_v11 = vsel %vm894_vm1, %v9338_v28, 0 }
0x3425   :  { %v13237_v2 = vpop.eup %13236 }
0x3426   :  { %v8826_v3 = vmul.f32 %v13237_v2, %v13235_v55 }
0x3427   :  { %v9450_v16 = vpop.permute.xlu0 %9449 }
0x3428   :  { %v8827_v6 = vpack.c.bf16 %v8826_v3, %v8826_v3  ;;  %12330 = vmatmul.mubr.msk.bf16.vlgmr.msra.gmra.mxu0 %vm894_vm1, %v9100_v4  ;;  %v9455_v37 = vsel %vm894_vm1, %v9450_v16, 0 }
0x3429   :  { %12340 = vmatpush3.bf16.xpose.msra.mxu0 %v9232_v8  ;;  %12341 = vmatprep.mubr.msk.bf16.mxu0 %vm14139_vm0, %v14138_v1 }
0x342a   :  { %12300 = vmatmul.mubr.msk.bf16.vlgmr.msra.gmra.mxu1 %vm942_vm3, %v8827_v6  ;;  %12351 = vmatprep.subr.bf16.mxu0 %v14138_v1 }
0x342b   :  { %12304 = vmatpush3.bf16.xpose.msra.mxu1 %v8884_v10  ;;  %12305 = vmatprep.mubr.msk.bf16.mxu1 %vm14139_vm0, %v14138_v1  ;;  %v9561_v18 = vpop.permute.xlu0 %9560 }
0x342c   :  { %12309 = vmatprep.subr.bf16.mxu1 %v14138_v1  ;;  %v9566_v20 = vsel %vm894_vm1, %v9561_v18, 0 }
0x3430   :  { %12342 = vmatmul.mubr.msk.bf16.vlgmr.msra.gmra.mxu0 %vm894_vm1, %v9225_v61 }
0x3431   :  { %12352 = vmatpush3.bf16.xpose.msra.mxu0 %v9343_v11  ;;  %12353 = vmatprep.mubr.msk.bf16.mxu0 %vm14139_vm0, %v14138_v1 }
0x3432   :  { %12306 = vmatmul.mubr.msk.bf16.vlgmr.msra.gmra.mxu1 %vm894_vm1, %v8876_v14  ;;  %12363 = vmatprep.subr.bf16.mxu0 %v14138_v1 }
0x3433   :  { %12311 = vmatprep.mubr.msk.bf16.mxu1 %vm14139_vm0, %v14138_v1 }
0x3438   :  { %12354 = vmatmul.mubr.msk.bf16.vlgmr.msra.gmra.mxu0 %vm894_vm1, %v9335_v17 }
0x3439   :  { %12364 = vmatpush3.bf16.xpose.msra.mxu0 %v9455_v37  ;;  %12365 = vmatprep.mubr.msk.bf16.mxu0 %vm14139_vm0, %v14138_v1 }
0x343a   :  { %12375 = vmatprep.subr.bf16.mxu0 %v14138_v1 }
0x3440   :  { %12366 = vmatmul.mubr.msk.bf16.vlgmr.msra.gmra.mxu0 %vm894_vm1, %v9448_v19 }
0x3441   :  { %12376 = vmatpush3.bf16.xpose.msra.mxu0 %v9566_v20  ;;  %12377 = vmatprep.mubr.msk.bf16.mxu0 %vm14139_vm0, %v14138_v1 }
0x3442   :  { %12387 = vmatprep.subr.bf16.mxu0 %v14138_v1 }
0x3448   :  { %12378 = vmatmul.mubr.msk.bf16.vlgmr.msra.gmra.mxu0 %vm894_vm1, %v9559_v21 }
0x3449   :  { %12403 = vmatprep.mubr.msk.bf16.mxu0 %vm14139_vm0, %v14138_v1 }
0x344b   :  { %v9032_v23 = vpop.f32.mrf.mxu0 }
0x344c   :  { %v9038_v15 = vmul.f32 0.17677669, %v9032_v23 }
0x344d   :  { %v12319_v40 = vpop.f32.mrf.mxu0 }
0x344e   :  { %v9039_v25 = vsel %vm942_vm3, %v9038_v15, -inf }
0x344f   :  { %9040 = vmax.xlane.f32.xlu1 %v9039_v25  ;;  %v9035_v27 = vpop.f32.mrf.mxu0 }
0x3451   :  { %v12320_v33 = vpop.f32.mrf.mxu0 }
0x34d8   :  { %v9041_v42 = vpop.xlane.xlu1 %9040 }
0x34d9   :  { %v9042_v5 = vsub.f32 %v9038_v15, %v9041_v42 }
0x34db   :  { %v9043_v60 = vmul.f32 1.442695, %v9042_v5 }
0x34dd   :  { %13238 = vpow2.f32 %v9043_v60 }
0x34e8   :  { %v9143_v34 = vpop.f32.mrf.mxu0 }
0x34e9   :  { %v9149_v61 = vmul.f32 0.17677669, %v9143_v34 }
0x34ea   :  { %v15712_v57 = vpop.f32.mrf.mxu1  ;;  %v12331_v46 = vpop.f32.mrf.mxu0 }
0x34eb   :  { %v9150_v29 = vsel %vm942_vm3, %v9149_v61, -inf  ;;  %v15720_v17 = vpop.eup %13238 }
0x34ec   :  { %v12301_v9 = vpop.f32.mrf.mxu1  ;;  %v9146_v35 = vpop.f32.mrf.mxu0  ;;  %v9045_v19 = vsel %vm942_vm3, %v15720_v17, 0.0 }
0x34ee   :  { %v8871_v38 = vpop.f32.mrf.mxu1  ;;  %v12332_v39 = vpop.f32.mrf.mxu0 }
0x34f0   :  { %v12302_v47 = vpop.f32.mrf.mxu1  ;;  %v9268_v7 = vpop.f32.mrf.mxu0 }
0x34f1   :  { %v9274_v51 = vmul.f32 0.17677669, %v9268_v7 }
0x34f2   :  { %v8920_v41 = vpop.f32.mrf.mxu1  ;;  %v12343_v36 = vpop.f32.mrf.mxu0 }
0x34f3   :  { %v8926_v43 = vmul.f32 0.17677669, %v8920_v41  ;;  %v9275_v14 = vsel %vm942_vm3, %v9274_v51, -inf }
0x34f4   :  { %v12307_v59 = vpop.f32.mrf.mxu1  ;;  %v9271_v44 = vpop.f32.mrf.mxu0 }
0x34f5   :  { %v8927_v52 = vsel %vm942_vm3, %v8926_v43, -inf }
0x34f6   :  { %v12344_v45 = vpop.f32.mrf.mxu0  ;;  %8928 = vmax.xlane.f32.xlu0 %v8927_v52  ;;  %v8923_v48 = vpop.f32.mrf.mxu1 }
0x34f8   :  { %v12308_v54 = vpop.f32.mrf.mxu1  ;;  %v9379_v50 = vpop.f32.mrf.mxu0 }
0x34f9   :  { %v9385_v55 = vmul.f32 0.17677669, %v9379_v50 }
0x34fa   :  { %v12355_v58 = vpop.f32.mrf.mxu0  ;;  %9151 = vmax.xlane.f32.xlu0 %v9150_v29 }
0x34fb   :  { %v9386_v13 = vsel %vm942_vm3, %v9385_v55, -inf }
0x34fc   :  { %9387 = vmax.xlane.f32.xlu1 %v9386_v13  ;;  %v9382_v26 = vpop.f32.mrf.mxu0 }
0x34fe   :  { %v12356_v53 = vpop.f32.mrf.mxu0  ;;  %9276 = vmax.xlane.f32.xlu0 %v9275_v14 }
0x3500   :  { %v9491_v62 = vpop.f32.mrf.mxu0 }
0x3501   :  { %v9497_v2 = vmul.f32 0.17677669, %v9491_v62 }
0x3502   :  { %v12367_v3 = vpop.f32.mrf.mxu0 }
0x3503   :  { %v9498_v4 = vsel %vm942_vm3, %v9497_v2, -inf }
0x3504   :  { %v9494_v6 = vpop.f32.mrf.mxu0  ;;  %9499 = vmax.xlane.f32.xlu0 %v9498_v4 }
0x3506   :  { %v12368_v8 = vpop.f32.mrf.mxu0 }
0x3508   :  { %v9602_v10 = vpop.f32.mrf.mxu0 }
0x3509   :  { %v9608_v28 = vmul.f32 0.17677669, %v9602_v10 }
0x350a   :  { %v12379_v11 = vpop.f32.mrf.mxu0 }
0x350b   :  { %v9609_v16 = vsel %vm942_vm3, %v9608_v28, -inf }
0x350c   :  { %9610 = vmax.xlane.f32.xlu1 %v9609_v16  ;;  %v9605_v37 = vpop.f32.mrf.mxu0 }
0x350e   :  { %v12380_v18 = vpop.f32.mrf.mxu0 }
0x3510   :  { %9046 = vadd.xlane.f32.xlu1 %v9045_v19 }
0x357f   :  { %v8929_v20 = vpop.xlane.xlu0 %8928 }
0x3580   :  { %v8930_v21 = vsub.f32 %v8926_v43, %v8929_v20 }
0x3582   :  { %v8931_v25 = vmul.f32 1.442695, %v8930_v21 }
0x3583   :  { %v9152_v23 = vpop.xlane.xlu0 %9151 }
0x3584   :  { %v9153_v15 = vsub.f32 %v9149_v61, %v9152_v23 }
0x3585   :  { %v9388_v40 = vpop.xlane.xlu1 %9387 }
0x3586   :  { %v9154_v27 = vmul.f32 1.442695, %v9153_v15  ;;  %v9389_v33 = vsub.f32 %v9385_v55, %v9388_v40 }
0x3587   :  { %v9277_v34 = vpop.xlane.xlu0 %9276 }
0x3588   :  { %13240 = vpow2.f32 %v9154_v27  ;;  %v9278_v46 = vsub.f32 %v9274_v51, %v9277_v34  ;;  %v9390_v9 = vmul.f32 1.442695, %v9389_v33 }
0x3589   :  { %13242 = vpow2.f32 %v8931_v25 }
0x358a   :  { %v9279_v35 = vmul.f32 1.442695, %v9278_v46 }
0x358c   :  { %13244 = vpow2.f32 %v9279_v35 }
0x358d   :  { %13246 = vpow2.f32 %v9390_v9  ;;  %v9500_v59 = vpop.xlane.xlu0 %9499 }
0x358e   :  { %v9501_v44 = vsub.f32 %v9497_v2, %v9500_v59 }
0x3590   :  { %v9502_v61 = vmul.f32 1.442695, %v9501_v44 }
0x3592   :  { %13248 = vpow2.f32 %v9502_v61 }
0x3595   :  { %v15724_v38 = vpop.eup %13240  ;;  %v9611_v52 = vpop.xlane.xlu1 %9610 }
0x3596   :  { %v9156_v39 = vsel %vm942_vm3, %v15724_v38, 0.0  ;;  %v13243_v47 = vpop.eup %13242  ;;  %v9612_v45 = vsub.f32 %v9608_v28, %v9611_v52 }
0x3597   :  { %9157 = vadd.xlane.f32.xlu0 %v9156_v39  ;;  %v8933_v41 = vsel %vm942_vm3, %v13243_v47, 0.0 }
0x3598   :  { %v9613_v48 = vmul.f32 1.442695, %v9612_v45 }
0x3599   :  { %v15728_v7 = vpop.eup %13244  ;;  %v9047_v60 = vpop.xlane.xlu1 %9046 }
0x359a   :  { %v9281_v36 = vsel %vm942_vm3, %v15728_v7, 0.0  ;;  %v15733_v42 = vpop.eup %13246  ;;  %13250 = vpow2.f32 %v9613_v48 }
0x359b   :  { %8934 = vadd.xlane.f32.xlu0 %v8933_v41  ;;  %9282 = vadd.xlane.f32.xlu1 %v9281_v36  ;;  %v9392_v43 = vsel %vm942_vm3, %v15733_v42, 0.0 }
0x359f   :  { %9393 = vadd.xlane.f32.xlu1 %v9392_v43  ;;  %v15743_v5 = vpop.eup %13248  ;;  %v12943_v43 = vld [vmem:[#allocation34 + $0x70] sm:$0xff]  }
0x35a0   :  { %v9504_v54 = vsel %vm942_vm3, %v15743_v5, 0.0 }
0x35a7   :  { %v15747_v50 = vpop.eup %13250 }
0x35a8   :  { %v9615_v51 = vsel %vm942_vm3, %v15747_v50, 0.0 }
0x35b0   :  { %9051 = vrot.lane.b32.xlu1 %v15648_v12, %s14117_s4 }
0x35b1   :  { %8940 = vrot.lane.b32.xlu0 %v15648_v12, %s14140_s25 }
0x35b4   :  { %9162 = vrot.lane.b32.xlu1 %v15648_v12, %s14097_s21  ;;  %v8764_v12 = vadd.f32 %v15707_v56, %v15645_v22 }
0x35b6   :  { %v9227_v55 = vpack.c.bf16 %v8764_v12, %v8764_v12 }
0x35b8   :  { %v9291_v18 = vsel %vm958_vm2, %v9227_v55, 0 }
0x35d0   :  { %9505 = vadd.xlane.f32.xlu0 %v9504_v54 }
0x35d8   :  { %9616 = vadd.xlane.f32.xlu1 %v9615_v51 }
0x35e6   :  { %9399 = vrot.lane.b32.xlu0 %v9227_v55, %s14140_s25 }
0x35e9   :  { %9510 = vrot.lane.b32.xlu1 %v9227_v55, %s14117_s4 }
0x35ea   :  { %9621 = vrot.lane.b32.xlu0 %v9227_v55, %s14097_s21 }
0x3620   :  { %v9158_v29 = vpop.xlane.xlu0 %9157 }
0x3624   :  { %v8935_v58 = vpop.xlane.xlu0 %8934  ;;  %v9283_v26 = vpop.xlane.xlu1 %9282 }
0x3625   :  { %13252 = vrcp.f32 %v8935_v58 }
0x3626   :  { %13254 = vrcp.f32 %v9047_v60 }
0x3627   :  { %13256 = vrcp.f32 %v9158_v29 }
0x3628   :  { %v8941_v13 = vpop.permute.xlu0 %8940  ;;  %v9394_v22 = vpop.xlane.xlu1 %9393  ;;  %13258 = vrcp.f32 %v9283_v26  ;;  %v12944_v26 = vld [vmem:[#allocation34 + $0x68] sm:$0xff]  }
0x3629   :  { %v8946_v14 = vsel %vm958_vm2, %v8941_v13, 0  ;;  %13260 = vrcp.f32 %v9394_v22  ;;  %v12946_v22 = vld [vmem:[#allocation34 + $0x58] sm:$0xff]  }
0x362a   :  { %12310 = vmatpush3.bf16.msra.mxu1 %v8946_v14  ;;  %v12945_v14 = vld [vmem:[#allocation34 + $0x60] sm:$0xff]  }
0x362b   :  { %12321 = vmatprep.subr.bf16.mxu1 %v14138_v1 }
0x362c   :  { %v9052_v62 = vpop.permute.xlu1 %9051 }
0x362d   :  { %v9057_v4 = vsel %vm958_vm2, %v9052_v62, 0 }
0x3630   :  { %v9163_v8 = vpop.permute.xlu1 %9162 }
0x3631   :  { %v9168_v11 = vsel %vm958_vm2, %v9163_v8, 0 }
0x3632   :  { %v13253_v56 = vpop.eup %13252 }
0x3633   :  { %v8937_v53 = vmul.f32 %v13253_v56, %v13243_v47  ;;  %v13255_v3 = vpop.eup %13254 }
0x3634   :  { %v9049_v6 = vmul.f32 %v13255_v3, %v15720_v17  ;;  %v13257_v28 = vpop.eup %13256 }
0x3635   :  { %v8938_v2 = vpack.c.bf16 %v8937_v53, %v8937_v53  ;;  %v9160_v16 = vmul.f32 %v13257_v28, %v15724_v38  ;;  %v13259_v17 = vpop.eup %13258 }
0x3636   :  { %v9050_v10 = vpack.c.bf16 %v9049_v6, %v9049_v6  ;;  %v9285_v19 = vmul.f32 %v13259_v17, %v15728_v7  ;;  %v13261_v21 = vpop.eup %13260 }
0x3637   :  { %12312 = vmatmul.mubr.msk.bf16.vlgmr.msra.gmra.mxu1 %vm942_vm3, %v8938_v2  ;;  %v9161_v37 = vpack.c.bf16 %v9160_v16, %v9160_v16  ;;  %v9396_v15 = vmul.f32 %v13261_v21, %v15733_v42  ;;  %v12942_v42 = vld [vmem:[#allocation34 + $0x78] sm:$0xff]   ;;  %v12947_v2 = vld [vmem:[#allocation34 + $0x50] sm:$0xff]  }
0x3638   :  { %12322 = vmatpush3.bf16.msra.mxu1 %v9057_v4  ;;  %12323 = vmatprep.mubr.msk.bf16.mxu1 %vm14139_vm0, %v14138_v1  ;;  %v9286_v20 = vpack.c.bf16 %v9285_v19, %v9285_v19  ;;  %v12948_v4 = vld [vmem:[#allocation34 + $0x48] sm:$0xff]  }
0x3639   :  { %12333 = vmatprep.subr.bf16.mxu1 %v14138_v1  ;;  %v9397_v27 = vpack.c.bf16 %v9396_v15, %v9396_v15  ;;  %12388 = vmatpush3.bf16.msra.mxu0 %v12942_v42 }
0x363a   :  { %12389 = vmatprep.subr.bf16.mxu0 %v14138_v1 }
0x363d   :  { %12390 = vmatpush3.bf16.msra.mxu0 %v12943_v43 }
0x363e   :  { %12391 = vmatprep.subr.bf16.mxu0 %v14138_v1 }
0x363f   :  { %12324 = vmatmul.mubr.msk.bf16.vlgmr.msra.gmra.mxu1 %vm942_vm3, %v9050_v10  ;;  %v12949_v10 = vld [vmem:[#allocation34 + $0x40] sm:$0xff]  }
0x3640   :  { %12334 = vmatpush3.bf16.msra.mxu1 %v9168_v11  ;;  %12335 = vmatprep.mubr.msk.bf16.mxu1 %vm14139_vm0, %v14138_v1 }
0x3641   :  { %12345 = vmatprep.subr.bf16.mxu1 %v14138_v1  ;;  %12392 = vmatpush3.bf16.msra.mxu0 %v12944_v26  ;;  %v12956_v26 = vld [vmem:[#allocation40 + $0xd0] ss:$8 sps:$4 sm:$0xff]  }
0x3642   :  { %12393 = vmatprep.subr.bf16.mxu0 %v14138_v1 }
0x3645   :  { %12394 = vmatpush3.bf16.msra.mxu0 %v12945_v14  ;;  %v12961_v14 = vld [vmem:[#allocation40 + $0xc4] ss:$8 sps:$4 sm:$0xff]  }
0x3646   :  { %12395 = vmatprep.subr.bf16.mxu0 %v14138_v1 }
0x3647   :  { %12336 = vmatmul.mubr.msk.bf16.vlgmr.msra.gmra.mxu1 %vm942_vm3, %v9161_v37 }
0x3648   :  { %12346 = vmatpush3.bf16.msra.mxu1 %v9291_v18  ;;  %12347 = vmatprep.mubr.msk.bf16.mxu1 %vm14139_vm0, %v14138_v1 }
0x3649   :  { %12357 = vmatprep.subr.bf16.mxu1 %v14138_v1  ;;  %12396 = vmatpush3.bf16.msra.mxu0 %v12946_v22  ;;  %v12959_v22 = vld [vmem:[#allocation40 + $0xc0] ss:$8 sps:$4 sm:$0xff]  }
0x364a   :  { %12397 = vmatprep.subr.bf16.mxu0 %v14138_v1 }
0x364d   :  { %12398 = vmatpush3.bf16.msra.mxu0 %v12947_v2  ;;  %v12965_v2 = vld [vmem:[#allocation40 + $0xa0] ss:$8 sps:$4 sm:$0xff]  }
0x364e   :  { %12399 = vmatprep.subr.bf16.mxu0 %v14138_v1 }
0x364f   :  { %12348 = vmatmul.mubr.msk.bf16.vlgmr.msra.gmra.mxu1 %vm942_vm3, %v9286_v20 }
0x3650   :  { %12359 = vmatprep.mubr.msk.bf16.mxu1 %vm14139_vm0, %v14138_v1 }
0x3651   :  { %12400 = vmatpush3.bf16.msra.mxu0 %v12948_v4  ;;  %v12970_v4 = vld [vmem:[#allocation40 + $0x94] ss:$8 sps:$4 sm:$0xff]  }
0x3652   :  { %12401 = vmatprep.subr.bf16.mxu0 %v14138_v1 }
0x3655   :  { %12402 = vmatpush3.bf16.msra.mxu0 %v12949_v10  ;;  %v12974_v10 = vld [vmem:[#allocation43 + $0xf8] sm:$0xff]  }
0x3656   :  { %11569 = vmatprep.subr.bf16.mxu0 %v12974_v10 }
0x3659   :  { %v9506_v23 = vpop.xlane.xlu0 %9505 }
0x365a   :  { %13262 = vrcp.f32 %v9506_v23 }
0x365d   :  { %v9400_v40 = vpop.permute.xlu0 %9399 }
0x365e   :  { %v9405_v25 = vsel %vm958_vm2, %v9400_v40, 0 }
0x365f   :  { %12358 = vmatpush3.bf16.msra.mxu1 %v9405_v25 }
0x3660   :  { %12369 = vmatprep.subr.bf16.mxu1 %v14138_v1 }
0x3661   :  { %v9617_v33 = vpop.xlane.xlu1 %9616  ;;  %v9622_v38 = vpop.permute.xlu0 %9621 }
0x3662   :  { %13264 = vrcp.f32 %v9617_v33  ;;  %12360 = vmatmul.mubr.msk.bf16.vlgmr.msra.gmra.mxu1 %vm942_vm3, %v9397_v27  ;;  %v9627_v47 = vsel %vm958_vm2, %v9622_v38, 0 }
0x3663   :  { %12371 = vmatprep.mubr.msk.bf16.mxu1 %vm14139_vm0, %v14138_v1 }
0x3665   :  { %v9511_v34 = vpop.permute.xlu1 %9510 }
0x3666   :  { %v9516_v46 = vsel %vm958_vm2, %v9511_v34, 0 }
0x3667   :  { %v13263_v9 = vpop.eup %13262  ;;  %12370 = vmatpush3.bf16.msra.mxu1 %v9516_v46 }
0x3668   :  { %v9508_v35 = vmul.f32 %v13263_v9, %v15743_v5  ;;  %12381 = vmatprep.subr.bf16.mxu1 %v14138_v1 }
0x366a   :  { %v9509_v39 = vpack.c.bf16 %v9508_v35, %v9508_v35 }
0x366c   :  { %12372 = vmatmul.mubr.msk.bf16.vlgmr.msra.gmra.mxu1 %vm942_vm3, %v9509_v39 }
0x366d   :  { %12382 = vmatpush3.bf16.msra.mxu1 %v9627_v47  ;;  %12383 = vmatprep.mubr.msk.bf16.mxu1 %vm14139_vm0, %v14138_v1 }
0x366f   :  { %v13265_v7 = vpop.eup %13264 }
0x3670   :  { %v9619_v41 = vmul.f32 %v13265_v7, %v15747_v50 }
0x3672   :  { %v9620_v36 = vpack.c.bf16 %v9619_v41, %v9619_v41 }
0x3674   :  { %12384 = vmatmul.mubr.msk.bf16.vlgmr.msra.gmra.mxu1 %vm942_vm3, %v9620_v36  ;;  %v11122_v36 = vld [vmem:[#allocation35 + $0x1] ss:$0 sm:$0xff] }
0x3675   :  { %9986 = vmatprep.mubr.bf16.mxu1 %v14137_v0 }
0x36f7   :  { %v8982_v59 = vpop.f32.mrf.mxu1 }
0x36f9   :  { %v12313_v44 = vpop.f32.mrf.mxu1 }
0x36fb   :  { %v8985_v61 = vpop.f32.mrf.mxu1 }
0x36fd   :  { %v12314_v52 = vpop.f32.mrf.mxu1 }
0x36ff   :  { %v9093_v45 = vpop.f32.mrf.mxu1 }
0x3701   :  { %v12325_v48 = vpop.f32.mrf.mxu1 }
0x3702   :  { %v12950_v48 = vld [vmem:[#allocation40 + $0xf0] ss:$8 sps:$4 sm:$0xff]  }
0x3703   :  { %v9096_v5 = vpop.f32.mrf.mxu1 }
0x3704   :  { %v12952_v5 = vld [vmem:[#allocation40 + $0xf4] ss:$8 sps:$4 sm:$0xff]  }
0x3705   :  { %v12326_v54 = vpop.f32.mrf.mxu1  ;;  %9954 = vmatprep.subr.bf16.mxu1 %v12952_v5 }
0x3706   :  { %9955 = vmatpush1.bf16.msra.mxu1 %v12950_v48 }
0x3707   :  { %v9204_v50 = vpop.f32.mrf.mxu1 }
0x3709   :  { %v12337_v51 = vpop.f32.mrf.mxu1 }
0x370b   :  { %v9207_v12 = vpop.f32.mrf.mxu1 }
0x370d   :  { %v12338_v55 = vpop.f32.mrf.mxu1 }
0x370f   :  { %v9327_v29 = vpop.f32.mrf.mxu1 }
0x3711   :  { %v12349_v58 = vpop.f32.mrf.mxu1 }
0x3712   :  { %v12955_v58 = vld [vmem:[#allocation40 + $0xe4] ss:$8 sps:$4 sm:$0xff]  }
0x3713   :  { %v9330_v60 = vpop.f32.mrf.mxu1  ;;  %9956 = vmatprep.subr.bf16.mxu1 %v12955_v58 }
0x3714   :  { %v12953_v60 = vld [vmem:[#allocation40 + $0xe0] ss:$8 sps:$4 sm:$0xff]  }
0x3715   :  { %v12350_v13 = vpop.f32.mrf.mxu1  ;;  %9957 = vmatpush1.bf16.msra.mxu1 %v12953_v60 }
0x3716   :  { %v12958_v13 = vld [vmem:[#allocation40 + $0xd4] ss:$8 sps:$4 sm:$0xff]  }
0x3717   :  { %9958 = vmatprep.subr.bf16.mxu1 %v12958_v13 }
0x3719   :  { %9959 = vmatpush1.bf16.msra.mxu1 %v12956_v26 }
0x371a   :  { %9960 = vmatprep.subr.bf16.mxu1 %v12961_v14 }
0x371d   :  { %9961 = vmatpush1.bf16.msra.mxu1 %v12959_v22 }
0x3722   :  { %v9441_v56 = vpop.f32.mrf.mxu1 }
0x3723   :  { %v12575_v53 = vpack.i.bf16 %v9441_v56, %v8982_v59  ;;  %v12964_v56 = vld [vmem:[#allocation40 + $0xb4] ss:$8 sps:$4 sm:$0xff]  }
0x3724   :  { %v12361_v62 = vpop.f32.mrf.mxu1  ;;  %9962 = vmatprep.subr.bf16.mxu1 %v12964_v56  ;;  %v11150_v56 = vld [vmem:[%s15901_s22 + $0x1] ss:$0 sm:$0xff] }
0x3725   :  { %12576 = vrot.lane.b32.xlu0 %v12575_v53, %s14097_s21  ;;  %v12962_v53 = vld [vmem:[#allocation40 + $0xb0] ss:$8 sps:$4 sm:$0xff]   ;;  %v12967_v62 = vld [vmem:[#allocation40 + $0xa4] ss:$8 sps:$4 sm:$0xff]   ;;  %s14142_s21 = smov [#allocation56]  }
0x3726   :  { %v9444_v3 = vpop.f32.mrf.mxu1  ;;  %9963 = vmatpush1.bf16.msra.mxu1 %v12962_v53 }
0x3727   :  { %9964 = vmatprep.subr.bf16.mxu1 %v12967_v62  ;;  %v12968_v3 = vld [vmem:[#allocation40 + $0x90] ss:$8 sps:$4 sm:$0xff]  }
0x3728   :  { %v12362_v6 = vpop.f32.mrf.mxu1 }
0x3729   :  { %v12973_v6 = vld [vmem:[#allocation40 + $0x84] ss:$8 sps:$4 sm:$0xff]  }
0x372a   :  { %9965 = vmatpush1.bf16.msra.mxu1 %v12965_v2 }
0x372b   :  { %9966 = vmatprep.subr.bf16.mxu1 %v12970_v4 }
0x372c   :  { %v9552_v8 = vpop.f32.mrf.mxu1 }
0x372d   :  { %v12580_v28 = vpack.i.bf16 %v9552_v8, %v9093_v45  ;;  %v12971_v8 = vld [vmem:[#allocation40 + $0x80] ss:$8 sps:$4 sm:$0xff]  }
0x372e   :  { %v12373_v11 = vpop.f32.mrf.mxu1  ;;  %9967 = vmatpush1.bf16.msra.mxu1 %v12968_v3 }
0x372f   :  { %12581 = vrot.lane.b32.xlu1 %v12580_v28, %s14117_s4  ;;  %9968 = vmatprep.subr.bf16.mxu1 %v12973_v6  ;;  %v12975_v28 = vld [vmem:[#allocation43 + $0xb8] sm:$0xff]   ;;  %v12976_v11 = vld [vmem:[#allocation43 + $0xf0] sm:$0xff]   ;;  %s10636_s4 = sshll.u32 %s14142_s21, 4  ;;  %s10637_s4 = int_to_ptr.vmem [resolvable:$true] %s10636_s4 }
0x3730   :  { %v9555_v16 = vpop.f32.mrf.mxu1  ;;  %s13992_s19 = scalar_lea.vmem %s10637_s4, 128  ;;  %p13997_p8 = scmp.lt.s32.totalorder %s10637_s4, %s10637_s4 }
0x3731   :  { %v12977_v16 = vld [vmem:[#allocation43 + $0xb0] sm:$0xff]   ;;  %p13993_p7 = scmp.ne.s32.totalorder %s10637_s4, %s13992_s19  ;;  %p13998_p9 = scmp.lt.s32.totalorder %s13992_s19, %s13992_s19 }
0x3732   :  { %v12374_v37 = vpop.f32.mrf.mxu1  ;;  %9969 = vmatpush1.bf16.msra.mxu1 %v12971_v8 }
0x3733   :  { %v12978_v37 = vld [vmem:[#allocation43 + $0xe8] sm:$0xff]   ;;  %p13999_p10 = por %p13998_p9, %p13997_p8 }
0x3734   :  { %v9663_v17 = vpop.f32.mrf.mxu1 }
0x3735   :  { %v12585_v18 = vpack.i.bf16 %v9663_v17, %v9204_v50  ;;  %v12979_v17 = vld [vmem:[#allocation43 + $0xa8] sm:$0xff]   ;;  %p14000_p11 = pnand %p13999_p10, %p13993_p7 }
0x3736   :  { %v12385_v19 = vpop.f32.mrf.mxu1 }
0x3737   :  { %12586 = vrot.lane.b32.xlu0 %v12585_v18, %s14140_s25  ;;  %v12980_v18 = vld [vmem:[#allocation43 + $0xe0] sm:$0xff]  }
0x3738   :  { %v9666_v20 = vpop.f32.mrf.mxu1  ;;  %v12981_v19 = vld [vmem:[#allocation43 + $0xa0] sm:$0xff]  }
0x3739   :  { %v12982_v20 = vld [vmem:[#allocation43 + $0xd8] sm:$0xff]  }
0x373a   :  { %v12386_v21 = vpop.f32.mrf.mxu1 }
0x373b   :  { %v12983_v21 = vld [vmem:[#allocation43 + $0x98] sm:$0xff]  }
0x3797   :  { %v12577_v23 = vpop.permute.xlu0 %12576 }
0x3798   :  { %v12579_v40 = vunpack.i.h.bf16 %v12577_v23  ;;  %v12578_v1 = vunpack.i.l.bf16 %v12577_v23 }
0x379a   :  { %v9681_v34 = vsel %vm894_vm1, %v9327_v29, %v12579_v40  ;;  %v9222_v46 = vsel %vm894_vm1, %v15712_v57, %v12578_v1 }
0x37a1   :  { %v12582_v15 = vpop.permute.xlu1 %12581 }
0x37a2   :  { %v12584_v25 = vunpack.i.h.bf16 %v12582_v15  ;;  %v12583_v27 = vunpack.i.l.bf16 %v12582_v15 }
0x37a4   :  { %v9682_v38 = vsel %vm1351_vm4, %v9681_v34, %v12584_v25  ;;  %v9223_v39 = vsel %vm1351_vm4, %v9222_v46, %v12583_v27  ;;  %v11131_v46 = vld [vmem:[#allocation37 + $0x1] ss:$0 sm:$0xff] }
0x37a9   :  { %v12587_v33 = vpop.permute.xlu0 %12586 }
0x37aa   :  { %v12589_v9 = vunpack.i.h.bf16 %v12587_v33  ;;  %v12588_v35 = vunpack.i.l.bf16 %v12587_v33 }
0x37ac   :  { %v9683_v47 = vsel %vm1353_vm5, %v9682_v38, %v12589_v9  ;;  %v9224_v7 = vsel %vm1353_vm5, %v9223_v39, %v12588_v35  ;;  %v11132_v39 = vld [vmem:[#allocation38 + $0x1] ss:$0 sm:$0xff] }
0x37ad   :  { %v9703_v41 = vpack.c.bf16 %v9683_v47, %v9224_v7 }
0x37af   :  { %12404 = vmatmul.mubr.bf16.vlgmr.msra.gmra.mxu0 %v9703_v41 }
0x37b0   :  { %11570 = vmatpush3.bf16.msra.mxu0 %v12975_v28 }
0x37b1   :  { %11571 = vmatprep.subr.bf16.mxu0 %v12976_v11 }
0x37b4   :  { %11572 = vmatpush3.bf16.msra.mxu0 %v12977_v16 }
0x37b5   :  { %11573 = vmatprep.subr.bf16.mxu0 %v12978_v37 }
0x37b8   :  { %11574 = vmatpush3.bf16.msra.mxu0 %v12979_v17 }
0x37b9   :  { %11575 = vmatprep.subr.bf16.mxu0 %v12980_v18 }
0x37bc   :  { %11576 = vmatpush3.bf16.msra.mxu0 %v12981_v19 }
0x37bd   :  { %11577 = vmatprep.subr.bf16.mxu0 %v12982_v20 }
0x37c0   :  { %11578 = vmatpush3.bf16.msra.mxu0 %v12983_v21 }
0x386f   :  { %v9792_v42 = vpop.f32.mrf.mxu0 }
0x3870   :  { %v9793_v43 = vadd.f32 %v11122_v36, %v9792_v42  ;;  %v12984_v42 = vld [vmem:[#allocation43 + $0xd0] sm:$0xff]  }
0x3871   :  { %v12405_v59 = vpop.f32.mrf.mxu0  ;;  %11579 = vmatprep.subr.bf16.mxu0 %v12984_v42 }
0x3872   :  { %v9799_v44 = vadd.f32 %v9793_v43, %v15634_v24  ;;  %v12985_v43 = vld [vmem:[#allocation43 + $0x90] sm:$0xff]   ;;  %v12986_v59 = vld [vmem:[#allocation43 + $0xc8] sm:$0xff]  }
0x3873   :  { %v9795_v61 = vpop.f32.mrf.mxu0  ;;  %11580 = vmatpush3.bf16.msra.mxu0 %v12985_v43 }
0x3874   :  { %v9796_v57 = vadd.f32 %v11122_v36, %v9795_v61  ;;  %9805 = vadd.xlane.f32.xlu1 %v9799_v44  ;;  %11581 = vmatprep.subr.bf16.mxu0 %v12986_v59  ;;  %v12988_v61 = vld [vmem:[#allocation43 + $0xc0] sm:$0xff]  }
0x3875   :  { %v12406_v52 = vpop.f32.mrf.mxu0 }
0x3876   :  { %v9800_v45 = vadd.f32 %v9796_v57, %v15636_v63  ;;  %v12989_v57 = vld [vmem:[#allocation43 + $0x80] sm:$0xff]   ;;  %v9861_v52 = vld [vmem:[#allocation41 + $0x2] sm:$0x3] }
0x3877   :  { %v9871_v48 = vrot.slane %v9861_v52, %v14497_v31  ;;  %v9867_v5 = vrot.slane %v9861_v52, %v14500_v32  ;;  %v12992_v52 = vld [vmem:[#allocation53 + $0xe4] ss:$16 sps:$4 sm:$0xff]  }
0x3878   :  { %9807 = vadd.xlane.f32.xlu0 %v9800_v45  ;;  %10488 = vmatprep.subr.bf16.mxu1 %v12992_v52 }
0x38fd   :  { %v9806_v54 = vpop.xlane.xlu1 %9805 }
0x38fe   :  { %v9809_v50 = vmul.f32 0.0078125, %v9806_v54 }
0x3900   :  { %v15814_v51 = vsub.f32 %v9799_v44, %v9809_v50  ;;  %v12987_v44 = vld [vmem:[#allocation43 + $0x88] sm:$0xff]  }
0x3901   :  { %v9808_v12 = vpop.xlane.xlu0 %9807  ;;  %11582 = vmatpush3.bf16.msra.mxu0 %v12987_v44 }
0x3902   :  { %v9810_v55 = vmul.f32 0.0078125, %v9808_v12  ;;  %v9813_v24 = vmul.f32 %v15814_v51, %v15814_v51  ;;  %11583 = vmatprep.subr.bf16.mxu0 %v12988_v61 }
0x3904   :  { %v15818_v29 = vsub.f32 %v9800_v45, %v9810_v55  ;;  %9815 = vadd.xlane.f32.xlu0 %v9813_v24 }
0x3905   :  { %11584 = vmatpush3.bf16.msra.mxu0 %v12989_v57 }
0x3906   :  { %v9814_v63 = vmul.f32 %v15818_v29, %v15818_v29 }
0x3908   :  { %9817 = vadd.xlane.f32.xlu1 %v9814_v63 }
0x398d   :  { %v9816_v23 = vpop.xlane.xlu0 %9815 }
0x398e   :  { %v9819_v15 = vmul.f32 0.0078125, %v9816_v23 }
0x3990   :  { %v9821_v40 = vadd.f32 1e-05, %v9819_v15 }
0x3991   :  { %v9818_v1 = vpop.xlane.xlu1 %9817 }
0x3992   :  { %13266 = vrsqrt.f32 %v9821_v40  ;;  %v9820_v25 = vmul.f32 0.0078125, %v9818_v1 }
0x3994   :  { %v9822_v27 = vadd.f32 1e-05, %v9820_v25 }
0x3996   :  { %13268 = vrsqrt.f32 %v9822_v27 }
0x399f   :  { %v13267_v33 = vpop.eup %13266 }
0x39a0   :  { %v9825_v34 = vmul.f32 %v13267_v33, %v15814_v51  ;;  %v11167_v33 = vld [vmem:[#allocation44 + $0x1] ss:$0 sm:$0xff] }
0x39a2   :  { %v9833_v38 = vmul.f32 %v11131_v46, %v9825_v34 }
0x39a3   :  { %v13269_v9 = vpop.eup %13268 }
0x39a4   :  { %v9826_v35 = vmul.f32 %v13269_v9, %v15818_v29  ;;  %v9841_v7 = vadd.f32 %v11132_v39, %v9833_v38 }
0x39a6   :  { %v9834_v47 = vmul.f32 %v11131_v46, %v9826_v35  ;;  %v11168_v46 = vld [vmem:[#allocation46 + $0x1] ss:$0 sm:$0xff] }
0x39a8   :  { %v9842_v41 = vadd.f32 %v11132_v39, %v9834_v47 }
0x39aa   :  { %v9862_v36 = vpack.c.bf16 %v9842_v41, %v9841_v7 }
0x39ac   :  { %9987 = vmatmul.mubr.bf16.vlgmr.msra.gmra.mxu1 %v9862_v36 }
0x39ad   :  { %10520 = vmatprep.mubr.bf16.mxu1 %v14137_v0 }
0x3a6c   :  { %v9988_v45 = vpop.f32.mrf.mxu1 }
0x3a6d   :  { %v9989_v55 = vadd.f32 %v9988_v45, %v9867_v5  ;;  %v12995_v45 = vld [vmem:[#allocation53 + $0xec] ss:$16 sps:$4 sm:$0xff]  }
0x3a6e   :  { %v9990_v54 = vpop.f32.mrf.mxu1  ;;  %10529 = vmatprep.subr.bf16.mxu0 %v12995_v45 }
0x3a6f   :  { %v9991_v51 = vadd.f32 %v9990_v54, %v9871_v48  ;;  %v9997_v13 = vmax.f32 %v9989_v55, 0.0  ;;  %v12998_v54 = vld [vmem:[#allocation53 + $0xc4] ss:$16 sps:$4 sm:$0xff]  }
0x3a70   :  { %v9992_v50 = vpop.f32.mrf.mxu1  ;;  %v13004_v55 = vld [vmem:[#allocation53 + $0xa4] ss:$16 sps:$4 sm:$0xff]  }
0x3a71   :  { %v9993_v12 = vadd.f32 %v9992_v50, %v9867_v5  ;;  %v9998_v58 = vmax.f32 %v9991_v51, 0.0  ;;  %v12993_v5 = vld [vmem:[#allocation53 + $0xe8] ss:$16 sps:$4 sm:$0xff]   ;;  %v13001_v50 = vld [vmem:[#allocation53 + $0xcc] ss:$16 sps:$4 sm:$0xff]  }
0x3a72   :  { %v9994_v24 = vpop.f32.mrf.mxu1  ;;  %v12996_v51 = vld [vmem:[#allocation53 + $0xc0] ss:$16 sps:$4 sm:$0xff]  }
0x3a73   :  { %v9995_v29 = vadd.f32 %v9994_v24, %v9871_v48  ;;  %v9999_v63 = vmax.f32 %v9993_v12, 0.0  ;;  %v12990_v48 = vld [vmem:[#allocation53 + $0xe0] ss:$16 sps:$4 sm:$0xff]   ;;  %v12999_v12 = vld [vmem:[#allocation53 + $0xc8] ss:$16 sps:$4 sm:$0xff]  }
0x3a74   :  { %10489 = vmatpush1.bf16.msra.mxu1 %v12990_v48  ;;  %v13007_v24 = vld [vmem:[#allocation53 + $0xac] ss:$16 sps:$4 sm:$0xff]  }
0x3a75   :  { %v10000_v60 = vmax.f32 %v9995_v29, 0.0  ;;  %v10036_v14 = vpack.c.bf16 %v9999_v63, %v9997_v13  ;;  %10490 = vmatprep.subr.bf16.mxu1 %v12998_v54  ;;  %v13002_v29 = vld [vmem:[#allocation53 + $0xa0] ss:$16 sps:$4 sm:$0xff]   ;;  %v13005_v63 = vld [vmem:[#allocation53 + $0xa8] ss:$16 sps:$4 sm:$0xff]  }
0x3a76   :  { %v13008_v13 = vld [vmem:[#allocation53 + $0x80] ss:$16 sps:$4 sm:$0xff]  }
0x3a77   :  { %v10037_v26 = vpack.c.bf16 %v10000_v60, %v9998_v58  ;;  %v13010_v58 = vld [vmem:[#allocation53 + $0x84] ss:$16 sps:$4 sm:$0xff]   ;;  %v13013_v60 = vld [vmem:[#allocation53 + $0x8c] ss:$16 sps:$4 sm:$0xff]  }
0x3a78   :  { %10491 = vmatpush1.bf16.msra.mxu1 %v12996_v51 }
0x3a79   :  { %10172 = vmatprep.mubr.bf16.mxu0 %v10037_v26  ;;  %10492 = vmatprep.subr.bf16.mxu1 %v13004_v55  ;;  %v13011_v26 = vld [vmem:[#allocation53 + $0x88] ss:$16 sps:$4 sm:$0xff]  }
0x3a7a   :  { %10173 = vmatmul.mubr.bf16.vlgmr.msra.gmra.mxu0 %v10036_v14  ;;  %v13016_v14 = vld [vmem:[#allocation53 + $0x64] ss:$16 sps:$4 sm:$0xff]  }
0x3a7b   :  { %10561 = vmatprep.mubr.bf16.mxu0 %v14137_v0  ;;  %10530 = vmatpush1.bf16.msra.mxu0 %v12993_v5 }
0x3a7c   :  { %10531 = vmatprep.subr.bf16.mxu0 %v13001_v50  ;;  %10493 = vmatpush1.bf16.msra.mxu1 %v13002_v29 }
0x3a7d   :  { %10494 = vmatprep.subr.bf16.mxu1 %v13010_v58 }
0x3a7f   :  { %10532 = vmatpush1.bf16.msra.mxu0 %v12999_v12 }
0x3a80   :  { %10533 = vmatprep.subr.bf16.mxu0 %v13007_v24  ;;  %10495 = vmatpush1.bf16.msra.mxu1 %v13008_v13 }
0x3a81   :  { %10496 = vmatprep.subr.bf16.mxu1 %v13016_v14 }
0x3a83   :  { %10534 = vmatpush1.bf16.msra.mxu0 %v13005_v63 }
0x3a84   :  { %10535 = vmatprep.subr.bf16.mxu0 %v13013_v60 }
0x3a87   :  { %10536 = vmatpush1.bf16.msra.mxu0 %v13011_v26 }
0x3b3a   :  { %v11585_v22 = vpop.f32.mrf.mxu0 }
0x3b3c   :  { %v11586_v53 = vpop.f32.mrf.mxu0 }
0x3b3d   :  { %v11587_v62 = vadd.f32 %v11586_v53, %v11585_v22  ;;  %v13019_v22 = vld [vmem:[#allocation53 + $0x6c] ss:$16 sps:$4 sm:$0xff]   ;;  %v13017_v53 = vld [vmem:[#allocation53 + $0x68] ss:$16 sps:$4 sm:$0xff]  }
0x3b3e   :  { %v11588_v2 = vpop.f32.mrf.mxu0  ;;  %10537 = vmatprep.subr.bf16.mxu0 %v13019_v22 }
0x3b3f   :  { %v10175_v3 = vadd.f32 %v11587_v62, %v11150_v56  ;;  %10538 = vmatpush1.bf16.msra.mxu0 %v13017_v53  ;;  %v13022_v62 = vld [vmem:[#allocation53 + $0x44] ss:$16 sps:$4 sm:$0xff]  }
0x3b40   :  { %v11589_v4 = vpop.f32.mrf.mxu0 }
0x3b41   :  { %v11590_v6 = vadd.f32 %v11589_v4, %v11588_v2  ;;  %v10181_v8 = vadd.f32 %v10175_v3, %v9841_v7  ;;  %v13025_v2 = vld [vmem:[#allocation53 + $0x4c] ss:$16 sps:$4 sm:$0xff]   ;;  %v13020_v3 = vld [vmem:[#allocation53 + $0x40] ss:$16 sps:$4 sm:$0xff]   ;;  %v13023_v4 = vld [vmem:[#allocation53 + $0x48] ss:$16 sps:$4 sm:$0xff]  }
0x3b42   :  { %10539 = vmatprep.subr.bf16.mxu0 %v13025_v2 }
0x3b43   :  { %v10178_v10 = vadd.f32 %v11590_v6, %v11150_v56  ;;  %10187 = vadd.xlane.f32.xlu0 %v10181_v8  ;;  %v13014_v56 = vld [vmem:[#allocation53 + $0x60] ss:$16 sps:$4 sm:$0xff]   ;;  %10540 = vmatpush1.bf16.msra.mxu0 %v13023_v4 }
0x3b44   :  { %10497 = vmatpush1.bf16.msra.mxu1 %v13014_v56  ;;  %v13026_v6 = vld [vmem:[#allocation53 + $0x20] ss:$16 sps:$4 sm:$0xff]  }
0x3b45   :  { %v10182_v28 = vadd.f32 %v10178_v10, %v9842_v41  ;;  %10498 = vmatprep.subr.bf16.mxu1 %v13022_v62  ;;  %v13029_v10 = vld [vmem:[#allocation53 + $0x28] ss:$16 sps:$4 sm:$0xff]  }
0x3b47   :  { %10189 = vadd.xlane.f32.xlu1 %v10182_v28 }
0x3b48   :  { %10499 = vmatpush1.bf16.msra.mxu1 %v13020_v3 }
0x3bcc   :  { %v10188_v11 = vpop.xlane.xlu0 %10187 }
0x3bcd   :  { %v10191_v16 = vmul.f32 0.0078125, %v10188_v11  ;;  %v13034_v11 = vld [vmem:[#allocation53 + $0x4] ss:$16 sps:$4 sm:$0xff]  }
0x3bcf   :  { %v10193_v37 = vsub.f32 %v10181_v8, %v10191_v16  ;;  %v13028_v8 = vld [vmem:[#allocation53 + $0x24] ss:$16 sps:$4 sm:$0xff]   ;;  %v13037_v16 = vld [vmem:[#allocation53 + $0xc] ss:$16 sps:$4 sm:$0xff]  }
0x3bd0   :  { %v10190_v17 = vpop.xlane.xlu1 %10189  ;;  %10500 = vmatprep.subr.bf16.mxu1 %v13028_v8 }
0x3bd1   :  { %v10192_v18 = vmul.f32 0.0078125, %v10190_v17  ;;  %v10195_v19 = vmul.f32 %v10193_v37, %v10193_v37  ;;  %10501 = vmatpush1.bf16.msra.mxu1 %v13026_v6  ;;  %v13035_v17 = vld [vmem:[#allocation53 + $0x8] ss:$16 sps:$4 sm:$0xff]  }
0x3bd2   :  { %10502 = vmatprep.subr.bf16.mxu1 %v13034_v11 }
0x3bd3   :  { %v10194_v0 = vsub.f32 %v10182_v28, %v10192_v18  ;;  %10197 = vadd.xlane.f32.xlu0 %v10195_v19  ;;  %v13031_v28 = vld [vmem:[#allocation53 + $0x2c] ss:$16 sps:$4 sm:$0xff]  }
0x3bd4   :  { %10541 = vmatprep.subr.bf16.mxu0 %v13031_v28 }
0x3bd5   :  { %v10196_v20 = vmul.f32 %v10194_v0, %v10194_v0  ;;  %10542 = vmatpush1.bf16.msra.mxu0 %v13029_v10 }
0x3bd6   :  { %10543 = vmatprep.subr.bf16.mxu0 %v13037_v16 }
0x3bd7   :  { %10199 = vadd.xlane.f32.xlu1 %v10196_v20 }
0x3bd9   :  { %10544 = vmatpush1.bf16.msra.mxu0 %v13035_v17 }
0x3c5c   :  { %v10198_v21 = vpop.xlane.xlu0 %10197 }
0x3c5d   :  { %v10201_v23 = vmul.f32 0.0078125, %v10198_v21 }
0x3c5f   :  { %v10203_v15 = vadd.f32 1e-05, %v10201_v23 }
0x3c60   :  { %v10200_v40 = vpop.xlane.xlu1 %10199 }
0x3c61   :  { %13270 = vrsqrt.f32 %v10203_v15  ;;  %v10202_v1 = vmul.f32 0.0078125, %v10200_v40  ;;  %v11169_v40 = vld [vmem:[#allocation50] ss:$0 sm:$0xff] }
0x3c63   :  { %v10204_v25 = vadd.f32 1e-05, %v10202_v1 }
0x3c65   :  { %13272 = vrsqrt.f32 %v10204_v25 }
0x3c6e   :  { %v13271_v27 = vpop.eup %13270 }
0x3c6f   :  { %v10207_v34 = vmul.f32 %v13271_v27, %v10193_v37  ;;  %v13032_v37 = vld [vmem:[#allocation53] ss:$16 sps:$4 sm:$0xff]  }
0x3c70   :  { %10503 = vmatpush1.bf16.msra.mxu1 %v13032_v37 }
0x3c71   :  { %v10215_v9 = vmul.f32 %v11167_v33, %v10207_v34 }
0x3c72   :  { %v13273_v35 = vpop.eup %13272 }
0x3c73   :  { %v10223_v38 = vadd.f32 %v11168_v46, %v10215_v9  ;;  %v10208_v39 = vmul.f32 %v13273_v35, %v10194_v0 }
0x3c75   :  { %10227 = vadd.xlane.f32.xlu0 %v10223_v38  ;;  %v10216_v47 = vmul.f32 %v11167_v33, %v10208_v39  ;;  %v11170_v33 = vld [vmem:[#allocation52] ss:$0 sm:$0xff] }
0x3c77   :  { %v10224_v7 = vadd.f32 %v11168_v46, %v10216_v47 }
0x3c79   :  { %10229 = vadd.xlane.f32.xlu1 %v10224_v7 }
0x3cfe   :  { %v10228_v41 = vpop.xlane.xlu0 %10227 }
0x3cff   :  { %v10231_v36 = vmul.f32 0.0078125, %v10228_v41  ;;  %v10306_v41 = vld [vmem:[#allocation55] sm:$0xf] }
0x3d01   :  { %v15829_v42 = vsub.f32 %v10223_v38, %v10231_v36  ;;  %v10322_v36 = vsub.s32 3, %v14494_v30 }
0x3d02   :  { %v10230_v43 = vpop.xlane.xlu1 %10229 }
0x3d03   :  { %v10232_v59 = vmul.f32 0.0078125, %v10230_v43  ;;  %v10235_v44 = vmul.f32 %v15829_v42, %v15829_v42  ;;  %v10319_v43 = vrot.slane %v10306_v41, %v14522_v49 }
0x3d05   :  { %v15833_v61 = vsub.f32 %v10224_v7, %v10232_v59  ;;  %10237 = vadd.xlane.f32.xlu0 %v10235_v44  ;;  %v10315_v59 = vrot.slane %v10306_v41, %v14497_v31  ;;  %v10323_v44 = vrot.slane %v10306_v41, %v10322_v36 }
0x3d07   :  { %v10236_v57 = vmul.f32 %v15833_v61, %v15833_v61 }
0x3d09   :  { %10239 = vadd.xlane.f32.xlu1 %v10236_v57 }
0x3d8e   :  { %v10238_v18 = vpop.xlane.xlu0 %10237 }
0x3d8f   :  { %v10241_v19 = vmul.f32 0.0078125, %v10238_v18 }
0x3d91   :  { %v10243_v0 = vadd.f32 1e-05, %v10241_v19 }
0x3d92   :  { %v10240_v20 = vpop.xlane.xlu1 %10239 }
0x3d93   :  { %13274 = vrsqrt.f32 %v10243_v0  ;;  %v10242_v21 = vmul.f32 0.0078125, %v10240_v20  ;;  %v14141_v20 = vmov 1983009808  }
0x3d95   :  { %v10244_v23 = vadd.f32 1e-05, %v10242_v21  ;;  %v10614_v21 = vunpack.c.l.s4 %v14141_v20 }
0x3d97   :  { %13276 = vrsqrt.f32 %v10244_v23  ;;  %v10615_v23 = vunpack.c.0.s8 %v10614_v21 }
0x3da0   :  { %v13275_v15 = vpop.eup %13274 }
0x3da1   :  { %v10247_v1 = vmul.f32 %v13275_v15, %v15829_v42  ;;  %v10311_v42 = vrot.slane %v10306_v41, %v14500_v32 }
0x3da3   :  { %v10255_v25 = vmul.f32 %v11169_v40, %v10247_v1 }
0x3da4   :  { %v13277_v27 = vpop.eup %13276 }
0x3da5   :  { %v10248_v34 = vmul.f32 %v13277_v27, %v15833_v61  ;;  %v10263_v9 = vadd.f32 %v11170_v33, %v10255_v25 }
0x3da7   :  { %v10256_v46 = vmul.f32 %v11169_v40, %v10248_v34  ;;  %v10266_v38 = vrot.slane %v10263_v9, 7  ;;  %v10618_v40 = vsub.s32 %v10615_v23, %v14494_v30 }
0x3da9   :  { %v10264_v35 = vadd.f32 %v11170_v33, %v10256_v46 }
0x3dab   :  { %v10269_v39 = vrot.slane %v10264_v35, 6 }
0x3dad   :  { %v10272_v47 = vsel %vm10271_vm6, %v10266_v38, %v10269_v39 }
0x3dae   :  { %v10273_v7 = vpack.c.bf16 %v10272_v47, %v10272_v47 }
0x3db0   :  { %10521 = vmatmul.mubr.bf16.vlgmr.msra.gmra.mxu1 %v10273_v7  ;;  %10562 = vmatmul.mubr.bf16.vlgmr.msra.gmra.mxu0 %v10273_v7 }
0x3e70   :  { %v10522_v61 = vpop.f32.mrf.mxu1  ;;  %v10563_v57 = vpop.f32.mrf.mxu0 }
0x3e71   :  { %v10523_v52 = vadd.f32 %v10522_v61, %v10311_v42  ;;  %v10564_v45 = vadd.f32 %v10563_v57, %v10319_v43 }
0x3e72   :  { %v10524_v48 = vpop.f32.mrf.mxu1  ;;  %v10565_v5 = vpop.f32.mrf.mxu0 }
0x3e73   :  { %v10525_v54 = vadd.f32 %v10524_v48, %v10315_v59  ;;  %v10566_v50 = vadd.f32 %v10565_v5, %v10323_v44  ;;  %v10571_v55 = vsel %vm10570_vm7, %v10523_v52, -inf  ;;  %v10573_v32 = vsel %vm10570_vm7, %v10564_v45, -inf }
0x3e74   :  { %v10526_v51 = vpop.f32.mrf.mxu1  ;;  %v10567_v12 = vpop.f32.mrf.mxu0 }
0x3e75   :  { %v10572_v49 = vsel %vm10570_vm7, %v10525_v54, -inf  ;;  %v10574_v31 = vsel %vm10570_vm7, %v10566_v50, -inf }
0x3e76   :  { %v10575_v24 = vmax.f32 %v10571_v55, %v10572_v49  ;;  %v10576_v29 = vmax.f32 %v10573_v32, %v10574_v31  ;;  %v10527_v63 = vpop.f32.mrf.mxu1  ;;  %v10568_v58 = vpop.f32.mrf.mxu0 }
0x3e78   :  { %v10577_v60 = vmax.f32 %v10575_v24, %v10576_v29 }
0x3e7a   :  { %10578 = vmax.xlane.f32.xlu0 %v10577_v60 }
0x3f03   :  { %v10579_v13 = vpop.xlane.xlu0 %10578 }
0x3f04   :  { %v10580_v26 = vsub.f32 %v10523_v52, %v10579_v13  ;;  %v10581_v14 = vsub.f32 %v10525_v54, %v10579_v13  ;;  %v10582_v22 = vsub.f32 %v10564_v45, %v10579_v13  ;;  %v10583_v56 = vsub.f32 %v10566_v50, %v10579_v13 }
0x3f06   :  { %v10584_v53 = vmul.f32 1.442695, %v10580_v26  ;;  %v10586_v62 = vmul.f32 1.442695, %v10581_v14  ;;  %v10588_v2 = vmul.f32 1.442695, %v10582_v22 }
0x3f07   :  { %v10590_v3 = vmul.f32 1.442695, %v10583_v56 }
0x3f08   :  { %13278 = vpow2.f32 %v10584_v53 }
0x3f09   :  { %13280 = vpow2.f32 %v10586_v62 }
0x3f0a   :  { %13282 = vpow2.f32 %v10588_v2 }
0x3f0b   :  { %13284 = vpow2.f32 %v10590_v3 }
0x3f15   :  { %v13279_v4 = vpop.eup %13278 }
0x3f16   :  { %v13281_v6 = vpop.eup %13280  ;;  %v10592_v8 = vsel %vm10570_vm7, %v13279_v4, 0.0 }
0x3f17   :  { %v13283_v10 = vpop.eup %13282  ;;  %v10593_v28 = vsel %vm10570_vm7, %v13281_v6, 0.0 }
0x3f18   :  { %v13285_v11 = vpop.eup %13284  ;;  %v10594_v16 = vadd.f32 %v10593_v28, %v10592_v8  ;;  %v10595_v37 = vsel %vm10570_vm7, %v13283_v10, 0.0 }
0x3f19   :  { %v10597_v18 = vsel %vm10570_vm7, %v13285_v11, 0.0 }
0x3f1a   :  { %v10596_v17 = vadd.f32 %v10595_v37, %v10594_v16 }
0x3f1c   :  { %v10598_v19 = vadd.f32 %v10597_v18, %v10596_v17 }
0x3f1e   :  { %10599 = vadd.xlane.f32.xlu1 %v10598_v19 }
0x3fa7   :  { %v10600_v0 = vpop.xlane.xlu1 %10599 }
0x3fa8   :  { %13286 = vrcp.f32 %v10600_v0 }
0x3fb5   :  { %v13287_v15 = vpop.eup %13286 }
0x3fb6   :  { %v10603_v1 = vmul.f32 %v13287_v15, %v13279_v4  ;;  %v10604_v25 = vmul.f32 %v13287_v15, %v13281_v6  ;;  %v10605_v27 = vmul.f32 %v13287_v15, %v13283_v10  ;;  %v10606_v33 = vmul.f32 %v13287_v15, %v13285_v11 }
0x3fb8   :  { %v10611_v34 = vcombine.low %v10603_v1, %v10604_v25  ;;  %v10612_v46 = vcombine.low %v10605_v27, %v10606_v33 }
0x3fba   :  { %v10619_v9 = vrot.slane %v10611_v34, %v10618_v40  ;;  %v10626_v35 = vrot.slane %v10612_v46, %v10618_v40 }
0x3fbc   :  { %v10627_v38 = vcombine.low %v10619_v9, %v10626_v35 }
0x3fbe   :  { %10629 = vst [vmem:[#allocation56] sm:$0xff] %v10627_v38 }
0x3fbf   :  { %14003 = shalt.err (!%p14000_p11)
}
0x3fc0   :  { %10639 = dma.vmem_to_hbm [thread:$0]  %s10637_s4, 128, %s14346_s9, [#allocation4]  }
0x3fc1   :  { %14048 = dma.done.wait [#allocation4], 128  }
0x3fc2   :  { %14049 = vsyncadd [#allocation4], 4294967168 }
0x3fc3   :  { %10643 = vsyncpa [#allocation3], 1 }
0x3fc4   :  { %10644 = vsyncpa [#allocation6], 1 }
0x3fc5   :  { %10645 = vsyncpa [#allocation9], 1 }
0x3fc6   :  { %10646 = vsyncpa [#allocation12], 1 }
0x3fc7   :  { %10647 = vsyncpa [#allocation15], 1 }
0x3fc8   :  { %10648 = vsyncpa [#allocation18], 1 }
0x3fc9   :  { %10649 = vsyncpa [#allocation21], 1 }
0x3fca   :  { %10650 = vsyncpa [#allocation24], 1 }
0x3fcb   :  { %10651 = vsyncpa [#allocation27], 1 }
0x3fcc   :  { %10652 = vsyncpa [#allocation30], 1 }
0x3fcd   :  { %10653 = vsyncpa [#allocation33], 1 }
0x3fce   :  { %10654 = vsyncpa [#allocation36], 1 }
0x3fcf   :  { %10655 = vsyncpa [#allocation39], 1 }
0x3fd0   :  { %10656 = vsyncpa [#allocation42], 1 }
0x3fd1   :  { %10657 = vsyncpa [#allocation45], 1 }
0x3fd2   :  { %10658 = vsyncpa [#allocation48], 1 }
0x3fd3   :  { %10659 = vsyncpa [#allocation51], 1 }
0x3fd4   :  { %10660 = vsyncpa [#allocation54], 1 }
0x3fd5   :  { %10661 = vsyncpa [#allocation4], 1 }

</bundles_post_ra>
